<compile_context>
chip_gen: v6e
topology: v6e:2x2x1
jax: 0.10.0
libtpu: 0.0.40
codegen_flags: <defaults>
</compile_context>

<pallas_src>
import functools

import jax
import jax.numpy as jnp
import numpy as np
from jax.experimental import pallas as pl
from jax.experimental.pallas import tpu as pltpu

LANE = 128
IMGS_PER_BLOCK = 8  # >= 8 for sublane-aligned output blocks; raise (32-64) on v6e


# -----------------------------------------------------------------------------
# Fused kernel: conv-as-matmul -> ReLU -> global-avg-pool -> folded head.
# -----------------------------------------------------------------------------
def fused_kernel(patch_ref, w_ref, b_ref, weff_ref, beff_ref, out_ref, *,
                 imgs, hw):
    # patch_ref: (imgs*hw, Kp) bf16    w_ref: (Kp, 512) bf16   b_ref: (1, 512) f32
    # weff_ref:  (512, Np)     f32     beff_ref: (1, Np) f32   out_ref: (imgs, Np) f32
    y = jnp.dot(patch_ref[...], w_ref[...], preferred_element_type=jnp.float32)
    y = jnp.maximum(y + b_ref[...], 0.0)                       # bias+ReLU once, f32
    # Global average pool over the hw spatial positions of each image.
    feats = jnp.mean(y.reshape(imgs, hw, y.shape[-1]), axis=1)  # (imgs, 512)
    # Folded head: projection -> attention(V) -> output proj -> classifier.
    out_ref[...] = (
        jnp.dot(feats, weff_ref[...], preferred_element_type=jnp.float32)
        + beff_ref[...]
    )


def fused_forward_pallas(patches, conv_w, conv_b, w_eff, b_eff, *, imgs, hw):
    padded_b = patches.shape[0] // hw
    kp = patches.shape[1]
    feat_dim = conv_w.shape[1]
    n_out = w_eff.shape[1]
    return pl.pallas_call(
        functools.partial(fused_kernel, imgs=imgs, hw=hw),
        out_shape=jax.ShapeDtypeStruct((padded_b, n_out), jnp.float32),
        grid_spec=pltpu.PrefetchScalarGridSpec(
            num_scalar_prefetch=0,
            grid=(padded_b // imgs,),
            in_specs=[
                pl.BlockSpec((imgs * hw, kp), lambda g: (g, 0)),
                pl.BlockSpec((kp, feat_dim), lambda g: (0, 0)),
                pl.BlockSpec((1, feat_dim), lambda g: (0, 0)),
                pl.BlockSpec((feat_dim, n_out), lambda g: (0, 0)),
                pl.BlockSpec((1, n_out), lambda g: (0, 0)),
            ],
            out_specs=pl.BlockSpec((imgs, n_out), lambda g: (g, 0)),
        ),
        compiler_params=pltpu.CompilerParams(
            dimension_semantics=("parallel",),  # batch axis -> megacore on v7x
        ),
    )(patches, conv_w, conv_b, w_eff, b_eff)


# -----------------------------------------------------------------------------
# Glue: im2col (3x3, pad=1, stride=1) in plain JAX (fused into the same jit).
# -----------------------------------------------------------------------------
def im2col_3x3(x):
    B, C, H, W = x.shape
    xp = jnp.pad(x, ((0, 0), (0, 0), (1, 1), (1, 1)))
    cols = [xp[:, :, dh:dh + H, dw:dw + W] for dh in range(3) for dw in range(3)]
    patches = jnp.stack(cols, axis=2)                       # [B, C, 9, H, W]
    patches = patches.transpose(0, 3, 4, 1, 2)              # [B, H, W, C, 9]
    return patches.reshape(B * H * W, C * 9)


def fold_head(params):
    # seq_len == 1 => attention output == V projection; everything downstream
    # of the pooled features is affine => fold into one matmul + bias.
    w_eff = params["wp"] @ params["wv"] @ params["wo"] @ params["wc"]
    b_eff = (((params["bp"] @ params["wv"] + params["bv"]) @ params["wo"]
              + params["bo"]) @ params["wc"] + params["bc"])
    return w_eff, b_eff


@functools.partial(jax.jit, static_argnames=("imgs_per_block",))
def forward(x, params, imgs_per_block=IMGS_PER_BLOCK):
    B, C, H, W = x.shape
    hw = H * W
    num_classes = params["wc"].shape[1]

    # im2col + K padding (27 -> 32) for aligned vector loads / clean MXU feed.
    patches = im2col_3x3(x)                                  # (B*hw, C*9)
    k = C * 9
    kp = ((k + 31) // 32) * 32
    patches = jnp.pad(patches, ((0, 0), (0, kp - k)))
    conv_w = jnp.pad(params["conv_w"], ((0, kp - k), (0, 0)))

    # Pad the batch so every grid step processes imgs_per_block images.
    padded_b = ((B + imgs_per_block - 1) // imgs_per_block) * imgs_per_block
    patches = jnp.pad(patches, ((0, (padded_b - B) * hw), (0, 0)))

    # bf16 inputs for the dominant matmul (halves DMA bytes; f32 accumulation).
    patches = patches.astype(jnp.bfloat16)
    conv_w = conv_w.astype(jnp.bfloat16)

    # Fold the head; pad classifier output to a lane-dense multiple of 128.
    w_eff, b_eff = fold_head(params)
    n_out = ((num_classes + LANE - 1) // LANE) * LANE
    w_eff = jnp.pad(w_eff, ((0, 0), (0, n_out - num_classes)))
    b_eff = jnp.pad(b_eff, ((0, 0), (0, n_out - num_classes)))

    logits_padded = fused_forward_pallas(
        patches, conv_w, params["conv_b"], w_eff, b_eff,
        imgs=imgs_per_block, hw=hw)
    return logits_padded[:B, :num_classes]


# -----------------------------------------------------------------------------
# Parameter init (deterministic, PyTorch-Linear-style uniform init).
# -----------------------------------------------------------------------------
def init_params(key, c_in, embed_size, num_heads, num_classes, feat_dim=512):
    def linear(k, fan_in, fan_out):
        bound = 1.0 / np.sqrt(fan_in)
        kw, kb = jax.random.split(k)
        w = jax.random.uniform(kw, (fan_in, fan_out), jnp.float32, -bound, bound)
        b = jax.random.uniform(kb, (1, fan_out), jnp.float32, -bound, bound)
        return w, b

    ks = jax.random.split(key, 8)
    conv_w, conv_b = linear(ks[0], c_in * 9, feat_dim)
    wp, bp = linear(ks[1], feat_dim, embed_size)
    wq, bq = linear(ks[2], embed_size, embed_size)   # dead with seq_len == 1
    wk, bk = linear(ks[3], embed_size, embed_size)   # dead with seq_len == 1
    wv, bv = linear(ks[4], embed_size, embed_size)
    wo, bo = linear(ks[5], embed_size, embed_size)
    wc, bc = linear(ks[6], embed_size, num_classes)
    return dict(conv_w=conv_w, conv_b=conv_b,
                wp=wp, bp=bp, wq=wq, bq=bq, wk=wk, bk=bk, wv=wv, bv=bv,
                wo=wo, bo=bo, wc=wc, bc=bc)


# -----------------------------------------------------------------------------
# Pure-JAX reference (unfused head) for correctness.
# -----------------------------------------------------------------------------
def forward_reference(x, params):
    B, C, H, W = x.shape
    patches = im2col_3x3(x)
    # Match the kernel's bf16 inputs / f32 accumulation on the conv matmul.
    pb = patches.astype(jnp.bfloat16).astype(jnp.float32)
    wb = params["conv_w"].astype(jnp.bfloat16).astype(jnp.float32)
    y = jnp.maximum(pb @ wb + params["conv_b"], 0.0)
    feats = y.reshape(B, H * W, -1).mean(axis=1)
    xp = feats @ params["wp"] + params["bp"]
    v = xp @ params["wv"] + params["bv"]          # softmax over 1 key = identity
    attn_out = v @ params["wo"] + params["bo"]
    return attn_out @ params["wc"] + params["bc"]


if __name__ == "__main__":
    embed_size, num_heads, num_classes = 32, 4, 10
    B, C, H, W = 2, 3, 16, 16

    key = jax.random.PRNGKey(0)
    kx, kp = jax.random.split(key)
    x = jax.random.normal(kx, (B, C, H, W), dtype=jnp.float32)
    params = init_params(kp, C, embed_size, num_heads, num_classes)

    logits = jax.block_until_ready(forward(x, params))
    ref = jax.block_until_ready(forward_reference(x, params))

    np.testing.assert_allclose(np.asarray(logits), np.asarray(ref),
                               rtol=1e-2, atol=1e-2)
    assert logits.shape == (B, num_classes)
    print("KERNEL_OK")
</pallas_src>

<mosaic_0001>
module attributes {stable_mosaic.version = 11 : i64} {
  func.func @fused_kernel(%arg0: i32, %arg1: memref<2048x32xbf16, #tpu.memory_space<vmem>>, %arg2: memref<32x512xbf16, #tpu.memory_space<vmem>>, %arg3: memref<1x512xf32, #tpu.memory_space<vmem>>, %arg4: memref<512x128xf32, #tpu.memory_space<vmem>>, %arg5: memref<1x128xf32, #tpu.memory_space<vmem>>, %arg6: memref<8x128xf32, #tpu.memory_space<vmem>>) attributes {dimension_semantics = [#tpu.dimension_semantics<parallel>], iteration_bounds = array<i64: 1>, scalar_prefetch = 0 : i64, scratch_operands = 0 : i64, tpu.core_type = #tpu.core_type<tc>, window_params = [{transform_indices = @transform_0, window_bounds = array<i64: 2048, 32>}, {pipeline_mode = #tpu.pipeline_mode<synchronous>, transform_indices = @transform_1, window_bounds = array<i64: 32, 512>}, {pipeline_mode = #tpu.pipeline_mode<synchronous>, transform_indices = @transform_2, window_bounds = array<i64: 1, 512>}, {pipeline_mode = #tpu.pipeline_mode<synchronous>, transform_indices = @transform_3, window_bounds = array<i64: 512, 128>}, {pipeline_mode = #tpu.pipeline_mode<synchronous>, transform_indices = @transform_4, window_bounds = array<i64: 1, 128>}, {transform_indices = @transform_5, window_bounds = array<i64: 8, 128>}]} {
    %c0 = arith.constant 0 : index
    %c0_0 = arith.constant 0 : index
    %0 = vector.load %arg1[%c0, %c0_0] : memref<2048x32xbf16, #tpu.memory_space<vmem>>, vector<2048x32xbf16>
    %c0_1 = arith.constant 0 : index
    %c0_2 = arith.constant 0 : index
    %1 = vector.load %arg2[%c0_1, %c0_2] : memref<32x512xbf16, #tpu.memory_space<vmem>>, vector<32x512xbf16>
    %cst = arith.constant dense<0.000000e+00> : vector<2048x512xf32>
    %2 = tpu.matmul %0, %1, %cst {dimension_numbers = #tpu.dot_dimension_numbers<[1], [0], [0], [1], [0, 0, 1, 1], [], []>} : vector<2048x32xbf16>, vector<32x512xbf16>, vector<2048x512xf32> -> vector<2048x512xf32>
    %c0_3 = arith.constant 0 : index
    %c0_4 = arith.constant 0 : index
    %3 = vector.load %arg3[%c0_3, %c0_4] : memref<1x512xf32, #tpu.memory_space<vmem>>, vector<1x512xf32>
    %4 = vector.broadcast %3 : vector<1x512xf32> to vector<2048x512xf32>
    %5 = arith.addf %2, %4 : vector<2048x512xf32>
    %cst_5 = arith.constant 0.000000e+00 : f32
    %6 = vector.broadcast %cst_5 : f32 to vector<2048x512xf32>
    %7 = arith.maximumf %5, %6 : vector<2048x512xf32>
    %8 = vector.shape_cast %7 : vector<2048x512xf32> to vector<8x256x512xf32>
    %cst_6 = arith.constant dense<0.000000e+00> : vector<8x512xf32>
    %9 = vector.multi_reduction <add>, %8, %cst_6 [1] : vector<8x256x512xf32> to vector<8x512xf32>
    %cst_7 = arith.constant 2.560000e+02 : f32
    %10 = vector.broadcast %cst_7 : f32 to vector<8x512xf32>
    %11 = arith.divf %9, %10 : vector<8x512xf32>
    %c0_8 = arith.constant 0 : index
    %c0_9 = arith.constant 0 : index
    %12 = vector.load %arg4[%c0_8, %c0_9] : memref<512x128xf32, #tpu.memory_space<vmem>>, vector<512x128xf32>
    %cst_10 = arith.constant dense<0.000000e+00> : vector<8x128xf32>
    %13 = tpu.matmul %11, %12, %cst_10 {dimension_numbers = #tpu.dot_dimension_numbers<[1], [0], [0], [1], [0, 0, 1, 1], [], []>} : vector<8x512xf32>, vector<512x128xf32>, vector<8x128xf32> -> vector<8x128xf32>
    %c0_11 = arith.constant 0 : index
    %c0_12 = arith.constant 0 : index
    %14 = vector.load %arg5[%c0_11, %c0_12] : memref<1x128xf32, #tpu.memory_space<vmem>>, vector<1x128xf32>
    %15 = vector.broadcast %14 : vector<1x128xf32> to vector<8x128xf32>
    %16 = arith.addf %13, %15 : vector<8x128xf32>
    %c0_13 = arith.constant 0 : index
    %c0_14 = arith.constant 0 : index
    %17 = vector.load %arg6[%c0_13, %c0_14] : memref<8x128xf32, #tpu.memory_space<vmem>>, vector<8x128xf32>
    tpu.vector_store %arg6[%c0_13, %c0_14], %16 {strides = array<i32>} : memref<8x128xf32, #tpu.memory_space<vmem>>, vector<8x128xf32>,
    return
  }
  func.func @transform_0(%arg0: i32) -> (i32, i32) {
    %c0_i32 = arith.constant 0 : i32
    %c0_i32_0 = arith.constant 0 : i32
    return %arg0, %c0_i32 : i32, i32
  }
  func.func @transform_1(%arg0: i32) -> (i32, i32) {
    %c0_i32 = arith.constant 0 : i32
    %c0_i32_0 = arith.constant 0 : i32
    %c0_i32_1 = arith.constant 0 : i32
    return %c0_i32, %c0_i32_0 : i32, i32
  }
  func.func @transform_2(%arg0: i32) -> (i32, i32) {
    %c0_i32 = arith.constant 0 : i32
    %c0_i32_0 = arith.constant 0 : i32
    %c0_i32_1 = arith.constant 0 : i32
    return %c0_i32, %c0_i32_0 : i32, i32
  }
  func.func @transform_3(%arg0: i32) -> (i32, i32) {
    %c0_i32 = arith.constant 0 : i32
    %c0_i32_0 = arith.constant 0 : i32
    %c0_i32_1 = arith.constant 0 : i32
    return %c0_i32, %c0_i32_0 : i32, i32
  }
  func.func @transform_4(%arg0: i32) -> (i32, i32) {
    %c0_i32 = arith.constant 0 : i32
    %c0_i32_0 = arith.constant 0 : i32
    %c0_i32_1 = arith.constant 0 : i32
    return %c0_i32, %c0_i32_0 : i32, i32
  }
  func.func @transform_5(%arg0: i32) -> (i32, i32) {
    %c0_i32 = arith.constant 0 : i32
    %c0_i32_0 = arith.constant 0 : i32
    return %arg0, %c0_i32 : i32, i32
  }
}

</mosaic_0001>

<bundles_post_ra>
// kernel: forward.1
= control target key start
LH: loop header
LB: loop body
LE: loop exit
PB: predicated region body
PF: predicated region fallthrough
CT: control target
= control target key end

     0   :  { %v7130_v1 = vmov 0   ;;  %vm987_vm0 = vcmask 261120   ;;  %v287_v40 = vlaneseq  ;;  %vm6342_vm1 = vcmask 1041409   ;;  %s9674_s1 = inlined_call_operand.vmem [shape: bf16[32,512], index: 1, kind: input, shape index: {}]   ;;  %s9675_s0 = inlined_call_operand.vmem [shape: bf16[2048,32], index: 0, kind: input, shape index: {}]   ;;  %s9676_s3 = inlined_call_operand.vmem [shape: f32[512,128], index: 3, kind: input, shape index: {}]   ;;  %s9677_s2 = inlined_call_operand.vmem [shape: f32[1,512], index: 2, kind: input, shape index: {}]   ;;  %s9678_s4 = inlined_call_operand.vmem [shape: f32[1,128], index: 4, kind: input, shape index: {}]   ;;  %s9679_s5 = inlined_call_operand.vmem [shape: f32[8,128], index: 5, kind: output, shape index: {}]  }
   0x1   :  { %v6990_v0 = vld [vmem:[%s9674_s1 + $0x24] ss:$16 sps:$4 sm:$0xff]   ;;  %1404 = vmatprep.mubr.bf16.mxu0 %v7130_v1  ;;  %2717 = vmatprep.mubr.bf16.mxu1 %v7130_v1  ;;  %v6992_v2 = vld [vmem:[%s9674_s1 + $0x2c] ss:$16 sps:$4 sm:$0xff]   ;;  %v6994_v3 = vld [vmem:[%s9674_s1 + $0x20] ss:$16 sps:$4 sm:$0xff]  }
   0x2   :  { %1384 = vmatprep.subr.bf16.mxu0 %v6990_v0  ;;  %v6995_v4 = vld [vmem:[%s9674_s1 + $0x28] ss:$16 sps:$4 sm:$0xff]   ;;  %2697 = vmatprep.subr.bf16.mxu1 %v6992_v2  ;;  %v6996_v5 = vld [vmem:[%s9674_s1 + $0x4] ss:$16 sps:$4 sm:$0xff]   ;;  %v6998_v6 = vld [vmem:[%s9674_s1 + $0xc] ss:$16 sps:$4 sm:$0xff]  }
   0x3   :  { %1385 = vmatpush1.bf16.msra.mxu0 %v6994_v3  ;;  %2698 = vmatpush1.bf16.msra.mxu1 %v6995_v4  ;;  %v7000_v7 = vld [vmem:[%s9674_s1] ss:$16 sps:$4 sm:$0xff]   ;;  %v7001_v8 = vld [vmem:[%s9674_s1 + $0x8] ss:$16 sps:$4 sm:$0xff]   ;;  %v288_v42 = vshrl.u32 %v287_v40, 7  ;;  %vm6344_vm2 = vcmask 1042434  }
   0x4   :  { %1386 = vmatprep.subr.bf16.mxu0 %v6996_v5  ;;  %2699 = vmatprep.subr.bf16.mxu1 %v6998_v6  ;;  %v7002_v9 = vld [vmem:[%s9675_s0] sm:$0xff]   ;;  %v7003_v10 = vld [vmem:[%s9675_s0 + $0x8] sm:$0xff]   ;;  %v7004_v11 = vld [vmem:[%s9675_s0 + $0x10] sm:$0xff]   ;;  %vm6346_vm3 = vcmask 1043459   ;;  %vm6348_vm4 = vcmask 1044484   ;;  %vm6350_vm5 = vcmask 1045509  }
   0x5   :  { %v7005_v12 = vld [vmem:[%s9675_s0 + $0x18] sm:$0xff]   ;;  %v7006_v13 = vld [vmem:[%s9675_s0 + $0x20] sm:$0xff]   ;;  %v7007_v14 = vld [vmem:[%s9675_s0 + $0x28] sm:$0xff]   ;;  %v289_v43 = vsub.s32 0, %v288_v42  ;;  %v297_v44 = vsub.s32 2, %v288_v42  ;;  %v293_v47 = vsub.s32 1, %v288_v42 }
   0x6   :  { %v7008_v15 = vld [vmem:[%s9675_s0 + $0x30] sm:$0xff]   ;;  %v7009_v16 = vld [vmem:[%s9675_s0 + $0x38] sm:$0xff]   ;;  %v7010_v17 = vld [vmem:[%s9675_s0 + $0x40] sm:$0xff]   ;;  %v301_v48 = vsub.s32 3, %v288_v42  ;;  %vm6352_vm6 = vcmask 1046534   ;;  %vm6354_vm7 = vcmask 1047559  }
   0x7   :  { %1387 = vmatpush1.bf16.msra.mxu0 %v7000_v7  ;;  %2700 = vmatpush1.bf16.msra.mxu1 %v7001_v8  ;;  %v7011_v18 = vld [vmem:[%s9675_s0 + $0x48] sm:$0xff]   ;;  %v7012_v19 = vld [vmem:[%s9675_s0 + $0x50] sm:$0xff]   ;;  %v7013_v20 = vld [vmem:[%s9675_s0 + $0x58] sm:$0xff]  }
   0x8   :  { %v6270_v21 = vld [vmem:[%s9676_s3 + $0xf8] sm:$0xff]  ;;  %v7014_v24 = vld [vmem:[%s9675_s0 + $0x60] sm:$0xff]   ;;  %v7015_v26 = vld [vmem:[%s9675_s0 + $0x68] sm:$0xff]  }
   0x9   :  { %v6254_v22 = vld [vmem:[%s9676_s3 + $0x78] sm:$0xff]  ;;  %6919 = vmatprep.subr.mxu0 %v6270_v21  ;;  %v7016_v27 = vld [vmem:[%s9675_s0 + $0x70] sm:$0xff]   ;;  %v7018_v29 = vld [vmem:[%s9675_s0 + $0x80] sm:$0xff]  }
   0xa   :  { %6662 = vmatmul.mubr.msk.bf16.vlgmr.msra.gmra.mxu0 %vm987_vm0, %v7002_v9  ;;  %6790 = vmatmul.mubr.msk.bf16.vlgmr.msra.gmra.mxu1 %vm987_vm0, %v7002_v9  ;;  %v6302_v23 = vld [vmem:[%s9676_s3 + $0x1f8] sm:$0xff]  ;;  %v7019_v30 = vld [vmem:[%s9675_s0 + $0x88] sm:$0xff]   ;;  %v7020_v31 = vld [vmem:[%s9675_s0 + $0x90] sm:$0xff]  }
   0xb   :  { %1414 = vmatprep.mubr.bf16.mxu0 %v7130_v1  ;;  %2727 = vmatprep.mubr.bf16.mxu1 %v7130_v1  ;;  %v6286_v25 = vld [vmem:[%s9676_s3 + $0x178] sm:$0xff]  ;;  %v6269_v33 = vld [vmem:[%s9676_s3 + $0xf0] sm:$0xff]  ;;  %v7022_v35 = vld [vmem:[%s9675_s0 + $0xa0] sm:$0xff]  }
   0xc   :  { %6954 = vmatprep.subr.mxu1 %v6302_v23  ;;  %6920 = vmatpush3.msra.mxu0 %v6254_v22  ;;  %v7017_v28 = vld [vmem:[%s9675_s0 + $0x78] sm:$0xff]   ;;  %v6253_v34 = vld [vmem:[%s9676_s3 + $0x70] sm:$0xff]  ;;  %v7023_v38 = vld [vmem:[%s9675_s0 + $0xa8] sm:$0xff]  }
   0xd   :  { %6955 = vmatpush3.msra.mxu1 %v6286_v25  ;;  %v7021_v32 = vld [vmem:[%s9675_s0 + $0x98] sm:$0xff]   ;;  %6921 = vmatprep.subr.mxu0 %v6269_v33  ;;  %v6301_v36 = vld [vmem:[%s9676_s3 + $0x1f0] sm:$0xff]  ;;  %v285_v45 = vld [vmem:[%s9677_s2] sm:$0xf] }
   0xe   :  { %6922 = vmatpush3.msra.mxu0 %v6253_v34  ;;  %v6285_v37 = vld [vmem:[%s9676_s3 + $0x170] sm:$0xff]  ;;  %6956 = vmatprep.subr.mxu1 %v6301_v36  ;;  %v7025_v41 = vld [vmem:[%s9675_s0 + $0xb8] sm:$0xff]   ;;  %v7026_v46 = vld [vmem:[%s9675_s0 + $0xc0] sm:$0xff]   ;;  %v7385_v49 = vrot.slane %v285_v45, %v289_v43  ;;  %v7387_v50 = vrot.slane %v285_v45, %v297_v44  ;;  %v7391_v53 = vrot.slane %v285_v45, %v293_v47 }
   0xf   :  { %6957 = vmatpush3.msra.mxu1 %v6285_v37  ;;  %v7024_v39 = vld [vmem:[%s9675_s0 + $0xb0] sm:$0xff]   ;;  %v7393_v54 = vrot.slane %v285_v45, %v301_v48  ;;  %v7027_v63 = vld [vmem:[%s9675_s0 + $0xc8] sm:$0xff]  }
  0x12   :  { %6663 = vmatmul.mubr.msk.bf16.gmra.mxu0 %vm987_vm0, %v7003_v10  ;;  %6791 = vmatmul.mubr.msk.bf16.gmra.mxu1 %vm987_vm0, %v7003_v10 }
  0x13   :  { %1424 = vmatprep.mubr.bf16.mxu0 %v7130_v1  ;;  %2737 = vmatprep.mubr.bf16.mxu1 %v7130_v1 }
  0x1a   :  { %6664 = vmatmul.mubr.msk.bf16.gmra.mxu0 %vm987_vm0, %v7004_v11  ;;  %6792 = vmatmul.mubr.msk.bf16.gmra.mxu1 %vm987_vm0, %v7004_v11 }
  0x1b   :  { %1434 = vmatprep.mubr.bf16.mxu0 %v7130_v1  ;;  %2747 = vmatprep.mubr.bf16.mxu1 %v7130_v1 }
  0x22   :  { %6665 = vmatmul.mubr.msk.bf16.gmra.mxu0 %vm987_vm0, %v7005_v12  ;;  %6793 = vmatmul.mubr.msk.bf16.gmra.mxu1 %vm987_vm0, %v7005_v12 }
  0x23   :  { %1444 = vmatprep.mubr.bf16.mxu0 %v7130_v1  ;;  %2757 = vmatprep.mubr.bf16.mxu1 %v7130_v1 }
  0x2a   :  { %6666 = vmatmul.mubr.msk.bf16.gmra.mxu0 %vm987_vm0, %v7006_v13  ;;  %6794 = vmatmul.mubr.msk.bf16.gmra.mxu1 %vm987_vm0, %v7006_v13 }
  0x2b   :  { %1454 = vmatprep.mubr.bf16.mxu0 %v7130_v1  ;;  %2767 = vmatprep.mubr.bf16.mxu1 %v7130_v1 }
  0x32   :  { %6667 = vmatmul.mubr.msk.bf16.gmra.mxu0 %vm987_vm0, %v7007_v14  ;;  %6795 = vmatmul.mubr.msk.bf16.gmra.mxu1 %vm987_vm0, %v7007_v14 }
  0x33   :  { %1464 = vmatprep.mubr.bf16.mxu0 %v7130_v1  ;;  %2777 = vmatprep.mubr.bf16.mxu1 %v7130_v1 }
  0x3a   :  { %6668 = vmatmul.mubr.msk.bf16.gmra.mxu0 %vm987_vm0, %v7008_v15  ;;  %6796 = vmatmul.mubr.msk.bf16.gmra.mxu1 %vm987_vm0, %v7008_v15 }
  0x3b   :  { %1474 = vmatprep.mubr.bf16.mxu0 %v7130_v1  ;;  %2787 = vmatprep.mubr.bf16.mxu1 %v7130_v1 }
  0x42   :  { %6669 = vmatmul.mubr.msk.bf16.gmra.mxu0 %vm987_vm0, %v7009_v16  ;;  %6797 = vmatmul.mubr.msk.bf16.gmra.mxu1 %vm987_vm0, %v7009_v16 }
  0x43   :  { %1484 = vmatprep.mubr.bf16.mxu0 %v7130_v1  ;;  %2797 = vmatprep.mubr.bf16.mxu1 %v7130_v1 }
  0x4a   :  { %6670 = vmatmul.mubr.msk.bf16.gmra.mxu0 %vm987_vm0, %v7010_v17  ;;  %6798 = vmatmul.mubr.msk.bf16.gmra.mxu1 %vm987_vm0, %v7010_v17 }
  0x4b   :  { %1494 = vmatprep.mubr.bf16.mxu0 %v7130_v1  ;;  %2807 = vmatprep.mubr.bf16.mxu1 %v7130_v1 }
  0x52   :  { %6671 = vmatmul.mubr.msk.bf16.gmra.mxu0 %vm987_vm0, %v7011_v18  ;;  %6799 = vmatmul.mubr.msk.bf16.gmra.mxu1 %vm987_vm0, %v7011_v18 }
  0x53   :  { %1504 = vmatprep.mubr.bf16.mxu0 %v7130_v1  ;;  %2817 = vmatprep.mubr.bf16.mxu1 %v7130_v1 }
  0x5a   :  { %6672 = vmatmul.mubr.msk.bf16.gmra.mxu0 %vm987_vm0, %v7012_v19  ;;  %6800 = vmatmul.mubr.msk.bf16.gmra.mxu1 %vm987_vm0, %v7012_v19 }
  0x5b   :  { %1514 = vmatprep.mubr.bf16.mxu0 %v7130_v1  ;;  %2827 = vmatprep.mubr.bf16.mxu1 %v7130_v1 }
  0x62   :  { %6673 = vmatmul.mubr.msk.bf16.gmra.mxu0 %vm987_vm0, %v7013_v20  ;;  %6801 = vmatmul.mubr.msk.bf16.gmra.mxu1 %vm987_vm0, %v7013_v20 }
  0x63   :  { %1524 = vmatprep.mubr.bf16.mxu0 %v7130_v1  ;;  %2837 = vmatprep.mubr.bf16.mxu1 %v7130_v1 }
  0x6a   :  { %6674 = vmatmul.mubr.msk.bf16.gmra.mxu0 %vm987_vm0, %v7014_v24  ;;  %6802 = vmatmul.mubr.msk.bf16.gmra.mxu1 %vm987_vm0, %v7014_v24 }
  0x6b   :  { %1534 = vmatprep.mubr.bf16.mxu0 %v7130_v1  ;;  %2847 = vmatprep.mubr.bf16.mxu1 %v7130_v1 }
  0x72   :  { %6675 = vmatmul.mubr.msk.bf16.gmra.mxu0 %vm987_vm0, %v7015_v26  ;;  %6803 = vmatmul.mubr.msk.bf16.gmra.mxu1 %vm987_vm0, %v7015_v26 }
  0x73   :  { %1544 = vmatprep.mubr.bf16.mxu0 %v7130_v1  ;;  %2857 = vmatprep.mubr.bf16.mxu1 %v7130_v1 }
  0x7a   :  { %6676 = vmatmul.mubr.msk.bf16.gmra.mxu0 %vm987_vm0, %v7016_v27  ;;  %6804 = vmatmul.mubr.msk.bf16.gmra.mxu1 %vm987_vm0, %v7016_v27 }
  0x7b   :  { %1554 = vmatprep.mubr.bf16.mxu0 %v7130_v1  ;;  %2867 = vmatprep.mubr.bf16.mxu1 %v7130_v1 }
  0x82   :  { %6677 = vmatmul.mubr.msk.bf16.gmra.mxu0 %vm987_vm0, %v7017_v28  ;;  %6805 = vmatmul.mubr.msk.bf16.gmra.mxu1 %vm987_vm0, %v7017_v28 }
  0x83   :  { %1564 = vmatprep.mubr.bf16.mxu0 %v7130_v1  ;;  %2877 = vmatprep.mubr.bf16.mxu1 %v7130_v1 }
  0x8a   :  { %6678 = vmatmul.mubr.msk.bf16.gmra.mxu0 %vm987_vm0, %v7018_v29  ;;  %6806 = vmatmul.mubr.msk.bf16.gmra.mxu1 %vm987_vm0, %v7018_v29 }
  0x8b   :  { %1574 = vmatprep.mubr.bf16.mxu0 %v7130_v1  ;;  %2887 = vmatprep.mubr.bf16.mxu1 %v7130_v1 }
  0x92   :  { %6679 = vmatmul.mubr.msk.bf16.gmra.mxu0 %vm987_vm0, %v7019_v30  ;;  %6807 = vmatmul.mubr.msk.bf16.gmra.mxu1 %vm987_vm0, %v7019_v30 }
  0x93   :  { %1584 = vmatprep.mubr.bf16.mxu0 %v7130_v1  ;;  %2897 = vmatprep.mubr.bf16.mxu1 %v7130_v1 }
  0x9a   :  { %6680 = vmatmul.mubr.msk.bf16.gmra.mxu0 %vm987_vm0, %v7020_v31  ;;  %6808 = vmatmul.mubr.msk.bf16.gmra.mxu1 %vm987_vm0, %v7020_v31  ;;  %v7028_v31 = vld [vmem:[%s9675_s0 + $0xd0] sm:$0xff]  }
  0x9b   :  { %1594 = vmatprep.mubr.bf16.mxu0 %v7130_v1  ;;  %2907 = vmatprep.mubr.bf16.mxu1 %v7130_v1 }
  0xa2   :  { %6681 = vmatmul.mubr.msk.bf16.gmra.mxu0 %vm987_vm0, %v7021_v32  ;;  %6809 = vmatmul.mubr.msk.bf16.gmra.mxu1 %vm987_vm0, %v7021_v32 }
  0xa3   :  { %1604 = vmatprep.mubr.bf16.mxu0 %v7130_v1  ;;  %2917 = vmatprep.mubr.bf16.mxu1 %v7130_v1 }
  0xaa   :  { %6682 = vmatmul.mubr.msk.bf16.gmra.mxu0 %vm987_vm0, %v7022_v35  ;;  %6810 = vmatmul.mubr.msk.bf16.gmra.mxu1 %vm987_vm0, %v7022_v35 }
  0xab   :  { %1614 = vmatprep.mubr.bf16.mxu0 %v7130_v1  ;;  %2927 = vmatprep.mubr.bf16.mxu1 %v7130_v1 }
  0xb2   :  { %6683 = vmatmul.mubr.msk.bf16.gmra.mxu0 %vm987_vm0, %v7023_v38  ;;  %6811 = vmatmul.mubr.msk.bf16.gmra.mxu1 %vm987_vm0, %v7023_v38 }
  0xb3   :  { %1624 = vmatprep.mubr.bf16.mxu0 %v7130_v1  ;;  %2937 = vmatprep.mubr.bf16.mxu1 %v7130_v1 }
  0xba   :  { %6684 = vmatmul.mubr.msk.bf16.gmra.mxu0 %vm987_vm0, %v7024_v39  ;;  %6812 = vmatmul.mubr.msk.bf16.gmra.mxu1 %vm987_vm0, %v7024_v39 }
  0xbb   :  { %1634 = vmatprep.mubr.bf16.mxu0 %v7130_v1  ;;  %2947 = vmatprep.mubr.bf16.mxu1 %v7130_v1 }
  0xc2   :  { %6685 = vmatmul.mubr.msk.bf16.gmra.mxu0 %vm987_vm0, %v7025_v41  ;;  %6813 = vmatmul.mubr.msk.bf16.gmra.mxu1 %vm987_vm0, %v7025_v41 }
  0xc3   :  { %1644 = vmatprep.mubr.bf16.mxu0 %v7130_v1  ;;  %2957 = vmatprep.mubr.bf16.mxu1 %v7130_v1 }
  0xca   :  { %v1406_v51 = vpop.f32.mrf.mxu0  ;;  %6686 = vmatmul.mubr.msk.bf16.gmra.mxu0 %vm987_vm0, %v7026_v46  ;;  %v2719_v52 = vpop.f32.mrf.mxu1  ;;  %6814 = vmatmul.mubr.msk.bf16.gmra.mxu1 %vm987_vm0, %v7026_v46 }
  0xcb   :  { %1654 = vmatprep.mubr.bf16.mxu0 %v7130_v1  ;;  %2967 = vmatprep.mubr.bf16.mxu1 %v7130_v1  ;;  %v1407_v55 = vadd.f32 %v1406_v51, %v7385_v49  ;;  %v2720_v56 = vadd.f32 %v2719_v52, %v7387_v50 }
  0xcc   :  { %v1408_v57 = vpop.f32.mrf.mxu0  ;;  %v2721_v58 = vpop.f32.mrf.mxu1 }
  0xcd   :  { %v1409_v59 = vadd.f32 %v1408_v57, %v7391_v53  ;;  %v2722_v60 = vadd.f32 %v2721_v58, %v7393_v54  ;;  %v3998_v3 = vmax.f32 %v1407_v55, 0.0  ;;  %v4000_v4 = vmax.f32 %v2720_v56, 0.0 }
  0xce   :  { %v1410_v61 = vpop.f32.mrf.mxu0  ;;  %v2723_v62 = vpop.f32.mrf.mxu1 }
  0xcf   :  { %v1411_v0 = vadd.f32 %v1410_v61, %v7385_v49  ;;  %v2724_v2 = vadd.f32 %v2723_v62, %v7387_v50  ;;  %v3999_v11 = vmax.f32 %v1409_v59, 0.0  ;;  %v4001_v12 = vmax.f32 %v2722_v60, 0.0 }
  0xd0   :  { %v1412_v5 = vpop.f32.mrf.mxu0  ;;  %v2725_v6 = vpop.f32.mrf.mxu1 }
  0xd1   :  { %v4002_v7 = vmax.f32 %v1411_v0, 0.0  ;;  %v4004_v8 = vmax.f32 %v2724_v2, 0.0  ;;  %v1413_v9 = vadd.f32 %v1412_v5, %v7391_v53  ;;  %v2726_v10 = vadd.f32 %v2725_v6, %v7393_v54  ;;  %v7029_v5 = vld [vmem:[%s9675_s0 + $0xd8] sm:$0xff]  }
  0xd2   :  { %v1416_v13 = vpop.f32.mrf.mxu0  ;;  %6687 = vmatmul.mubr.msk.bf16.gmra.mxu0 %vm987_vm0, %v7027_v63  ;;  %v2729_v14 = vpop.f32.mrf.mxu1  ;;  %6815 = vmatmul.mubr.msk.bf16.gmra.mxu1 %vm987_vm0, %v7027_v63 }
  0xd3   :  { %v5022_v15 = vadd.f32 %v4002_v7, %v3998_v3  ;;  %v5096_v16 = vadd.f32 %v4004_v8, %v4000_v4  ;;  %v4003_v17 = vmax.f32 %v1413_v9, 0.0  ;;  %v4005_v18 = vmax.f32 %v2726_v10, 0.0  ;;  %1664 = vmatprep.mubr.bf16.mxu0 %v7130_v1  ;;  %2977 = vmatprep.mubr.bf16.mxu1 %v7130_v1 }
  0xd4   :  { %v1417_v19 = vadd.f32 %v1416_v13, %v7385_v49  ;;  %v2730_v20 = vadd.f32 %v2729_v14, %v7387_v50  ;;  %v1418_v21 = vpop.f32.mrf.mxu0  ;;  %v2731_v22 = vpop.f32.mrf.mxu1 }
  0xd5   :  { %v5059_v23 = vadd.f32 %v4003_v17, %v3999_v11  ;;  %v5133_v24 = vadd.f32 %v4005_v18, %v4001_v12  ;;  %v1419_v25 = vadd.f32 %v1418_v21, %v7391_v53  ;;  %v2732_v26 = vadd.f32 %v2731_v22, %v7393_v54 }
  0xd6   :  { %v4006_v27 = vmax.f32 %v1417_v19, 0.0  ;;  %v4008_v28 = vmax.f32 %v2730_v20, 0.0  ;;  %v1420_v29 = vpop.f32.mrf.mxu0  ;;  %v2733_v30 = vpop.f32.mrf.mxu1 }
  0xd7   :  { %v4007_v32 = vmax.f32 %v1419_v25, 0.0  ;;  %v4009_v33 = vmax.f32 %v2732_v26, 0.0  ;;  %v1421_v34 = vadd.f32 %v1420_v29, %v7385_v49  ;;  %v2734_v35 = vadd.f32 %v2733_v30, %v7387_v50 }
  0xd8   :  { %v5023_v36 = vadd.f32 %v5022_v15, %v4006_v27  ;;  %v5097_v37 = vadd.f32 %v5096_v16, %v4008_v28  ;;  %v1422_v38 = vpop.f32.mrf.mxu0  ;;  %v2735_v39 = vpop.f32.mrf.mxu1 }
  0xd9   :  { %v5060_v40 = vadd.f32 %v5059_v23, %v4007_v32  ;;  %v5134_v41 = vadd.f32 %v5133_v24, %v4009_v33  ;;  %v4010_v42 = vmax.f32 %v1421_v34, 0.0  ;;  %v4012_v43 = vmax.f32 %v2734_v35, 0.0  ;;  %v6268_v34 = vld [vmem:[%s9676_s3 + $0xe8] sm:$0xff] }
  0xda   :  { %v1423_v44 = vadd.f32 %v1422_v38, %v7391_v53  ;;  %v2736_v45 = vadd.f32 %v2735_v39, %v7393_v54  ;;  %v1426_v46 = vpop.f32.mrf.mxu0  ;;  %6688 = vmatmul.mubr.msk.bf16.gmra.mxu0 %vm987_vm0, %v7028_v31  ;;  %v2739_v47 = vpop.f32.mrf.mxu1  ;;  %6816 = vmatmul.mubr.msk.bf16.gmra.mxu1 %vm987_vm0, %v7028_v31  ;;  %v6252_v35 = vld [vmem:[%s9676_s3 + $0x68] sm:$0xff] }
  0xdb   :  { %v5024_v48 = vadd.f32 %v5023_v36, %v4010_v42  ;;  %v5098_v51 = vadd.f32 %v5097_v37, %v4012_v43  ;;  %v1427_v52 = vadd.f32 %v1426_v46, %v7385_v49  ;;  %v2740_v55 = vadd.f32 %v2739_v47, %v7387_v50  ;;  %1674 = vmatprep.mubr.bf16.mxu0 %v7130_v1  ;;  %v6284_v42 = vld [vmem:[%s9676_s3 + $0x168] sm:$0xff] }
  0xdc   :  { %v4011_v56 = vmax.f32 %v1423_v44, 0.0  ;;  %v4013_v57 = vmax.f32 %v2736_v45, 0.0  ;;  %v1428_v58 = vpop.f32.mrf.mxu0  ;;  %v2741_v59 = vpop.f32.mrf.mxu1  ;;  %2987 = vmatprep.mubr.bf16.mxu1 %v7130_v1  ;;  %6923 = vmatprep.subr.mxu0 %v6268_v34 }
  0xdd   :  { %v4014_v60 = vmax.f32 %v1427_v52, 0.0  ;;  %v4016_v61 = vmax.f32 %v2740_v55, 0.0  ;;  %v1429_v62 = vadd.f32 %v1428_v58, %v7391_v53  ;;  %v2742_v63 = vadd.f32 %v2741_v59, %v7393_v54  ;;  %6924 = vmatpush3.msra.mxu0 %v6252_v35 }
  0xde   :  { %v5061_v0 = vadd.f32 %v5060_v40, %v4011_v56  ;;  %v5135_v2 = vadd.f32 %v5134_v41, %v4013_v57  ;;  %v1430_v3 = vpop.f32.mrf.mxu0  ;;  %v2743_v4 = vpop.f32.mrf.mxu1  ;;  %v7030_v40 = vld [vmem:[%s9675_s0 + $0xe0] sm:$0xff]   ;;  %v6300_v41 = vld [vmem:[%s9676_s3 + $0x1e8] sm:$0xff] }
  0xdf   :  { %v5025_v6 = vadd.f32 %v5024_v48, %v4014_v60  ;;  %v5099_v7 = vadd.f32 %v5098_v51, %v4016_v61  ;;  %v4015_v8 = vmax.f32 %v1429_v62, 0.0  ;;  %v4017_v9 = vmax.f32 %v2742_v63, 0.0  ;;  %6958 = vmatprep.subr.mxu1 %v6300_v41 }
  0xe0   :  { %v1431_v10 = vadd.f32 %v1430_v3, %v7385_v49  ;;  %v2744_v11 = vadd.f32 %v2743_v4, %v7387_v50  ;;  %v1432_v12 = vpop.f32.mrf.mxu0  ;;  %v2745_v13 = vpop.f32.mrf.mxu1  ;;  %6959 = vmatpush3.msra.mxu1 %v6284_v42 }
  0xe1   :  { %v5062_v14 = vadd.f32 %v5061_v0, %v4015_v8  ;;  %v5136_v15 = vadd.f32 %v5135_v2, %v4017_v9  ;;  %v1433_v16 = vadd.f32 %v1432_v12, %v7391_v53  ;;  %v2746_v17 = vadd.f32 %v2745_v13, %v7393_v54 }
  0xe2   :  { %v4018_v18 = vmax.f32 %v1431_v10, 0.0  ;;  %v4020_v19 = vmax.f32 %v2744_v11, 0.0  ;;  %v1436_v20 = vpop.f32.mrf.mxu0  ;;  %6689 = vmatmul.mubr.msk.bf16.gmra.mxu0 %vm987_vm0, %v7029_v5  ;;  %v2749_v21 = vpop.f32.mrf.mxu1  ;;  %6817 = vmatmul.mubr.msk.bf16.gmra.mxu1 %vm987_vm0, %v7029_v5 }
  0xe3   :  { %v4019_v22 = vmax.f32 %v1433_v16, 0.0  ;;  %v4021_v23 = vmax.f32 %v2746_v17, 0.0  ;;  %v1437_v24 = vadd.f32 %v1436_v20, %v7385_v49  ;;  %v2750_v25 = vadd.f32 %v2749_v21, %v7387_v50  ;;  %1684 = vmatprep.mubr.bf16.mxu0 %v7130_v1  ;;  %2997 = vmatprep.mubr.bf16.mxu1 %v7130_v1  ;;  %v7031_v16 = vld [vmem:[%s9675_s0 + $0xe8] sm:$0xff]  }
  0xe4   :  { %v5026_v26 = vadd.f32 %v5025_v6, %v4018_v18  ;;  %v5100_v27 = vadd.f32 %v5099_v7, %v4020_v19  ;;  %v1438_v28 = vpop.f32.mrf.mxu0  ;;  %v2751_v29 = vpop.f32.mrf.mxu1 }
  0xe5   :  { %v5063_v30 = vadd.f32 %v5062_v14, %v4019_v22  ;;  %v5137_v31 = vadd.f32 %v5136_v15, %v4021_v23  ;;  %v4022_v32 = vmax.f32 %v1437_v24, 0.0  ;;  %v4024_v33 = vmax.f32 %v2750_v25, 0.0 }
  0xe6   :  { %v1439_v36 = vadd.f32 %v1438_v28, %v7391_v53  ;;  %v2752_v37 = vadd.f32 %v2751_v29, %v7393_v54  ;;  %v1440_v38 = vpop.f32.mrf.mxu0  ;;  %v2753_v39 = vpop.f32.mrf.mxu1 }
  0xe7   :  { %v5027_v43 = vadd.f32 %v5026_v26, %v4022_v32  ;;  %v5101_v44 = vadd.f32 %v5100_v27, %v4024_v33  ;;  %v1441_v45 = vadd.f32 %v1440_v38, %v7385_v49  ;;  %v2754_v46 = vadd.f32 %v2753_v39, %v7387_v50 }
  0xe8   :  { %v4023_v47 = vmax.f32 %v1439_v36, 0.0  ;;  %v4025_v48 = vmax.f32 %v2752_v37, 0.0  ;;  %v1442_v51 = vpop.f32.mrf.mxu0  ;;  %v2755_v52 = vpop.f32.mrf.mxu1 }
  0xe9   :  { %v4026_v55 = vmax.f32 %v1441_v45, 0.0  ;;  %v4028_v56 = vmax.f32 %v2754_v46, 0.0  ;;  %v1443_v57 = vadd.f32 %v1442_v51, %v7391_v53  ;;  %v2756_v58 = vadd.f32 %v2755_v52, %v7393_v54  ;;  %v7032_v51 = vld [vmem:[%s9675_s0 + $0xf0] sm:$0xff]  }
  0xea   :  { %v5064_v59 = vadd.f32 %v5063_v30, %v4023_v47  ;;  %v5138_v60 = vadd.f32 %v5137_v31, %v4025_v48  ;;  %v1446_v61 = vpop.f32.mrf.mxu0  ;;  %6690 = vmatmul.mubr.msk.bf16.gmra.mxu0 %vm987_vm0, %v7030_v40  ;;  %v2759_v62 = vpop.f32.mrf.mxu1  ;;  %6818 = vmatmul.mubr.msk.bf16.gmra.mxu1 %vm987_vm0, %v7030_v40 }
  0xeb   :  { %v5028_v63 = vadd.f32 %v5027_v43, %v4026_v55  ;;  %v5102_v0 = vadd.f32 %v5101_v44, %v4028_v56  ;;  %v4027_v2 = vmax.f32 %v1443_v57, 0.0  ;;  %v4029_v3 = vmax.f32 %v2756_v58, 0.0  ;;  %1694 = vmatprep.mubr.bf16.mxu0 %v7130_v1  ;;  %3007 = vmatprep.mubr.bf16.mxu1 %v7130_v1 }
  0xec   :  { %v1447_v4 = vadd.f32 %v1446_v61, %v7385_v49  ;;  %v2760_v5 = vadd.f32 %v2759_v62, %v7387_v50  ;;  %v1448_v6 = vpop.f32.mrf.mxu0  ;;  %v2761_v7 = vpop.f32.mrf.mxu1 }
  0xed   :  { %v5065_v8 = vadd.f32 %v5064_v59, %v4027_v2  ;;  %v5139_v9 = vadd.f32 %v5138_v60, %v4029_v3  ;;  %v1449_v10 = vadd.f32 %v1448_v6, %v7391_v53  ;;  %v2762_v11 = vadd.f32 %v2761_v7, %v7393_v54 }
  0xee   :  { %v4030_v12 = vmax.f32 %v1447_v4, 0.0  ;;  %v4032_v13 = vmax.f32 %v2760_v5, 0.0  ;;  %v1450_v14 = vpop.f32.mrf.mxu0  ;;  %v2763_v15 = vpop.f32.mrf.mxu1 }
  0xef   :  { %v4031_v17 = vmax.f32 %v1449_v10, 0.0  ;;  %v4033_v18 = vmax.f32 %v2762_v11, 0.0  ;;  %v1451_v19 = vadd.f32 %v1450_v14, %v7385_v49  ;;  %v2764_v20 = vadd.f32 %v2763_v15, %v7387_v50 }
  0xf0   :  { %v5029_v21 = vadd.f32 %v5028_v63, %v4030_v12  ;;  %v5103_v22 = vadd.f32 %v5102_v0, %v4032_v13  ;;  %v1452_v23 = vpop.f32.mrf.mxu0  ;;  %v2765_v24 = vpop.f32.mrf.mxu1 }
  0xf1   :  { %v5066_v25 = vadd.f32 %v5065_v8, %v4031_v17  ;;  %v5140_v26 = vadd.f32 %v5139_v9, %v4033_v18  ;;  %v4034_v27 = vmax.f32 %v1451_v19, 0.0  ;;  %v4036_v28 = vmax.f32 %v2764_v20, 0.0 }
  0xf2   :  { %v1453_v29 = vadd.f32 %v1452_v23, %v7391_v53  ;;  %v2766_v30 = vadd.f32 %v2765_v24, %v7393_v54  ;;  %v1456_v31 = vpop.f32.mrf.mxu0  ;;  %6691 = vmatmul.mubr.msk.bf16.gmra.mxu0 %vm987_vm0, %v7031_v16  ;;  %v2769_v32 = vpop.f32.mrf.mxu1  ;;  %6819 = vmatmul.mubr.msk.bf16.gmra.mxu1 %vm987_vm0, %v7031_v16  ;;  %v7033_v23 = vld [vmem:[%s9675_s0 + $0xf8] sm:$0xff]  }
  0xf3   :  { %v5030_v33 = vadd.f32 %v5029_v21, %v4034_v27  ;;  %v5104_v34 = vadd.f32 %v5103_v22, %v4036_v28  ;;  %v1457_v35 = vadd.f32 %v1456_v31, %v7385_v49  ;;  %v2770_v36 = vadd.f32 %v2769_v32, %v7387_v50  ;;  %1704 = vmatprep.mubr.bf16.mxu0 %v7130_v1 }
  0xf4   :  { %v4035_v37 = vmax.f32 %v1453_v29, 0.0  ;;  %v4037_v38 = vmax.f32 %v2766_v30, 0.0  ;;  %v1458_v39 = vpop.f32.mrf.mxu0  ;;  %v2771_v40 = vpop.f32.mrf.mxu1  ;;  %3017 = vmatprep.mubr.bf16.mxu1 %v7130_v1 }
  0xf5   :  { %v4038_v41 = vmax.f32 %v1457_v35, 0.0  ;;  %v4040_v42 = vmax.f32 %v2770_v36, 0.0  ;;  %v1459_v43 = vadd.f32 %v1458_v39, %v7391_v53  ;;  %v2772_v44 = vadd.f32 %v2771_v40, %v7393_v54 }
  0xf6   :  { %v5067_v45 = vadd.f32 %v5066_v25, %v4035_v37  ;;  %v5141_v46 = vadd.f32 %v5140_v26, %v4037_v38  ;;  %v1460_v47 = vpop.f32.mrf.mxu0  ;;  %v2773_v48 = vpop.f32.mrf.mxu1 }
  0xf7   :  { %v5031_v52 = vadd.f32 %v5030_v33, %v4038_v41  ;;  %v5105_v55 = vadd.f32 %v5104_v34, %v4040_v42  ;;  %v4039_v56 = vmax.f32 %v1459_v43, 0.0  ;;  %v4041_v57 = vmax.f32 %v2772_v44, 0.0 }
  0xf8   :  { %v1461_v58 = vadd.f32 %v1460_v47, %v7385_v49  ;;  %v2774_v59 = vadd.f32 %v2773_v48, %v7387_v50  ;;  %v1462_v60 = vpop.f32.mrf.mxu0  ;;  %v2775_v61 = vpop.f32.mrf.mxu1 }
  0xf9   :  { %v5068_v62 = vadd.f32 %v5067_v45, %v4039_v56  ;;  %v5142_v63 = vadd.f32 %v5141_v46, %v4041_v57  ;;  %v1463_v0 = vadd.f32 %v1462_v60, %v7391_v53  ;;  %v2776_v2 = vadd.f32 %v2775_v61, %v7393_v54  ;;  %v7034_v60 = vld [vmem:[%s9675_s0 + $0x100] sm:$0xff]  }
  0xfa   :  { %v4042_v3 = vmax.f32 %v1461_v58, 0.0  ;;  %v4044_v4 = vmax.f32 %v2774_v59, 0.0  ;;  %v1466_v5 = vpop.f32.mrf.mxu0  ;;  %6692 = vmatmul.mubr.msk.bf16.gmra.mxu0 %vm987_vm0, %v7032_v51  ;;  %v2779_v6 = vpop.f32.mrf.mxu1  ;;  %6820 = vmatmul.mubr.msk.bf16.gmra.mxu1 %vm987_vm0, %v7032_v51 }
  0xfb   :  { %v4043_v7 = vmax.f32 %v1463_v0, 0.0  ;;  %v4045_v8 = vmax.f32 %v2776_v2, 0.0  ;;  %v1467_v9 = vadd.f32 %v1466_v5, %v7385_v49  ;;  %v2780_v10 = vadd.f32 %v2779_v6, %v7387_v50  ;;  %1714 = vmatprep.mubr.bf16.mxu0 %v7130_v1  ;;  %3027 = vmatprep.mubr.bf16.mxu1 %v7130_v1 }
  0xfc   :  { %v5032_v11 = vadd.f32 %v5031_v52, %v4042_v3  ;;  %v5106_v12 = vadd.f32 %v5105_v55, %v4044_v4  ;;  %v1468_v13 = vpop.f32.mrf.mxu0  ;;  %v2781_v14 = vpop.f32.mrf.mxu1 }
  0xfd   :  { %v5069_v15 = vadd.f32 %v5068_v62, %v4043_v7  ;;  %v5143_v16 = vadd.f32 %v5142_v63, %v4045_v8  ;;  %v4046_v17 = vmax.f32 %v1467_v9, 0.0  ;;  %v4048_v18 = vmax.f32 %v2780_v10, 0.0 }
  0xfe   :  { %v1469_v19 = vadd.f32 %v1468_v13, %v7391_v53  ;;  %v2782_v20 = vadd.f32 %v2781_v14, %v7393_v54  ;;  %v1470_v21 = vpop.f32.mrf.mxu0  ;;  %v2783_v22 = vpop.f32.mrf.mxu1 }
  0xff   :  { %v5033_v24 = vadd.f32 %v5032_v11, %v4046_v17  ;;  %v5107_v25 = vadd.f32 %v5106_v12, %v4048_v18  ;;  %v1471_v26 = vadd.f32 %v1470_v21, %v7385_v49  ;;  %v2784_v27 = vadd.f32 %v2783_v22, %v7387_v50 }
 0x100   :  { %v4047_v28 = vmax.f32 %v1469_v19, 0.0  ;;  %v4049_v29 = vmax.f32 %v2782_v20, 0.0  ;;  %v1472_v30 = vpop.f32.mrf.mxu0  ;;  %v2785_v31 = vpop.f32.mrf.mxu1 }
 0x101   :  { %v4050_v32 = vmax.f32 %v1471_v26, 0.0  ;;  %v4052_v33 = vmax.f32 %v2784_v27, 0.0  ;;  %v1473_v34 = vadd.f32 %v1472_v30, %v7391_v53  ;;  %v2786_v35 = vadd.f32 %v2785_v31, %v7393_v54  ;;  %v7035_v30 = vld [vmem:[%s9675_s0 + $0x108] sm:$0xff]  }
 0x102   :  { %v5070_v36 = vadd.f32 %v5069_v15, %v4047_v28  ;;  %v5144_v37 = vadd.f32 %v5143_v16, %v4049_v29  ;;  %v1476_v38 = vpop.f32.mrf.mxu0  ;;  %6693 = vmatmul.mubr.msk.bf16.gmra.mxu0 %vm987_vm0, %v7033_v23  ;;  %v2789_v39 = vpop.f32.mrf.mxu1  ;;  %6821 = vmatmul.mubr.msk.bf16.gmra.mxu1 %vm987_vm0, %v7033_v23 }
 0x103   :  { %v5034_v40 = vadd.f32 %v5033_v24, %v4050_v32  ;;  %v5108_v41 = vadd.f32 %v5107_v25, %v4052_v33  ;;  %v4051_v42 = vmax.f32 %v1473_v34, 0.0  ;;  %v4053_v43 = vmax.f32 %v2786_v35, 0.0  ;;  %1724 = vmatprep.mubr.bf16.mxu0 %v7130_v1  ;;  %3037 = vmatprep.mubr.bf16.mxu1 %v7130_v1 }
 0x104   :  { %v1477_v44 = vadd.f32 %v1476_v38, %v7385_v49  ;;  %v2790_v45 = vadd.f32 %v2789_v39, %v7387_v50  ;;  %v1478_v46 = vpop.f32.mrf.mxu0  ;;  %v2791_v47 = vpop.f32.mrf.mxu1 }
 0x105   :  { %v5071_v48 = vadd.f32 %v5070_v36, %v4051_v42  ;;  %v5145_v51 = vadd.f32 %v5144_v37, %v4053_v43  ;;  %v1479_v52 = vadd.f32 %v1478_v46, %v7391_v53  ;;  %v2792_v55 = vadd.f32 %v2791_v47, %v7393_v54 }
 0x106   :  { %v4054_v56 = vmax.f32 %v1477_v44, 0.0  ;;  %v4056_v57 = vmax.f32 %v2790_v45, 0.0  ;;  %v1480_v58 = vpop.f32.mrf.mxu0  ;;  %v2793_v59 = vpop.f32.mrf.mxu1 }
 0x107   :  { %v4055_v61 = vmax.f32 %v1479_v52, 0.0  ;;  %v4057_v62 = vmax.f32 %v2792_v55, 0.0  ;;  %v1481_v63 = vadd.f32 %v1480_v58, %v7385_v49  ;;  %v2794_v0 = vadd.f32 %v2793_v59, %v7387_v50 }
 0x108   :  { %v5035_v2 = vadd.f32 %v5034_v40, %v4054_v56  ;;  %v5109_v3 = vadd.f32 %v5108_v41, %v4056_v57  ;;  %v1482_v4 = vpop.f32.mrf.mxu0  ;;  %v2795_v5 = vpop.f32.mrf.mxu1 }
 0x109   :  { %v5072_v6 = vadd.f32 %v5071_v48, %v4055_v61  ;;  %v5146_v7 = vadd.f32 %v5145_v51, %v4057_v62  ;;  %v4058_v8 = vmax.f32 %v1481_v63, 0.0  ;;  %v4060_v9 = vmax.f32 %v2794_v0, 0.0 }
 0x10a   :  { %v1483_v10 = vadd.f32 %v1482_v4, %v7391_v53  ;;  %v2796_v11 = vadd.f32 %v2795_v5, %v7393_v54  ;;  %v1486_v12 = vpop.f32.mrf.mxu0  ;;  %6694 = vmatmul.mubr.msk.bf16.gmra.mxu0 %vm987_vm0, %v7034_v60  ;;  %v2799_v13 = vpop.f32.mrf.mxu1  ;;  %6822 = vmatmul.mubr.msk.bf16.gmra.mxu1 %vm987_vm0, %v7034_v60  ;;  %v7036_v4 = vld [vmem:[%s9675_s0 + $0x110] sm:$0xff]  }
 0x10b   :  { %v5036_v14 = vadd.f32 %v5035_v2, %v4058_v8  ;;  %v5110_v15 = vadd.f32 %v5109_v3, %v4060_v9  ;;  %v1487_v16 = vadd.f32 %v1486_v12, %v7385_v49  ;;  %v2800_v17 = vadd.f32 %v2799_v13, %v7387_v50  ;;  %1734 = vmatprep.mubr.bf16.mxu0 %v7130_v1 }
 0x10c   :  { %v4059_v18 = vmax.f32 %v1483_v10, 0.0  ;;  %v4061_v19 = vmax.f32 %v2796_v11, 0.0  ;;  %v1488_v20 = vpop.f32.mrf.mxu0  ;;  %v2801_v21 = vpop.f32.mrf.mxu1  ;;  %3047 = vmatprep.mubr.bf16.mxu1 %v7130_v1 }
 0x10d   :  { %v4062_v22 = vmax.f32 %v1487_v16, 0.0  ;;  %v4064_v23 = vmax.f32 %v2800_v17, 0.0  ;;  %v1489_v24 = vadd.f32 %v1488_v20, %v7391_v53  ;;  %v2802_v25 = vadd.f32 %v2801_v21, %v7393_v54 }
 0x10e   :  { %v5073_v26 = vadd.f32 %v5072_v6, %v4059_v18  ;;  %v5147_v27 = vadd.f32 %v5146_v7, %v4061_v19  ;;  %v1490_v28 = vpop.f32.mrf.mxu0  ;;  %v2803_v29 = vpop.f32.mrf.mxu1 }
 0x10f   :  { %v5037_v31 = vadd.f32 %v5036_v14, %v4062_v22  ;;  %v5111_v32 = vadd.f32 %v5110_v15, %v4064_v23  ;;  %v4063_v33 = vmax.f32 %v1489_v24, 0.0  ;;  %v4065_v34 = vmax.f32 %v2802_v25, 0.0 }
 0x110   :  { %v1491_v35 = vadd.f32 %v1490_v28, %v7385_v49  ;;  %v2804_v36 = vadd.f32 %v2803_v29, %v7387_v50  ;;  %v1492_v37 = vpop.f32.mrf.mxu0  ;;  %v2805_v38 = vpop.f32.mrf.mxu1 }
 0x111   :  { %v5074_v39 = vadd.f32 %v5073_v26, %v4063_v33  ;;  %v5148_v40 = vadd.f32 %v5147_v27, %v4065_v34  ;;  %v1493_v41 = vadd.f32 %v1492_v37, %v7391_v53  ;;  %v2806_v42 = vadd.f32 %v2805_v38, %v7393_v54  ;;  %v7037_v37 = vld [vmem:[%s9675_s0 + $0x118] sm:$0xff]  }
 0x112   :  { %v4066_v43 = vmax.f32 %v1491_v35, 0.0  ;;  %v4068_v44 = vmax.f32 %v2804_v36, 0.0  ;;  %v1496_v45 = vpop.f32.mrf.mxu0  ;;  %6695 = vmatmul.mubr.msk.bf16.gmra.mxu0 %vm987_vm0, %v7035_v30  ;;  %v2809_v46 = vpop.f32.mrf.mxu1  ;;  %6823 = vmatmul.mubr.msk.bf16.gmra.mxu1 %vm987_vm0, %v7035_v30 }
 0x113   :  { %v4067_v47 = vmax.f32 %v1493_v41, 0.0  ;;  %v4069_v48 = vmax.f32 %v2806_v42, 0.0  ;;  %v1497_v51 = vadd.f32 %v1496_v45, %v7385_v49  ;;  %v2810_v52 = vadd.f32 %v2809_v46, %v7387_v50  ;;  %1744 = vmatprep.mubr.bf16.mxu0 %v7130_v1  ;;  %3057 = vmatprep.mubr.bf16.mxu1 %v7130_v1 }
 0x114   :  { %v5038_v55 = vadd.f32 %v5037_v31, %v4066_v43  ;;  %v5112_v56 = vadd.f32 %v5111_v32, %v4068_v44  ;;  %v1498_v57 = vpop.f32.mrf.mxu0  ;;  %v2811_v58 = vpop.f32.mrf.mxu1 }
 0x115   :  { %v5075_v59 = vadd.f32 %v5074_v39, %v4067_v47  ;;  %v5149_v60 = vadd.f32 %v5148_v40, %v4069_v48  ;;  %v4070_v61 = vmax.f32 %v1497_v51, 0.0  ;;  %v4072_v62 = vmax.f32 %v2810_v52, 0.0 }
 0x116   :  { %v1499_v63 = vadd.f32 %v1498_v57, %v7391_v53  ;;  %v2812_v0 = vadd.f32 %v2811_v58, %v7393_v54  ;;  %v1500_v2 = vpop.f32.mrf.mxu0  ;;  %v2813_v3 = vpop.f32.mrf.mxu1 }
 0x117   :  { %v5039_v5 = vadd.f32 %v5038_v55, %v4070_v61  ;;  %v5113_v6 = vadd.f32 %v5112_v56, %v4072_v62  ;;  %v1501_v7 = vadd.f32 %v1500_v2, %v7385_v49  ;;  %v2814_v8 = vadd.f32 %v2813_v3, %v7387_v50  ;;  %v6267_v62 = vld [vmem:[%s9676_s3 + $0xe0] sm:$0xff] }
 0x118   :  { %v4071_v9 = vmax.f32 %v1499_v63, 0.0  ;;  %v4073_v10 = vmax.f32 %v2812_v0, 0.0  ;;  %v1502_v11 = vpop.f32.mrf.mxu0  ;;  %v2815_v12 = vpop.f32.mrf.mxu1  ;;  %v6251_v63 = vld [vmem:[%s9676_s3 + $0x60] sm:$0xff]  ;;  %6925 = vmatprep.subr.mxu0 %v6267_v62 }
 0x119   :  { %v4074_v13 = vmax.f32 %v1501_v7, 0.0  ;;  %v4076_v14 = vmax.f32 %v2814_v8, 0.0  ;;  %v1503_v15 = vadd.f32 %v1502_v11, %v7391_v53  ;;  %v2816_v16 = vadd.f32 %v2815_v12, %v7393_v54  ;;  %6926 = vmatpush3.msra.mxu0 %v6251_v63 }
 0x11a   :  { %v5076_v17 = vadd.f32 %v5075_v59, %v4071_v9  ;;  %v5150_v18 = vadd.f32 %v5149_v60, %v4073_v10  ;;  %v1506_v19 = vpop.f32.mrf.mxu0  ;;  %6696 = vmatmul.mubr.msk.bf16.gmra.mxu0 %vm987_vm0, %v7036_v4  ;;  %v2819_v20 = vpop.f32.mrf.mxu1  ;;  %6824 = vmatmul.mubr.msk.bf16.gmra.mxu1 %vm987_vm0, %v7036_v4 }
 0x11b   :  { %v5040_v21 = vadd.f32 %v5039_v5, %v4074_v13  ;;  %v5114_v22 = vadd.f32 %v5113_v6, %v4076_v14  ;;  %v4075_v23 = vmax.f32 %v1503_v15, 0.0  ;;  %v4077_v24 = vmax.f32 %v2816_v16, 0.0  ;;  %1754 = vmatprep.mubr.bf16.mxu0 %v7130_v1  ;;  %3067 = vmatprep.mubr.bf16.mxu1 %v7130_v1  ;;  %v7038_v13 = vld [vmem:[%s9675_s0 + $0x120] sm:$0xff]  }
 0x11c   :  { %v1507_v25 = vadd.f32 %v1506_v19, %v7385_v49  ;;  %v2820_v26 = vadd.f32 %v2819_v20, %v7387_v50  ;;  %v1508_v27 = vpop.f32.mrf.mxu0  ;;  %v2821_v28 = vpop.f32.mrf.mxu1  ;;  %v6299_v14 = vld [vmem:[%s9676_s3 + $0x1e0] sm:$0xff] }
 0x11d   :  { %v5077_v29 = vadd.f32 %v5076_v17, %v4075_v23  ;;  %v5151_v30 = vadd.f32 %v5150_v18, %v4077_v24  ;;  %v1509_v31 = vadd.f32 %v1508_v27, %v7391_v53  ;;  %v2822_v32 = vadd.f32 %v2821_v28, %v7393_v54  ;;  %v6283_v15 = vld [vmem:[%s9676_s3 + $0x160] sm:$0xff]  ;;  %6960 = vmatprep.subr.mxu1 %v6299_v14 }
 0x11e   :  { %v4078_v33 = vmax.f32 %v1507_v25, 0.0  ;;  %v4080_v34 = vmax.f32 %v2820_v26, 0.0  ;;  %v1510_v35 = vpop.f32.mrf.mxu0  ;;  %v2823_v36 = vpop.f32.mrf.mxu1  ;;  %6961 = vmatpush3.msra.mxu1 %v6283_v15 }
 0x11f   :  { %v4079_v38 = vmax.f32 %v1509_v31, 0.0  ;;  %v4081_v39 = vmax.f32 %v2822_v32, 0.0  ;;  %v1511_v40 = vadd.f32 %v1510_v35, %v7385_v49  ;;  %v2824_v41 = vadd.f32 %v2823_v36, %v7387_v50 }
 0x120   :  { %v5041_v42 = vadd.f32 %v5040_v21, %v4078_v33  ;;  %v5115_v43 = vadd.f32 %v5114_v22, %v4080_v34  ;;  %v1512_v44 = vpop.f32.mrf.mxu0  ;;  %v2825_v45 = vpop.f32.mrf.mxu1 }
 0x121   :  { %v5078_v46 = vadd.f32 %v5077_v29, %v4079_v38  ;;  %v5152_v47 = vadd.f32 %v5151_v30, %v4081_v39  ;;  %v4082_v48 = vmax.f32 %v1511_v40, 0.0  ;;  %v4084_v51 = vmax.f32 %v2824_v41, 0.0 }
 0x122   :  { %v1513_v52 = vadd.f32 %v1512_v44, %v7391_v53  ;;  %v2826_v55 = vadd.f32 %v2825_v45, %v7393_v54  ;;  %v1516_v56 = vpop.f32.mrf.mxu0  ;;  %6697 = vmatmul.mubr.msk.bf16.gmra.mxu0 %vm987_vm0, %v7037_v37  ;;  %v2829_v57 = vpop.f32.mrf.mxu1  ;;  %6825 = vmatmul.mubr.msk.bf16.gmra.mxu1 %vm987_vm0, %v7037_v37 }
 0x123   :  { %v5042_v58 = vadd.f32 %v5041_v42, %v4082_v48  ;;  %v5116_v59 = vadd.f32 %v5115_v43, %v4084_v51  ;;  %v1517_v60 = vadd.f32 %v1516_v56, %v7385_v49  ;;  %v2830_v61 = vadd.f32 %v2829_v57, %v7387_v50  ;;  %1764 = vmatprep.mubr.bf16.mxu0 %v7130_v1  ;;  %v7039_v48 = vld [vmem:[%s9675_s0 + $0x128] sm:$0xff]  }
 0x124   :  { %v4083_v0 = vmax.f32 %v1513_v52, 0.0  ;;  %v4085_v2 = vmax.f32 %v2826_v55, 0.0  ;;  %v1518_v3 = vpop.f32.mrf.mxu0  ;;  %v2831_v4 = vpop.f32.mrf.mxu1  ;;  %3077 = vmatprep.mubr.bf16.mxu1 %v7130_v1 }
 0x125   :  { %v4086_v5 = vmax.f32 %v1517_v60, 0.0  ;;  %v4088_v6 = vmax.f32 %v2830_v61, 0.0  ;;  %v1519_v7 = vadd.f32 %v1518_v3, %v7391_v53  ;;  %v2832_v8 = vadd.f32 %v2831_v4, %v7393_v54 }
 0x126   :  { %v5079_v9 = vadd.f32 %v5078_v46, %v4083_v0  ;;  %v5153_v10 = vadd.f32 %v5152_v47, %v4085_v2  ;;  %v1520_v11 = vpop.f32.mrf.mxu0  ;;  %v2833_v12 = vpop.f32.mrf.mxu1 }
 0x127   :  { %v5043_v16 = vadd.f32 %v5042_v58, %v4086_v5  ;;  %v5117_v17 = vadd.f32 %v5116_v59, %v4088_v6  ;;  %v4087_v18 = vmax.f32 %v1519_v7, 0.0  ;;  %v4089_v19 = vmax.f32 %v2832_v8, 0.0 }
 0x128   :  { %v1521_v20 = vadd.f32 %v1520_v11, %v7385_v49  ;;  %v2834_v21 = vadd.f32 %v2833_v12, %v7387_v50  ;;  %v1522_v22 = vpop.f32.mrf.mxu0  ;;  %v2835_v23 = vpop.f32.mrf.mxu1 }
 0x129   :  { %v5080_v24 = vadd.f32 %v5079_v9, %v4087_v18  ;;  %v5154_v25 = vadd.f32 %v5153_v10, %v4089_v19  ;;  %v1523_v26 = vadd.f32 %v1522_v22, %v7391_v53  ;;  %v2836_v27 = vadd.f32 %v2835_v23, %v7393_v54  ;;  %v7040_v22 = vld [vmem:[%s9675_s0 + $0x130] sm:$0xff]  }
 0x12a   :  { %v4090_v28 = vmax.f32 %v1521_v20, 0.0  ;;  %v4092_v29 = vmax.f32 %v2834_v21, 0.0  ;;  %v1526_v30 = vpop.f32.mrf.mxu0  ;;  %6698 = vmatmul.mubr.msk.bf16.gmra.mxu0 %vm987_vm0, %v7038_v13  ;;  %v2839_v31 = vpop.f32.mrf.mxu1  ;;  %6826 = vmatmul.mubr.msk.bf16.gmra.mxu1 %vm987_vm0, %v7038_v13 }
 0x12b   :  { %v4091_v32 = vmax.f32 %v1523_v26, 0.0  ;;  %v4093_v33 = vmax.f32 %v2836_v27, 0.0  ;;  %v1527_v34 = vadd.f32 %v1526_v30, %v7385_v49  ;;  %v2840_v35 = vadd.f32 %v2839_v31, %v7387_v50  ;;  %1774 = vmatprep.mubr.bf16.mxu0 %v7130_v1  ;;  %3087 = vmatprep.mubr.bf16.mxu1 %v7130_v1 }
 0x12c   :  { %v5044_v36 = vadd.f32 %v5043_v16, %v4090_v28  ;;  %v5118_v37 = vadd.f32 %v5117_v17, %v4092_v29  ;;  %v1528_v38 = vpop.f32.mrf.mxu0  ;;  %v2841_v39 = vpop.f32.mrf.mxu1 }
 0x12d   :  { %v5081_v40 = vadd.f32 %v5080_v24, %v4091_v32  ;;  %v5155_v41 = vadd.f32 %v5154_v25, %v4093_v33  ;;  %v4094_v42 = vmax.f32 %v1527_v34, 0.0  ;;  %v4096_v43 = vmax.f32 %v2840_v35, 0.0 }
 0x12e   :  { %v1529_v44 = vadd.f32 %v1528_v38, %v7391_v53  ;;  %v2842_v45 = vadd.f32 %v2841_v39, %v7393_v54  ;;  %v1530_v46 = vpop.f32.mrf.mxu0  ;;  %v2843_v47 = vpop.f32.mrf.mxu1 }
 0x12f   :  { %v5045_v51 = vadd.f32 %v5044_v36, %v4094_v42  ;;  %v5119_v52 = vadd.f32 %v5118_v37, %v4096_v43  ;;  %v1531_v55 = vadd.f32 %v1530_v46, %v7385_v49  ;;  %v2844_v56 = vadd.f32 %v2843_v47, %v7387_v50 }
 0x130   :  { %v4095_v57 = vmax.f32 %v1529_v44, 0.0  ;;  %v4097_v58 = vmax.f32 %v2842_v45, 0.0  ;;  %v1532_v59 = vpop.f32.mrf.mxu0  ;;  %v2845_v60 = vpop.f32.mrf.mxu1 }
 0x131   :  { %v4098_v61 = vmax.f32 %v1531_v55, 0.0  ;;  %v4100_v62 = vmax.f32 %v2844_v56, 0.0  ;;  %v1533_v63 = vadd.f32 %v1532_v59, %v7391_v53  ;;  %v2846_v0 = vadd.f32 %v2845_v60, %v7393_v54  ;;  %v7041_v59 = vld [vmem:[%s9675_s0 + $0x138] sm:$0xff]  }
 0x132   :  { %v5082_v2 = vadd.f32 %v5081_v40, %v4095_v57  ;;  %v5156_v3 = vadd.f32 %v5155_v41, %v4097_v58  ;;  %v1536_v4 = vpop.f32.mrf.mxu0  ;;  %6699 = vmatmul.mubr.msk.bf16.gmra.mxu0 %vm987_vm0, %v7039_v48  ;;  %v2849_v5 = vpop.f32.mrf.mxu1  ;;  %6827 = vmatmul.mubr.msk.bf16.gmra.mxu1 %vm987_vm0, %v7039_v48 }
 0x133   :  { %v5046_v6 = vadd.f32 %v5045_v51, %v4098_v61  ;;  %v5120_v7 = vadd.f32 %v5119_v52, %v4100_v62  ;;  %v4099_v8 = vmax.f32 %v1533_v63, 0.0  ;;  %v4101_v9 = vmax.f32 %v2846_v0, 0.0  ;;  %1784 = vmatprep.mubr.bf16.mxu0 %v7130_v1  ;;  %3097 = vmatprep.mubr.bf16.mxu1 %v7130_v1 }
 0x134   :  { %v1537_v10 = vadd.f32 %v1536_v4, %v7385_v49  ;;  %v2850_v11 = vadd.f32 %v2849_v5, %v7387_v50  ;;  %v1538_v12 = vpop.f32.mrf.mxu0  ;;  %v2851_v13 = vpop.f32.mrf.mxu1 }
 0x135   :  { %v5083_v14 = vadd.f32 %v5082_v2, %v4099_v8  ;;  %v5157_v15 = vadd.f32 %v5156_v3, %v4101_v9  ;;  %v1539_v16 = vadd.f32 %v1538_v12, %v7391_v53  ;;  %v2852_v17 = vadd.f32 %v2851_v13, %v7393_v54 }
 0x136   :  { %v4102_v18 = vmax.f32 %v1537_v10, 0.0  ;;  %v4104_v19 = vmax.f32 %v2850_v11, 0.0  ;;  %v1540_v20 = vpop.f32.mrf.mxu0  ;;  %v2853_v21 = vpop.f32.mrf.mxu1 }
 0x137   :  { %v4103_v23 = vmax.f32 %v1539_v16, 0.0  ;;  %v4105_v24 = vmax.f32 %v2852_v17, 0.0  ;;  %v1541_v25 = vadd.f32 %v1540_v20, %v7385_v49  ;;  %v2854_v26 = vadd.f32 %v2853_v21, %v7387_v50 }
 0x138   :  { %v5047_v27 = vadd.f32 %v5046_v6, %v4102_v18  ;;  %v5121_v28 = vadd.f32 %v5120_v7, %v4104_v19  ;;  %v1542_v29 = vpop.f32.mrf.mxu0  ;;  %v2855_v30 = vpop.f32.mrf.mxu1 }
 0x139   :  { %v5084_v31 = vadd.f32 %v5083_v14, %v4103_v23  ;;  %v5158_v32 = vadd.f32 %v5157_v15, %v4105_v24  ;;  %v4106_v33 = vmax.f32 %v1541_v25, 0.0  ;;  %v4108_v34 = vmax.f32 %v2854_v26, 0.0 }
 0x13a   :  { %v1543_v35 = vadd.f32 %v1542_v29, %v7391_v53  ;;  %v2856_v36 = vadd.f32 %v2855_v30, %v7393_v54  ;;  %v1546_v37 = vpop.f32.mrf.mxu0  ;;  %6700 = vmatmul.mubr.msk.bf16.gmra.mxu0 %vm987_vm0, %v7040_v22  ;;  %v2859_v38 = vpop.f32.mrf.mxu1  ;;  %6828 = vmatmul.mubr.msk.bf16.gmra.mxu1 %vm987_vm0, %v7040_v22  ;;  %v7042_v29 = vld [vmem:[%s9675_s0 + $0x140] sm:$0xff]  }
 0x13b   :  { %v5048_v39 = vadd.f32 %v5047_v27, %v4106_v33  ;;  %v5122_v40 = vadd.f32 %v5121_v28, %v4108_v34  ;;  %v1547_v41 = vadd.f32 %v1546_v37, %v7385_v49  ;;  %v2860_v42 = vadd.f32 %v2859_v38, %v7387_v50  ;;  %1794 = vmatprep.mubr.bf16.mxu0 %v7130_v1 }
 0x13c   :  { %v4107_v43 = vmax.f32 %v1543_v35, 0.0  ;;  %v4109_v44 = vmax.f32 %v2856_v36, 0.0  ;;  %v1548_v45 = vpop.f32.mrf.mxu0  ;;  %v2861_v46 = vpop.f32.mrf.mxu1  ;;  %3107 = vmatprep.mubr.bf16.mxu1 %v7130_v1 }
 0x13d   :  { %v4110_v47 = vmax.f32 %v1547_v41, 0.0  ;;  %v4112_v48 = vmax.f32 %v2860_v42, 0.0  ;;  %v1549_v51 = vadd.f32 %v1548_v45, %v7391_v53  ;;  %v2862_v52 = vadd.f32 %v2861_v46, %v7393_v54 }
 0x13e   :  { %v5085_v55 = vadd.f32 %v5084_v31, %v4107_v43  ;;  %v5159_v56 = vadd.f32 %v5158_v32, %v4109_v44  ;;  %v1550_v57 = vpop.f32.mrf.mxu0  ;;  %v2863_v58 = vpop.f32.mrf.mxu1 }
 0x13f   :  { %v5049_v60 = vadd.f32 %v5048_v39, %v4110_v47  ;;  %v5123_v61 = vadd.f32 %v5122_v40, %v4112_v48  ;;  %v4111_v62 = vmax.f32 %v1549_v51, 0.0  ;;  %v4113_v63 = vmax.f32 %v2862_v52, 0.0 }
 0x140   :  { %v1551_v0 = vadd.f32 %v1550_v57, %v7385_v49  ;;  %v2864_v2 = vadd.f32 %v2863_v58, %v7387_v50  ;;  %v1552_v3 = vpop.f32.mrf.mxu0  ;;  %v2865_v4 = vpop.f32.mrf.mxu1 }
 0x141   :  { %v5086_v5 = vadd.f32 %v5085_v55, %v4111_v62  ;;  %v5160_v6 = vadd.f32 %v5159_v56, %v4113_v63  ;;  %v1553_v7 = vadd.f32 %v1552_v3, %v7391_v53  ;;  %v2866_v8 = vadd.f32 %v2865_v4, %v7393_v54  ;;  %v7043_v62 = vld [vmem:[%s9675_s0 + $0x148] sm:$0xff]  }
 0x142   :  { %v4114_v9 = vmax.f32 %v1551_v0, 0.0  ;;  %v4116_v10 = vmax.f32 %v2864_v2, 0.0  ;;  %v1556_v11 = vpop.f32.mrf.mxu0  ;;  %6701 = vmatmul.mubr.msk.bf16.gmra.mxu0 %vm987_vm0, %v7041_v59  ;;  %v2869_v12 = vpop.f32.mrf.mxu1  ;;  %6829 = vmatmul.mubr.msk.bf16.gmra.mxu1 %vm987_vm0, %v7041_v59 }
 0x143   :  { %v4115_v13 = vmax.f32 %v1553_v7, 0.0  ;;  %v4117_v14 = vmax.f32 %v2866_v8, 0.0  ;;  %v1557_v15 = vadd.f32 %v1556_v11, %v7385_v49  ;;  %v2870_v16 = vadd.f32 %v2869_v12, %v7387_v50  ;;  %1804 = vmatprep.mubr.bf16.mxu0 %v7130_v1  ;;  %3117 = vmatprep.mubr.bf16.mxu1 %v7130_v1 }
 0x144   :  { %v5050_v17 = vadd.f32 %v5049_v60, %v4114_v9  ;;  %v5124_v18 = vadd.f32 %v5123_v61, %v4116_v10  ;;  %v1558_v19 = vpop.f32.mrf.mxu0  ;;  %v2871_v20 = vpop.f32.mrf.mxu1 }
 0x145   :  { %v5087_v21 = vadd.f32 %v5086_v5, %v4115_v13  ;;  %v5161_v22 = vadd.f32 %v5160_v6, %v4117_v14  ;;  %v4118_v23 = vmax.f32 %v1557_v15, 0.0  ;;  %v4120_v24 = vmax.f32 %v2870_v16, 0.0 }
 0x146   :  { %v1559_v25 = vadd.f32 %v1558_v19, %v7391_v53  ;;  %v2872_v26 = vadd.f32 %v2871_v20, %v7393_v54  ;;  %v1560_v27 = vpop.f32.mrf.mxu0  ;;  %v2873_v28 = vpop.f32.mrf.mxu1 }
 0x147   :  { %v5051_v30 = vadd.f32 %v5050_v17, %v4118_v23  ;;  %v5125_v31 = vadd.f32 %v5124_v18, %v4120_v24  ;;  %v1561_v32 = vadd.f32 %v1560_v27, %v7385_v49  ;;  %v2874_v33 = vadd.f32 %v2873_v28, %v7387_v50  ;;  %v7044_v28 = vld [vmem:[%s9675_s0 + $0x150] sm:$0xff]  }
 0x148   :  { %v4119_v34 = vmax.f32 %v1559_v25, 0.0  ;;  %v4121_v35 = vmax.f32 %v2872_v26, 0.0  ;;  %v1562_v36 = vpop.f32.mrf.mxu0  ;;  %v2875_v37 = vpop.f32.mrf.mxu1 }
 0x149   :  { %v4122_v38 = vmax.f32 %v1561_v32, 0.0  ;;  %v4124_v39 = vmax.f32 %v2874_v33, 0.0  ;;  %v1563_v40 = vadd.f32 %v1562_v36, %v7391_v53  ;;  %v2876_v41 = vadd.f32 %v2875_v37, %v7393_v54 }
 0x14a   :  { %v5088_v42 = vadd.f32 %v5087_v21, %v4119_v34  ;;  %v5162_v43 = vadd.f32 %v5161_v22, %v4121_v35  ;;  %v1566_v44 = vpop.f32.mrf.mxu0  ;;  %6702 = vmatmul.mubr.msk.bf16.gmra.mxu0 %vm987_vm0, %v7042_v29  ;;  %v2879_v45 = vpop.f32.mrf.mxu1  ;;  %6830 = vmatmul.mubr.msk.bf16.gmra.mxu1 %vm987_vm0, %v7042_v29 }
 0x14b   :  { %v7659_v46 = vadd.f32 %v5051_v30, %v4122_v38  ;;  %v7661_v47 = vadd.f32 %v5125_v31, %v4124_v39  ;;  %v4123_v48 = vmax.f32 %v1563_v40, 0.0  ;;  %v4125_v51 = vmax.f32 %v2876_v41, 0.0  ;;  %1814 = vmatprep.mubr.bf16.mxu0 %v7130_v1  ;;  %3127 = vmatprep.mubr.bf16.mxu1 %v7130_v1 }
 0x14c   :  { %v1568_v52 = vpop.f32.mrf.mxu0  ;;  %v2881_v55 = vpop.f32.mrf.mxu1  ;;  %v1567_v58 = vadd.f32 %v1566_v44, %v7385_v49  ;;  %v2880_v59 = vadd.f32 %v2879_v45, %v7387_v50 }
 0x14d   :  { %v7665_v56 = vadd.f32 %v5088_v42, %v4123_v48  ;;  %v7667_v57 = vadd.f32 %v5162_v43, %v4125_v51  ;;  %v1569_v63 = vadd.f32 %v1568_v52, %v7391_v53  ;;  %v2882_v0 = vadd.f32 %v2881_v55, %v7393_v54 }
 0x14e   :  { %v1570_v60 = vpop.f32.mrf.mxu0  ;;  %v2883_v61 = vpop.f32.mrf.mxu1  ;;  %v4126_v6 = vmax.f32 %v1567_v58, 0.0  ;;  %v4128_v7 = vmax.f32 %v2880_v59, 0.0 }
 0x14f   :  { %v1571_v2 = vadd.f32 %v1570_v60, %v7385_v49  ;;  %v2884_v3 = vadd.f32 %v2883_v61, %v7387_v50  ;;  %v4127_v14 = vmax.f32 %v1569_v63, 0.0  ;;  %v4129_v15 = vmax.f32 %v2882_v0, 0.0 }
 0x150   :  { %v1572_v4 = vpop.f32.mrf.mxu0  ;;  %v2885_v5 = vpop.f32.mrf.mxu1 }
 0x151   :  { %v4130_v8 = vmax.f32 %v1571_v2, 0.0  ;;  %v4132_v9 = vmax.f32 %v2884_v3, 0.0  ;;  %v1573_v10 = vadd.f32 %v1572_v4, %v7391_v53  ;;  %v2886_v11 = vadd.f32 %v2885_v5, %v7393_v54  ;;  %v7045_v4 = vld [vmem:[%s9675_s0 + $0x158] sm:$0xff]  }
 0x152   :  { %v1576_v12 = vpop.f32.mrf.mxu0  ;;  %6703 = vmatmul.mubr.msk.bf16.gmra.mxu0 %vm987_vm0, %v7043_v62  ;;  %v2889_v13 = vpop.f32.mrf.mxu1  ;;  %6831 = vmatmul.mubr.msk.bf16.gmra.mxu1 %vm987_vm0, %v7043_v62 }
 0x153   :  { %1824 = vmatprep.mubr.bf16.mxu0 %v7130_v1  ;;  %3137 = vmatprep.mubr.bf16.mxu1 %v7130_v1  ;;  %v5170_v16 = vadd.f32 %v4130_v8, %v4126_v6  ;;  %v5244_v17 = vadd.f32 %v4132_v9, %v4128_v7  ;;  %v4131_v18 = vmax.f32 %v1573_v10, 0.0  ;;  %v4133_v19 = vmax.f32 %v2886_v11, 0.0 }
 0x154   :  { %v1578_v20 = vpop.f32.mrf.mxu0  ;;  %v2891_v21 = vpop.f32.mrf.mxu1  ;;  %v1577_v24 = vadd.f32 %v1576_v12, %v7385_v49  ;;  %v2890_v25 = vadd.f32 %v2889_v13, %v7387_v50 }
 0x155   :  { %v5207_v22 = vadd.f32 %v4131_v18, %v4127_v14  ;;  %v5281_v23 = vadd.f32 %v4133_v19, %v4129_v15  ;;  %v1579_v31 = vadd.f32 %v1578_v20, %v7391_v53  ;;  %v2892_v32 = vadd.f32 %v2891_v21, %v7393_v54 }
 0x156   :  { %v1580_v26 = vpop.f32.mrf.mxu0  ;;  %v2893_v27 = vpop.f32.mrf.mxu1  ;;  %v4134_v29 = vmax.f32 %v1577_v24, 0.0  ;;  %v4136_v30 = vmax.f32 %v2890_v25, 0.0 }
 0x157   :  { %v4135_v37 = vmax.f32 %v1579_v31, 0.0  ;;  %v4137_v38 = vmax.f32 %v2892_v32, 0.0  ;;  %v1581_v41 = vadd.f32 %v1580_v26, %v7385_v49  ;;  %v2894_v42 = vadd.f32 %v2893_v27, %v7387_v50 }
 0x158   :  { %v1582_v33 = vpop.f32.mrf.mxu0  ;;  %v2895_v34 = vpop.f32.mrf.mxu1  ;;  %v5171_v35 = vadd.f32 %v5170_v16, %v4134_v29  ;;  %v5245_v36 = vadd.f32 %v5244_v17, %v4136_v30 }
 0x159   :  { %v5208_v43 = vadd.f32 %v5207_v22, %v4135_v37  ;;  %v5282_v44 = vadd.f32 %v5281_v23, %v4137_v38  ;;  %v1583_v45 = vadd.f32 %v1582_v33, %v7391_v53  ;;  %v2896_v48 = vadd.f32 %v2895_v34, %v7393_v54  ;;  %v6266_v37 = vld [vmem:[%s9676_s3 + $0xd8] sm:$0xff] }
 0x15a   :  { %v1586_v39 = vpop.f32.mrf.mxu0  ;;  %6704 = vmatmul.mubr.msk.bf16.gmra.mxu0 %vm987_vm0, %v7044_v28  ;;  %v2899_v40 = vpop.f32.mrf.mxu1  ;;  %6832 = vmatmul.mubr.msk.bf16.gmra.mxu1 %vm987_vm0, %v7044_v28  ;;  %v4138_v55 = vmax.f32 %v1581_v41, 0.0  ;;  %v4140_v58 = vmax.f32 %v2894_v42, 0.0  ;;  %v6250_v38 = vld [vmem:[%s9676_s3 + $0x58] sm:$0xff] }
 0x15b   :  { %1834 = vmatprep.mubr.bf16.mxu0 %v7130_v1  ;;  %3147 = vmatprep.mubr.bf16.mxu1 %v7130_v1  ;;  %v1587_v59 = vadd.f32 %v1586_v39, %v7385_v49  ;;  %v2900_v60 = vadd.f32 %v2899_v40, %v7387_v50  ;;  %v4139_v61 = vmax.f32 %v1583_v45, 0.0  ;;  %v4141_v62 = vmax.f32 %v2896_v48, 0.0  ;;  %v7046_v45 = vld [vmem:[%s9675_s0 + $0x160] sm:$0xff]   ;;  %v6298_v48 = vld [vmem:[%s9676_s3 + $0x1d8] sm:$0xff] }
 0x15c   :  { %v1588_v51 = vpop.f32.mrf.mxu0  ;;  %v2901_v52 = vpop.f32.mrf.mxu1  ;;  %v5172_v5 = vadd.f32 %v5171_v35, %v4138_v55  ;;  %v5246_v6 = vadd.f32 %v5245_v36, %v4140_v58  ;;  %6927 = vmatprep.subr.mxu0 %v6266_v37  ;;  %6962 = vmatprep.subr.mxu1 %v6298_v48 }
 0x15d   :  { %v1589_v63 = vadd.f32 %v1588_v51, %v7391_v53  ;;  %v2902_v0 = vadd.f32 %v2901_v52, %v7393_v54  ;;  %v4142_v7 = vmax.f32 %v1587_v59, 0.0  ;;  %v4144_v8 = vmax.f32 %v2900_v60, 0.0  ;;  %v6282_v51 = vld [vmem:[%s9676_s3 + $0x158] sm:$0xff]  ;;  %6928 = vmatpush3.msra.mxu0 %v6250_v38 }
 0x15e   :  { %v1590_v2 = vpop.f32.mrf.mxu0  ;;  %v2903_v3 = vpop.f32.mrf.mxu1  ;;  %v5209_v9 = vadd.f32 %v5208_v43, %v4139_v61  ;;  %v5283_v10 = vadd.f32 %v5282_v44, %v4141_v62  ;;  %6963 = vmatpush3.msra.mxu1 %v6282_v51 }
 0x15f   :  { %v4143_v11 = vmax.f32 %v1589_v63, 0.0  ;;  %v4145_v12 = vmax.f32 %v2902_v0, 0.0  ;;  %v5173_v15 = vadd.f32 %v5172_v5, %v4142_v7  ;;  %v5247_v16 = vadd.f32 %v5246_v6, %v4144_v8 }
 0x160   :  { %v1592_v13 = vpop.f32.mrf.mxu0  ;;  %v2905_v14 = vpop.f32.mrf.mxu1  ;;  %v1591_v17 = vadd.f32 %v1590_v2, %v7385_v49  ;;  %v2904_v18 = vadd.f32 %v2903_v3, %v7387_v50 }
 0x161   :  { %v5210_v19 = vadd.f32 %v5209_v9, %v4143_v11  ;;  %v5284_v20 = vadd.f32 %v5283_v10, %v4145_v12  ;;  %v1593_v21 = vadd.f32 %v1592_v13, %v7391_v53  ;;  %v2906_v22 = vadd.f32 %v2905_v14, %v7393_v54 }
 0x162   :  { %v1596_v23 = vpop.f32.mrf.mxu0  ;;  %6705 = vmatmul.mubr.msk.bf16.gmra.mxu0 %vm987_vm0, %v7045_v4  ;;  %v2909_v24 = vpop.f32.mrf.mxu1  ;;  %v4146_v25 = vmax.f32 %v1591_v17, 0.0  ;;  %v4148_v26 = vmax.f32 %v2904_v18, 0.0  ;;  %6833 = vmatmul.mubr.msk.bf16.gmra.mxu1 %vm987_vm0, %v7045_v4 }
 0x163   :  { %v1597_v27 = vadd.f32 %v1596_v23, %v7385_v49  ;;  %v2910_v28 = vadd.f32 %v2909_v24, %v7387_v50  ;;  %1844 = vmatprep.mubr.bf16.mxu0 %v7130_v1  ;;  %v4147_v29 = vmax.f32 %v1593_v21, 0.0  ;;  %v4149_v30 = vmax.f32 %v2906_v22, 0.0  ;;  %3157 = vmatprep.mubr.bf16.mxu1 %v7130_v1 }
 0x164   :  { %v1598_v31 = vpop.f32.mrf.mxu0  ;;  %v2911_v32 = vpop.f32.mrf.mxu1  ;;  %v5174_v33 = vadd.f32 %v5173_v15, %v4146_v25  ;;  %v5248_v34 = vadd.f32 %v5247_v16, %v4148_v26  ;;  %v7047_v25 = vld [vmem:[%s9675_s0 + $0x168] sm:$0xff]  }
 0x165   :  { %v4150_v35 = vmax.f32 %v1597_v27, 0.0  ;;  %v4152_v36 = vmax.f32 %v2910_v28, 0.0  ;;  %v5211_v39 = vadd.f32 %v5210_v19, %v4147_v29  ;;  %v5285_v40 = vadd.f32 %v5284_v20, %v4149_v30 }
 0x166   :  { %v1599_v41 = vadd.f32 %v1598_v31, %v7391_v53  ;;  %v2912_v42 = vadd.f32 %v2911_v32, %v7393_v54  ;;  %v1600_v43 = vpop.f32.mrf.mxu0  ;;  %v2913_v44 = vpop.f32.mrf.mxu1 }
 0x167   :  { %v5175_v52 = vadd.f32 %v5174_v33, %v4150_v35  ;;  %v5249_v55 = vadd.f32 %v5248_v34, %v4152_v36  ;;  %v1601_v58 = vadd.f32 %v1600_v43, %v7385_v49  ;;  %v2914_v59 = vadd.f32 %v2913_v44, %v7387_v50 }
 0x168   :  { %v4151_v60 = vmax.f32 %v1599_v41, 0.0  ;;  %v4153_v61 = vmax.f32 %v2912_v42, 0.0  ;;  %v1602_v62 = vpop.f32.mrf.mxu0  ;;  %v2915_v63 = vpop.f32.mrf.mxu1 }
 0x169   :  { %v4154_v0 = vmax.f32 %v1601_v58, 0.0  ;;  %v4156_v2 = vmax.f32 %v2914_v59, 0.0  ;;  %v1603_v3 = vadd.f32 %v1602_v62, %v7391_v53  ;;  %v2916_v4 = vadd.f32 %v2915_v63, %v7393_v54 }
 0x16a   :  { %v5212_v5 = vadd.f32 %v5211_v39, %v4151_v60  ;;  %v5286_v6 = vadd.f32 %v5285_v40, %v4153_v61  ;;  %v1606_v7 = vpop.f32.mrf.mxu0  ;;  %6706 = vmatmul.mubr.msk.bf16.gmra.mxu0 %vm987_vm0, %v7046_v45  ;;  %v2919_v8 = vpop.f32.mrf.mxu1  ;;  %6834 = vmatmul.mubr.msk.bf16.gmra.mxu1 %vm987_vm0, %v7046_v45 }
 0x16b   :  { %v5176_v9 = vadd.f32 %v5175_v52, %v4154_v0  ;;  %v5250_v10 = vadd.f32 %v5249_v55, %v4156_v2  ;;  %v4155_v11 = vmax.f32 %v1603_v3, 0.0  ;;  %v4157_v12 = vmax.f32 %v2916_v4, 0.0  ;;  %1854 = vmatprep.mubr.bf16.mxu0 %v7130_v1  ;;  %3167 = vmatprep.mubr.bf16.mxu1 %v7130_v1  ;;  %v7048_v3 = vld [vmem:[%s9675_s0 + $0x170] sm:$0xff]  }
 0x16c   :  { %v1607_v13 = vadd.f32 %v1606_v7, %v7385_v49  ;;  %v2920_v14 = vadd.f32 %v2919_v8, %v7387_v50  ;;  %v1608_v15 = vpop.f32.mrf.mxu0  ;;  %v2921_v16 = vpop.f32.mrf.mxu1 }
 0x16d   :  { %v5213_v17 = vadd.f32 %v5212_v5, %v4155_v11  ;;  %v5287_v18 = vadd.f32 %v5286_v6, %v4157_v12  ;;  %v1609_v19 = vadd.f32 %v1608_v15, %v7391_v53  ;;  %v2922_v20 = vadd.f32 %v2921_v16, %v7393_v54 }
 0x16e   :  { %v4158_v21 = vmax.f32 %v1607_v13, 0.0  ;;  %v4160_v22 = vmax.f32 %v2920_v14, 0.0  ;;  %v1610_v23 = vpop.f32.mrf.mxu0  ;;  %v2923_v24 = vpop.f32.mrf.mxu1 }
 0x16f   :  { %v4159_v26 = vmax.f32 %v1609_v19, 0.0  ;;  %v4161_v27 = vmax.f32 %v2922_v20, 0.0  ;;  %v1611_v28 = vadd.f32 %v1610_v23, %v7385_v49  ;;  %v2924_v29 = vadd.f32 %v2923_v24, %v7387_v50 }
 0x170   :  { %v5177_v30 = vadd.f32 %v5176_v9, %v4158_v21  ;;  %v5251_v31 = vadd.f32 %v5250_v10, %v4160_v22  ;;  %v1612_v32 = vpop.f32.mrf.mxu0  ;;  %v2925_v33 = vpop.f32.mrf.mxu1 }
 0x171   :  { %v5214_v34 = vadd.f32 %v5213_v17, %v4159_v26  ;;  %v5288_v35 = vadd.f32 %v5287_v18, %v4161_v27  ;;  %v4162_v36 = vmax.f32 %v1611_v28, 0.0  ;;  %v4164_v37 = vmax.f32 %v2924_v29, 0.0 }
 0x172   :  { %v1613_v38 = vadd.f32 %v1612_v32, %v7391_v53  ;;  %v2926_v39 = vadd.f32 %v2925_v33, %v7393_v54  ;;  %v1616_v40 = vpop.f32.mrf.mxu0  ;;  %6707 = vmatmul.mubr.msk.bf16.gmra.mxu0 %vm987_vm0, %v7047_v25  ;;  %v2929_v41 = vpop.f32.mrf.mxu1  ;;  %6835 = vmatmul.mubr.msk.bf16.gmra.mxu1 %vm987_vm0, %v7047_v25 }
 0x173   :  { %v5178_v42 = vadd.f32 %v5177_v30, %v4162_v36  ;;  %v5252_v43 = vadd.f32 %v5251_v31, %v4164_v37  ;;  %v1617_v44 = vadd.f32 %v1616_v40, %v7385_v49  ;;  %v2930_v45 = vadd.f32 %v2929_v41, %v7387_v50  ;;  %1864 = vmatprep.mubr.bf16.mxu0 %v7130_v1  ;;  %v7049_v36 = vld [vmem:[%s9675_s0 + $0x178] sm:$0xff]  }
 0x174   :  { %v4163_v48 = vmax.f32 %v1613_v38, 0.0  ;;  %v4165_v51 = vmax.f32 %v2926_v39, 0.0  ;;  %v1618_v52 = vpop.f32.mrf.mxu0  ;;  %v2931_v55 = vpop.f32.mrf.mxu1  ;;  %3177 = vmatprep.mubr.bf16.mxu1 %v7130_v1 }
 0x175   :  { %v4166_v58 = vmax.f32 %v1617_v44, 0.0  ;;  %v4168_v59 = vmax.f32 %v2930_v45, 0.0  ;;  %v1619_v60 = vadd.f32 %v1618_v52, %v7391_v53  ;;  %v2932_v61 = vadd.f32 %v2931_v55, %v7393_v54 }
 0x176   :  { %v5215_v62 = vadd.f32 %v5214_v34, %v4163_v48  ;;  %v5289_v63 = vadd.f32 %v5288_v35, %v4165_v51  ;;  %v1620_v0 = vpop.f32.mrf.mxu0  ;;  %v2933_v2 = vpop.f32.mrf.mxu1 }
 0x177   :  { %v5179_v4 = vadd.f32 %v5178_v42, %v4166_v58  ;;  %v5253_v5 = vadd.f32 %v5252_v43, %v4168_v59  ;;  %v4167_v6 = vmax.f32 %v1619_v60, 0.0  ;;  %v4169_v7 = vmax.f32 %v2932_v61, 0.0 }
 0x178   :  { %v1621_v8 = vadd.f32 %v1620_v0, %v7385_v49  ;;  %v2934_v9 = vadd.f32 %v2933_v2, %v7387_v50  ;;  %v1622_v10 = vpop.f32.mrf.mxu0  ;;  %v2935_v11 = vpop.f32.mrf.mxu1 }
 0x179   :  { %v5216_v12 = vadd.f32 %v5215_v62, %v4167_v6  ;;  %v5290_v13 = vadd.f32 %v5289_v63, %v4169_v7  ;;  %v1623_v14 = vadd.f32 %v1622_v10, %v7391_v53  ;;  %v2936_v15 = vadd.f32 %v2935_v11, %v7393_v54 }
 0x17a   :  { %v4170_v16 = vmax.f32 %v1621_v8, 0.0  ;;  %v4172_v17 = vmax.f32 %v2934_v9, 0.0  ;;  %v1626_v18 = vpop.f32.mrf.mxu0  ;;  %6708 = vmatmul.mubr.msk.bf16.gmra.mxu0 %vm987_vm0, %v7048_v3  ;;  %v2939_v19 = vpop.f32.mrf.mxu1  ;;  %6836 = vmatmul.mubr.msk.bf16.gmra.mxu1 %vm987_vm0, %v7048_v3 }
 0x17b   :  { %v4171_v20 = vmax.f32 %v1623_v14, 0.0  ;;  %v4173_v21 = vmax.f32 %v2936_v15, 0.0  ;;  %v1627_v22 = vadd.f32 %v1626_v18, %v7385_v49  ;;  %v2940_v23 = vadd.f32 %v2939_v19, %v7387_v50  ;;  %1874 = vmatprep.mubr.bf16.mxu0 %v7130_v1  ;;  %3187 = vmatprep.mubr.bf16.mxu1 %v7130_v1  ;;  %v7050_v14 = vld [vmem:[%s9675_s0 + $0x180] sm:$0xff]  }
 0x17c   :  { %v5180_v24 = vadd.f32 %v5179_v4, %v4170_v16  ;;  %v5254_v25 = vadd.f32 %v5253_v5, %v4172_v17  ;;  %v1628_v26 = vpop.f32.mrf.mxu0  ;;  %v2941_v27 = vpop.f32.mrf.mxu1 }
 0x17d   :  { %v5217_v28 = vadd.f32 %v5216_v12, %v4171_v20  ;;  %v5291_v29 = vadd.f32 %v5290_v13, %v4173_v21  ;;  %v4174_v30 = vmax.f32 %v1627_v22, 0.0  ;;  %v4176_v31 = vmax.f32 %v2940_v23, 0.0 }
 0x17e   :  { %v1629_v32 = vadd.f32 %v1628_v26, %v7391_v53  ;;  %v2942_v33 = vadd.f32 %v2941_v27, %v7393_v54  ;;  %v1630_v34 = vpop.f32.mrf.mxu0  ;;  %v2943_v35 = vpop.f32.mrf.mxu1 }
 0x17f   :  { %v5181_v37 = vadd.f32 %v5180_v24, %v4174_v30  ;;  %v5255_v38 = vadd.f32 %v5254_v25, %v4176_v31  ;;  %v1631_v39 = vadd.f32 %v1630_v34, %v7385_v49  ;;  %v2944_v40 = vadd.f32 %v2943_v35, %v7387_v50 }
 0x180   :  { %v4175_v41 = vmax.f32 %v1629_v32, 0.0  ;;  %v4177_v42 = vmax.f32 %v2942_v33, 0.0  ;;  %v1632_v43 = vpop.f32.mrf.mxu0  ;;  %v2945_v44 = vpop.f32.mrf.mxu1 }
 0x181   :  { %v4178_v45 = vmax.f32 %v1631_v39, 0.0  ;;  %v4180_v48 = vmax.f32 %v2944_v40, 0.0  ;;  %v1633_v51 = vadd.f32 %v1632_v43, %v7391_v53  ;;  %v2946_v52 = vadd.f32 %v2945_v44, %v7393_v54 }
 0x182   :  { %v5218_v55 = vadd.f32 %v5217_v28, %v4175_v41  ;;  %v5292_v58 = vadd.f32 %v5291_v29, %v4177_v42  ;;  %v1636_v59 = vpop.f32.mrf.mxu0  ;;  %6709 = vmatmul.mubr.msk.bf16.gmra.mxu0 %vm987_vm0, %v7049_v36  ;;  %v2949_v60 = vpop.f32.mrf.mxu1  ;;  %6837 = vmatmul.mubr.msk.bf16.gmra.mxu1 %vm987_vm0, %v7049_v36 }
 0x183   :  { %v5182_v61 = vadd.f32 %v5181_v37, %v4178_v45  ;;  %v5256_v62 = vadd.f32 %v5255_v38, %v4180_v48  ;;  %v4179_v63 = vmax.f32 %v1633_v51, 0.0  ;;  %v4181_v0 = vmax.f32 %v2946_v52, 0.0  ;;  %1884 = vmatprep.mubr.bf16.mxu0 %v7130_v1  ;;  %3197 = vmatprep.mubr.bf16.mxu1 %v7130_v1  ;;  %v7051_v51 = vld [vmem:[%s9675_s0 + $0x188] sm:$0xff]  }
 0x184   :  { %v1637_v2 = vadd.f32 %v1636_v59, %v7385_v49  ;;  %v2950_v3 = vadd.f32 %v2949_v60, %v7387_v50  ;;  %v1638_v4 = vpop.f32.mrf.mxu0  ;;  %v2951_v5 = vpop.f32.mrf.mxu1 }
 0x185   :  { %v5219_v6 = vadd.f32 %v5218_v55, %v4179_v63  ;;  %v5293_v7 = vadd.f32 %v5292_v58, %v4181_v0  ;;  %v1639_v8 = vadd.f32 %v1638_v4, %v7391_v53  ;;  %v2952_v9 = vadd.f32 %v2951_v5, %v7393_v54 }
 0x186   :  { %v4182_v10 = vmax.f32 %v1637_v2, 0.0  ;;  %v4184_v11 = vmax.f32 %v2950_v3, 0.0  ;;  %v1640_v12 = vpop.f32.mrf.mxu0  ;;  %v2953_v13 = vpop.f32.mrf.mxu1 }
 0x187   :  { %v4183_v15 = vmax.f32 %v1639_v8, 0.0  ;;  %v4185_v16 = vmax.f32 %v2952_v9, 0.0  ;;  %v1641_v17 = vadd.f32 %v1640_v12, %v7385_v49  ;;  %v2954_v18 = vadd.f32 %v2953_v13, %v7387_v50 }
 0x188   :  { %v5183_v19 = vadd.f32 %v5182_v61, %v4182_v10  ;;  %v5257_v20 = vadd.f32 %v5256_v62, %v4184_v11  ;;  %v1642_v21 = vpop.f32.mrf.mxu0  ;;  %v2955_v22 = vpop.f32.mrf.mxu1 }
 0x189   :  { %v5220_v23 = vadd.f32 %v5219_v6, %v4183_v15  ;;  %v5294_v24 = vadd.f32 %v5293_v7, %v4185_v16  ;;  %v4186_v25 = vmax.f32 %v1641_v17, 0.0  ;;  %v4188_v26 = vmax.f32 %v2954_v18, 0.0 }
 0x18a   :  { %v1643_v27 = vadd.f32 %v1642_v21, %v7391_v53  ;;  %v2956_v28 = vadd.f32 %v2955_v22, %v7393_v54  ;;  %v1646_v29 = vpop.f32.mrf.mxu0  ;;  %6710 = vmatmul.mubr.msk.bf16.gmra.mxu0 %vm987_vm0, %v7050_v14  ;;  %v2959_v30 = vpop.f32.mrf.mxu1  ;;  %6838 = vmatmul.mubr.msk.bf16.gmra.mxu1 %vm987_vm0, %v7050_v14 }
 0x18b   :  { %v5184_v31 = vadd.f32 %v5183_v19, %v4186_v25  ;;  %v5258_v32 = vadd.f32 %v5257_v20, %v4188_v26  ;;  %v1647_v33 = vadd.f32 %v1646_v29, %v7385_v49  ;;  %v2960_v34 = vadd.f32 %v2959_v30, %v7387_v50  ;;  %1894 = vmatprep.mubr.bf16.mxu0 %v7130_v1  ;;  %v7052_v25 = vld [vmem:[%s9675_s0 + $0x190] sm:$0xff]  }
 0x18c   :  { %v4187_v35 = vmax.f32 %v1643_v27, 0.0  ;;  %v4189_v36 = vmax.f32 %v2956_v28, 0.0  ;;  %v1648_v37 = vpop.f32.mrf.mxu0  ;;  %v2961_v38 = vpop.f32.mrf.mxu1  ;;  %3207 = vmatprep.mubr.bf16.mxu1 %v7130_v1 }
 0x18d   :  { %v4190_v39 = vmax.f32 %v1647_v33, 0.0  ;;  %v4192_v40 = vmax.f32 %v2960_v34, 0.0  ;;  %v1649_v41 = vadd.f32 %v1648_v37, %v7391_v53  ;;  %v2962_v42 = vadd.f32 %v2961_v38, %v7393_v54 }
 0x18e   :  { %v5221_v43 = vadd.f32 %v5220_v23, %v4187_v35  ;;  %v5295_v44 = vadd.f32 %v5294_v24, %v4189_v36  ;;  %v1650_v45 = vpop.f32.mrf.mxu0  ;;  %v2963_v48 = vpop.f32.mrf.mxu1 }
 0x18f   :  { %v5185_v52 = vadd.f32 %v5184_v31, %v4190_v39  ;;  %v5259_v55 = vadd.f32 %v5258_v32, %v4192_v40  ;;  %v4191_v58 = vmax.f32 %v1649_v41, 0.0  ;;  %v4193_v59 = vmax.f32 %v2962_v42, 0.0 }
 0x190   :  { %v1651_v60 = vadd.f32 %v1650_v45, %v7385_v49  ;;  %v2964_v61 = vadd.f32 %v2963_v48, %v7387_v50  ;;  %v1652_v62 = vpop.f32.mrf.mxu0  ;;  %v2965_v63 = vpop.f32.mrf.mxu1 }
 0x191   :  { %v5222_v0 = vadd.f32 %v5221_v43, %v4191_v58  ;;  %v5296_v2 = vadd.f32 %v5295_v44, %v4193_v59  ;;  %v1653_v3 = vadd.f32 %v1652_v62, %v7391_v53  ;;  %v2966_v4 = vadd.f32 %v2965_v63, %v7393_v54 }
 0x192   :  { %v4194_v5 = vmax.f32 %v1651_v60, 0.0  ;;  %v4196_v6 = vmax.f32 %v2964_v61, 0.0  ;;  %v1656_v7 = vpop.f32.mrf.mxu0  ;;  %6711 = vmatmul.mubr.msk.bf16.gmra.mxu0 %vm987_vm0, %v7051_v51  ;;  %v2969_v8 = vpop.f32.mrf.mxu1  ;;  %6839 = vmatmul.mubr.msk.bf16.gmra.mxu1 %vm987_vm0, %v7051_v51 }
 0x193   :  { %v4195_v9 = vmax.f32 %v1653_v3, 0.0  ;;  %v4197_v10 = vmax.f32 %v2966_v4, 0.0  ;;  %v1657_v11 = vadd.f32 %v1656_v7, %v7385_v49  ;;  %v2970_v12 = vadd.f32 %v2969_v8, %v7387_v50  ;;  %1904 = vmatprep.mubr.bf16.mxu0 %v7130_v1  ;;  %3217 = vmatprep.mubr.bf16.mxu1 %v7130_v1  ;;  %v7053_v3 = vld [vmem:[%s9675_s0 + $0x198] sm:$0xff]  }
 0x194   :  { %v5186_v13 = vadd.f32 %v5185_v52, %v4194_v5  ;;  %v5260_v14 = vadd.f32 %v5259_v55, %v4196_v6  ;;  %v1658_v15 = vpop.f32.mrf.mxu0  ;;  %v2971_v16 = vpop.f32.mrf.mxu1 }
 0x195   :  { %v5223_v17 = vadd.f32 %v5222_v0, %v4195_v9  ;;  %v5297_v18 = vadd.f32 %v5296_v2, %v4197_v10  ;;  %v4198_v19 = vmax.f32 %v1657_v11, 0.0  ;;  %v4200_v20 = vmax.f32 %v2970_v12, 0.0 }
 0x196   :  { %v1659_v21 = vadd.f32 %v1658_v15, %v7391_v53  ;;  %v2972_v22 = vadd.f32 %v2971_v16, %v7393_v54  ;;  %v1660_v23 = vpop.f32.mrf.mxu0  ;;  %v2973_v24 = vpop.f32.mrf.mxu1 }
 0x197   :  { %v5187_v26 = vadd.f32 %v5186_v13, %v4198_v19  ;;  %v5261_v27 = vadd.f32 %v5260_v14, %v4200_v20  ;;  %v1661_v28 = vadd.f32 %v1660_v23, %v7385_v49  ;;  %v2974_v29 = vadd.f32 %v2973_v24, %v7387_v50 }
 0x198   :  { %v4199_v30 = vmax.f32 %v1659_v21, 0.0  ;;  %v4201_v31 = vmax.f32 %v2972_v22, 0.0  ;;  %v1662_v32 = vpop.f32.mrf.mxu0  ;;  %v2975_v33 = vpop.f32.mrf.mxu1 }
 0x199   :  { %v4202_v34 = vmax.f32 %v1661_v28, 0.0  ;;  %v4204_v35 = vmax.f32 %v2974_v29, 0.0  ;;  %v1663_v36 = vadd.f32 %v1662_v32, %v7391_v53  ;;  %v2976_v37 = vadd.f32 %v2975_v33, %v7393_v54  ;;  %v6265_v28 = vld [vmem:[%s9676_s3 + $0xd0] sm:$0xff] }
 0x19a   :  { %v5224_v38 = vadd.f32 %v5223_v17, %v4199_v30  ;;  %v5298_v39 = vadd.f32 %v5297_v18, %v4201_v31  ;;  %v1666_v40 = vpop.f32.mrf.mxu0  ;;  %6712 = vmatmul.mubr.msk.bf16.gmra.mxu0 %vm987_vm0, %v7052_v25  ;;  %v2979_v41 = vpop.f32.mrf.mxu1  ;;  %6840 = vmatmul.mubr.msk.bf16.gmra.mxu1 %vm987_vm0, %v7052_v25  ;;  %v6249_v29 = vld [vmem:[%s9676_s3 + $0x50] sm:$0xff] }
 0x19b   :  { %v5188_v42 = vadd.f32 %v5187_v26, %v4202_v34  ;;  %v5262_v43 = vadd.f32 %v5261_v27, %v4204_v35  ;;  %v4203_v44 = vmax.f32 %v1663_v36, 0.0  ;;  %v4205_v45 = vmax.f32 %v2976_v37, 0.0  ;;  %1914 = vmatprep.mubr.bf16.mxu0 %v7130_v1  ;;  %3227 = vmatprep.mubr.bf16.mxu1 %v7130_v1  ;;  %v6297_v34 = vld [vmem:[%s9676_s3 + $0x1d0] sm:$0xff] }
 0x19c   :  { %v1667_v48 = vadd.f32 %v1666_v40, %v7385_v49  ;;  %v2980_v51 = vadd.f32 %v2979_v41, %v7387_v50  ;;  %v1668_v52 = vpop.f32.mrf.mxu0  ;;  %v2981_v55 = vpop.f32.mrf.mxu1  ;;  %6929 = vmatprep.subr.mxu0 %v6265_v28  ;;  %v6281_v35 = vld [vmem:[%s9676_s3 + $0x150] sm:$0xff]  ;;  %v7054_v40 = vld [vmem:[%s9675_s0 + $0x1a0] sm:$0xff]   ;;  %6964 = vmatprep.subr.mxu1 %v6297_v34 }
 0x19d   :  { %v5225_v58 = vadd.f32 %v5224_v38, %v4203_v44  ;;  %v5299_v59 = vadd.f32 %v5298_v39, %v4205_v45  ;;  %v1669_v60 = vadd.f32 %v1668_v52, %v7391_v53  ;;  %v2982_v61 = vadd.f32 %v2981_v55, %v7393_v54  ;;  %6930 = vmatpush3.msra.mxu0 %v6249_v29 }
 0x19e   :  { %v4206_v62 = vmax.f32 %v1667_v48, 0.0  ;;  %v4208_v63 = vmax.f32 %v2980_v51, 0.0  ;;  %v1670_v0 = vpop.f32.mrf.mxu0  ;;  %v2983_v2 = vpop.f32.mrf.mxu1  ;;  %6965 = vmatpush3.msra.mxu1 %v6281_v35 }
 0x19f   :  { %v4207_v4 = vmax.f32 %v1669_v60, 0.0  ;;  %v4209_v5 = vmax.f32 %v2982_v61, 0.0  ;;  %v1671_v6 = vadd.f32 %v1670_v0, %v7385_v49  ;;  %v2984_v7 = vadd.f32 %v2983_v2, %v7387_v50 }
 0x1a0   :  { %v5189_v8 = vadd.f32 %v5188_v42, %v4206_v62  ;;  %v5263_v9 = vadd.f32 %v5262_v43, %v4208_v63  ;;  %v1672_v10 = vpop.f32.mrf.mxu0  ;;  %v2985_v11 = vpop.f32.mrf.mxu1 }
 0x1a1   :  { %v5226_v12 = vadd.f32 %v5225_v58, %v4207_v4  ;;  %v5300_v13 = vadd.f32 %v5299_v59, %v4209_v5  ;;  %v4210_v14 = vmax.f32 %v1671_v6, 0.0  ;;  %v4212_v15 = vmax.f32 %v2984_v7, 0.0 }
 0x1a2   :  { %v1673_v16 = vadd.f32 %v1672_v10, %v7391_v53  ;;  %v2986_v17 = vadd.f32 %v2985_v11, %v7393_v54  ;;  %v1676_v18 = vpop.f32.mrf.mxu0  ;;  %6713 = vmatmul.mubr.msk.bf16.gmra.mxu0 %vm987_vm0, %v7053_v3  ;;  %v2989_v19 = vpop.f32.mrf.mxu1  ;;  %6841 = vmatmul.mubr.msk.bf16.gmra.mxu1 %vm987_vm0, %v7053_v3 }
 0x1a3   :  { %v5190_v20 = vadd.f32 %v5189_v8, %v4210_v14  ;;  %v5264_v21 = vadd.f32 %v5263_v9, %v4212_v15  ;;  %v1677_v22 = vadd.f32 %v1676_v18, %v7385_v49  ;;  %v2990_v23 = vadd.f32 %v2989_v19, %v7387_v50  ;;  %1924 = vmatprep.mubr.bf16.mxu0 %v7130_v1  ;;  %v7055_v18 = vld [vmem:[%s9675_s0 + $0x1a8] sm:$0xff]  }
 0x1a4   :  { %v4211_v24 = vmax.f32 %v1673_v16, 0.0  ;;  %v4213_v25 = vmax.f32 %v2986_v17, 0.0  ;;  %v1678_v26 = vpop.f32.mrf.mxu0  ;;  %v2991_v27 = vpop.f32.mrf.mxu1  ;;  %3237 = vmatprep.mubr.bf16.mxu1 %v7130_v1 }
 0x1a5   :  { %v4214_v30 = vmax.f32 %v1677_v22, 0.0  ;;  %v4216_v31 = vmax.f32 %v2990_v23, 0.0  ;;  %v1679_v32 = vadd.f32 %v1678_v26, %v7391_v53  ;;  %v2992_v33 = vadd.f32 %v2991_v27, %v7393_v54 }
 0x1a6   :  { %v5227_v36 = vadd.f32 %v5226_v12, %v4211_v24  ;;  %v5301_v37 = vadd.f32 %v5300_v13, %v4213_v25  ;;  %v1680_v38 = vpop.f32.mrf.mxu0  ;;  %v2993_v39 = vpop.f32.mrf.mxu1 }
 0x1a7   :  { %v5191_v41 = vadd.f32 %v5190_v20, %v4214_v30  ;;  %v5265_v42 = vadd.f32 %v5264_v21, %v4216_v31  ;;  %v4215_v43 = vmax.f32 %v1679_v32, 0.0  ;;  %v4217_v44 = vmax.f32 %v2992_v33, 0.0 }
 0x1a8   :  { %v1681_v45 = vadd.f32 %v1680_v38, %v7385_v49  ;;  %v2994_v48 = vadd.f32 %v2993_v39, %v7387_v50  ;;  %v1682_v51 = vpop.f32.mrf.mxu0  ;;  %v2995_v52 = vpop.f32.mrf.mxu1  ;;  %v5053_v31 = vrot.slane %v7659_v46, 4  ;;  %v5127_v32 = vrot.slane %v7661_v47, 4 }
 0x1a9   :  { %v5228_v55 = vadd.f32 %v5227_v36, %v4215_v43  ;;  %v5302_v58 = vadd.f32 %v5301_v37, %v4217_v44  ;;  %v1683_v59 = vadd.f32 %v1682_v51, %v7391_v53  ;;  %v2996_v60 = vadd.f32 %v2995_v52, %v7393_v54 }
 0x1aa   :  { %v4218_v61 = vmax.f32 %v1681_v45, 0.0  ;;  %v4220_v62 = vmax.f32 %v2994_v48, 0.0  ;;  %v1686_v63 = vpop.f32.mrf.mxu0  ;;  %6714 = vmatmul.mubr.msk.bf16.gmra.mxu0 %vm987_vm0, %v7054_v40  ;;  %v2999_v0 = vpop.f32.mrf.mxu1  ;;  %6842 = vmatmul.mubr.msk.bf16.gmra.mxu1 %vm987_vm0, %v7054_v40 }
 0x1ab   :  { %v4219_v2 = vmax.f32 %v1683_v59, 0.0  ;;  %v4221_v3 = vmax.f32 %v2996_v60, 0.0  ;;  %v1687_v4 = vadd.f32 %v1686_v63, %v7385_v49  ;;  %v3000_v5 = vadd.f32 %v2999_v0, %v7387_v50  ;;  %1934 = vmatprep.mubr.bf16.mxu0 %v7130_v1  ;;  %3247 = vmatprep.mubr.bf16.mxu1 %v7130_v1  ;;  %v7056_v0 = vld [vmem:[%s9675_s0 + $0x1b0] sm:$0xff]  }
 0x1ac   :  { %v5192_v6 = vadd.f32 %v5191_v41, %v4218_v61  ;;  %v5266_v7 = vadd.f32 %v5265_v42, %v4220_v62  ;;  %v1688_v8 = vpop.f32.mrf.mxu0  ;;  %v3001_v9 = vpop.f32.mrf.mxu1  ;;  %v5090_v41 = vrot.slane %v7665_v56, 4  ;;  %v5128_v59 = vadd.f32 %v5127_v32, %v7661_v47 }
 0x1ad   :  { %v5229_v10 = vadd.f32 %v5228_v55, %v4219_v2  ;;  %v5303_v11 = vadd.f32 %v5302_v58, %v4221_v3  ;;  %v4222_v12 = vmax.f32 %v1687_v4, 0.0  ;;  %v4224_v13 = vmax.f32 %v3000_v5, 0.0 }
 0x1ae   :  { %v1689_v14 = vadd.f32 %v1688_v8, %v7391_v53  ;;  %v3002_v15 = vadd.f32 %v3001_v9, %v7393_v54  ;;  %v1690_v16 = vpop.f32.mrf.mxu0  ;;  %v3003_v17 = vpop.f32.mrf.mxu1  ;;  %v5054_v58 = vadd.f32 %v5053_v31, %v7659_v46  ;;  %v5164_v46 = vrot.slane %v7667_v57, 4 }
 0x1af   :  { %v5193_v19 = vadd.f32 %v5192_v6, %v4222_v12  ;;  %v5267_v20 = vadd.f32 %v5266_v7, %v4224_v13  ;;  %v1691_v21 = vadd.f32 %v1690_v16, %v7385_v49  ;;  %v3004_v22 = vadd.f32 %v3003_v17, %v7387_v50 }
 0x1b0   :  { %v4223_v23 = vmax.f32 %v1689_v14, 0.0  ;;  %v4225_v24 = vmax.f32 %v3002_v15, 0.0  ;;  %v1692_v25 = vpop.f32.mrf.mxu0  ;;  %v3005_v26 = vpop.f32.mrf.mxu1  ;;  %v5091_v6 = vadd.f32 %v5090_v41, %v7665_v56  ;;  %v5055_v14 = vrot.slane %v5054_v58, 2 }
 0x1b1   :  { %v4226_v27 = vmax.f32 %v1691_v21, 0.0  ;;  %v4228_v28 = vmax.f32 %v3004_v22, 0.0  ;;  %v1693_v29 = vadd.f32 %v1692_v25, %v7391_v53  ;;  %v3006_v30 = vadd.f32 %v3005_v26, %v7393_v54 }
 0x1b2   :  { %v5230_v33 = vadd.f32 %v5229_v10, %v4223_v23  ;;  %v5304_v34 = vadd.f32 %v5303_v11, %v4225_v24  ;;  %v1696_v35 = vpop.f32.mrf.mxu0  ;;  %6715 = vmatmul.mubr.msk.bf16.gmra.mxu0 %vm987_vm0, %v7055_v18  ;;  %v3009_v36 = vpop.f32.mrf.mxu1  ;;  %6843 = vmatmul.mubr.msk.bf16.gmra.mxu1 %vm987_vm0, %v7055_v18  ;;  %v5129_v15 = vrot.slane %v5128_v59, 2  ;;  %v5092_v23 = vrot.slane %v5091_v6, 2 }
 0x1b3   :  { %v5194_v37 = vadd.f32 %v5193_v19, %v4226_v27  ;;  %v5268_v38 = vadd.f32 %v5267_v20, %v4228_v28  ;;  %v4227_v39 = vmax.f32 %v1693_v29, 0.0  ;;  %v4229_v40 = vmax.f32 %v3006_v30, 0.0  ;;  %1944 = vmatprep.mubr.bf16.mxu0 %v7130_v1  ;;  %3257 = vmatprep.mubr.bf16.mxu1 %v7130_v1 }
 0x1b4   :  { %v1697_v42 = vadd.f32 %v1696_v35, %v7385_v49  ;;  %v3010_v43 = vadd.f32 %v3009_v36, %v7387_v50  ;;  %v1698_v44 = vpop.f32.mrf.mxu0  ;;  %v3011_v45 = vpop.f32.mrf.mxu1  ;;  %v5165_v24 = vadd.f32 %v5164_v46, %v7667_v57 }
 0x1b5   :  { %v5231_v48 = vadd.f32 %v5230_v33, %v4227_v39  ;;  %v5305_v51 = vadd.f32 %v5304_v34, %v4229_v40  ;;  %v1699_v52 = vadd.f32 %v1698_v44, %v7391_v53  ;;  %v3012_v55 = vadd.f32 %v3011_v45, %v7393_v54 }
 0x1b6   :  { %v4230_v60 = vmax.f32 %v1697_v42, 0.0  ;;  %v4232_v61 = vmax.f32 %v3010_v43, 0.0  ;;  %v1700_v62 = vpop.f32.mrf.mxu0  ;;  %v3013_v63 = vpop.f32.mrf.mxu1  ;;  %v5056_v33 = vadd.f32 %v5055_v14, %v5054_v58  ;;  %v5130_v34 = vadd.f32 %v5129_v15, %v5128_v59 }
 0x1b7   :  { %v4231_v2 = vmax.f32 %v1699_v52, 0.0  ;;  %v4233_v3 = vmax.f32 %v3012_v55, 0.0  ;;  %v1701_v4 = vadd.f32 %v1700_v62, %v7385_v49  ;;  %v3014_v5 = vadd.f32 %v3013_v63, %v7387_v50 }
 0x1b8   :  { %v5195_v7 = vadd.f32 %v5194_v37, %v4230_v60  ;;  %v5269_v47 = vadd.f32 %v5268_v38, %v4232_v61  ;;  %v1702_v8 = vpop.f32.mrf.mxu0  ;;  %v3015_v9 = vpop.f32.mrf.mxu1  ;;  %v7057_v38 = vld [vmem:[%s9675_s0 + $0x1b8] sm:$0xff]   ;;  %v5093_v43 = vadd.f32 %v5092_v23, %v5091_v6  ;;  %v5166_v44 = vrot.slane %v5165_v24, 2 }
 0x1b9   :  { %v5232_v10 = vadd.f32 %v5231_v48, %v4231_v2  ;;  %v5306_v11 = vadd.f32 %v5305_v51, %v4233_v3  ;;  %v4234_v12 = vmax.f32 %v1701_v4, 0.0  ;;  %v4236_v13 = vmax.f32 %v3014_v5, 0.0 }
 0x1ba   :  { %v1703_v16 = vadd.f32 %v1702_v8, %v7391_v53  ;;  %v3016_v17 = vadd.f32 %v3015_v9, %v7393_v54  ;;  %v1706_v18 = vpop.f32.mrf.mxu0  ;;  %6716 = vmatmul.mubr.msk.bf16.gmra.mxu0 %vm987_vm0, %v7056_v0  ;;  %v3019_v56 = vpop.f32.mrf.mxu1  ;;  %6844 = vmatmul.mubr.msk.bf16.gmra.mxu1 %vm987_vm0, %v7056_v0  ;;  %v5057_v61 = vrot.slane %v5056_v33, 1  ;;  %v5131_v62 = vrot.slane %v5130_v34, 1 }
 0x1bb   :  { %v5196_v19 = vadd.f32 %v5195_v7, %v4234_v12  ;;  %v5270_v20 = vadd.f32 %v5269_v47, %v4236_v13  ;;  %v1707_v21 = vadd.f32 %v1706_v18, %v7385_v49  ;;  %v3020_v22 = vadd.f32 %v3019_v56, %v7387_v50  ;;  %1954 = vmatprep.mubr.bf16.mxu0 %v7130_v1 }
 0x1bc   :  { %v4235_v25 = vmax.f32 %v1703_v16, 0.0  ;;  %v4237_v26 = vmax.f32 %v3016_v17, 0.0  ;;  %v1708_v27 = vpop.f32.mrf.mxu0  ;;  %v3021_v28 = vpop.f32.mrf.mxu1  ;;  %3267 = vmatprep.mubr.bf16.mxu1 %v7130_v1  ;;  %v5094_v7 = vrot.slane %v5093_v43, 1  ;;  %v5167_v47 = vadd.f32 %v5166_v44, %v5165_v24 }
 0x1bd   :  { %v4238_v29 = vmax.f32 %v1707_v21, 0.0  ;;  %v4240_v30 = vmax.f32 %v3020_v22, 0.0  ;;  %v1709_v31 = vadd.f32 %v1708_v27, %v7391_v53  ;;  %v3022_v32 = vadd.f32 %v3021_v28, %v7393_v54  ;;  %v7058_v21 = vld [vmem:[%s9675_s0 + $0x1c0] sm:$0xff]  }
 0x1be   :  { %v5233_v35 = vadd.f32 %v5232_v10, %v4235_v25  ;;  %v5307_v36 = vadd.f32 %v5306_v11, %v4237_v26  ;;  %v1710_v37 = vpop.f32.mrf.mxu0  ;;  %v3023_v57 = vpop.f32.mrf.mxu1  ;;  %v5058_v16 = vadd.f32 %v5057_v61, %v5056_v33  ;;  %v5132_v17 = vadd.f32 %v5131_v62, %v5130_v34 }
 0x1bf   :  { %v5197_v39 = vadd.f32 %v5196_v19, %v4238_v29  ;;  %v5271_v40 = vadd.f32 %v5270_v20, %v4240_v30  ;;  %v4239_v41 = vmax.f32 %v1709_v31, 0.0  ;;  %v4241_v42 = vmax.f32 %v3022_v32, 0.0 }
 0x1c0   :  { %v1711_v45 = vadd.f32 %v1710_v37, %v7385_v49  ;;  %v3024_v48 = vadd.f32 %v3023_v57, %v7387_v50  ;;  %v1712_v51 = vpop.f32.mrf.mxu0  ;;  %v3025_v52 = vpop.f32.mrf.mxu1  ;;  %v5095_v26 = vadd.f32 %v5094_v7, %v5093_v43  ;;  %v5168_v27 = vrot.slane %v5167_v47, 1 }
 0x1c1   :  { %v5234_v55 = vadd.f32 %v5233_v35, %v4239_v41  ;;  %v5308_v58 = vadd.f32 %v5307_v36, %v4241_v42  ;;  %v1713_v59 = vadd.f32 %v1712_v51, %v7391_v53  ;;  %v3026_v60 = vadd.f32 %v3025_v52, %v7393_v54 }
 0x1c2   :  { %v4242_v63 = vmax.f32 %v1711_v45, 0.0  ;;  %v4244_v0 = vmax.f32 %v3024_v48, 0.0  ;;  %v1716_v2 = vpop.f32.mrf.mxu0  ;;  %6717 = vmatmul.mubr.msk.bf16.gmra.mxu0 %vm987_vm0, %v7057_v38  ;;  %v3029_v3 = vpop.f32.mrf.mxu1  ;;  %6845 = vmatmul.mubr.msk.bf16.gmra.mxu1 %vm987_vm0, %v7057_v38  ;;  %v7937_v36 = vmul.f32 0.00390625, %v5058_v16  ;;  %v7939_v37 = vmul.f32 0.00390625, %v5132_v17 }
 0x1c3   :  { %v4243_v4 = vmax.f32 %v1713_v59, 0.0  ;;  %v4245_v5 = vmax.f32 %v3026_v60, 0.0  ;;  %v1717_v6 = vadd.f32 %v1716_v2, %v7385_v49  ;;  %v3030_v46 = vadd.f32 %v3029_v3, %v7387_v50  ;;  %1964 = vmatprep.mubr.bf16.mxu0 %v7130_v1  ;;  %3277 = vmatprep.mubr.bf16.mxu1 %v7130_v1 }
 0x1c4   :  { %v5198_v8 = vadd.f32 %v5197_v39, %v4242_v63  ;;  %v5272_v9 = vadd.f32 %v5271_v40, %v4244_v0  ;;  %v1718_v10 = vpop.f32.mrf.mxu0  ;;  %v3031_v11 = vpop.f32.mrf.mxu1  ;;  %v7944_v45 = vmul.f32 0.00390625, %v5095_v26  ;;  %v7946_v48 = vadd.f32 %v5168_v27, %v5167_v47 }
 0x1c5   :  { %v5235_v12 = vadd.f32 %v5234_v55, %v4243_v4  ;;  %v5309_v13 = vadd.f32 %v5308_v58, %v4245_v5  ;;  %v4246_v14 = vmax.f32 %v1717_v6, 0.0  ;;  %v4248_v15 = vmax.f32 %v3030_v46, 0.0  ;;  %v7059_v6 = vld [vmem:[%s9675_s0 + $0x1c8] sm:$0xff]  }
 0x1c6   :  { %v1719_v18 = vadd.f32 %v1718_v10, %v7391_v53  ;;  %v3032_v56 = vadd.f32 %v3031_v11, %v7393_v54  ;;  %v1720_v19 = vpop.f32.mrf.mxu0  ;;  %v3033_v20 = vpop.f32.mrf.mxu1 }
 0x1c7   :  { %v5199_v22 = vadd.f32 %v5198_v8, %v4246_v14  ;;  %v5273_v23 = vadd.f32 %v5272_v9, %v4248_v15  ;;  %v1721_v24 = vadd.f32 %v1720_v19, %v7385_v49  ;;  %v3034_v25 = vadd.f32 %v3033_v20, %v7387_v50 }
 0x1c8   :  { %v4247_v28 = vmax.f32 %v1719_v18, 0.0  ;;  %v4249_v29 = vmax.f32 %v3032_v56, 0.0  ;;  %v1722_v30 = vpop.f32.mrf.mxu0  ;;  %v3035_v31 = vpop.f32.mrf.mxu1 }
 0x1c9   :  { %v4250_v32 = vmax.f32 %v1721_v24, 0.0  ;;  %v4252_v33 = vmax.f32 %v3034_v25, 0.0  ;;  %v1723_v34 = vadd.f32 %v1722_v30, %v7391_v53  ;;  %v3036_v35 = vadd.f32 %v3035_v31, %v7393_v54 }
 0x1ca   :  { %v5236_v57 = vadd.f32 %v5235_v12, %v4247_v28  ;;  %v5310_v38 = vadd.f32 %v5309_v13, %v4249_v29  ;;  %v1726_v39 = vpop.f32.mrf.mxu0  ;;  %6718 = vmatmul.mubr.msk.bf16.gmra.mxu0 %vm987_vm0, %v7058_v21  ;;  %v3039_v40 = vpop.f32.mrf.mxu1  ;;  %6846 = vmatmul.mubr.msk.bf16.gmra.mxu1 %vm987_vm0, %v7058_v21 }
 0x1cb   :  { %v5200_v41 = vadd.f32 %v5199_v22, %v4250_v32  ;;  %v5274_v42 = vadd.f32 %v5273_v23, %v4252_v33  ;;  %v4251_v43 = vmax.f32 %v1723_v34, 0.0  ;;  %v4253_v44 = vmax.f32 %v3036_v35, 0.0  ;;  %1974 = vmatprep.mubr.bf16.mxu0 %v7130_v1  ;;  %3287 = vmatprep.mubr.bf16.mxu1 %v7130_v1 }
 0x1cc   :  { %v1727_v51 = vadd.f32 %v1726_v39, %v7385_v49  ;;  %v3040_v52 = vadd.f32 %v3039_v40, %v7387_v50  ;;  %v1728_v55 = vpop.f32.mrf.mxu0  ;;  %v3041_v58 = vpop.f32.mrf.mxu1 }
 0x1cd   :  { %v5201_v59 = vrot.slane %v5200_v41, 4  ;;  %v5275_v60 = vrot.slane %v5274_v42, 4  ;;  %v5237_v61 = vadd.f32 %v5236_v57, %v4251_v43  ;;  %v5311_v62 = vadd.f32 %v5310_v38, %v4253_v44 }
 0x1ce   :  { %v4254_v63 = vmax.f32 %v1727_v51, 0.0  ;;  %v4256_v0 = vmax.f32 %v3040_v52, 0.0  ;;  %v1729_v2 = vadd.f32 %v1728_v55, %v7391_v53  ;;  %v3042_v3 = vadd.f32 %v3041_v58, %v7393_v54  ;;  %v1730_v4 = vpop.f32.mrf.mxu0  ;;  %v3043_v5 = vpop.f32.mrf.mxu1  ;;  %v7060_v51 = vld [vmem:[%s9675_s0 + $0x1d0] sm:$0xff]  }
 0x1cf   :  { %v5202_v46 = vadd.f32 %v5201_v59, %v5200_v41  ;;  %v5276_v7 = vadd.f32 %v5275_v60, %v5274_v42  ;;  %v5238_v47 = vrot.slane %v5237_v61, 4  ;;  %v5312_v8 = vrot.slane %v5311_v62, 4 }
 0x1d0   :  { %v4255_v9 = vmax.f32 %v1729_v2, 0.0  ;;  %v4257_v10 = vmax.f32 %v3042_v3, 0.0  ;;  %v1731_v11 = vadd.f32 %v1730_v4, %v7385_v49  ;;  %v3044_v12 = vadd.f32 %v3043_v5, %v7387_v50  ;;  %v1732_v13 = vpop.f32.mrf.mxu0  ;;  %v3045_v14 = vpop.f32.mrf.mxu1 }
 0x1d1   :  { %v5203_v15 = vrot.slane %v5202_v46, 2  ;;  %v5277_v16 = vrot.slane %v5276_v7, 2  ;;  %v5239_v17 = vadd.f32 %v5238_v47, %v5237_v61  ;;  %v5313_v18 = vadd.f32 %v5312_v8, %v5311_v62 }
 0x1d2   :  { %v4258_v56 = vmax.f32 %v1731_v11, 0.0  ;;  %v4260_v19 = vmax.f32 %v3044_v12, 0.0  ;;  %v1733_v20 = vadd.f32 %v1732_v13, %v7391_v53  ;;  %v3046_v21 = vadd.f32 %v3045_v14, %v7393_v54  ;;  %v1736_v22 = vpop.f32.mrf.mxu0  ;;  %6719 = vmatmul.mubr.msk.bf16.gmra.mxu0 %vm987_vm0, %v7059_v6  ;;  %v3049_v23 = vpop.f32.mrf.mxu1  ;;  %6847 = vmatmul.mubr.msk.bf16.gmra.mxu1 %vm987_vm0, %v7059_v6 }
 0x1d3   :  { %v5204_v24 = vadd.f32 %v5203_v15, %v5202_v46  ;;  %v5278_v25 = vadd.f32 %v5277_v16, %v5276_v7  ;;  %v5240_v26 = vrot.slane %v5239_v17, 2  ;;  %v5314_v27 = vrot.slane %v5313_v18, 2  ;;  %1984 = vmatprep.mubr.bf16.mxu0 %v7130_v1  ;;  %3297 = vmatprep.mubr.bf16.mxu1 %v7130_v1 }
 0x1d4   :  { %v5318_v28 = vadd.f32 %v4258_v56, %v4254_v63  ;;  %v5392_v29 = vadd.f32 %v4260_v19, %v4256_v0  ;;  %v4259_v30 = vmax.f32 %v1733_v20, 0.0  ;;  %v4261_v31 = vmax.f32 %v3046_v21, 0.0  ;;  %v1738_v32 = vpop.f32.mrf.mxu0  ;;  %v3051_v33 = vpop.f32.mrf.mxu1 }
 0x1d5   :  { %v5205_v34 = vrot.slane %v5204_v24, 1  ;;  %v5279_v35 = vrot.slane %v5278_v25, 1  ;;  %v5241_v57 = vadd.f32 %v5240_v26, %v5239_v17  ;;  %v5315_v38 = vadd.f32 %v5314_v27, %v5313_v18 }
 0x1d6   :  { %v5355_v39 = vadd.f32 %v4259_v30, %v4255_v9  ;;  %v5429_v40 = vadd.f32 %v4261_v31, %v4257_v10  ;;  %v1737_v41 = vadd.f32 %v1736_v22, %v7385_v49  ;;  %v3050_v42 = vadd.f32 %v3049_v23, %v7387_v50  ;;  %v1740_v43 = vpop.f32.mrf.mxu0  ;;  %v3053_v44 = vpop.f32.mrf.mxu1 }
 0x1d7   :  { %v5206_v52 = vadd.f32 %v5205_v34, %v5204_v24  ;;  %v5280_v55 = vadd.f32 %v5279_v35, %v5278_v25  ;;  %v5242_v58 = vrot.slane %v5241_v57, 1  ;;  %v5316_v59 = vrot.slane %v5315_v38, 1 }
 0x1d8   :  { %v4262_v60 = vmax.f32 %v1737_v41, 0.0  ;;  %v4264_v61 = vmax.f32 %v3050_v42, 0.0  ;;  %v1739_v62 = vadd.f32 %v1738_v32, %v7391_v53  ;;  %v3052_v63 = vadd.f32 %v3051_v33, %v7393_v54  ;;  %v1742_v0 = vpop.f32.mrf.mxu0  ;;  %v3055_v2 = vpop.f32.mrf.mxu1 }
 0x1d9   :  { %v6211_v3 = vmul.f32 0.00390625, %v5206_v52  ;;  %v6213_v4 = vmul.f32 0.00390625, %v5280_v55  ;;  %v5243_v5 = vadd.f32 %v5242_v58, %v5241_v57  ;;  %v5317_v6 = vadd.f32 %v5316_v59, %v5315_v38 }
 0x1da   :  { %v5319_v46 = vadd.f32 %v5318_v28, %v4262_v60  ;;  %v5393_v7 = vadd.f32 %v5392_v29, %v4264_v61  ;;  %v4263_v47 = vmax.f32 %v1739_v62, 0.0  ;;  %v4265_v8 = vmax.f32 %v3052_v63, 0.0  ;;  %v1746_v9 = vpop.f32.mrf.mxu0  ;;  %6720 = vmatmul.mubr.msk.bf16.gmra.mxu0 %vm987_vm0, %v7060_v51  ;;  %v3059_v10 = vpop.f32.mrf.mxu1  ;;  %6848 = vmatmul.mubr.msk.bf16.gmra.mxu1 %vm987_vm0, %v7060_v51  ;;  %v7061_v28 = vld [vmem:[%s9675_s0 + $0x1d8] sm:$0xff]  }
 0x1db   :  { %v7974_v11 = vsel %vm6342_vm1, %v6211_v3, %v7937_v36  ;;  %v7978_v12 = vsel %vm6342_vm1, %v6213_v4, %v7939_v37  ;;  %v7980_v13 = vmul.f32 0.00390625, %v5243_v5  ;;  %v7982_v14 = vmul.f32 0.00390625, %v5317_v6  ;;  %1994 = vmatprep.mubr.bf16.mxu0 %v7130_v1  ;;  %3307 = vmatprep.mubr.bf16.mxu1 %v7130_v1 }
 0x1dc   :  { %v5356_v15 = vadd.f32 %v5355_v39, %v4263_v47  ;;  %v5430_v16 = vadd.f32 %v5429_v40, %v4265_v8  ;;  %v1741_v17 = vadd.f32 %v1740_v43, %v7385_v49  ;;  %v3054_v18 = vadd.f32 %v3053_v44, %v7387_v50  ;;  %v1748_v36 = vpop.f32.mrf.mxu0  ;;  %v3061_v56 = vpop.f32.mrf.mxu1 }
 0x1dd   :  { %v1743_v37 = vadd.f32 %v1742_v0, %v7391_v53  ;;  %v3056_v19 = vadd.f32 %v3055_v2, %v7393_v54  ;;  %v1747_v20 = vadd.f32 %v1746_v9, %v7385_v49  ;;  %v3060_v21 = vadd.f32 %v3059_v10, %v7387_v50  ;;  %v7062_v9 = vld [vmem:[%s9675_s0 + $0x1e0] sm:$0xff]  }
 0x1de   :  { %v4266_v22 = vmax.f32 %v1741_v17, 0.0  ;;  %v4268_v23 = vmax.f32 %v3054_v18, 0.0  ;;  %v1749_v24 = vadd.f32 %v1748_v36, %v7391_v53  ;;  %v3062_v25 = vadd.f32 %v3061_v56, %v7393_v54  ;;  %v1750_v26 = vpop.f32.mrf.mxu0  ;;  %v3063_v27 = vpop.f32.mrf.mxu1  ;;  %v6264_v56 = vld [vmem:[%s9676_s3 + $0xc8] sm:$0xff] }
 0x1df   :  { %v4267_v29 = vmax.f32 %v1743_v37, 0.0  ;;  %v4269_v30 = vmax.f32 %v3056_v19, 0.0  ;;  %v4270_v31 = vmax.f32 %v1747_v20, 0.0  ;;  %v4272_v32 = vmax.f32 %v3060_v21, 0.0  ;;  %v6248_v37 = vld [vmem:[%s9676_s3 + $0x48] sm:$0xff]  ;;  %6931 = vmatprep.subr.mxu0 %v6264_v56 }
 0x1e0   :  { %v5320_v33 = vadd.f32 %v5319_v46, %v4266_v22  ;;  %v5394_v34 = vadd.f32 %v5393_v7, %v4268_v23  ;;  %v4271_v35 = vmax.f32 %v1749_v24, 0.0  ;;  %v4273_v57 = vmax.f32 %v3062_v25, 0.0  ;;  %v1752_v38 = vpop.f32.mrf.mxu0  ;;  %v3065_v39 = vpop.f32.mrf.mxu1  ;;  %v6296_v19 = vld [vmem:[%s9676_s3 + $0x1c8] sm:$0xff]  ;;  %6932 = vmatpush3.msra.mxu0 %v6248_v37 }
 0x1e1   :  { %v5357_v40 = vadd.f32 %v5356_v15, %v4267_v29  ;;  %v5431_v41 = vadd.f32 %v5430_v16, %v4269_v30  ;;  %v1751_v42 = vadd.f32 %v1750_v26, %v7385_v49  ;;  %v3064_v43 = vadd.f32 %v3063_v27, %v7387_v50  ;;  %6966 = vmatprep.subr.mxu1 %v6296_v19  ;;  %v6280_v24 = vld [vmem:[%s9676_s3 + $0x148] sm:$0xff] }
 0x1e2   :  { %v5321_v44 = vadd.f32 %v5320_v33, %v4270_v31  ;;  %v5395_v51 = vadd.f32 %v5394_v34, %v4272_v32  ;;  %v1753_v52 = vadd.f32 %v1752_v38, %v7391_v53  ;;  %v3066_v55 = vadd.f32 %v3065_v39, %v7393_v54  ;;  %v1756_v58 = vpop.f32.mrf.mxu0  ;;  %6721 = vmatmul.mubr.msk.bf16.gmra.mxu0 %vm987_vm0, %v7061_v28  ;;  %v3069_v59 = vpop.f32.mrf.mxu1 }
 0x1e3   :  { %v5358_v60 = vadd.f32 %v5357_v40, %v4271_v35  ;;  %v5432_v61 = vadd.f32 %v5431_v41, %v4273_v57  ;;  %v4274_v62 = vmax.f32 %v1751_v42, 0.0  ;;  %v4276_v63 = vmax.f32 %v3064_v43, 0.0  ;;  %6849 = vmatmul.mubr.msk.bf16.gmra.mxu1 %vm987_vm0, %v7061_v28  ;;  %2004 = vmatprep.mubr.bf16.mxu0 %v7130_v1 }
 0x1e4   :  { %v4275_v0 = vmax.f32 %v1753_v52, 0.0  ;;  %v4277_v2 = vmax.f32 %v3066_v55, 0.0  ;;  %v1757_v3 = vadd.f32 %v1756_v58, %v7385_v49  ;;  %v3070_v4 = vadd.f32 %v3069_v59, %v7387_v50  ;;  %v1758_v5 = vpop.f32.mrf.mxu0  ;;  %v3071_v6 = vpop.f32.mrf.mxu1  ;;  %3317 = vmatprep.mubr.bf16.mxu1 %v7130_v1  ;;  %6967 = vmatpush3.msra.mxu1 %v6280_v24 }
 0x1e5   :  { %v5322_v46 = vadd.f32 %v5321_v44, %v4274_v62  ;;  %v5396_v7 = vadd.f32 %v5395_v51, %v4276_v63  ;;  %v1759_v47 = vadd.f32 %v1758_v5, %v7391_v53  ;;  %v3072_v8 = vadd.f32 %v3071_v6, %v7393_v54  ;;  %v7063_v63 = vld [vmem:[%s9675_s0 + $0x1e8] sm:$0xff]  }
 0x1e6   :  { %v5359_v10 = vadd.f32 %v5358_v60, %v4275_v0  ;;  %v5433_v15 = vadd.f32 %v5432_v61, %v4277_v2  ;;  %v4278_v16 = vmax.f32 %v1757_v3, 0.0  ;;  %v4280_v17 = vmax.f32 %v3070_v4, 0.0  ;;  %v1760_v18 = vpop.f32.mrf.mxu0  ;;  %v3073_v36 = vpop.f32.mrf.mxu1 }
 0x1e7   :  { %v4279_v20 = vmax.f32 %v1759_v47, 0.0  ;;  %v4281_v21 = vmax.f32 %v3072_v8, 0.0  ;;  %v1761_v22 = vadd.f32 %v1760_v18, %v7385_v49  ;;  %v3074_v23 = vadd.f32 %v3073_v36, %v7387_v50 }
 0x1e8   :  { %v6210_v25 = vmul.f32 0.00390625, %v7946_v48  ;;  %v5323_v26 = vadd.f32 %v5322_v46, %v4278_v16  ;;  %v5397_v27 = vadd.f32 %v5396_v7, %v4280_v17  ;;  %v1762_v28 = vpop.f32.mrf.mxu0  ;;  %v3075_v29 = vpop.f32.mrf.mxu1  ;;  %v8031_v30 = vsel %vm6342_vm1, %v7980_v13, %v7944_v45 }
 0x1e9   :  { %v5360_v31 = vadd.f32 %v5359_v10, %v4279_v20  ;;  %v5434_v32 = vadd.f32 %v5433_v15, %v4281_v21  ;;  %v4282_v33 = vmax.f32 %v1761_v22, 0.0  ;;  %v4284_v34 = vmax.f32 %v3074_v23, 0.0 }
 0x1ea   :  { %v1763_v35 = vadd.f32 %v1762_v28, %v7391_v53  ;;  %v3076_v57 = vadd.f32 %v3075_v29, %v7393_v54  ;;  %v1766_v48 = vpop.f32.mrf.mxu0  ;;  %6722 = vmatmul.mubr.msk.bf16.gmra.mxu0 %vm987_vm0, %v7062_v9  ;;  %v3079_v38 = vpop.f32.mrf.mxu1  ;;  %v8038_v39 = vsel %vm6342_vm1, %v7982_v14, %v6210_v25 }
 0x1eb   :  { %v5324_v40 = vadd.f32 %v5323_v26, %v4282_v33  ;;  %v5398_v41 = vadd.f32 %v5397_v27, %v4284_v34  ;;  %v1767_v45 = vadd.f32 %v1766_v48, %v7385_v49  ;;  %v3080_v13 = vadd.f32 %v3079_v38, %v7387_v50  ;;  %6850 = vmatmul.mubr.msk.bf16.gmra.mxu1 %vm987_vm0, %v7062_v9  ;;  %v7064_v33 = vld [vmem:[%s9675_s0 + $0x1f0] sm:$0xff]  }
 0x1ec   :  { %v4283_v42 = vmax.f32 %v1763_v35, 0.0  ;;  %v4285_v43 = vmax.f32 %v3076_v57, 0.0  ;;  %v1768_v44 = vpop.f32.mrf.mxu0  ;;  %v3081_v51 = vpop.f32.mrf.mxu1  ;;  %2014 = vmatprep.mubr.bf16.mxu0 %v7130_v1  ;;  %3327 = vmatprep.mubr.bf16.mxu1 %v7130_v1 }
 0x1ed   :  { %v4286_v52 = vmax.f32 %v1767_v45, 0.0  ;;  %v4288_v55 = vmax.f32 %v3080_v13, 0.0  ;;  %v1769_v14 = vadd.f32 %v1768_v44, %v7391_v53  ;;  %v3082_v58 = vadd.f32 %v3081_v51, %v7393_v54 }
 0x1ee   :  { %v5361_v59 = vadd.f32 %v5360_v31, %v4283_v42  ;;  %v5435_v60 = vadd.f32 %v5434_v32, %v4285_v43  ;;  %v1770_v61 = vpop.f32.mrf.mxu0  ;;  %v3083_v62 = vpop.f32.mrf.mxu1 }
 0x1ef   :  { %v5325_v0 = vadd.f32 %v5324_v40, %v4286_v52  ;;  %v5399_v2 = vadd.f32 %v5398_v41, %v4288_v55  ;;  %v4287_v3 = vmax.f32 %v1769_v14, 0.0  ;;  %v4289_v4 = vmax.f32 %v3082_v58, 0.0 }
 0x1f0   :  { %v1771_v5 = vadd.f32 %v1770_v61, %v7385_v49  ;;  %v3084_v6 = vadd.f32 %v3083_v62, %v7387_v50  ;;  %v1772_v46 = vpop.f32.mrf.mxu0  ;;  %v3085_v7 = vpop.f32.mrf.mxu1 }
 0x1f1   :  { %v5362_v47 = vadd.f32 %v5361_v59, %v4287_v3  ;;  %v5436_v8 = vadd.f32 %v5435_v60, %v4289_v4  ;;  %v1773_v9 = vadd.f32 %v1772_v46, %v7391_v53  ;;  %v3086_v10 = vadd.f32 %v3085_v7, %v7393_v54 }
 0x1f2   :  { %v4290_v15 = vmax.f32 %v1771_v5, 0.0  ;;  %v4292_v16 = vmax.f32 %v3084_v6, 0.0  ;;  %v1776_v17 = vpop.f32.mrf.mxu0  ;;  %6723 = vmatmul.mubr.msk.bf16.gmra.mxu0 %vm987_vm0, %v7063_v63  ;;  %v3089_v18 = vpop.f32.mrf.mxu1 }
 0x1f3   :  { %v4291_v36 = vmax.f32 %v1773_v9, 0.0  ;;  %v4293_v56 = vmax.f32 %v3086_v10, 0.0  ;;  %v1777_v37 = vadd.f32 %v1776_v17, %v7385_v49  ;;  %v3090_v19 = vadd.f32 %v3089_v18, %v7387_v50  ;;  %6851 = vmatmul.mubr.msk.bf16.gmra.mxu1 %vm987_vm0, %v7063_v63  ;;  %2024 = vmatprep.mubr.bf16.mxu0 %v7130_v1  ;;  %v7065_v9 = vld [vmem:[%s9675_s0 + $0x1f8] sm:$0xff]  }
 0x1f4   :  { %v5326_v20 = vadd.f32 %v5325_v0, %v4290_v15  ;;  %v5400_v21 = vadd.f32 %v5399_v2, %v4292_v16  ;;  %v1778_v22 = vpop.f32.mrf.mxu0  ;;  %v3091_v23 = vpop.f32.mrf.mxu1  ;;  %3337 = vmatprep.mubr.bf16.mxu1 %v7130_v1 }
 0x1f5   :  { %v5363_v24 = vadd.f32 %v5362_v47, %v4291_v36  ;;  %v5437_v25 = vadd.f32 %v5436_v8, %v4293_v56  ;;  %v4294_v26 = vmax.f32 %v1777_v37, 0.0  ;;  %v4296_v27 = vmax.f32 %v3090_v19, 0.0 }
 0x1f6   :  { %v1779_v28 = vadd.f32 %v1778_v22, %v7391_v53  ;;  %v3092_v29 = vadd.f32 %v3091_v23, %v7393_v54  ;;  %v1780_v31 = vpop.f32.mrf.mxu0  ;;  %v3093_v32 = vpop.f32.mrf.mxu1 }
 0x1f7   :  { %v5327_v34 = vadd.f32 %v5326_v20, %v4294_v26  ;;  %v5401_v35 = vadd.f32 %v5400_v21, %v4296_v27  ;;  %v1781_v57 = vadd.f32 %v1780_v31, %v7385_v49  ;;  %v3094_v48 = vadd.f32 %v3093_v32, %v7387_v50 }
 0x1f8   :  { %v4295_v38 = vmax.f32 %v1779_v28, 0.0  ;;  %v4297_v40 = vmax.f32 %v3092_v29, 0.0  ;;  %v1782_v41 = vpop.f32.mrf.mxu0  ;;  %v3095_v45 = vpop.f32.mrf.mxu1 }
 0x1f9   :  { %v4298_v13 = vmax.f32 %v1781_v57, 0.0  ;;  %v4300_v42 = vmax.f32 %v3094_v48, 0.0  ;;  %v1783_v43 = vadd.f32 %v1782_v41, %v7391_v53  ;;  %v3096_v44 = vadd.f32 %v3095_v45, %v7393_v54 }
 0x1fa   :  { %v5364_v51 = vadd.f32 %v5363_v24, %v4295_v38  ;;  %v5438_v52 = vadd.f32 %v5437_v25, %v4297_v40  ;;  %v1786_v55 = vpop.f32.mrf.mxu0  ;;  %6724 = vmatmul.mubr.msk.bf16.gmra.mxu0 %vm987_vm0, %v7064_v33  ;;  %v3099_v14 = vpop.f32.mrf.mxu1 }
 0x1fb   :  { %v5328_v58 = vadd.f32 %v5327_v34, %v4298_v13  ;;  %v5402_v59 = vadd.f32 %v5401_v35, %v4300_v42  ;;  %v4299_v60 = vmax.f32 %v1783_v43, 0.0  ;;  %v4301_v61 = vmax.f32 %v3096_v44, 0.0  ;;  %6852 = vmatmul.mubr.msk.bf16.gmra.mxu1 %vm987_vm0, %v7064_v33  ;;  %2034 = vmatprep.mubr.bf16.mxu0 %v7130_v1  ;;  %v7066_v43 = vld [vmem:[%s9675_s0 + $0x200] sm:$0xff]  }
 0x1fc   :  { %v1787_v62 = vadd.f32 %v1786_v55, %v7385_v49  ;;  %v3100_v63 = vadd.f32 %v3099_v14, %v7387_v50  ;;  %v1788_v0 = vpop.f32.mrf.mxu0  ;;  %v3101_v2 = vpop.f32.mrf.mxu1  ;;  %3347 = vmatprep.mubr.bf16.mxu1 %v7130_v1 }
 0x1fd   :  { %v5365_v3 = vadd.f32 %v5364_v51, %v4299_v60  ;;  %v5439_v4 = vadd.f32 %v5438_v52, %v4301_v61  ;;  %v1789_v5 = vadd.f32 %v1788_v0, %v7391_v53  ;;  %v3102_v6 = vadd.f32 %v3101_v2, %v7393_v54 }
 0x1fe   :  { %v4302_v46 = vmax.f32 %v1787_v62, 0.0  ;;  %v4304_v7 = vmax.f32 %v3100_v63, 0.0  ;;  %v1790_v47 = vpop.f32.mrf.mxu0  ;;  %v3103_v8 = vpop.f32.mrf.mxu1 }
 0x1ff   :  { %v4303_v10 = vmax.f32 %v1789_v5, 0.0  ;;  %v4305_v15 = vmax.f32 %v3102_v6, 0.0  ;;  %v1791_v16 = vadd.f32 %v1790_v47, %v7385_v49  ;;  %v3104_v17 = vadd.f32 %v3103_v8, %v7387_v50 }
 0x200   :  { %v5329_v18 = vadd.f32 %v5328_v58, %v4302_v46  ;;  %v5403_v36 = vadd.f32 %v5402_v59, %v4304_v7  ;;  %v1792_v56 = vpop.f32.mrf.mxu0  ;;  %v3105_v37 = vpop.f32.mrf.mxu1 }
 0x201   :  { %v5366_v19 = vadd.f32 %v5365_v3, %v4303_v10  ;;  %v5440_v20 = vadd.f32 %v5439_v4, %v4305_v15  ;;  %v4306_v21 = vmax.f32 %v1791_v16, 0.0  ;;  %v4308_v22 = vmax.f32 %v3104_v17, 0.0 }
 0x202   :  { %v1793_v23 = vadd.f32 %v1792_v56, %v7391_v53  ;;  %v3106_v24 = vadd.f32 %v3105_v37, %v7393_v54  ;;  %v1796_v25 = vpop.f32.mrf.mxu0  ;;  %6725 = vmatmul.mubr.msk.bf16.gmra.mxu0 %vm987_vm0, %v7065_v9  ;;  %v3109_v26 = vpop.f32.mrf.mxu1 }
 0x203   :  { %v5330_v27 = vadd.f32 %v5329_v18, %v4306_v21  ;;  %v5404_v28 = vadd.f32 %v5403_v36, %v4308_v22  ;;  %v1797_v29 = vadd.f32 %v1796_v25, %v7385_v49  ;;  %v3110_v31 = vadd.f32 %v3109_v26, %v7387_v50  ;;  %6853 = vmatmul.mubr.msk.bf16.gmra.mxu1 %vm987_vm0, %v7065_v9  ;;  %v7067_v21 = vld [vmem:[%s9675_s0 + $0x208] sm:$0xff]  }
 0x204   :  { %v4307_v32 = vmax.f32 %v1793_v23, 0.0  ;;  %v4309_v33 = vmax.f32 %v3106_v24, 0.0  ;;  %v1798_v34 = vpop.f32.mrf.mxu0  ;;  %v3111_v35 = vpop.f32.mrf.mxu1  ;;  %2044 = vmatprep.mubr.bf16.mxu0 %v7130_v1  ;;  %3357 = vmatprep.mubr.bf16.mxu1 %v7130_v1 }
 0x205   :  { %v4310_v57 = vmax.f32 %v1797_v29, 0.0  ;;  %v4312_v48 = vmax.f32 %v3110_v31, 0.0  ;;  %v1799_v38 = vadd.f32 %v1798_v34, %v7391_v53  ;;  %v3112_v40 = vadd.f32 %v3111_v35, %v7393_v54 }
 0x206   :  { %v5367_v41 = vadd.f32 %v5366_v19, %v4307_v32  ;;  %v5441_v45 = vadd.f32 %v5440_v20, %v4309_v33  ;;  %v1800_v13 = vpop.f32.mrf.mxu0  ;;  %v3113_v42 = vpop.f32.mrf.mxu1 }
 0x207   :  { %v5331_v44 = vadd.f32 %v5330_v27, %v4310_v57  ;;  %v5405_v51 = vadd.f32 %v5404_v28, %v4312_v48  ;;  %v4311_v52 = vmax.f32 %v1799_v38, 0.0  ;;  %v4313_v55 = vmax.f32 %v3112_v40, 0.0 }
 0x208   :  { %v1801_v14 = vadd.f32 %v1800_v13, %v7385_v49  ;;  %v3114_v58 = vadd.f32 %v3113_v42, %v7387_v50  ;;  %v1802_v59 = vpop.f32.mrf.mxu0  ;;  %v3115_v60 = vpop.f32.mrf.mxu1 }
 0x209   :  { %v5368_v61 = vadd.f32 %v5367_v41, %v4311_v52  ;;  %v5442_v62 = vadd.f32 %v5441_v45, %v4313_v55  ;;  %v1803_v63 = vadd.f32 %v1802_v59, %v7391_v53  ;;  %v3116_v0 = vadd.f32 %v3115_v60, %v7393_v54 }
 0x20a   :  { %v4314_v2 = vmax.f32 %v1801_v14, 0.0  ;;  %v4316_v3 = vmax.f32 %v3114_v58, 0.0  ;;  %v1806_v4 = vpop.f32.mrf.mxu0  ;;  %6726 = vmatmul.mubr.msk.bf16.gmra.mxu0 %vm987_vm0, %v7066_v43  ;;  %v3119_v5 = vpop.f32.mrf.mxu1 }
 0x20b   :  { %v4315_v6 = vmax.f32 %v1803_v63, 0.0  ;;  %v4317_v46 = vmax.f32 %v3116_v0, 0.0  ;;  %v1807_v7 = vadd.f32 %v1806_v4, %v7385_v49  ;;  %v3120_v47 = vadd.f32 %v3119_v5, %v7387_v50  ;;  %6854 = vmatmul.mubr.msk.bf16.gmra.mxu1 %vm987_vm0, %v7066_v43  ;;  %2054 = vmatprep.mubr.bf16.mxu0 %v7130_v1  ;;  %v7068_v63 = vld [vmem:[%s9675_s0 + $0x210] sm:$0xff]  }
 0x20c   :  { %v5332_v8 = vadd.f32 %v5331_v44, %v4314_v2  ;;  %v5406_v9 = vadd.f32 %v5405_v51, %v4316_v3  ;;  %v1808_v10 = vpop.f32.mrf.mxu0  ;;  %v3121_v15 = vpop.f32.mrf.mxu1  ;;  %3367 = vmatprep.mubr.bf16.mxu1 %v7130_v1 }
 0x20d   :  { %v5369_v16 = vadd.f32 %v5368_v61, %v4315_v6  ;;  %v5443_v17 = vadd.f32 %v5442_v62, %v4317_v46  ;;  %v4318_v18 = vmax.f32 %v1807_v7, 0.0  ;;  %v4320_v36 = vmax.f32 %v3120_v47, 0.0 }
 0x20e   :  { %v1809_v56 = vadd.f32 %v1808_v10, %v7391_v53  ;;  %v3122_v37 = vadd.f32 %v3121_v15, %v7393_v54  ;;  %v1810_v19 = vpop.f32.mrf.mxu0  ;;  %v3123_v20 = vpop.f32.mrf.mxu1 }
 0x20f   :  { %v5333_v22 = vadd.f32 %v5332_v8, %v4318_v18  ;;  %v5407_v23 = vadd.f32 %v5406_v9, %v4320_v36  ;;  %v1811_v24 = vadd.f32 %v1810_v19, %v7385_v49  ;;  %v3124_v25 = vadd.f32 %v3123_v20, %v7387_v50 }
 0x210   :  { %v4319_v26 = vmax.f32 %v1809_v56, 0.0  ;;  %v4321_v27 = vmax.f32 %v3122_v37, 0.0  ;;  %v1812_v28 = vpop.f32.mrf.mxu0  ;;  %v3125_v29 = vpop.f32.mrf.mxu1 }
 0x211   :  { %v4322_v31 = vmax.f32 %v1811_v24, 0.0  ;;  %v4324_v32 = vmax.f32 %v3124_v25, 0.0  ;;  %v1813_v33 = vadd.f32 %v1812_v28, %v7391_v53  ;;  %v3126_v34 = vadd.f32 %v3125_v29, %v7393_v54 }
 0x212   :  { %v5370_v35 = vadd.f32 %v5369_v16, %v4319_v26  ;;  %v5444_v57 = vadd.f32 %v5443_v17, %v4321_v27  ;;  %v1816_v48 = vpop.f32.mrf.mxu0  ;;  %6727 = vmatmul.mubr.msk.bf16.gmra.mxu0 %vm987_vm0, %v7067_v21  ;;  %v3129_v38 = vpop.f32.mrf.mxu1 }
 0x213   :  { %v5334_v40 = vadd.f32 %v5333_v22, %v4322_v31  ;;  %v5408_v41 = vadd.f32 %v5407_v23, %v4324_v32  ;;  %v4323_v45 = vmax.f32 %v1813_v33, 0.0  ;;  %v4325_v13 = vmax.f32 %v3126_v34, 0.0  ;;  %6855 = vmatmul.mubr.msk.bf16.gmra.mxu1 %vm987_vm0, %v7067_v21  ;;  %2064 = vmatprep.mubr.bf16.mxu0 %v7130_v1  ;;  %v7069_v33 = vld [vmem:[%s9675_s0 + $0x218] sm:$0xff]  }
 0x214   :  { %v1817_v42 = vadd.f32 %v1816_v48, %v7385_v49  ;;  %v3130_v43 = vadd.f32 %v3129_v38, %v7387_v50  ;;  %v1818_v44 = vpop.f32.mrf.mxu0  ;;  %v3131_v51 = vpop.f32.mrf.mxu1  ;;  %3377 = vmatprep.mubr.bf16.mxu1 %v7130_v1 }
 0x215   :  { %v5371_v52 = vadd.f32 %v5370_v35, %v4323_v45  ;;  %v5445_v55 = vadd.f32 %v5444_v57, %v4325_v13  ;;  %v1819_v14 = vadd.f32 %v1818_v44, %v7391_v53  ;;  %v3132_v58 = vadd.f32 %v3131_v51, %v7393_v54 }
 0x216   :  { %v4326_v59 = vmax.f32 %v1817_v42, 0.0  ;;  %v4328_v60 = vmax.f32 %v3130_v43, 0.0  ;;  %v1820_v61 = vpop.f32.mrf.mxu0  ;;  %v3133_v62 = vpop.f32.mrf.mxu1 }
 0x217   :  { %v4327_v0 = vmax.f32 %v1819_v14, 0.0  ;;  %v4329_v2 = vmax.f32 %v3132_v58, 0.0  ;;  %v1821_v3 = vadd.f32 %v1820_v61, %v7385_v49  ;;  %v3134_v4 = vadd.f32 %v3133_v62, %v7387_v50 }
 0x218   :  { %v5335_v5 = vadd.f32 %v5334_v40, %v4326_v59  ;;  %v5409_v6 = vadd.f32 %v5408_v41, %v4328_v60  ;;  %v1822_v46 = vpop.f32.mrf.mxu0  ;;  %v3135_v7 = vpop.f32.mrf.mxu1 }
 0x219   :  { %v5372_v47 = vadd.f32 %v5371_v52, %v4327_v0  ;;  %v5446_v8 = vadd.f32 %v5445_v55, %v4329_v2  ;;  %v4330_v9 = vmax.f32 %v1821_v3, 0.0  ;;  %v4332_v10 = vmax.f32 %v3134_v4, 0.0  ;;  %v6263_v2 = vld [vmem:[%s9676_s3 + $0xc0] sm:$0xff] }
 0x21a   :  { %v1823_v15 = vadd.f32 %v1822_v46, %v7391_v53  ;;  %v3136_v16 = vadd.f32 %v3135_v7, %v7393_v54  ;;  %v1826_v17 = vpop.f32.mrf.mxu0  ;;  %6728 = vmatmul.mubr.msk.bf16.gmra.mxu0 %vm987_vm0, %v7068_v63  ;;  %v3139_v18 = vpop.f32.mrf.mxu1  ;;  %v6247_v3 = vld [vmem:[%s9676_s3 + $0x40] sm:$0xff]  ;;  %6933 = vmatprep.subr.mxu0 %v6263_v2 }
 0x21b   :  { %v5336_v36 = vadd.f32 %v5335_v5, %v4330_v9  ;;  %v5410_v56 = vadd.f32 %v5409_v6, %v4332_v10  ;;  %v1827_v37 = vadd.f32 %v1826_v17, %v7385_v49  ;;  %v3140_v19 = vadd.f32 %v3139_v18, %v7387_v50  ;;  %6856 = vmatmul.mubr.msk.bf16.gmra.mxu1 %vm987_vm0, %v7068_v63  ;;  %v7070_v10 = vld [vmem:[%s9675_s0 + $0x220] sm:$0xff]  }
 0x21c   :  { %v4331_v20 = vmax.f32 %v1823_v15, 0.0  ;;  %v4333_v21 = vmax.f32 %v3136_v16, 0.0  ;;  %v1828_v22 = vpop.f32.mrf.mxu0  ;;  %v3141_v23 = vpop.f32.mrf.mxu1  ;;  %2074 = vmatprep.mubr.bf16.mxu0 %v7130_v1  ;;  %3387 = vmatprep.mubr.bf16.mxu1 %v7130_v1  ;;  %v6295_v15 = vld [vmem:[%s9676_s3 + $0x1c0] sm:$0xff] }
 0x21d   :  { %v4334_v24 = vmax.f32 %v1827_v37, 0.0  ;;  %v4336_v25 = vmax.f32 %v3140_v19, 0.0  ;;  %v1829_v26 = vadd.f32 %v1828_v22, %v7391_v53  ;;  %v3142_v27 = vadd.f32 %v3141_v23, %v7393_v54  ;;  %6934 = vmatpush3.msra.mxu0 %v6247_v3  ;;  %v6279_v16 = vld [vmem:[%s9676_s3 + $0x140] sm:$0xff]  ;;  %6968 = vmatprep.subr.mxu1 %v6295_v15 }
 0x21e   :  { %v5373_v28 = vadd.f32 %v5372_v47, %v4331_v20  ;;  %v5447_v29 = vadd.f32 %v5446_v8, %v4333_v21  ;;  %v1830_v31 = vpop.f32.mrf.mxu0  ;;  %v3143_v32 = vpop.f32.mrf.mxu1  ;;  %6969 = vmatpush3.msra.mxu1 %v6279_v16 }
 0x21f   :  { %v5337_v34 = vadd.f32 %v5336_v36, %v4334_v24  ;;  %v5411_v35 = vadd.f32 %v5410_v56, %v4336_v25  ;;  %v4335_v57 = vmax.f32 %v1829_v26, 0.0  ;;  %v4337_v48 = vmax.f32 %v3142_v27, 0.0 }
 0x220   :  { %v1831_v38 = vadd.f32 %v1830_v31, %v7385_v49  ;;  %v3144_v40 = vadd.f32 %v3143_v32, %v7387_v50  ;;  %v1832_v41 = vpop.f32.mrf.mxu0  ;;  %v3145_v45 = vpop.f32.mrf.mxu1 }
 0x221   :  { %v5374_v13 = vadd.f32 %v5373_v28, %v4335_v57  ;;  %v5448_v42 = vadd.f32 %v5447_v29, %v4337_v48  ;;  %v1833_v43 = vadd.f32 %v1832_v41, %v7391_v53  ;;  %v3146_v44 = vadd.f32 %v3145_v45, %v7393_v54 }
 0x222   :  { %v4338_v51 = vmax.f32 %v1831_v38, 0.0  ;;  %v4340_v52 = vmax.f32 %v3144_v40, 0.0  ;;  %v1836_v55 = vpop.f32.mrf.mxu0  ;;  %6729 = vmatmul.mubr.msk.bf16.gmra.mxu0 %vm987_vm0, %v7069_v33  ;;  %v3149_v60 = vpop.f32.mrf.mxu1 }
 0x223   :  { %v4339_v14 = vmax.f32 %v1833_v43, 0.0  ;;  %v4341_v58 = vmax.f32 %v3146_v44, 0.0  ;;  %v1837_v59 = vadd.f32 %v1836_v55, %v7385_v49  ;;  %6857 = vmatmul.mubr.msk.bf16.gmra.mxu1 %vm987_vm0, %v7069_v33  ;;  %2084 = vmatprep.mubr.bf16.mxu0 %v7130_v1  ;;  %v3150_v63 = vadd.f32 %v3149_v60, %v7387_v50 }
 0x224   :  { %v5338_v61 = vadd.f32 %v5337_v34, %v4338_v51  ;;  %v5412_v62 = vadd.f32 %v5411_v35, %v4340_v52  ;;  %v1838_v0 = vpop.f32.mrf.mxu0  ;;  %3397 = vmatprep.mubr.bf16.mxu1 %v7130_v1  ;;  %v3151_v7 = vpop.f32.mrf.mxu1  ;;  %v7071_v52 = vld [vmem:[%s9675_s0 + $0x228] sm:$0xff]  }
 0x225   :  { %v5375_v4 = vadd.f32 %v5374_v13, %v4339_v14  ;;  %v5449_v5 = vadd.f32 %v5448_v42, %v4341_v58  ;;  %v4342_v6 = vmax.f32 %v1837_v59, 0.0  ;;  %v1839_v46 = vadd.f32 %v1838_v0, %v7391_v53 }
 0x226   :  { %v4344_v47 = vmax.f32 %v3150_v63, 0.0  ;;  %v3152_v8 = vadd.f32 %v3151_v7, %v7393_v54  ;;  %v1840_v9 = vpop.f32.mrf.mxu0  ;;  %v3153_v56 = vpop.f32.mrf.mxu1 }
 0x227   :  { %v5339_v17 = vadd.f32 %v5338_v61, %v4342_v6  ;;  %v4343_v18 = vmax.f32 %v1839_v46, 0.0  ;;  %v1841_v36 = vadd.f32 %v1840_v9, %v7385_v49  ;;  %v3154_v20 = vadd.f32 %v3153_v56, %v7387_v50 }
 0x228   :  { %v5413_v37 = vadd.f32 %v5412_v62, %v4344_v47  ;;  %v4345_v19 = vmax.f32 %v3152_v8, 0.0  ;;  %v1842_v21 = vpop.f32.mrf.mxu0  ;;  %v3155_v25 = vpop.f32.mrf.mxu1 }
 0x229   :  { %v5376_v22 = vadd.f32 %v5375_v4, %v4343_v18  ;;  %v4346_v23 = vmax.f32 %v1841_v36, 0.0  ;;  %v1843_v24 = vadd.f32 %v1842_v21, %v7391_v53  ;;  %v4348_v27 = vmax.f32 %v3154_v20, 0.0 }
 0x22a   :  { %v5450_v26 = vadd.f32 %v5449_v5, %v4345_v19  ;;  %v3156_v28 = vadd.f32 %v3155_v25, %v7393_v54  ;;  %v1846_v29 = vpop.f32.mrf.mxu0  ;;  %6730 = vmatmul.mubr.msk.bf16.gmra.mxu0 %vm987_vm0, %v7070_v10  ;;  %v3159_v34 = vpop.f32.mrf.mxu1 }
 0x22b   :  { %v5340_v31 = vadd.f32 %v5339_v17, %v4346_v23  ;;  %v4347_v32 = vmax.f32 %v1843_v24, 0.0  ;;  %v1847_v33 = vadd.f32 %v1846_v29, %v7385_v49  ;;  %6858 = vmatmul.mubr.msk.bf16.gmra.mxu1 %vm987_vm0, %v7070_v10  ;;  %2094 = vmatprep.mubr.bf16.mxu0 %v7130_v1  ;;  %v5414_v35 = vadd.f32 %v5413_v37, %v4348_v27  ;;  %v7072_v24 = vld [vmem:[%s9675_s0 + $0x230] sm:$0xff]  }
 0x22c   :  { %v4349_v57 = vmax.f32 %v3156_v28, 0.0  ;;  %v3160_v48 = vadd.f32 %v3159_v34, %v7387_v50  ;;  %v1848_v38 = vpop.f32.mrf.mxu0  ;;  %3407 = vmatprep.mubr.bf16.mxu1 %v7130_v1  ;;  %v3161_v13 = vpop.f32.mrf.mxu1 }
 0x22d   :  { %v5377_v40 = vadd.f32 %v5376_v22, %v4347_v32  ;;  %v4350_v41 = vmax.f32 %v1847_v33, 0.0  ;;  %v1849_v45 = vadd.f32 %v1848_v38, %v7391_v53  ;;  %v3162_v44 = vadd.f32 %v3161_v13, %v7393_v54 }
 0x22e   :  { %v5451_v42 = vadd.f32 %v5450_v26, %v4349_v57  ;;  %v4352_v43 = vmax.f32 %v3160_v48, 0.0  ;;  %v1850_v51 = vpop.f32.mrf.mxu0  ;;  %v3163_v59 = vpop.f32.mrf.mxu1 }
 0x22f   :  { %v5341_v55 = vadd.f32 %v5340_v31, %v4350_v41  ;;  %v4351_v14 = vmax.f32 %v1849_v45, 0.0  ;;  %v1851_v58 = vadd.f32 %v1850_v51, %v7385_v49  ;;  %v4353_v61 = vmax.f32 %v3162_v44, 0.0 }
 0x230   :  { %v5415_v60 = vadd.f32 %v5414_v35, %v4352_v43  ;;  %v3164_v62 = vadd.f32 %v3163_v59, %v7387_v50  ;;  %v1852_v63 = vpop.f32.mrf.mxu0  ;;  %v3165_v4 = vpop.f32.mrf.mxu1 }
 0x231   :  { %v5378_v0 = vadd.f32 %v5377_v40, %v4351_v14  ;;  %v4354_v2 = vmax.f32 %v1851_v58, 0.0  ;;  %v1853_v3 = vadd.f32 %v1852_v63, %v7391_v53  ;;  %v5452_v5 = vadd.f32 %v5451_v42, %v4353_v61 }
 0x232   :  { %v4356_v6 = vmax.f32 %v3164_v62, 0.0  ;;  %v3166_v46 = vadd.f32 %v3165_v4, %v7393_v54  ;;  %v1856_v7 = vpop.f32.mrf.mxu0  ;;  %6731 = vmatmul.mubr.msk.bf16.gmra.mxu0 %vm987_vm0, %v7071_v52  ;;  %v3169_v10 = vpop.f32.mrf.mxu1 }
 0x233   :  { %v5342_v47 = vadd.f32 %v5341_v55, %v4354_v2  ;;  %v4355_v8 = vmax.f32 %v1853_v3, 0.0  ;;  %v1857_v9 = vadd.f32 %v1856_v7, %v7385_v49  ;;  %6859 = vmatmul.mubr.msk.bf16.gmra.mxu1 %vm987_vm0, %v7071_v52  ;;  %2104 = vmatprep.mubr.bf16.mxu0 %v7130_v1  ;;  %v3170_v17 = vadd.f32 %v3169_v10, %v7387_v50  ;;  %v7073_v3 = vld [vmem:[%s9675_s0 + $0x238] sm:$0xff]  }
 0x234   :  { %v5416_v15 = vadd.f32 %v5415_v60, %v4356_v6  ;;  %v4357_v16 = vmax.f32 %v3166_v46, 0.0  ;;  %v1858_v18 = vpop.f32.mrf.mxu0  ;;  %3417 = vmatprep.mubr.bf16.mxu1 %v7130_v1  ;;  %v3171_v19 = vpop.f32.mrf.mxu1 }
 0x235   :  { %v5379_v36 = vadd.f32 %v5378_v0, %v4355_v8  ;;  %v4358_v56 = vmax.f32 %v1857_v9, 0.0  ;;  %v1859_v37 = vadd.f32 %v1858_v18, %v7391_v53  ;;  %v4360_v21 = vmax.f32 %v3170_v17, 0.0 }
 0x236   :  { %v5453_v20 = vadd.f32 %v5452_v5, %v4357_v16  ;;  %v3172_v22 = vadd.f32 %v3171_v19, %v7393_v54  ;;  %v1860_v23 = vpop.f32.mrf.mxu0  ;;  %v3173_v28 = vpop.f32.mrf.mxu1 }
 0x237   :  { %v5343_v25 = vadd.f32 %v5342_v47, %v4358_v56  ;;  %v4359_v26 = vmax.f32 %v1859_v37, 0.0  ;;  %v1861_v27 = vadd.f32 %v1860_v23, %v7385_v49  ;;  %v5417_v29 = vadd.f32 %v5416_v15, %v4360_v21 }
 0x238   :  { %v4361_v31 = vmax.f32 %v3172_v22, 0.0  ;;  %v3174_v32 = vadd.f32 %v3173_v28, %v7387_v50  ;;  %v1862_v33 = vpop.f32.mrf.mxu0  ;;  %v3175_v48 = vpop.f32.mrf.mxu1 }
 0x239   :  { %v5380_v34 = vadd.f32 %v5379_v36, %v4359_v26  ;;  %v4362_v35 = vmax.f32 %v1861_v27, 0.0  ;;  %v1863_v57 = vadd.f32 %v1862_v33, %v7391_v53  ;;  %v3176_v41 = vadd.f32 %v3175_v48, %v7393_v54 }
 0x23a   :  { %v5454_v38 = vadd.f32 %v5453_v20, %v4361_v31  ;;  %v4364_v40 = vmax.f32 %v3174_v32, 0.0  ;;  %v1866_v45 = vpop.f32.mrf.mxu0  ;;  %6732 = vmatmul.mubr.msk.bf16.gmra.mxu0 %vm987_vm0, %v7072_v24  ;;  %v3179_v44 = vpop.f32.mrf.mxu1 }
 0x23b   :  { %v5344_v13 = vadd.f32 %v5343_v25, %v4362_v35  ;;  %v4363_v42 = vmax.f32 %v1863_v57, 0.0  ;;  %v1867_v43 = vadd.f32 %v1866_v45, %v7385_v49  ;;  %6860 = vmatmul.mubr.msk.bf16.gmra.mxu1 %vm987_vm0, %v7072_v24  ;;  %2114 = vmatprep.mubr.bf16.mxu0 %v7130_v1  ;;  %v4365_v52 = vmax.f32 %v3176_v41, 0.0  ;;  %v7074_v57 = vld [vmem:[%s9675_s0 + $0x240] sm:$0xff]  }
 0x23c   :  { %v5418_v51 = vadd.f32 %v5417_v29, %v4364_v40  ;;  %v3180_v55 = vadd.f32 %v3179_v44, %v7387_v50  ;;  %v1868_v14 = vpop.f32.mrf.mxu0  ;;  %3427 = vmatprep.mubr.bf16.mxu1 %v7130_v1  ;;  %v3181_v61 = vpop.f32.mrf.mxu1 }
 0x23d   :  { %v5381_v58 = vadd.f32 %v5380_v34, %v4363_v42  ;;  %v4366_v59 = vmax.f32 %v1867_v43, 0.0  ;;  %v1869_v60 = vadd.f32 %v1868_v14, %v7391_v53  ;;  %v5455_v62 = vadd.f32 %v5454_v38, %v4365_v52 }
 0x23e   :  { %v4368_v63 = vmax.f32 %v3180_v55, 0.0  ;;  %v3182_v0 = vadd.f32 %v3181_v61, %v7393_v54  ;;  %v1870_v2 = vpop.f32.mrf.mxu0  ;;  %v3183_v46 = vpop.f32.mrf.mxu1 }
 0x23f   :  { %v5345_v4 = vadd.f32 %v5344_v13, %v4366_v59  ;;  %v4367_v5 = vmax.f32 %v1869_v60, 0.0  ;;  %v1871_v6 = vadd.f32 %v1870_v2, %v7385_v49  ;;  %v3184_v8 = vadd.f32 %v3183_v46, %v7387_v50 }
 0x240   :  { %v5419_v7 = vadd.f32 %v5418_v51, %v4368_v63  ;;  %v4369_v47 = vmax.f32 %v3182_v0, 0.0  ;;  %v1872_v9 = vpop.f32.mrf.mxu0  ;;  %v3185_v17 = vpop.f32.mrf.mxu1 }
 0x241   :  { %v5382_v10 = vadd.f32 %v5381_v58, %v4367_v5  ;;  %v4370_v15 = vmax.f32 %v1871_v6, 0.0  ;;  %v1873_v16 = vadd.f32 %v1872_v9, %v7391_v53  ;;  %v4372_v36 = vmax.f32 %v3184_v8, 0.0 }
 0x242   :  { %v5456_v18 = vadd.f32 %v5455_v62, %v4369_v47  ;;  %v3186_v56 = vadd.f32 %v3185_v17, %v7393_v54  ;;  %v1876_v37 = vpop.f32.mrf.mxu0  ;;  %6733 = vmatmul.mubr.msk.bf16.gmra.mxu0 %vm987_vm0, %v7073_v3  ;;  %v3189_v22 = vpop.f32.mrf.mxu1 }
 0x243   :  { %v5346_v19 = vadd.f32 %v5345_v4, %v4370_v15  ;;  %v4371_v20 = vmax.f32 %v1873_v16, 0.0  ;;  %v1877_v21 = vadd.f32 %v1876_v37, %v7385_v49  ;;  %6861 = vmatmul.mubr.msk.bf16.gmra.mxu1 %vm987_vm0, %v7073_v3  ;;  %2124 = vmatprep.mubr.bf16.mxu0 %v7130_v1  ;;  %v5420_v23 = vadd.f32 %v5419_v7, %v4372_v36 }
 0x244   :  { %v4373_v24 = vmax.f32 %v3186_v56, 0.0  ;;  %v3190_v25 = vadd.f32 %v3189_v22, %v7387_v50  ;;  %v1878_v26 = vpop.f32.mrf.mxu0  ;;  %3437 = vmatprep.mubr.bf16.mxu1 %v7130_v1  ;;  %v3191_v31 = vpop.f32.mrf.mxu1 }
 0x245   :  { %v5383_v27 = vadd.f32 %v5382_v10, %v4371_v20  ;;  %v4374_v28 = vmax.f32 %v1877_v21, 0.0  ;;  %v1879_v29 = vadd.f32 %v1878_v26, %v7391_v53  ;;  %v3192_v34 = vadd.f32 %v3191_v31, %v7393_v54 }
 0x246   :  { %v5457_v32 = vadd.f32 %v5456_v18, %v4373_v24  ;;  %v4376_v33 = vmax.f32 %v3190_v25, 0.0  ;;  %v1880_v35 = vpop.f32.mrf.mxu0  ;;  %v3193_v41 = vpop.f32.mrf.mxu1  ;;  %v7075_v18 = vld [vmem:[%s9675_s0 + $0x248] sm:$0xff]  }
 0x247   :  { %v5347_v48 = vadd.f32 %v5346_v19, %v4374_v28  ;;  %v4375_v38 = vmax.f32 %v1879_v29, 0.0  ;;  %v1881_v40 = vadd.f32 %v1880_v35, %v7385_v49  ;;  %v4377_v13 = vmax.f32 %v3192_v34, 0.0 }
 0x248   :  { %v5421_v45 = vadd.f32 %v5420_v23, %v4376_v33  ;;  %v3194_v42 = vadd.f32 %v3193_v41, %v7387_v50  ;;  %v1882_v43 = vpop.f32.mrf.mxu0  ;;  %v3195_v55 = vpop.f32.mrf.mxu1 }
 0x249   :  { %v5384_v44 = vadd.f32 %v5383_v27, %v4375_v38  ;;  %v4378_v51 = vmax.f32 %v1881_v40, 0.0  ;;  %v1883_v52 = vadd.f32 %v1882_v43, %v7391_v53  ;;  %v5458_v14 = vadd.f32 %v5457_v32, %v4377_v13 }
 0x24a   :  { %v4380_v58 = vmax.f32 %v3194_v42, 0.0  ;;  %v3196_v59 = vadd.f32 %v3195_v55, %v7393_v54  ;;  %v1886_v60 = vpop.f32.mrf.mxu0  ;;  %6734 = vmatmul.mubr.msk.bf16.gmra.mxu0 %vm987_vm0, %v7074_v57  ;;  %v3199_v0 = vpop.f32.mrf.mxu1 }
 0x24b   :  { %v5348_v61 = vadd.f32 %v5347_v48, %v4378_v51  ;;  %v4379_v62 = vmax.f32 %v1883_v52, 0.0  ;;  %v1887_v63 = vadd.f32 %v1886_v60, %v7385_v49  ;;  %6862 = vmatmul.mubr.msk.bf16.gmra.mxu1 %vm987_vm0, %v7074_v57  ;;  %2134 = vmatprep.mubr.bf16.mxu0 %v7130_v1  ;;  %v3200_v4 = vadd.f32 %v3199_v0, %v7387_v50 }
 0x24c   :  { %v5422_v2 = vadd.f32 %v5421_v45, %v4380_v58  ;;  %v4381_v3 = vmax.f32 %v3196_v59, 0.0  ;;  %v1888_v5 = vpop.f32.mrf.mxu0  ;;  %3447 = vmatprep.mubr.bf16.mxu1 %v7130_v1  ;;  %v3201_v8 = vpop.f32.mrf.mxu1 }
 0x24d   :  { %v5349_v6 = vrot.slane %v5348_v61, 4  ;;  %v5385_v46 = vadd.f32 %v5384_v44, %v4379_v62  ;;  %v4382_v7 = vmax.f32 %v1887_v63, 0.0  ;;  %v1889_v47 = vadd.f32 %v1888_v5, %v7391_v53 }
 0x24e   :  { %v5423_v9 = vrot.slane %v5422_v2, 4  ;;  %v5459_v10 = vadd.f32 %v5458_v14, %v4381_v3  ;;  %v4384_v15 = vmax.f32 %v3200_v4, 0.0  ;;  %v3202_v16 = vadd.f32 %v3201_v8, %v7393_v54  ;;  %v1890_v17 = vpop.f32.mrf.mxu0  ;;  %v3203_v20 = vpop.f32.mrf.mxu1 }
 0x24f   :  { %v5350_v36 = vadd.f32 %v5349_v6, %v5348_v61  ;;  %v5386_v56 = vrot.slane %v5385_v46, 4  ;;  %v4383_v37 = vmax.f32 %v1889_v47, 0.0  ;;  %v1891_v19 = vadd.f32 %v1890_v17, %v7385_v49 }
 0x250   :  { %v5424_v21 = vadd.f32 %v5423_v9, %v5422_v2  ;;  %v5460_v22 = vrot.slane %v5459_v10, 4  ;;  %v4385_v23 = vmax.f32 %v3202_v16, 0.0  ;;  %v3204_v24 = vadd.f32 %v3203_v20, %v7387_v50  ;;  %v1892_v25 = vpop.f32.mrf.mxu0  ;;  %v3205_v31 = vpop.f32.mrf.mxu1  ;;  %v7076_v2 = vld [vmem:[%s9675_s0 + $0x250] sm:$0xff]  }
 0x251   :  { %v5351_v26 = vrot.slane %v5350_v36, 2  ;;  %v5387_v27 = vadd.f32 %v5386_v56, %v5385_v46  ;;  %v4386_v28 = vmax.f32 %v1891_v19, 0.0  ;;  %v1893_v29 = vadd.f32 %v1892_v25, %v7391_v53 }
 0x252   :  { %v5425_v32 = vrot.slane %v5424_v21, 2  ;;  %v5461_v33 = vadd.f32 %v5460_v22, %v5459_v10  ;;  %v4388_v34 = vmax.f32 %v3204_v24, 0.0  ;;  %v3206_v35 = vadd.f32 %v3205_v31, %v7393_v54  ;;  %v1896_v57 = vpop.f32.mrf.mxu0  ;;  %6735 = vmatmul.mubr.msk.bf16.gmra.mxu0 %vm987_vm0, %v7075_v18  ;;  %v3209_v45 = vpop.f32.mrf.mxu1 }
 0x253   :  { %v5352_v48 = vadd.f32 %v5351_v26, %v5350_v36  ;;  %v5388_v38 = vrot.slane %v5387_v27, 2  ;;  %v5466_v40 = vadd.f32 %v4386_v28, %v4382_v7  ;;  %v4387_v41 = vmax.f32 %v1893_v29, 0.0  ;;  %6863 = vmatmul.mubr.msk.bf16.gmra.mxu1 %vm987_vm0, %v7075_v18  ;;  %2144 = vmatprep.mubr.bf16.mxu0 %v7130_v1 }
 0x254   :  { %v5426_v13 = vadd.f32 %v5425_v32, %v5424_v21  ;;  %v5462_v42 = vrot.slane %v5461_v33, 2  ;;  %v5540_v43 = vadd.f32 %v4388_v34, %v4384_v15  ;;  %v4389_v44 = vmax.f32 %v3206_v35, 0.0  ;;  %v1898_v51 = vpop.f32.mrf.mxu0  ;;  %3457 = vmatprep.mubr.bf16.mxu1 %v7130_v1  ;;  %v3211_v59 = vpop.f32.mrf.mxu1 }
 0x255   :  { %v5353_v52 = vrot.slane %v5352_v48, 1  ;;  %v5389_v55 = vadd.f32 %v5388_v38, %v5387_v27  ;;  %v5503_v14 = vadd.f32 %v4387_v41, %v4383_v37  ;;  %v1897_v58 = vadd.f32 %v1896_v57, %v7385_v49  ;;  %v7077_v41 = vld [vmem:[%s9675_s0 + $0x258] sm:$0xff]  }
 0x256   :  { %v5427_v60 = vrot.slane %v5426_v13, 1  ;;  %v5463_v61 = vadd.f32 %v5462_v42, %v5461_v33  ;;  %v5577_v62 = vadd.f32 %v4389_v44, %v4385_v23  ;;  %v3210_v63 = vadd.f32 %v3209_v45, %v7387_v50  ;;  %v1900_v0 = vpop.f32.mrf.mxu0  ;;  %v3213_v46 = vpop.f32.mrf.mxu1 }
 0x257   :  { %v5354_v3 = vadd.f32 %v5353_v52, %v5352_v48  ;;  %v5390_v4 = vrot.slane %v5389_v55, 1  ;;  %v4390_v5 = vmax.f32 %v1897_v58, 0.0  ;;  %v1899_v6 = vadd.f32 %v1898_v51, %v7391_v53 }
 0x258   :  { %v5428_v7 = vadd.f32 %v5427_v60, %v5426_v13  ;;  %v5464_v47 = vrot.slane %v5463_v61, 1  ;;  %v4392_v8 = vmax.f32 %v3210_v63, 0.0  ;;  %v3212_v9 = vadd.f32 %v3211_v59, %v7393_v54  ;;  %v1902_v10 = vpop.f32.mrf.mxu0  ;;  %v3215_v36 = vpop.f32.mrf.mxu1 }
 0x259   :  { %v6215_v15 = vmul.f32 0.00390625, %v5354_v3  ;;  %v5391_v16 = vadd.f32 %v5390_v4, %v5389_v55  ;;  %v5467_v17 = vadd.f32 %v5466_v40, %v4390_v5  ;;  %v4391_v18 = vmax.f32 %v1899_v6, 0.0 }
 0x25a   :  { %v6217_v56 = vmul.f32 0.00390625, %v5428_v7  ;;  %v5465_v37 = vadd.f32 %v5464_v47, %v5463_v61  ;;  %v5541_v19 = vadd.f32 %v5540_v43, %v4392_v8  ;;  %v4393_v20 = vmax.f32 %v3212_v9, 0.0  ;;  %v1906_v21 = vpop.f32.mrf.mxu0  ;;  %6736 = vmatmul.mubr.msk.bf16.gmra.mxu0 %vm987_vm0, %v7076_v2  ;;  %v3219_v25 = vpop.f32.mrf.mxu1 }
 0x25b   :  { %v8260_v22 = vsel %vm6344_vm2, %v6215_v15, %v7974_v11  ;;  %v5504_v23 = vadd.f32 %v5503_v14, %v4391_v18  ;;  %v1901_v24 = vadd.f32 %v1900_v0, %v7385_v49  ;;  %6864 = vmatmul.mubr.msk.bf16.gmra.mxu1 %vm987_vm0, %v7076_v2  ;;  %2154 = vmatprep.mubr.bf16.mxu0 %v7130_v1  ;;  %v8269_v27 = vmul.f32 0.00390625, %v5391_v16 }
 0x25c   :  { %v8267_v26 = vsel %vm6344_vm2, %v6217_v56, %v7978_v12  ;;  %v5578_v28 = vadd.f32 %v5577_v62, %v4393_v20  ;;  %v3214_v29 = vadd.f32 %v3213_v46, %v7387_v50  ;;  %v1908_v31 = vpop.f32.mrf.mxu0  ;;  %3467 = vmatprep.mubr.bf16.mxu1 %v7130_v1  ;;  %v1903_v32 = vadd.f32 %v1902_v10, %v7391_v53  ;;  %v3221_v35 = vpop.f32.mrf.mxu1 }
 0x25d   :  { %v4394_v11 = vmax.f32 %v1901_v24, 0.0  ;;  %v3216_v33 = vadd.f32 %v3215_v36, %v7393_v54  ;;  %v1907_v34 = vadd.f32 %v1906_v21, %v7385_v49  ;;  %v3220_v12 = vadd.f32 %v3219_v25, %v7387_v50  ;;  %v7078_v21 = vld [vmem:[%s9675_s0 + $0x260] sm:$0xff]  }
 0x25e   :  { %v4396_v57 = vmax.f32 %v3214_v29, 0.0  ;;  %v1909_v48 = vadd.f32 %v1908_v31, %v7391_v53  ;;  %v3222_v38 = vadd.f32 %v3221_v35, %v7393_v54  ;;  %v1910_v40 = vpop.f32.mrf.mxu0  ;;  %v4395_v13 = vmax.f32 %v1903_v32, 0.0  ;;  %v3223_v44 = vpop.f32.mrf.mxu1  ;;  %v6262_v31 = vld [vmem:[%s9676_s3 + $0xb8] sm:$0xff] }
 0x25f   :  { %v5468_v45 = vadd.f32 %v5467_v17, %v4394_v11  ;;  %v4397_v42 = vmax.f32 %v3216_v33, 0.0  ;;  %v4398_v43 = vmax.f32 %v1907_v34, 0.0  ;;  %v4400_v52 = vmax.f32 %v3220_v12, 0.0  ;;  %v6294_v11 = vld [vmem:[%s9676_s3 + $0x1b8] sm:$0xff]  ;;  %6935 = vmatprep.subr.mxu0 %v6262_v31 }
 0x260   :  { %v5542_v51 = vadd.f32 %v5541_v19, %v4396_v57  ;;  %v4399_v55 = vmax.f32 %v1909_v48, 0.0  ;;  %v4401_v14 = vmax.f32 %v3222_v38, 0.0  ;;  %v1912_v58 = vpop.f32.mrf.mxu0  ;;  %v5505_v59 = vadd.f32 %v5504_v23, %v4395_v13  ;;  %v3225_v63 = vpop.f32.mrf.mxu1  ;;  %6970 = vmatprep.subr.mxu1 %v6294_v11  ;;  %v6278_v12 = vld [vmem:[%s9676_s3 + $0x138] sm:$0xff] }
 0x261   :  { %v5579_v60 = vadd.f32 %v5578_v28, %v4397_v42  ;;  %v5469_v61 = vadd.f32 %v5468_v45, %v4398_v43  ;;  %v1911_v62 = vadd.f32 %v1910_v40, %v7385_v49  ;;  %v3224_v2 = vadd.f32 %v3223_v44, %v7387_v50  ;;  %6971 = vmatpush3.msra.mxu1 %v6278_v12 }
 0x262   :  { %v5543_v0 = vadd.f32 %v5542_v51, %v4400_v52  ;;  %v1913_v3 = vadd.f32 %v1912_v58, %v7391_v53  ;;  %v3226_v4 = vadd.f32 %v3225_v63, %v7393_v54  ;;  %v1916_v5 = vpop.f32.mrf.mxu0  ;;  %6737 = vmatmul.mubr.msk.bf16.gmra.mxu0 %vm987_vm0, %v7077_v41  ;;  %v5506_v6 = vadd.f32 %v5505_v59, %v4399_v55  ;;  %v3229_v8 = vpop.f32.mrf.mxu1 }
 0x263   :  { %v5580_v46 = vadd.f32 %v5579_v60, %v4401_v14  ;;  %v4402_v7 = vmax.f32 %v1911_v62, 0.0  ;;  %v1917_v47 = vadd.f32 %v1916_v5, %v7385_v49  ;;  %6865 = vmatmul.mubr.msk.bf16.gmra.mxu1 %vm987_vm0, %v7077_v41  ;;  %2164 = vmatprep.mubr.bf16.mxu0 %v7130_v1  ;;  %v4404_v9 = vmax.f32 %v3224_v2, 0.0 }
 0x264   :  { %v4403_v10 = vmax.f32 %v1913_v3, 0.0  ;;  %v4405_v15 = vmax.f32 %v3226_v4, 0.0  ;;  %v3230_v16 = vadd.f32 %v3229_v8, %v7387_v50  ;;  %v1918_v17 = vpop.f32.mrf.mxu0  ;;  %3477 = vmatprep.mubr.bf16.mxu1 %v7130_v1  ;;  %v6218_v18 = vmul.f32 0.00390625, %v5465_v37  ;;  %v3231_v20 = vpop.f32.mrf.mxu1  ;;  %v6246_v37 = vld [vmem:[%s9676_s3 + $0x38] sm:$0xff] }
 0x265   :  { %v5470_v36 = vadd.f32 %v5469_v61, %v4402_v7  ;;  %v4406_v56 = vmax.f32 %v1917_v47, 0.0  ;;  %v1919_v19 = vadd.f32 %v1918_v17, %v7391_v53  ;;  %v5544_v23 = vadd.f32 %v5543_v0, %v4404_v9  ;;  %6936 = vmatpush3.msra.mxu0 %v6246_v37  ;;  %v7079_v47 = vld [vmem:[%s9675_s0 + $0x268] sm:$0xff]  }
 0x266   :  { %v5507_v24 = vadd.f32 %v5506_v6, %v4403_v10  ;;  %v5581_v25 = vadd.f32 %v5580_v46, %v4405_v15  ;;  %v4408_v28 = vmax.f32 %v3230_v16, 0.0  ;;  %v1920_v29 = vpop.f32.mrf.mxu0  ;;  %v3232_v34 = vadd.f32 %v3231_v20, %v7393_v54  ;;  %v3233_v57 = vpop.f32.mrf.mxu1 }
 0x267   :  { %v5471_v32 = vadd.f32 %v5470_v36, %v4406_v56  ;;  %v4407_v33 = vmax.f32 %v1919_v19, 0.0  ;;  %v1921_v35 = vadd.f32 %v1920_v29, %v7385_v49  ;;  %v3234_v38 = vadd.f32 %v3233_v57, %v7387_v50 }
 0x268   :  { %v5545_v48 = vadd.f32 %v5544_v23, %v4408_v28  ;;  %v1922_v40 = vpop.f32.mrf.mxu0  ;;  %v8314_v41 = vsel %vm6344_vm2, %v8269_v27, %v8031_v30  ;;  %v4409_v13 = vmax.f32 %v3232_v34, 0.0  ;;  %v3235_v44 = vpop.f32.mrf.mxu1  ;;  %v8321_v14 = vsel %vm6344_vm2, %v6218_v18, %v8038_v39 }
 0x269   :  { %v5508_v45 = vadd.f32 %v5507_v24, %v4407_v33  ;;  %v4410_v42 = vmax.f32 %v1921_v35, 0.0  ;;  %v1923_v43 = vadd.f32 %v1922_v40, %v7391_v53  ;;  %v4412_v51 = vmax.f32 %v3234_v38, 0.0 }
 0x26a   :  { %v3236_v52 = vadd.f32 %v3235_v44, %v7393_v54  ;;  %v1926_v55 = vpop.f32.mrf.mxu0  ;;  %6738 = vmatmul.mubr.msk.bf16.gmra.mxu0 %vm987_vm0, %v7078_v21  ;;  %v5582_v58 = vadd.f32 %v5581_v25, %v4409_v13  ;;  %v3239_v60 = vpop.f32.mrf.mxu1 }
 0x26b   :  { %v5472_v59 = vadd.f32 %v5471_v32, %v4410_v42  ;;  %v4411_v30 = vmax.f32 %v1923_v43, 0.0  ;;  %v1927_v27 = vadd.f32 %v1926_v55, %v7385_v49  ;;  %6866 = vmatmul.mubr.msk.bf16.gmra.mxu1 %vm987_vm0, %v7078_v21  ;;  %2174 = vmatprep.mubr.bf16.mxu0 %v7130_v1  ;;  %v5546_v61 = vadd.f32 %v5545_v48, %v4412_v51  ;;  %v7080_v43 = vld [vmem:[%s9675_s0 + $0x270] sm:$0xff]  }
 0x26c   :  { %v4413_v62 = vmax.f32 %v3236_v52, 0.0  ;;  %v3240_v63 = vadd.f32 %v3239_v60, %v7387_v50  ;;  %v1928_v0 = vpop.f32.mrf.mxu0  ;;  %3487 = vmatprep.mubr.bf16.mxu1 %v7130_v1  ;;  %v3241_v4 = vpop.f32.mrf.mxu1 }
 0x26d   :  { %v5509_v2 = vadd.f32 %v5508_v45, %v4411_v30  ;;  %v4414_v39 = vmax.f32 %v1927_v27, 0.0  ;;  %v1929_v3 = vadd.f32 %v1928_v0, %v7391_v53  ;;  %v3242_v46 = vadd.f32 %v3241_v4, %v7393_v54 }
 0x26e   :  { %v5583_v5 = vadd.f32 %v5582_v58, %v4413_v62  ;;  %v4416_v6 = vmax.f32 %v3240_v63, 0.0  ;;  %v1930_v7 = vpop.f32.mrf.mxu0  ;;  %v3243_v15 = vpop.f32.mrf.mxu1 }
 0x26f   :  { %v5473_v8 = vadd.f32 %v5472_v59, %v4414_v39  ;;  %v4415_v9 = vmax.f32 %v1929_v3, 0.0  ;;  %v1931_v10 = vadd.f32 %v1930_v7, %v7385_v49  ;;  %v4417_v17 = vmax.f32 %v3242_v46, 0.0 }
 0x270   :  { %v5547_v16 = vadd.f32 %v5546_v61, %v4416_v6  ;;  %v3244_v18 = vadd.f32 %v3243_v15, %v7387_v50  ;;  %v1932_v36 = vpop.f32.mrf.mxu0  ;;  %v3245_v21 = vpop.f32.mrf.mxu1 }
 0x271   :  { %v5510_v56 = vadd.f32 %v5509_v2, %v4415_v9  ;;  %v4418_v19 = vmax.f32 %v1931_v10, 0.0  ;;  %v1933_v20 = vadd.f32 %v1932_v36, %v7391_v53  ;;  %v5584_v23 = vadd.f32 %v5583_v5, %v4417_v17 }
 0x272   :  { %v4420_v24 = vmax.f32 %v3244_v18, 0.0  ;;  %v3246_v25 = vadd.f32 %v3245_v21, %v7393_v54  ;;  %v1936_v28 = vpop.f32.mrf.mxu0  ;;  %6739 = vmatmul.mubr.msk.bf16.gmra.mxu0 %vm987_vm0, %v7079_v47  ;;  %v3249_v11 = vpop.f32.mrf.mxu1 }
 0x273   :  { %v5474_v29 = vadd.f32 %v5473_v8, %v4418_v19  ;;  %v4419_v31 = vmax.f32 %v1933_v20, 0.0  ;;  %v1937_v37 = vadd.f32 %v1936_v28, %v7385_v49  ;;  %6867 = vmatmul.mubr.msk.bf16.gmra.mxu1 %vm987_vm0, %v7079_v47  ;;  %2184 = vmatprep.mubr.bf16.mxu0 %v7130_v1  ;;  %v3250_v34 = vadd.f32 %v3249_v11, %v7387_v50  ;;  %v7081_v20 = vld [vmem:[%s9675_s0 + $0x278] sm:$0xff]  }
 0x274   :  { %v5548_v32 = vadd.f32 %v5547_v16, %v4420_v24  ;;  %v4421_v33 = vmax.f32 %v3246_v25, 0.0  ;;  %v1938_v35 = vpop.f32.mrf.mxu0  ;;  %3497 = vmatprep.mubr.bf16.mxu1 %v7130_v1  ;;  %v3251_v38 = vpop.f32.mrf.mxu1 }
 0x275   :  { %v5511_v57 = vadd.f32 %v5510_v56, %v4419_v31  ;;  %v4422_v12 = vmax.f32 %v1937_v37, 0.0  ;;  %v1939_v48 = vadd.f32 %v1938_v35, %v7391_v53  ;;  %v4424_v45 = vmax.f32 %v3250_v34, 0.0 }
 0x276   :  { %v5585_v40 = vadd.f32 %v5584_v23, %v4421_v33  ;;  %v3252_v13 = vadd.f32 %v3251_v38, %v7393_v54  ;;  %v1940_v42 = vpop.f32.mrf.mxu0  ;;  %v3253_v55 = vpop.f32.mrf.mxu1 }
 0x277   :  { %v5475_v44 = vadd.f32 %v5474_v29, %v4422_v12  ;;  %v4423_v51 = vmax.f32 %v1939_v48, 0.0  ;;  %v1941_v52 = vadd.f32 %v1940_v42, %v7385_v49  ;;  %v5549_v58 = vadd.f32 %v5548_v32, %v4424_v45 }
 0x278   :  { %v4425_v59 = vmax.f32 %v3252_v13, 0.0  ;;  %v3254_v30 = vadd.f32 %v3253_v55, %v7387_v50  ;;  %v1942_v27 = vpop.f32.mrf.mxu0  ;;  %v3255_v63 = vpop.f32.mrf.mxu1 }
 0x279   :  { %v5512_v60 = vadd.f32 %v5511_v57, %v4423_v51  ;;  %v4426_v61 = vmax.f32 %v1941_v52, 0.0  ;;  %v1943_v62 = vadd.f32 %v1942_v27, %v7391_v53  ;;  %v3256_v39 = vadd.f32 %v3255_v63, %v7393_v54 }
 0x27a   :  { %v5586_v0 = vadd.f32 %v5585_v40, %v4425_v59  ;;  %v4428_v2 = vmax.f32 %v3254_v30, 0.0  ;;  %v1946_v3 = vpop.f32.mrf.mxu0  ;;  %6740 = vmatmul.mubr.msk.bf16.gmra.mxu0 %vm987_vm0, %v7080_v43  ;;  %v3259_v46 = vpop.f32.mrf.mxu1 }
 0x27b   :  { %v5476_v4 = vadd.f32 %v5475_v44, %v4426_v61  ;;  %v4427_v5 = vmax.f32 %v1943_v62, 0.0  ;;  %v1947_v6 = vadd.f32 %v1946_v3, %v7385_v49  ;;  %6868 = vmatmul.mubr.msk.bf16.gmra.mxu1 %vm987_vm0, %v7080_v43  ;;  %2194 = vmatprep.mubr.bf16.mxu0 %v7130_v1  ;;  %v4429_v47 = vmax.f32 %v3256_v39, 0.0  ;;  %v7082_v62 = vld [vmem:[%s9675_s0 + $0x280] sm:$0xff]  }
 0x27c   :  { %v5550_v7 = vadd.f32 %v5549_v58, %v4428_v2  ;;  %v3260_v8 = vadd.f32 %v3259_v46, %v7387_v50  ;;  %v1948_v9 = vpop.f32.mrf.mxu0  ;;  %3507 = vmatprep.mubr.bf16.mxu1 %v7130_v1  ;;  %v3261_v17 = vpop.f32.mrf.mxu1 }
 0x27d   :  { %v5513_v10 = vadd.f32 %v5512_v60, %v4427_v5  ;;  %v4430_v15 = vmax.f32 %v1947_v6, 0.0  ;;  %v1949_v16 = vadd.f32 %v1948_v9, %v7391_v53  ;;  %v5587_v18 = vadd.f32 %v5586_v0, %v4429_v47 }
 0x27e   :  { %v4432_v36 = vmax.f32 %v3260_v8, 0.0  ;;  %v3262_v56 = vadd.f32 %v3261_v17, %v7393_v54  ;;  %v1950_v19 = vpop.f32.mrf.mxu0  ;;  %v3263_v25 = vpop.f32.mrf.mxu1 }
 0x27f   :  { %v5477_v21 = vadd.f32 %v5476_v4, %v4430_v15  ;;  %v4431_v23 = vmax.f32 %v1949_v16, 0.0  ;;  %v1951_v24 = vadd.f32 %v1950_v19, %v7385_v49  ;;  %v3264_v31 = vadd.f32 %v3263_v25, %v7387_v50 }
 0x280   :  { %v5551_v28 = vadd.f32 %v5550_v7, %v4432_v36  ;;  %v4433_v29 = vmax.f32 %v3262_v56, 0.0  ;;  %v1952_v37 = vpop.f32.mrf.mxu0  ;;  %v3265_v34 = vpop.f32.mrf.mxu1 }
 0x281   :  { %v5514_v11 = vadd.f32 %v5513_v10, %v4431_v23  ;;  %v4434_v32 = vmax.f32 %v1951_v24, 0.0  ;;  %v1953_v33 = vadd.f32 %v1952_v37, %v7391_v53  ;;  %v4436_v57 = vmax.f32 %v3264_v31, 0.0 }
 0x282   :  { %v5588_v35 = vadd.f32 %v5587_v18, %v4433_v29  ;;  %v3266_v12 = vadd.f32 %v3265_v34, %v7393_v54  ;;  %v1956_v48 = vpop.f32.mrf.mxu0  ;;  %6741 = vmatmul.mubr.msk.bf16.gmra.mxu0 %vm987_vm0, %v7081_v20  ;;  %v3269_v13 = vpop.f32.mrf.mxu1 }
 0x283   :  { %v5478_v38 = vadd.f32 %v5477_v21, %v4434_v32  ;;  %v4435_v40 = vmax.f32 %v1953_v33, 0.0  ;;  %v1957_v45 = vadd.f32 %v1956_v48, %v7385_v49  ;;  %6869 = vmatmul.mubr.msk.bf16.gmra.mxu1 %vm987_vm0, %v7081_v20  ;;  %2204 = vmatprep.mubr.bf16.mxu0 %v7130_v1  ;;  %v5552_v42 = vadd.f32 %v5551_v28, %v4436_v57  ;;  %v7083_v33 = vld [vmem:[%s9675_s0 + $0x288] sm:$0xff]  }
 0x284   :  { %v4437_v43 = vmax.f32 %v3266_v12, 0.0  ;;  %v3270_v44 = vadd.f32 %v3269_v13, %v7387_v50  ;;  %v1958_v51 = vpop.f32.mrf.mxu0  ;;  %3517 = vmatprep.mubr.bf16.mxu1 %v7130_v1  ;;  %v3271_v59 = vpop.f32.mrf.mxu1 }
 0x285   :  { %v5515_v52 = vadd.f32 %v5514_v11, %v4435_v40  ;;  %v4438_v55 = vmax.f32 %v1957_v45, 0.0  ;;  %v1959_v58 = vadd.f32 %v1958_v51, %v7391_v53  ;;  %v3272_v60 = vadd.f32 %v3271_v59, %v7393_v54 }
 0x286   :  { %v5589_v30 = vadd.f32 %v5588_v35, %v4437_v43  ;;  %v4440_v27 = vmax.f32 %v3270_v44, 0.0  ;;  %v1960_v61 = vpop.f32.mrf.mxu0  ;;  %v3273_v39 = vpop.f32.mrf.mxu1 }
 0x287   :  { %v5479_v63 = vadd.f32 %v5478_v38, %v4438_v55  ;;  %v4439_v0 = vmax.f32 %v1959_v58, 0.0  ;;  %v1961_v2 = vadd.f32 %v1960_v61, %v7385_v49  ;;  %v4441_v4 = vmax.f32 %v3272_v60, 0.0 }
 0x288   :  { %v5553_v3 = vadd.f32 %v5552_v42, %v4440_v27  ;;  %v3274_v5 = vadd.f32 %v3273_v39, %v7387_v50  ;;  %v1962_v6 = vpop.f32.mrf.mxu0  ;;  %v3275_v8 = vpop.f32.mrf.mxu1 }
 0x289   :  { %v5516_v46 = vadd.f32 %v5515_v52, %v4439_v0  ;;  %v4442_v7 = vmax.f32 %v1961_v2, 0.0  ;;  %v1963_v47 = vadd.f32 %v1962_v6, %v7391_v53  ;;  %v5590_v9 = vadd.f32 %v5589_v30, %v4441_v4 }
 0x28a   :  { %v4444_v10 = vmax.f32 %v3274_v5, 0.0  ;;  %v3276_v15 = vadd.f32 %v3275_v8, %v7393_v54  ;;  %v1966_v16 = vpop.f32.mrf.mxu0  ;;  %6742 = vmatmul.mubr.msk.bf16.gmra.mxu0 %vm987_vm0, %v7082_v62  ;;  %v3279_v56 = vpop.f32.mrf.mxu1 }
 0x28b   :  { %v5480_v17 = vadd.f32 %v5479_v63, %v4442_v7  ;;  %v4443_v18 = vmax.f32 %v1963_v47, 0.0  ;;  %v1967_v36 = vadd.f32 %v1966_v16, %v7385_v49  ;;  %6870 = vmatmul.mubr.msk.bf16.gmra.mxu1 %vm987_vm0, %v7082_v62  ;;  %2214 = vmatprep.mubr.bf16.mxu0 %v7130_v1  ;;  %v3280_v21 = vadd.f32 %v3279_v56, %v7387_v50  ;;  %v7084_v47 = vld [vmem:[%s9675_s0 + $0x290] sm:$0xff]  }
 0x28c   :  { %v5554_v19 = vadd.f32 %v5553_v3, %v4444_v10  ;;  %v4445_v20 = vmax.f32 %v3276_v15, 0.0  ;;  %v1968_v23 = vpop.f32.mrf.mxu0  ;;  %3527 = vmatprep.mubr.bf16.mxu1 %v7130_v1  ;;  %v3281_v29 = vpop.f32.mrf.mxu1 }
 0x28d   :  { %v5517_v24 = vadd.f32 %v5516_v46, %v4443_v18  ;;  %v4446_v25 = vmax.f32 %v1967_v36, 0.0  ;;  %v1969_v28 = vadd.f32 %v1968_v23, %v7391_v53  ;;  %v4448_v37 = vmax.f32 %v3280_v21, 0.0 }
 0x28e   :  { %v5591_v31 = vadd.f32 %v5590_v9, %v4445_v20  ;;  %v3282_v11 = vadd.f32 %v3281_v29, %v7393_v54  ;;  %v1970_v32 = vpop.f32.mrf.mxu0  ;;  %v3283_v12 = vpop.f32.mrf.mxu1 }
 0x28f   :  { %v5481_v34 = vadd.f32 %v5480_v17, %v4446_v25  ;;  %v4447_v35 = vmax.f32 %v1969_v28, 0.0  ;;  %v1971_v57 = vadd.f32 %v1970_v32, %v7385_v49  ;;  %v5555_v48 = vadd.f32 %v5554_v19, %v4448_v37 }
 0x290   :  { %v4449_v38 = vmax.f32 %v3282_v11, 0.0  ;;  %v3284_v40 = vadd.f32 %v3283_v12, %v7387_v50  ;;  %v1972_v45 = vpop.f32.mrf.mxu0  ;;  %v3285_v44 = vpop.f32.mrf.mxu1 }
 0x291   :  { %v5518_v13 = vadd.f32 %v5517_v24, %v4447_v35  ;;  %v4450_v42 = vmax.f32 %v1971_v57, 0.0  ;;  %v1973_v43 = vadd.f32 %v1972_v45, %v7391_v53  ;;  %v3286_v55 = vadd.f32 %v3285_v44, %v7393_v54 }
 0x292   :  { %v5592_v51 = vadd.f32 %v5591_v31, %v4449_v38  ;;  %v4452_v52 = vmax.f32 %v3284_v40, 0.0  ;;  %v1976_v58 = vpop.f32.mrf.mxu0  ;;  %6743 = vmatmul.mubr.msk.bf16.gmra.mxu0 %vm987_vm0, %v7083_v33  ;;  %v3289_v60 = vpop.f32.mrf.mxu1 }
 0x293   :  { %v5482_v59 = vadd.f32 %v5481_v34, %v4450_v42  ;;  %v4451_v30 = vmax.f32 %v1973_v43, 0.0  ;;  %v1977_v27 = vadd.f32 %v1976_v58, %v7385_v49  ;;  %6871 = vmatmul.mubr.msk.bf16.gmra.mxu1 %vm987_vm0, %v7083_v33  ;;  %2224 = vmatprep.mubr.bf16.mxu0 %v7130_v1  ;;  %v4453_v62 = vmax.f32 %v3286_v55, 0.0  ;;  %v7085_v43 = vld [vmem:[%s9675_s0 + $0x298] sm:$0xff]  }
 0x294   :  { %v5556_v61 = vadd.f32 %v5555_v48, %v4452_v52  ;;  %v3290_v63 = vadd.f32 %v3289_v60, %v7387_v50  ;;  %v1978_v0 = vpop.f32.mrf.mxu0  ;;  %3537 = vmatprep.mubr.bf16.mxu1 %v7130_v1  ;;  %v3291_v4 = vpop.f32.mrf.mxu1 }
 0x295   :  { %v5519_v2 = vadd.f32 %v5518_v13, %v4451_v30  ;;  %v4454_v39 = vmax.f32 %v1977_v27, 0.0  ;;  %v1979_v3 = vadd.f32 %v1978_v0, %v7391_v53  ;;  %v5593_v5 = vadd.f32 %v5592_v51, %v4453_v62 }
 0x296   :  { %v4456_v6 = vmax.f32 %v3290_v63, 0.0  ;;  %v3292_v46 = vadd.f32 %v3291_v4, %v7393_v54  ;;  %v1980_v7 = vpop.f32.mrf.mxu0  ;;  %v3293_v15 = vpop.f32.mrf.mxu1 }
 0x297   :  { %v5483_v8 = vadd.f32 %v5482_v59, %v4454_v39  ;;  %v4455_v9 = vmax.f32 %v1979_v3, 0.0  ;;  %v1981_v10 = vadd.f32 %v1980_v7, %v7385_v49  ;;  %v3294_v18 = vadd.f32 %v3293_v15, %v7387_v50  ;;  %v6245_v15 = vld [vmem:[%s9676_s3 + $0x30] sm:$0xff] }
 0x298   :  { %v5557_v16 = vadd.f32 %v5556_v61, %v4456_v6  ;;  %v4457_v17 = vmax.f32 %v3292_v46, 0.0  ;;  %v1982_v36 = vpop.f32.mrf.mxu0  ;;  %v3295_v21 = vpop.f32.mrf.mxu1 }
 0x299   :  { %v5520_v56 = vadd.f32 %v5519_v2, %v4455_v9  ;;  %v4458_v19 = vmax.f32 %v1981_v10, 0.0  ;;  %v1983_v20 = vadd.f32 %v1982_v36, %v7391_v53  ;;  %v4460_v24 = vmax.f32 %v3294_v18, 0.0  ;;  %v6261_v10 = vld [vmem:[%s9676_s3 + $0xb0] sm:$0xff] }
 0x29a   :  { %v5594_v23 = vadd.f32 %v5593_v5, %v4457_v17  ;;  %v3296_v25 = vadd.f32 %v3295_v21, %v7393_v54  ;;  %v1986_v28 = vpop.f32.mrf.mxu0  ;;  %6744 = vmatmul.mubr.msk.bf16.gmra.mxu0 %vm987_vm0, %v7084_v47  ;;  %v3299_v11 = vpop.f32.mrf.mxu1  ;;  %6937 = vmatprep.subr.mxu0 %v6261_v10 }
 0x29b   :  { %v5484_v29 = vadd.f32 %v5483_v8, %v4458_v19  ;;  %v4459_v31 = vmax.f32 %v1983_v20, 0.0  ;;  %v1987_v37 = vadd.f32 %v1986_v28, %v7385_v49  ;;  %6872 = vmatmul.mubr.msk.bf16.gmra.mxu1 %vm987_vm0, %v7084_v47  ;;  %2234 = vmatprep.mubr.bf16.mxu0 %v7130_v1  ;;  %v5558_v32 = vadd.f32 %v5557_v16, %v4460_v24  ;;  %v6293_v24 = vld [vmem:[%s9676_s3 + $0x1b0] sm:$0xff] }
 0x29c   :  { %v4461_v33 = vmax.f32 %v3296_v25, 0.0  ;;  %v3300_v34 = vadd.f32 %v3299_v11, %v7387_v50  ;;  %v1988_v35 = vpop.f32.mrf.mxu0  ;;  %3547 = vmatprep.mubr.bf16.mxu1 %v7130_v1  ;;  %v3301_v38 = vpop.f32.mrf.mxu1  ;;  %6938 = vmatpush3.msra.mxu0 %v6245_v15  ;;  %v6277_v25 = vld [vmem:[%s9676_s3 + $0x130] sm:$0xff] }
 0x29d   :  { %v5521_v57 = vadd.f32 %v5520_v56, %v4459_v31  ;;  %v4462_v12 = vmax.f32 %v1987_v37, 0.0  ;;  %v1989_v48 = vadd.f32 %v1988_v35, %v7391_v53  ;;  %v3302_v13 = vadd.f32 %v3301_v38, %v7393_v54  ;;  %6972 = vmatprep.subr.mxu1 %v6293_v24 }
 0x29e   :  { %v5595_v40 = vadd.f32 %v5594_v23, %v4461_v33  ;;  %v4464_v45 = vmax.f32 %v3300_v34, 0.0  ;;  %v1990_v42 = vpop.f32.mrf.mxu0  ;;  %v3303_v55 = vpop.f32.mrf.mxu1  ;;  %v7086_v23 = vld [vmem:[%s9675_s0 + $0x2a0] sm:$0xff]   ;;  %6973 = vmatpush3.msra.mxu1 %v6277_v25 }
 0x29f   :  { %v5485_v44 = vadd.f32 %v5484_v29, %v4462_v12  ;;  %v4463_v51 = vmax.f32 %v1989_v48, 0.0  ;;  %v1991_v52 = vadd.f32 %v1990_v42, %v7385_v49  ;;  %v4465_v59 = vmax.f32 %v3302_v13, 0.0 }
 0x2a0   :  { %v5559_v58 = vadd.f32 %v5558_v32, %v4464_v45  ;;  %v3304_v30 = vadd.f32 %v3303_v55, %v7387_v50  ;;  %v1992_v27 = vpop.f32.mrf.mxu0  ;;  %v3305_v63 = vpop.f32.mrf.mxu1 }
 0x2a1   :  { %v5522_v60 = vadd.f32 %v5521_v57, %v4463_v51  ;;  %v4466_v61 = vmax.f32 %v1991_v52, 0.0  ;;  %v1993_v62 = vadd.f32 %v1992_v27, %v7391_v53  ;;  %v5596_v0 = vadd.f32 %v5595_v40, %v4465_v59 }
 0x2a2   :  { %v4468_v2 = vmax.f32 %v3304_v30, 0.0  ;;  %v3306_v39 = vadd.f32 %v3305_v63, %v7393_v54  ;;  %v1996_v3 = vpop.f32.mrf.mxu0  ;;  %6745 = vmatmul.mubr.msk.bf16.gmra.mxu0 %vm987_vm0, %v7085_v43 }
 0x2a3   :  { %v5486_v4 = vadd.f32 %v5485_v44, %v4466_v61  ;;  %v4467_v5 = vmax.f32 %v1993_v62, 0.0  ;;  %v1997_v6 = vadd.f32 %v1996_v3, %v7385_v49  ;;  %v3309_v46 = vpop.f32.mrf.mxu1  ;;  %6873 = vmatmul.mubr.msk.bf16.gmra.mxu1 %vm987_vm0, %v7085_v43  ;;  %2244 = vmatprep.mubr.bf16.mxu0 %v7130_v1 }
 0x2a4   :  { %v5560_v7 = vadd.f32 %v5559_v58, %v4468_v2  ;;  %v4469_v47 = vmax.f32 %v3306_v39, 0.0  ;;  %v3310_v8 = vadd.f32 %v3309_v46, %v7387_v50  ;;  %v1998_v9 = vpop.f32.mrf.mxu0  ;;  %3557 = vmatprep.mubr.bf16.mxu1 %v7130_v1  ;;  %v7087_v39 = vld [vmem:[%s9675_s0 + $0x2a8] sm:$0xff]  }
 0x2a5   :  { %v5523_v16 = vadd.f32 %v5522_v60, %v4467_v5  ;;  %v4470_v17 = vmax.f32 %v1997_v6, 0.0  ;;  %v1999_v18 = vadd.f32 %v1998_v9, %v7391_v53  ;;  %v3311_v36 = vpop.f32.mrf.mxu1 }
 0x2a6   :  { %v5597_v56 = vadd.f32 %v5596_v0, %v4469_v47  ;;  %v4472_v19 = vmax.f32 %v3310_v8, 0.0  ;;  %v3312_v20 = vadd.f32 %v3311_v36, %v7393_v54  ;;  %v2000_v21 = vpop.f32.mrf.mxu0 }
 0x2a7   :  { %v5487_v28 = vadd.f32 %v5486_v4, %v4470_v17  ;;  %v4471_v29 = vmax.f32 %v1999_v18, 0.0  ;;  %v2001_v31 = vadd.f32 %v2000_v21, %v7385_v49  ;;  %v3313_v37 = vpop.f32.mrf.mxu1 }
 0x2a8   :  { %v5561_v11 = vadd.f32 %v5560_v7, %v4472_v19  ;;  %v4473_v32 = vmax.f32 %v3312_v20, 0.0  ;;  %v3314_v33 = vadd.f32 %v3313_v37, %v7387_v50  ;;  %v2002_v34 = vpop.f32.mrf.mxu0 }
 0x2a9   :  { %v5524_v35 = vadd.f32 %v5523_v16, %v4471_v29  ;;  %v4474_v57 = vmax.f32 %v2001_v31, 0.0  ;;  %v2003_v12 = vadd.f32 %v2002_v34, %v7391_v53  ;;  %v3315_v48 = vpop.f32.mrf.mxu1 }
 0x2aa   :  { %v5598_v38 = vadd.f32 %v5597_v56, %v4473_v32  ;;  %v4476_v40 = vmax.f32 %v3314_v33, 0.0  ;;  %v3316_v45 = vadd.f32 %v3315_v48, %v7393_v54  ;;  %v2006_v13 = vpop.f32.mrf.mxu0  ;;  %6746 = vmatmul.mubr.msk.bf16.gmra.mxu0 %vm987_vm0, %v7086_v23 }
 0x2ab   :  { %v5488_v42 = vadd.f32 %v5487_v28, %v4474_v57  ;;  %v4475_v43 = vmax.f32 %v2003_v12, 0.0  ;;  %v2007_v44 = vadd.f32 %v2006_v13, %v7385_v49  ;;  %v3319_v51 = vpop.f32.mrf.mxu1  ;;  %6874 = vmatmul.mubr.msk.bf16.gmra.mxu1 %vm987_vm0, %v7086_v23  ;;  %2254 = vmatprep.mubr.bf16.mxu0 %v7130_v1  ;;  %v7088_v12 = vld [vmem:[%s9675_s0 + $0x2b0] sm:$0xff]  }
 0x2ac   :  { %v5562_v52 = vadd.f32 %v5561_v11, %v4476_v40  ;;  %v4477_v55 = vmax.f32 %v3316_v45, 0.0  ;;  %v3320_v58 = vadd.f32 %v3319_v51, %v7387_v50  ;;  %v2008_v59 = vpop.f32.mrf.mxu0  ;;  %3567 = vmatprep.mubr.bf16.mxu1 %v7130_v1 }
 0x2ad   :  { %v5525_v30 = vadd.f32 %v5524_v35, %v4475_v43  ;;  %v4478_v27 = vmax.f32 %v2007_v44, 0.0  ;;  %v2009_v60 = vadd.f32 %v2008_v59, %v7391_v53  ;;  %v3321_v61 = vpop.f32.mrf.mxu1 }
 0x2ae   :  { %v5599_v62 = vadd.f32 %v5598_v38, %v4477_v55  ;;  %v4480_v63 = vmax.f32 %v3320_v58, 0.0  ;;  %v3322_v0 = vadd.f32 %v3321_v61, %v7393_v54  ;;  %v2010_v2 = vpop.f32.mrf.mxu0 }
 0x2af   :  { %v5489_v3 = vadd.f32 %v5488_v42, %v4478_v27  ;;  %v4479_v4 = vmax.f32 %v2009_v60, 0.0  ;;  %v2011_v5 = vadd.f32 %v2010_v2, %v7385_v49  ;;  %v3323_v6 = vpop.f32.mrf.mxu1 }
 0x2b0   :  { %v5563_v46 = vadd.f32 %v5562_v52, %v4480_v63  ;;  %v4481_v7 = vmax.f32 %v3322_v0, 0.0  ;;  %v3324_v47 = vadd.f32 %v3323_v6, %v7387_v50  ;;  %v2012_v8 = vpop.f32.mrf.mxu0 }
 0x2b1   :  { %v5526_v9 = vadd.f32 %v5525_v30, %v4479_v4  ;;  %v4482_v10 = vmax.f32 %v2011_v5, 0.0  ;;  %v2013_v15 = vadd.f32 %v2012_v8, %v7391_v53  ;;  %v3325_v16 = vpop.f32.mrf.mxu1 }
 0x2b2   :  { %v5600_v17 = vadd.f32 %v5599_v62, %v4481_v7  ;;  %v4484_v18 = vmax.f32 %v3324_v47, 0.0  ;;  %v3326_v36 = vadd.f32 %v3325_v16, %v7393_v54  ;;  %v2016_v56 = vpop.f32.mrf.mxu0  ;;  %6747 = vmatmul.mubr.msk.bf16.gmra.mxu0 %vm987_vm0, %v7087_v39 }
 0x2b3   :  { %v5490_v19 = vadd.f32 %v5489_v3, %v4482_v10  ;;  %v4483_v20 = vmax.f32 %v2013_v15, 0.0  ;;  %v2017_v21 = vadd.f32 %v2016_v56, %v7385_v49  ;;  %v3329_v23 = vpop.f32.mrf.mxu1  ;;  %6875 = vmatmul.mubr.msk.bf16.gmra.mxu1 %vm987_vm0, %v7087_v39  ;;  %2264 = vmatprep.mubr.bf16.mxu0 %v7130_v1  ;;  %v7089_v15 = vld [vmem:[%s9675_s0 + $0x2b8] sm:$0xff]  }
 0x2b4   :  { %v5564_v24 = vadd.f32 %v5563_v46, %v4484_v18  ;;  %v4485_v25 = vmax.f32 %v3326_v36, 0.0  ;;  %v3330_v28 = vadd.f32 %v3329_v23, %v7387_v50  ;;  %v2018_v29 = vpop.f32.mrf.mxu0  ;;  %3577 = vmatprep.mubr.bf16.mxu1 %v7130_v1 }
 0x2b5   :  { %v5527_v31 = vadd.f32 %v5526_v9, %v4483_v20  ;;  %v4486_v37 = vmax.f32 %v2017_v21, 0.0  ;;  %v2019_v11 = vadd.f32 %v2018_v29, %v7391_v53  ;;  %v3331_v32 = vpop.f32.mrf.mxu1 }
 0x2b6   :  { %v5601_v33 = vadd.f32 %v5600_v17, %v4485_v25  ;;  %v4488_v34 = vmax.f32 %v3330_v28, 0.0  ;;  %v3332_v35 = vadd.f32 %v3331_v32, %v7393_v54  ;;  %v2020_v57 = vpop.f32.mrf.mxu0 }
 0x2b7   :  { %v5491_v48 = vadd.f32 %v5490_v19, %v4486_v37  ;;  %v4487_v38 = vmax.f32 %v2019_v11, 0.0  ;;  %v2021_v40 = vadd.f32 %v2020_v57, %v7385_v49  ;;  %v3333_v45 = vpop.f32.mrf.mxu1 }
 0x2b8   :  { %v5565_v13 = vadd.f32 %v5564_v24, %v4488_v34  ;;  %v4489_v42 = vmax.f32 %v3332_v35, 0.0  ;;  %v3334_v43 = vadd.f32 %v3333_v45, %v7387_v50  ;;  %v2022_v44 = vpop.f32.mrf.mxu0 }
 0x2b9   :  { %v5528_v51 = vadd.f32 %v5527_v31, %v4487_v38  ;;  %v4490_v52 = vmax.f32 %v2021_v40, 0.0  ;;  %v2023_v55 = vadd.f32 %v2022_v44, %v7391_v53  ;;  %v3335_v58 = vpop.f32.mrf.mxu1 }
 0x2ba   :  { %v5602_v59 = vadd.f32 %v5601_v33, %v4489_v42  ;;  %v4492_v30 = vmax.f32 %v3334_v43, 0.0  ;;  %v3336_v27 = vadd.f32 %v3335_v58, %v7393_v54  ;;  %v2026_v60 = vpop.f32.mrf.mxu0  ;;  %6748 = vmatmul.mubr.msk.bf16.gmra.mxu0 %vm987_vm0, %v7088_v12 }
 0x2bb   :  { %v5492_v61 = vadd.f32 %v5491_v48, %v4490_v52  ;;  %v4491_v62 = vmax.f32 %v2023_v55, 0.0  ;;  %v2027_v63 = vadd.f32 %v2026_v60, %v7385_v49  ;;  %v3339_v0 = vpop.f32.mrf.mxu1  ;;  %6876 = vmatmul.mubr.msk.bf16.gmra.mxu1 %vm987_vm0, %v7088_v12  ;;  %2274 = vmatprep.mubr.bf16.mxu0 %v7130_v1  ;;  %v7090_v55 = vld [vmem:[%s9675_s0 + $0x2c0] sm:$0xff]  }
 0x2bc   :  { %v5566_v2 = vadd.f32 %v5565_v13, %v4492_v30  ;;  %v4493_v39 = vmax.f32 %v3336_v27, 0.0  ;;  %v3340_v3 = vadd.f32 %v3339_v0, %v7387_v50  ;;  %v2028_v4 = vpop.f32.mrf.mxu0  ;;  %3587 = vmatprep.mubr.bf16.mxu1 %v7130_v1 }
 0x2bd   :  { %v5529_v5 = vadd.f32 %v5528_v51, %v4491_v62  ;;  %v4494_v6 = vmax.f32 %v2027_v63, 0.0  ;;  %v2029_v46 = vadd.f32 %v2028_v4, %v7391_v53  ;;  %v3341_v7 = vpop.f32.mrf.mxu1 }
 0x2be   :  { %v5603_v47 = vadd.f32 %v5602_v59, %v4493_v39  ;;  %v4496_v8 = vmax.f32 %v3340_v3, 0.0  ;;  %v3342_v9 = vadd.f32 %v3341_v7, %v7393_v54  ;;  %v2030_v10 = vpop.f32.mrf.mxu0 }
 0x2bf   :  { %v5493_v16 = vadd.f32 %v5492_v61, %v4494_v6  ;;  %v4495_v17 = vmax.f32 %v2029_v46, 0.0  ;;  %v2031_v18 = vadd.f32 %v2030_v10, %v7385_v49  ;;  %v3343_v36 = vpop.f32.mrf.mxu1 }
 0x2c0   :  { %v5567_v56 = vadd.f32 %v5566_v2, %v4496_v8  ;;  %v4497_v19 = vmax.f32 %v3342_v9, 0.0  ;;  %v3344_v20 = vadd.f32 %v3343_v36, %v7387_v50  ;;  %v2032_v21 = vpop.f32.mrf.mxu0 }
 0x2c1   :  { %v5530_v23 = vadd.f32 %v5529_v5, %v4495_v17  ;;  %v4498_v24 = vmax.f32 %v2031_v18, 0.0  ;;  %v2033_v25 = vadd.f32 %v2032_v21, %v7391_v53  ;;  %v3345_v28 = vpop.f32.mrf.mxu1 }
 0x2c2   :  { %v5604_v29 = vadd.f32 %v5603_v47, %v4497_v19  ;;  %v4500_v31 = vmax.f32 %v3344_v20, 0.0  ;;  %v3346_v37 = vadd.f32 %v3345_v28, %v7393_v54  ;;  %v2036_v11 = vpop.f32.mrf.mxu0  ;;  %6749 = vmatmul.mubr.msk.bf16.gmra.mxu0 %vm987_vm0, %v7089_v15 }
 0x2c3   :  { %v5494_v32 = vadd.f32 %v5493_v16, %v4498_v24  ;;  %v4499_v33 = vmax.f32 %v2033_v25, 0.0  ;;  %v2037_v34 = vadd.f32 %v2036_v11, %v7385_v49  ;;  %v3349_v35 = vpop.f32.mrf.mxu1  ;;  %6877 = vmatmul.mubr.msk.bf16.gmra.mxu1 %vm987_vm0, %v7089_v15  ;;  %2284 = vmatprep.mubr.bf16.mxu0 %v7130_v1 }
 0x2c4   :  { %v5568_v57 = vadd.f32 %v5567_v56, %v4500_v31  ;;  %v4501_v12 = vmax.f32 %v3346_v37, 0.0  ;;  %v3350_v48 = vadd.f32 %v3349_v35, %v7387_v50  ;;  %v2038_v38 = vpop.f32.mrf.mxu0  ;;  %3597 = vmatprep.mubr.bf16.mxu1 %v7130_v1 }
 0x2c5   :  { %v5531_v40 = vadd.f32 %v5530_v23, %v4499_v33  ;;  %v4502_v45 = vmax.f32 %v2037_v34, 0.0  ;;  %v2039_v13 = vadd.f32 %v2038_v38, %v7391_v53  ;;  %v3351_v42 = vpop.f32.mrf.mxu1 }
 0x2c6   :  { %v5605_v43 = vadd.f32 %v5604_v29, %v4501_v12  ;;  %v4504_v44 = vmax.f32 %v3350_v48, 0.0  ;;  %v3352_v51 = vadd.f32 %v3351_v42, %v7393_v54  ;;  %v2040_v52 = vpop.f32.mrf.mxu0  ;;  %v7091_v29 = vld [vmem:[%s9675_s0 + $0x2c8] sm:$0xff]  }
 0x2c7   :  { %v5495_v58 = vadd.f32 %v5494_v32, %v4502_v45  ;;  %v4503_v59 = vmax.f32 %v2039_v13, 0.0  ;;  %v2041_v30 = vadd.f32 %v2040_v52, %v7385_v49  ;;  %v3353_v27 = vpop.f32.mrf.mxu1 }
 0x2c8   :  { %v5569_v60 = vadd.f32 %v5568_v57, %v4504_v44  ;;  %v4505_v61 = vmax.f32 %v3352_v51, 0.0  ;;  %v3354_v62 = vadd.f32 %v3353_v27, %v7387_v50  ;;  %v2042_v63 = vpop.f32.mrf.mxu0 }
 0x2c9   :  { %v5532_v0 = vadd.f32 %v5531_v40, %v4503_v59  ;;  %v4506_v2 = vmax.f32 %v2041_v30, 0.0  ;;  %v2043_v39 = vadd.f32 %v2042_v63, %v7391_v53  ;;  %v3355_v3 = vpop.f32.mrf.mxu1 }
 0x2ca   :  { %v5606_v4 = vadd.f32 %v5605_v43, %v4505_v61  ;;  %v4508_v5 = vmax.f32 %v3354_v62, 0.0  ;;  %v3356_v6 = vadd.f32 %v3355_v3, %v7393_v54  ;;  %v2046_v46 = vpop.f32.mrf.mxu0  ;;  %6750 = vmatmul.mubr.msk.bf16.gmra.mxu0 %vm987_vm0, %v7090_v55 }
 0x2cb   :  { %v5496_v7 = vadd.f32 %v5495_v58, %v4506_v2  ;;  %v4507_v47 = vmax.f32 %v2043_v39, 0.0  ;;  %v2047_v8 = vadd.f32 %v2046_v46, %v7385_v49  ;;  %v3359_v9 = vpop.f32.mrf.mxu1  ;;  %6878 = vmatmul.mubr.msk.bf16.gmra.mxu1 %vm987_vm0, %v7090_v55  ;;  %2294 = vmatprep.mubr.bf16.mxu0 %v7130_v1 }
 0x2cc   :  { %v5570_v10 = vadd.f32 %v5569_v60, %v4508_v5  ;;  %v4509_v15 = vmax.f32 %v3356_v6, 0.0  ;;  %v3360_v16 = vadd.f32 %v3359_v9, %v7387_v50  ;;  %v2048_v17 = vpop.f32.mrf.mxu0  ;;  %3607 = vmatprep.mubr.bf16.mxu1 %v7130_v1 }
 0x2cd   :  { %v5497_v18 = vrot.slane %v5496_v7, 4  ;;  %v5533_v36 = vadd.f32 %v5532_v0, %v4507_v47  ;;  %v4510_v56 = vmax.f32 %v2047_v8, 0.0  ;;  %v2049_v19 = vadd.f32 %v2048_v17, %v7391_v53  ;;  %v3361_v20 = vpop.f32.mrf.mxu1 }
 0x2ce   :  { %v5571_v21 = vrot.slane %v5570_v10, 4  ;;  %v5607_v23 = vadd.f32 %v5606_v4, %v4509_v15  ;;  %v4512_v24 = vmax.f32 %v3360_v16, 0.0  ;;  %v3362_v25 = vadd.f32 %v3361_v20, %v7393_v54  ;;  %v2050_v28 = vpop.f32.mrf.mxu0 }
 0x2cf   :  { %v5498_v31 = vadd.f32 %v5497_v18, %v5496_v7  ;;  %v5534_v37 = vrot.slane %v5533_v36, 4  ;;  %v4511_v11 = vmax.f32 %v2049_v19, 0.0  ;;  %v2051_v32 = vadd.f32 %v2050_v28, %v7385_v49  ;;  %v3363_v33 = vpop.f32.mrf.mxu1 }
 0x2d0   :  { %v5572_v34 = vadd.f32 %v5571_v21, %v5570_v10  ;;  %v5608_v35 = vrot.slane %v5607_v23, 4  ;;  %v4513_v57 = vmax.f32 %v3362_v25, 0.0  ;;  %v3364_v12 = vadd.f32 %v3363_v33, %v7387_v50  ;;  %v2052_v48 = vpop.f32.mrf.mxu0  ;;  %v7092_v10 = vld [vmem:[%s9675_s0 + $0x2d0] sm:$0xff]  }
 0x2d1   :  { %v5499_v38 = vrot.slane %v5498_v31, 2  ;;  %v5535_v40 = vadd.f32 %v5534_v37, %v5533_v36  ;;  %v4514_v45 = vmax.f32 %v2051_v32, 0.0  ;;  %v2053_v13 = vadd.f32 %v2052_v48, %v7391_v53  ;;  %v3365_v42 = vpop.f32.mrf.mxu1 }
 0x2d2   :  { %v5573_v43 = vrot.slane %v5572_v34, 2  ;;  %v5609_v44 = vadd.f32 %v5608_v35, %v5607_v23  ;;  %v4516_v51 = vmax.f32 %v3364_v12, 0.0  ;;  %v3366_v52 = vadd.f32 %v3365_v42, %v7393_v54  ;;  %v2056_v55 = vpop.f32.mrf.mxu0  ;;  %6751 = vmatmul.mubr.msk.bf16.gmra.mxu0 %vm987_vm0, %v7091_v29 }
 0x2d3   :  { %v5500_v58 = vadd.f32 %v5499_v38, %v5498_v31  ;;  %v5536_v59 = vrot.slane %v5535_v40, 2  ;;  %v5614_v30 = vadd.f32 %v4514_v45, %v4510_v56  ;;  %v4515_v27 = vmax.f32 %v2053_v13, 0.0  ;;  %v3369_v60 = vpop.f32.mrf.mxu1  ;;  %6879 = vmatmul.mubr.msk.bf16.gmra.mxu1 %vm987_vm0, %v7091_v29  ;;  %2304 = vmatprep.mubr.bf16.mxu0 %v7130_v1 }
 0x2d4   :  { %v5574_v61 = vadd.f32 %v5573_v43, %v5572_v34  ;;  %v5610_v62 = vrot.slane %v5609_v44, 2  ;;  %v5688_v63 = vadd.f32 %v4516_v51, %v4512_v24  ;;  %v4517_v0 = vmax.f32 %v3366_v52, 0.0  ;;  %v2058_v2 = vpop.f32.mrf.mxu0  ;;  %3617 = vmatprep.mubr.bf16.mxu1 %v7130_v1 }
 0x2d5   :  { %v5501_v39 = vrot.slane %v5500_v58, 1  ;;  %v5537_v3 = vadd.f32 %v5536_v59, %v5535_v40  ;;  %v5651_v4 = vadd.f32 %v4515_v27, %v4511_v11  ;;  %v2057_v5 = vadd.f32 %v2056_v55, %v7385_v49  ;;  %v3371_v6 = vpop.f32.mrf.mxu1 }
 0x2d6   :  { %v5575_v46 = vrot.slane %v5574_v61, 1  ;;  %v5611_v7 = vadd.f32 %v5610_v62, %v5609_v44  ;;  %v5725_v47 = vadd.f32 %v4517_v0, %v4513_v57  ;;  %v3370_v8 = vadd.f32 %v3369_v60, %v7387_v50  ;;  %v2060_v9 = vpop.f32.mrf.mxu0  ;;  %v7093_v60 = vld [vmem:[%s9675_s0 + $0x2d8] sm:$0xff]  }
 0x2d7   :  { %v5502_v15 = vadd.f32 %v5501_v39, %v5500_v58  ;;  %v5538_v16 = vrot.slane %v5537_v3, 1  ;;  %v4518_v17 = vmax.f32 %v2057_v5, 0.0  ;;  %v2059_v18 = vadd.f32 %v2058_v2, %v7391_v53  ;;  %v3373_v36 = vpop.f32.mrf.mxu1 }
 0x2d8   :  { %v5576_v56 = vadd.f32 %v5575_v46, %v5574_v61  ;;  %v5612_v19 = vrot.slane %v5611_v7, 1  ;;  %v4520_v20 = vmax.f32 %v3370_v8, 0.0  ;;  %v3372_v21 = vadd.f32 %v3371_v6, %v7393_v54  ;;  %v2062_v23 = vpop.f32.mrf.mxu0 }
 0x2d9   :  { %v6219_v24 = vmul.f32 0.00390625, %v5502_v15  ;;  %v5539_v25 = vadd.f32 %v5538_v16, %v5537_v3  ;;  %v5615_v28 = vadd.f32 %v5614_v30, %v4518_v17  ;;  %v4519_v29 = vmax.f32 %v2059_v18, 0.0  ;;  %v3375_v31 = vpop.f32.mrf.mxu1 }
 0x2da   :  { %v6221_v37 = vmul.f32 0.00390625, %v5576_v56  ;;  %v5613_v11 = vadd.f32 %v5612_v19, %v5611_v7  ;;  %v5689_v32 = vadd.f32 %v5688_v63, %v4520_v20  ;;  %v4521_v33 = vmax.f32 %v3372_v21, 0.0  ;;  %v2066_v34 = vpop.f32.mrf.mxu0  ;;  %6752 = vmatmul.mubr.msk.bf16.gmra.mxu0 %vm987_vm0, %v7092_v10 }
 0x2db   :  { %v8543_v35 = vsel %vm6346_vm3, %v6219_v24, %v8260_v22  ;;  %v8545_v57 = vmul.f32 0.00390625, %v5539_v25  ;;  %v5652_v12 = vadd.f32 %v5651_v4, %v4519_v29  ;;  %v2061_v48 = vadd.f32 %v2060_v9, %v7385_v49  ;;  %v3379_v38 = vpop.f32.mrf.mxu1  ;;  %6880 = vmatmul.mubr.msk.bf16.gmra.mxu1 %vm987_vm0, %v7092_v10  ;;  %2314 = vmatprep.mubr.bf16.mxu0 %v7130_v1 }
 0x2dc   :  { %v8552_v40 = vsel %vm6346_vm3, %v6221_v37, %v8267_v26  ;;  %v8554_v45 = vmul.f32 0.00390625, %v5613_v11  ;;  %v5726_v13 = vadd.f32 %v5725_v47, %v4521_v33  ;;  %v3374_v22 = vadd.f32 %v3373_v36, %v7387_v50  ;;  %v2068_v42 = vpop.f32.mrf.mxu0  ;;  %3627 = vmatprep.mubr.bf16.mxu1 %v7130_v1  ;;  %v6260_v33 = vld [vmem:[%s9676_s3 + $0xa8] sm:$0xff] }
 0x2dd   :  { %v4522_v43 = vmax.f32 %v2061_v48, 0.0  ;;  %v2063_v44 = vadd.f32 %v2062_v23, %v7391_v53  ;;  %v3376_v51 = vadd.f32 %v3375_v31, %v7393_v54  ;;  %v2067_v52 = vadd.f32 %v2066_v34, %v7385_v49  ;;  %v3381_v55 = vpop.f32.mrf.mxu1  ;;  %v6244_v34 = vld [vmem:[%s9676_s3 + $0x28] sm:$0xff]  ;;  %6939 = vmatprep.subr.mxu0 %v6260_v33 }
 0x2de   :  { %v4524_v58 = vmax.f32 %v3374_v22, 0.0  ;;  %v3380_v26 = vadd.f32 %v3379_v38, %v7387_v50  ;;  %v2069_v59 = vadd.f32 %v2068_v42, %v7391_v53  ;;  %v3382_v30 = vadd.f32 %v3381_v55, %v7393_v54  ;;  %v2070_v27 = vpop.f32.mrf.mxu0  ;;  %v7094_v42 = vld [vmem:[%s9675_s0 + $0x2e0] sm:$0xff]   ;;  %6940 = vmatpush3.msra.mxu0 %v6244_v34 }
 0x2df   :  { %v5616_v61 = vadd.f32 %v5615_v28, %v4522_v43  ;;  %v4523_v62 = vmax.f32 %v2063_v44, 0.0  ;;  %v4525_v63 = vmax.f32 %v3376_v51, 0.0  ;;  %v4526_v0 = vmax.f32 %v2067_v52, 0.0  ;;  %v3383_v2 = vpop.f32.mrf.mxu1  ;;  %v6292_v43 = vld [vmem:[%s9676_s3 + $0x1a8] sm:$0xff] }
 0x2e0   :  { %v5690_v39 = vadd.f32 %v5689_v32, %v4524_v58  ;;  %v4528_v3 = vmax.f32 %v3380_v26, 0.0  ;;  %v4527_v4 = vmax.f32 %v2069_v59, 0.0  ;;  %v4529_v5 = vmax.f32 %v3382_v30, 0.0  ;;  %v2072_v6 = vpop.f32.mrf.mxu0  ;;  %v6276_v44 = vld [vmem:[%s9676_s3 + $0x128] sm:$0xff]  ;;  %6974 = vmatprep.subr.mxu1 %v6292_v43 }
 0x2e1   :  { %v5653_v46 = vadd.f32 %v5652_v12, %v4523_v62  ;;  %v5727_v7 = vadd.f32 %v5726_v13, %v4525_v63  ;;  %v5617_v47 = vadd.f32 %v5616_v61, %v4526_v0  ;;  %v2071_v8 = vadd.f32 %v2070_v27, %v7385_v49  ;;  %v3385_v9 = vpop.f32.mrf.mxu1  ;;  %6975 = vmatpush3.msra.mxu1 %v6276_v44 }
 0x2e2   :  { %v5691_v10 = vadd.f32 %v5690_v39, %v4528_v3  ;;  %v3384_v15 = vadd.f32 %v3383_v2, %v7387_v50  ;;  %v2073_v16 = vadd.f32 %v2072_v6, %v7391_v53  ;;  %v3386_v17 = vadd.f32 %v3385_v9, %v7393_v54  ;;  %v2076_v18 = vpop.f32.mrf.mxu0  ;;  %6753 = vmatmul.mubr.msk.bf16.gmra.mxu0 %vm987_vm0, %v7093_v60 }
 0x2e3   :  { %v5654_v36 = vadd.f32 %v5653_v46, %v4527_v4  ;;  %v5728_v56 = vadd.f32 %v5727_v7, %v4529_v5  ;;  %v4530_v19 = vmax.f32 %v2071_v8, 0.0  ;;  %v2077_v20 = vadd.f32 %v2076_v18, %v7385_v49  ;;  %v3389_v21 = vpop.f32.mrf.mxu1  ;;  %6881 = vmatmul.mubr.msk.bf16.gmra.mxu1 %vm987_vm0, %v7093_v60  ;;  %2324 = vmatprep.mubr.bf16.mxu0 %v7130_v1 }
 0x2e4   :  { %v4532_v23 = vmax.f32 %v3384_v15, 0.0  ;;  %v4531_v24 = vmax.f32 %v2073_v16, 0.0  ;;  %v4533_v25 = vmax.f32 %v3386_v17, 0.0  ;;  %v3390_v28 = vadd.f32 %v3389_v21, %v7387_v50  ;;  %v2078_v29 = vpop.f32.mrf.mxu0  ;;  %3637 = vmatprep.mubr.bf16.mxu1 %v7130_v1 }
 0x2e5   :  { %v5618_v31 = vadd.f32 %v5617_v47, %v4530_v19  ;;  %v4534_v37 = vmax.f32 %v2077_v20, 0.0  ;;  %v2079_v11 = vadd.f32 %v2078_v29, %v7391_v53  ;;  %v3391_v32 = vpop.f32.mrf.mxu1  ;;  %v8599_v60 = vsel %vm6346_vm3, %v8545_v57, %v8314_v41  ;;  %v7095_v19 = vld [vmem:[%s9675_s0 + $0x2e8] sm:$0xff]  }
 0x2e6   :  { %v5692_v12 = vadd.f32 %v5691_v10, %v4532_v23  ;;  %v5655_v48 = vadd.f32 %v5654_v36, %v4531_v24  ;;  %v5729_v38 = vadd.f32 %v5728_v56, %v4533_v25  ;;  %v4536_v13 = vmax.f32 %v3390_v28, 0.0  ;;  %v2080_v22 = vpop.f32.mrf.mxu0 }
 0x2e7   :  { %v5619_v51 = vadd.f32 %v5618_v31, %v4534_v37  ;;  %v4535_v52 = vmax.f32 %v2079_v11, 0.0  ;;  %v3392_v55 = vadd.f32 %v3391_v32, %v7393_v54  ;;  %v2081_v58 = vadd.f32 %v2080_v22, %v7385_v49  ;;  %v3393_v26 = vpop.f32.mrf.mxu1 }
 0x2e8   :  { %v5693_v59 = vadd.f32 %v5692_v12, %v4536_v13  ;;  %v3394_v30 = vadd.f32 %v3393_v26, %v7387_v50  ;;  %v2082_v27 = vpop.f32.mrf.mxu0  ;;  %v8604_v61 = vsel %vm6346_vm3, %v8554_v45, %v8321_v14 }
 0x2e9   :  { %v5656_v62 = vadd.f32 %v5655_v48, %v4535_v52  ;;  %v4537_v63 = vmax.f32 %v3392_v55, 0.0  ;;  %v4538_v0 = vmax.f32 %v2081_v58, 0.0  ;;  %v2083_v2 = vadd.f32 %v2082_v27, %v7391_v53  ;;  %v3395_v39 = vpop.f32.mrf.mxu1 }
 0x2ea   :  { %v4540_v3 = vmax.f32 %v3394_v30, 0.0  ;;  %v3396_v4 = vadd.f32 %v3395_v39, %v7393_v54  ;;  %v2086_v5 = vpop.f32.mrf.mxu0  ;;  %6754 = vmatmul.mubr.msk.bf16.gmra.mxu0 %vm987_vm0, %v7094_v42 }
 0x2eb   :  { %v5730_v6 = vadd.f32 %v5729_v38, %v4537_v63  ;;  %v5620_v41 = vadd.f32 %v5619_v51, %v4538_v0  ;;  %v4539_v57 = vmax.f32 %v2083_v2, 0.0  ;;  %v2087_v46 = vadd.f32 %v2086_v5, %v7385_v49  ;;  %v3399_v7 = vpop.f32.mrf.mxu1  ;;  %6882 = vmatmul.mubr.msk.bf16.gmra.mxu1 %vm987_vm0, %v7094_v42  ;;  %2334 = vmatprep.mubr.bf16.mxu0 %v7130_v1  ;;  %v7096_v2 = vld [vmem:[%s9675_s0 + $0x2f0] sm:$0xff]  }
 0x2ec   :  { %v5694_v14 = vadd.f32 %v5693_v59, %v4540_v3  ;;  %v4541_v45 = vmax.f32 %v3396_v4, 0.0  ;;  %v3400_v47 = vadd.f32 %v3399_v7, %v7387_v50  ;;  %v2088_v8 = vpop.f32.mrf.mxu0  ;;  %3647 = vmatprep.mubr.bf16.mxu1 %v7130_v1 }
 0x2ed   :  { %v5657_v9 = vadd.f32 %v5656_v62, %v4539_v57  ;;  %v4542_v10 = vmax.f32 %v2087_v46, 0.0  ;;  %v2089_v15 = vadd.f32 %v2088_v8, %v7391_v53  ;;  %v3401_v16 = vpop.f32.mrf.mxu1 }
 0x2ee   :  { %v5731_v17 = vadd.f32 %v5730_v6, %v4541_v45  ;;  %v4544_v18 = vmax.f32 %v3400_v47, 0.0  ;;  %v3402_v36 = vadd.f32 %v3401_v16, %v7393_v54  ;;  %v2090_v56 = vpop.f32.mrf.mxu0 }
 0x2ef   :  { %v5621_v20 = vadd.f32 %v5620_v41, %v4542_v10  ;;  %v4543_v21 = vmax.f32 %v2089_v15, 0.0  ;;  %v2091_v23 = vadd.f32 %v2090_v56, %v7385_v49  ;;  %v3403_v24 = vpop.f32.mrf.mxu1 }
 0x2f0   :  { %v5695_v25 = vadd.f32 %v5694_v14, %v4544_v18  ;;  %v4545_v28 = vmax.f32 %v3402_v36, 0.0  ;;  %v3404_v29 = vadd.f32 %v3403_v24, %v7387_v50  ;;  %v2092_v31 = vpop.f32.mrf.mxu0 }
 0x2f1   :  { %v5658_v37 = vadd.f32 %v5657_v9, %v4543_v21  ;;  %v4546_v11 = vmax.f32 %v2091_v23, 0.0  ;;  %v2093_v32 = vadd.f32 %v2092_v31, %v7391_v53  ;;  %v3405_v33 = vpop.f32.mrf.mxu1 }
 0x2f2   :  { %v5732_v34 = vadd.f32 %v5731_v17, %v4545_v28  ;;  %v4548_v12 = vmax.f32 %v3404_v29, 0.0  ;;  %v3406_v48 = vadd.f32 %v3405_v33, %v7393_v54  ;;  %v2096_v38 = vpop.f32.mrf.mxu0  ;;  %6755 = vmatmul.mubr.msk.bf16.gmra.mxu0 %vm987_vm0, %v7095_v19 }
 0x2f3   :  { %v5622_v13 = vadd.f32 %v5621_v20, %v4546_v11  ;;  %v4547_v22 = vmax.f32 %v2093_v32, 0.0  ;;  %v2097_v42 = vadd.f32 %v2096_v38, %v7385_v49  ;;  %v3409_v43 = vpop.f32.mrf.mxu1  ;;  %6883 = vmatmul.mubr.msk.bf16.gmra.mxu1 %vm987_vm0, %v7095_v19  ;;  %2344 = vmatprep.mubr.bf16.mxu0 %v7130_v1  ;;  %v7097_v32 = vld [vmem:[%s9675_s0 + $0x2f8] sm:$0xff]  }
 0x2f4   :  { %v5696_v44 = vadd.f32 %v5695_v25, %v4548_v12  ;;  %v4549_v51 = vmax.f32 %v3406_v48, 0.0  ;;  %v3410_v52 = vadd.f32 %v3409_v43, %v7387_v50  ;;  %v2098_v55 = vpop.f32.mrf.mxu0  ;;  %3657 = vmatprep.mubr.bf16.mxu1 %v7130_v1 }
 0x2f5   :  { %v5659_v58 = vadd.f32 %v5658_v37, %v4547_v22  ;;  %v4550_v26 = vmax.f32 %v2097_v42, 0.0  ;;  %v2099_v59 = vadd.f32 %v2098_v55, %v7391_v53  ;;  %v3411_v30 = vpop.f32.mrf.mxu1 }
 0x2f6   :  { %v5733_v27 = vadd.f32 %v5732_v34, %v4549_v51  ;;  %v4552_v62 = vmax.f32 %v3410_v52, 0.0  ;;  %v3412_v63 = vadd.f32 %v3411_v30, %v7393_v54  ;;  %v2100_v0 = vpop.f32.mrf.mxu0 }
 0x2f7   :  { %v5623_v39 = vadd.f32 %v5622_v13, %v4550_v26  ;;  %v4551_v3 = vmax.f32 %v2099_v59, 0.0  ;;  %v2101_v4 = vadd.f32 %v2100_v0, %v7385_v49  ;;  %v3413_v5 = vpop.f32.mrf.mxu1 }
 0x2f8   :  { %v5697_v6 = vadd.f32 %v5696_v44, %v4552_v62  ;;  %v4553_v41 = vmax.f32 %v3412_v63, 0.0  ;;  %v3414_v57 = vadd.f32 %v3413_v5, %v7387_v50  ;;  %v2102_v46 = vpop.f32.mrf.mxu0 }
 0x2f9   :  { %v5660_v7 = vadd.f32 %v5659_v58, %v4551_v3  ;;  %v4554_v14 = vmax.f32 %v2101_v4, 0.0  ;;  %v2103_v45 = vadd.f32 %v2102_v46, %v7391_v53  ;;  %v3415_v47 = vpop.f32.mrf.mxu1 }
 0x2fa   :  { %v5734_v8 = vadd.f32 %v5733_v27, %v4553_v41  ;;  %v4556_v9 = vmax.f32 %v3414_v57, 0.0  ;;  %v3416_v10 = vadd.f32 %v3415_v47, %v7393_v54  ;;  %v2106_v15 = vpop.f32.mrf.mxu0  ;;  %6756 = vmatmul.mubr.msk.bf16.gmra.mxu0 %vm987_vm0, %v7096_v2 }
 0x2fb   :  { %v5624_v16 = vadd.f32 %v5623_v39, %v4554_v14  ;;  %v4555_v17 = vmax.f32 %v2103_v45, 0.0  ;;  %v2107_v18 = vadd.f32 %v2106_v15, %v7385_v49  ;;  %v3419_v36 = vpop.f32.mrf.mxu1  ;;  %6884 = vmatmul.mubr.msk.bf16.gmra.mxu1 %vm987_vm0, %v7096_v2  ;;  %2354 = vmatprep.mubr.bf16.mxu0 %v7130_v1  ;;  %v7098_v45 = vld [vmem:[%s9675_s0 + $0x300] sm:$0xff]  }
 0x2fc   :  { %v5698_v56 = vadd.f32 %v5697_v6, %v4556_v9  ;;  %v4557_v19 = vmax.f32 %v3416_v10, 0.0  ;;  %v3420_v20 = vadd.f32 %v3419_v36, %v7387_v50  ;;  %v2108_v21 = vpop.f32.mrf.mxu0  ;;  %3667 = vmatprep.mubr.bf16.mxu1 %v7130_v1 }
 0x2fd   :  { %v5661_v23 = vadd.f32 %v5660_v7, %v4555_v17  ;;  %v4558_v24 = vmax.f32 %v2107_v18, 0.0  ;;  %v2109_v25 = vadd.f32 %v2108_v21, %v7391_v53  ;;  %v3421_v28 = vpop.f32.mrf.mxu1 }
 0x2fe   :  { %v5735_v29 = vadd.f32 %v5734_v8, %v4557_v19  ;;  %v4560_v31 = vmax.f32 %v3420_v20, 0.0  ;;  %v3422_v37 = vadd.f32 %v3421_v28, %v7393_v54  ;;  %v2110_v11 = vpop.f32.mrf.mxu0 }
 0x2ff   :  { %v5625_v33 = vadd.f32 %v5624_v16, %v4558_v24  ;;  %v4559_v34 = vmax.f32 %v2109_v25, 0.0  ;;  %v2111_v12 = vadd.f32 %v2110_v11, %v7385_v49  ;;  %v3423_v48 = vpop.f32.mrf.mxu1 }
 0x300   :  { %v5699_v38 = vadd.f32 %v5698_v56, %v4560_v31  ;;  %v4561_v13 = vmax.f32 %v3422_v37, 0.0  ;;  %v3424_v22 = vadd.f32 %v3423_v48, %v7387_v50  ;;  %v2112_v42 = vpop.f32.mrf.mxu0 }
 0x301   :  { %v5662_v43 = vadd.f32 %v5661_v23, %v4559_v34  ;;  %v4562_v44 = vmax.f32 %v2111_v12, 0.0  ;;  %v2113_v51 = vadd.f32 %v2112_v42, %v7391_v53  ;;  %v3425_v52 = vpop.f32.mrf.mxu1 }
 0x302   :  { %v5736_v55 = vadd.f32 %v5735_v29, %v4561_v13  ;;  %v4564_v58 = vmax.f32 %v3424_v22, 0.0  ;;  %v3426_v26 = vadd.f32 %v3425_v52, %v7393_v54  ;;  %v2116_v59 = vpop.f32.mrf.mxu0  ;;  %6757 = vmatmul.mubr.msk.bf16.gmra.mxu0 %vm987_vm0, %v7097_v32 }
 0x303   :  { %v5626_v30 = vadd.f32 %v5625_v33, %v4562_v44  ;;  %v4563_v27 = vmax.f32 %v2113_v51, 0.0  ;;  %v2117_v62 = vadd.f32 %v2116_v59, %v7385_v49  ;;  %v3429_v63 = vpop.f32.mrf.mxu1  ;;  %6885 = vmatmul.mubr.msk.bf16.gmra.mxu1 %vm987_vm0, %v7097_v32  ;;  %2364 = vmatprep.mubr.bf16.mxu0 %v7130_v1  ;;  %v7099_v51 = vld [vmem:[%s9675_s0 + $0x308] sm:$0xff]  }
 0x304   :  { %v5700_v0 = vadd.f32 %v5699_v38, %v4564_v58  ;;  %v4565_v2 = vmax.f32 %v3426_v26, 0.0  ;;  %v3430_v39 = vadd.f32 %v3429_v63, %v7387_v50  ;;  %v2118_v3 = vpop.f32.mrf.mxu0  ;;  %3677 = vmatprep.mubr.bf16.mxu1 %v7130_v1 }
 0x305   :  { %v5663_v4 = vadd.f32 %v5662_v43, %v4563_v27  ;;  %v4566_v5 = vmax.f32 %v2117_v62, 0.0  ;;  %v2119_v6 = vadd.f32 %v2118_v3, %v7391_v53  ;;  %v3431_v41 = vpop.f32.mrf.mxu1 }
 0x306   :  { %v5737_v57 = vadd.f32 %v5736_v55, %v4565_v2  ;;  %v4568_v46 = vmax.f32 %v3430_v39, 0.0  ;;  %v3432_v7 = vadd.f32 %v3431_v41, %v7393_v54  ;;  %v2120_v14 = vpop.f32.mrf.mxu0 }
 0x307   :  { %v5627_v47 = vadd.f32 %v5626_v30, %v4566_v5  ;;  %v4567_v8 = vmax.f32 %v2119_v6, 0.0  ;;  %v2121_v9 = vadd.f32 %v2120_v14, %v7385_v49  ;;  %v3433_v10 = vpop.f32.mrf.mxu1 }
 0x308   :  { %v5701_v15 = vadd.f32 %v5700_v0, %v4568_v46  ;;  %v4569_v16 = vmax.f32 %v3432_v7, 0.0  ;;  %v3434_v17 = vadd.f32 %v3433_v10, %v7387_v50  ;;  %v2122_v18 = vpop.f32.mrf.mxu0 }
 0x309   :  { %v5664_v36 = vadd.f32 %v5663_v4, %v4567_v8  ;;  %v4570_v56 = vmax.f32 %v2121_v9, 0.0  ;;  %v2123_v19 = vadd.f32 %v2122_v18, %v7391_v53  ;;  %v3435_v20 = vpop.f32.mrf.mxu1 }
 0x30a   :  { %v5738_v21 = vadd.f32 %v5737_v57, %v4569_v16  ;;  %v4572_v23 = vmax.f32 %v3434_v17, 0.0  ;;  %v3436_v24 = vadd.f32 %v3435_v20, %v7393_v54  ;;  %v2126_v25 = vpop.f32.mrf.mxu0  ;;  %6758 = vmatmul.mubr.msk.bf16.gmra.mxu0 %vm987_vm0, %v7098_v45 }
 0x30b   :  { %v5628_v28 = vadd.f32 %v5627_v47, %v4570_v56  ;;  %v4571_v29 = vmax.f32 %v2123_v19, 0.0  ;;  %v2127_v31 = vadd.f32 %v2126_v25, %v7385_v49  ;;  %v3439_v37 = vpop.f32.mrf.mxu1  ;;  %6886 = vmatmul.mubr.msk.bf16.gmra.mxu1 %vm987_vm0, %v7098_v45  ;;  %2374 = vmatprep.mubr.bf16.mxu0 %v7130_v1  ;;  %v7100_v19 = vld [vmem:[%s9675_s0 + $0x310] sm:$0xff]  }
 0x30c   :  { %v5702_v11 = vadd.f32 %v5701_v15, %v4572_v23  ;;  %v4573_v32 = vmax.f32 %v3436_v24, 0.0  ;;  %v3440_v33 = vadd.f32 %v3439_v37, %v7387_v50  ;;  %v2128_v34 = vpop.f32.mrf.mxu0  ;;  %3687 = vmatprep.mubr.bf16.mxu1 %v7130_v1 }
 0x30d   :  { %v5665_v12 = vadd.f32 %v5664_v36, %v4571_v29  ;;  %v4574_v48 = vmax.f32 %v2127_v31, 0.0  ;;  %v2129_v38 = vadd.f32 %v2128_v34, %v7391_v53  ;;  %v3441_v13 = vpop.f32.mrf.mxu1 }
 0x30e   :  { %v5739_v22 = vadd.f32 %v5738_v21, %v4573_v32  ;;  %v4576_v42 = vmax.f32 %v3440_v33, 0.0  ;;  %v3442_v43 = vadd.f32 %v3441_v13, %v7393_v54  ;;  %v2130_v44 = vpop.f32.mrf.mxu0 }
 0x30f   :  { %v5629_v52 = vadd.f32 %v5628_v28, %v4574_v48  ;;  %v4575_v55 = vmax.f32 %v2129_v38, 0.0  ;;  %v2131_v58 = vadd.f32 %v2130_v44, %v7385_v49  ;;  %v3443_v26 = vpop.f32.mrf.mxu1 }
 0x310   :  { %v5703_v59 = vadd.f32 %v5702_v11, %v4576_v42  ;;  %v4577_v30 = vmax.f32 %v3442_v43, 0.0  ;;  %v3444_v27 = vadd.f32 %v3443_v26, %v7387_v50  ;;  %v2132_v62 = vpop.f32.mrf.mxu0 }
 0x311   :  { %v5666_v63 = vadd.f32 %v5665_v12, %v4575_v55  ;;  %v4578_v0 = vmax.f32 %v2131_v58, 0.0  ;;  %v2133_v2 = vadd.f32 %v2132_v62, %v7391_v53  ;;  %v3445_v39 = vpop.f32.mrf.mxu1 }
 0x312   :  { %v5740_v3 = vadd.f32 %v5739_v22, %v4577_v30  ;;  %v4580_v4 = vmax.f32 %v3444_v27, 0.0  ;;  %v3446_v5 = vadd.f32 %v3445_v39, %v7393_v54  ;;  %v2136_v6 = vpop.f32.mrf.mxu0  ;;  %6759 = vmatmul.mubr.msk.bf16.gmra.mxu0 %vm987_vm0, %v7099_v51 }
 0x313   :  { %v5630_v41 = vadd.f32 %v5629_v52, %v4578_v0  ;;  %v4579_v57 = vmax.f32 %v2133_v2, 0.0  ;;  %v2137_v46 = vadd.f32 %v2136_v6, %v7385_v49  ;;  %v3449_v7 = vpop.f32.mrf.mxu1  ;;  %6887 = vmatmul.mubr.msk.bf16.gmra.mxu1 %vm987_vm0, %v7099_v51  ;;  %2384 = vmatprep.mubr.bf16.mxu0 %v7130_v1  ;;  %v7101_v2 = vld [vmem:[%s9675_s0 + $0x318] sm:$0xff]  }
 0x314   :  { %v5704_v14 = vadd.f32 %v5703_v59, %v4580_v4  ;;  %v4581_v45 = vmax.f32 %v3446_v5, 0.0  ;;  %v3450_v47 = vadd.f32 %v3449_v7, %v7387_v50  ;;  %v2138_v8 = vpop.f32.mrf.mxu0  ;;  %3697 = vmatprep.mubr.bf16.mxu1 %v7130_v1 }
 0x315   :  { %v5667_v9 = vadd.f32 %v5666_v63, %v4579_v57  ;;  %v4582_v10 = vmax.f32 %v2137_v46, 0.0  ;;  %v2139_v15 = vadd.f32 %v2138_v8, %v7391_v53  ;;  %v3451_v16 = vpop.f32.mrf.mxu1 }
 0x316   :  { %v5741_v17 = vadd.f32 %v5740_v3, %v4581_v45  ;;  %v4584_v18 = vmax.f32 %v3450_v47, 0.0  ;;  %v3452_v36 = vadd.f32 %v3451_v16, %v7393_v54  ;;  %v2140_v56 = vpop.f32.mrf.mxu0 }
 0x317   :  { %v5631_v20 = vadd.f32 %v5630_v41, %v4582_v10  ;;  %v4583_v21 = vmax.f32 %v2139_v15, 0.0  ;;  %v2141_v23 = vadd.f32 %v2140_v56, %v7385_v49  ;;  %v3453_v24 = vpop.f32.mrf.mxu1 }
 0x318   :  { %v5705_v25 = vadd.f32 %v5704_v14, %v4584_v18  ;;  %v4585_v28 = vmax.f32 %v3452_v36, 0.0  ;;  %v3454_v29 = vadd.f32 %v3453_v24, %v7387_v50  ;;  %v2142_v31 = vpop.f32.mrf.mxu0  ;;  %v6243_v24 = vld [vmem:[%s9676_s3 + $0x20] sm:$0xff] }
 0x319   :  { %v5668_v37 = vadd.f32 %v5667_v9, %v4583_v21  ;;  %v4586_v11 = vmax.f32 %v2141_v23, 0.0  ;;  %v2143_v32 = vadd.f32 %v2142_v31, %v7391_v53  ;;  %v3455_v33 = vpop.f32.mrf.mxu1  ;;  %v6259_v23 = vld [vmem:[%s9676_s3 + $0xa0] sm:$0xff] }
 0x31a   :  { %v5742_v34 = vadd.f32 %v5741_v17, %v4585_v28  ;;  %v4588_v12 = vmax.f32 %v3454_v29, 0.0  ;;  %v3456_v48 = vadd.f32 %v3455_v33, %v7393_v54  ;;  %v2146_v38 = vpop.f32.mrf.mxu0  ;;  %6760 = vmatmul.mubr.msk.bf16.gmra.mxu0 %vm987_vm0, %v7100_v19  ;;  %6941 = vmatprep.subr.mxu0 %v6259_v23 }
 0x31b   :  { %v5632_v13 = vadd.f32 %v5631_v20, %v4586_v11  ;;  %v4587_v22 = vmax.f32 %v2143_v32, 0.0  ;;  %v2147_v42 = vadd.f32 %v2146_v38, %v7385_v49  ;;  %v3459_v43 = vpop.f32.mrf.mxu1  ;;  %6888 = vmatmul.mubr.msk.bf16.gmra.mxu1 %vm987_vm0, %v7100_v19  ;;  %2394 = vmatprep.mubr.bf16.mxu0 %v7130_v1 }
 0x31c   :  { %v5706_v44 = vadd.f32 %v5705_v25, %v4588_v12  ;;  %v4589_v51 = vmax.f32 %v3456_v48, 0.0  ;;  %v3460_v52 = vadd.f32 %v3459_v43, %v7387_v50  ;;  %v2148_v55 = vpop.f32.mrf.mxu0  ;;  %3707 = vmatprep.mubr.bf16.mxu1 %v7130_v1  ;;  %6942 = vmatpush3.msra.mxu0 %v6243_v24  ;;  %v6291_v12 = vld [vmem:[%s9676_s3 + $0x1a0] sm:$0xff] }
 0x31d   :  { %v5669_v58 = vadd.f32 %v5668_v37, %v4587_v22  ;;  %v4590_v26 = vmax.f32 %v2147_v42, 0.0  ;;  %v2149_v59 = vadd.f32 %v2148_v55, %v7391_v53  ;;  %v3461_v30 = vpop.f32.mrf.mxu1  ;;  %v6275_v48 = vld [vmem:[%s9676_s3 + $0x120] sm:$0xff]  ;;  %6976 = vmatprep.subr.mxu1 %v6291_v12 }
 0x31e   :  { %v5743_v27 = vadd.f32 %v5742_v34, %v4589_v51  ;;  %v4592_v62 = vmax.f32 %v3460_v52, 0.0  ;;  %v3462_v63 = vadd.f32 %v3461_v30, %v7393_v54  ;;  %v2150_v0 = vpop.f32.mrf.mxu0  ;;  %v7102_v34 = vld [vmem:[%s9675_s0 + $0x320] sm:$0xff]   ;;  %6977 = vmatpush3.msra.mxu1 %v6275_v48 }
 0x31f   :  { %v5633_v39 = vadd.f32 %v5632_v13, %v4590_v26  ;;  %v4591_v3 = vmax.f32 %v2149_v59, 0.0  ;;  %v2151_v4 = vadd.f32 %v2150_v0, %v7385_v49  ;;  %v3463_v5 = vpop.f32.mrf.mxu1 }
 0x320   :  { %v5707_v6 = vadd.f32 %v5706_v44, %v4592_v62  ;;  %v4593_v41 = vmax.f32 %v3462_v63, 0.0  ;;  %v3464_v57 = vadd.f32 %v3463_v5, %v7387_v50  ;;  %v2152_v46 = vpop.f32.mrf.mxu0 }
 0x321   :  { %v5670_v7 = vadd.f32 %v5669_v58, %v4591_v3  ;;  %v4594_v14 = vmax.f32 %v2151_v4, 0.0  ;;  %v2153_v45 = vadd.f32 %v2152_v46, %v7391_v53  ;;  %v3465_v47 = vpop.f32.mrf.mxu1 }
 0x322   :  { %v5744_v8 = vadd.f32 %v5743_v27, %v4593_v41  ;;  %v4596_v9 = vmax.f32 %v3464_v57, 0.0  ;;  %v3466_v10 = vadd.f32 %v3465_v47, %v7393_v54  ;;  %v2156_v15 = vpop.f32.mrf.mxu0  ;;  %6761 = vmatmul.mubr.msk.bf16.gmra.mxu0 %vm987_vm0, %v7101_v2 }
 0x323   :  { %v5634_v16 = vadd.f32 %v5633_v39, %v4594_v14  ;;  %v4595_v17 = vmax.f32 %v2153_v45, 0.0  ;;  %v2157_v18 = vadd.f32 %v2156_v15, %v7385_v49  ;;  %v3469_v36 = vpop.f32.mrf.mxu1  ;;  %6889 = vmatmul.mubr.msk.bf16.gmra.mxu1 %vm987_vm0, %v7101_v2  ;;  %2404 = vmatprep.mubr.bf16.mxu0 %v7130_v1 }
 0x324   :  { %v5708_v56 = vadd.f32 %v5707_v6, %v4596_v9  ;;  %v4597_v19 = vmax.f32 %v3466_v10, 0.0  ;;  %v3470_v20 = vadd.f32 %v3469_v36, %v7387_v50  ;;  %v2158_v21 = vpop.f32.mrf.mxu0  ;;  %3717 = vmatprep.mubr.bf16.mxu1 %v7130_v1  ;;  %v7103_v10 = vld [vmem:[%s9675_s0 + $0x328] sm:$0xff]  }
 0x325   :  { %v5671_v25 = vadd.f32 %v5670_v7, %v4595_v17  ;;  %v4598_v28 = vmax.f32 %v2157_v18, 0.0  ;;  %v2159_v29 = vadd.f32 %v2158_v21, %v7391_v53  ;;  %v3471_v31 = vpop.f32.mrf.mxu1 }
 0x326   :  { %v5745_v37 = vadd.f32 %v5744_v8, %v4597_v19  ;;  %v4600_v11 = vmax.f32 %v3470_v20, 0.0  ;;  %v3472_v32 = vadd.f32 %v3471_v31, %v7393_v54  ;;  %v2160_v33 = vpop.f32.mrf.mxu0 }
 0x327   :  { %v5635_v38 = vadd.f32 %v5634_v16, %v4598_v28  ;;  %v4599_v13 = vmax.f32 %v2159_v29, 0.0  ;;  %v2161_v22 = vadd.f32 %v2160_v33, %v7385_v49  ;;  %v3473_v42 = vpop.f32.mrf.mxu1 }
 0x328   :  { %v5709_v43 = vadd.f32 %v5708_v56, %v4600_v11  ;;  %v4601_v44 = vmax.f32 %v3472_v32, 0.0  ;;  %v3474_v51 = vadd.f32 %v3473_v42, %v7387_v50  ;;  %v2162_v52 = vpop.f32.mrf.mxu0 }
 0x329   :  { %v5672_v55 = vadd.f32 %v5671_v25, %v4599_v13  ;;  %v4602_v58 = vmax.f32 %v2161_v22, 0.0  ;;  %v2163_v26 = vadd.f32 %v2162_v52, %v7391_v53  ;;  %v3475_v59 = vpop.f32.mrf.mxu1 }
 0x32a   :  { %v5746_v30 = vadd.f32 %v5745_v37, %v4601_v44  ;;  %v4604_v27 = vmax.f32 %v3474_v51, 0.0  ;;  %v3476_v62 = vadd.f32 %v3475_v59, %v7393_v54  ;;  %v2166_v63 = vpop.f32.mrf.mxu0  ;;  %6762 = vmatmul.mubr.msk.bf16.gmra.mxu0 %vm987_vm0, %v7102_v34 }
 0x32b   :  { %v5636_v0 = vadd.f32 %v5635_v38, %v4602_v58  ;;  %v4603_v2 = vmax.f32 %v2163_v26, 0.0  ;;  %v2167_v39 = vadd.f32 %v2166_v63, %v7385_v49  ;;  %v3479_v3 = vpop.f32.mrf.mxu1  ;;  %6890 = vmatmul.mubr.msk.bf16.gmra.mxu1 %vm987_vm0, %v7102_v34  ;;  %2414 = vmatprep.mubr.bf16.mxu0 %v7130_v1  ;;  %v7104_v26 = vld [vmem:[%s9675_s0 + $0x330] sm:$0xff]  }
 0x32c   :  { %v5710_v4 = vadd.f32 %v5709_v43, %v4604_v27  ;;  %v4605_v5 = vmax.f32 %v3476_v62, 0.0  ;;  %v3480_v6 = vadd.f32 %v3479_v3, %v7387_v50  ;;  %v2168_v41 = vpop.f32.mrf.mxu0  ;;  %3727 = vmatprep.mubr.bf16.mxu1 %v7130_v1 }
 0x32d   :  { %v5673_v57 = vadd.f32 %v5672_v55, %v4603_v2  ;;  %v4606_v46 = vmax.f32 %v2167_v39, 0.0  ;;  %v2169_v7 = vadd.f32 %v2168_v41, %v7391_v53  ;;  %v3481_v14 = vpop.f32.mrf.mxu1 }
 0x32e   :  { %v5747_v45 = vadd.f32 %v5746_v30, %v4605_v5  ;;  %v4608_v47 = vmax.f32 %v3480_v6, 0.0  ;;  %v3482_v8 = vadd.f32 %v3481_v14, %v7393_v54  ;;  %v2170_v9 = vpop.f32.mrf.mxu0 }
 0x32f   :  { %v5637_v15 = vadd.f32 %v5636_v0, %v4606_v46  ;;  %v4607_v16 = vmax.f32 %v2169_v7, 0.0  ;;  %v2171_v17 = vadd.f32 %v2170_v9, %v7385_v49  ;;  %v3483_v18 = vpop.f32.mrf.mxu1 }
 0x330   :  { %v5711_v36 = vadd.f32 %v5710_v4, %v4608_v47  ;;  %v4609_v56 = vmax.f32 %v3482_v8, 0.0  ;;  %v3484_v19 = vadd.f32 %v3483_v18, %v7387_v50  ;;  %v2172_v20 = vpop.f32.mrf.mxu0 }
 0x331   :  { %v5674_v21 = vadd.f32 %v5673_v57, %v4607_v16  ;;  %v4610_v23 = vmax.f32 %v2171_v17, 0.0  ;;  %v2173_v24 = vadd.f32 %v2172_v20, %v7391_v53  ;;  %v3485_v25 = vpop.f32.mrf.mxu1 }
 0x332   :  { %v5748_v28 = vadd.f32 %v5747_v45, %v4609_v56  ;;  %v4612_v29 = vmax.f32 %v3484_v19, 0.0  ;;  %v3486_v31 = vadd.f32 %v3485_v25, %v7393_v54  ;;  %v2176_v37 = vpop.f32.mrf.mxu0  ;;  %6763 = vmatmul.mubr.msk.bf16.gmra.mxu0 %vm987_vm0, %v7103_v10 }
 0x333   :  { %v5638_v11 = vadd.f32 %v5637_v15, %v4610_v23  ;;  %v4611_v32 = vmax.f32 %v2173_v24, 0.0  ;;  %v2177_v33 = vadd.f32 %v2176_v37, %v7385_v49  ;;  %v3489_v34 = vpop.f32.mrf.mxu1  ;;  %6891 = vmatmul.mubr.msk.bf16.gmra.mxu1 %vm987_vm0, %v7103_v10  ;;  %2424 = vmatprep.mubr.bf16.mxu0 %v7130_v1  ;;  %v7105_v24 = vld [vmem:[%s9675_s0 + $0x338] sm:$0xff]  }
 0x334   :  { %v5712_v12 = vadd.f32 %v5711_v36, %v4612_v29  ;;  %v4613_v48 = vmax.f32 %v3486_v31, 0.0  ;;  %v3490_v38 = vadd.f32 %v3489_v34, %v7387_v50  ;;  %v2178_v13 = vpop.f32.mrf.mxu0  ;;  %3737 = vmatprep.mubr.bf16.mxu1 %v7130_v1 }
 0x335   :  { %v5675_v22 = vadd.f32 %v5674_v21, %v4611_v32  ;;  %v4614_v42 = vmax.f32 %v2177_v33, 0.0  ;;  %v2179_v43 = vadd.f32 %v2178_v13, %v7391_v53  ;;  %v3491_v44 = vpop.f32.mrf.mxu1 }
 0x336   :  { %v5749_v51 = vadd.f32 %v5748_v28, %v4613_v48  ;;  %v4616_v52 = vmax.f32 %v3490_v38, 0.0  ;;  %v3492_v55 = vadd.f32 %v3491_v44, %v7393_v54  ;;  %v2180_v58 = vpop.f32.mrf.mxu0 }
 0x337   :  { %v5639_v59 = vadd.f32 %v5638_v11, %v4614_v42  ;;  %v4615_v30 = vmax.f32 %v2179_v43, 0.0  ;;  %v2181_v27 = vadd.f32 %v2180_v58, %v7385_v49  ;;  %v3493_v62 = vpop.f32.mrf.mxu1 }
 0x338   :  { %v5713_v63 = vadd.f32 %v5712_v12, %v4616_v52  ;;  %v4617_v0 = vmax.f32 %v3492_v55, 0.0  ;;  %v3494_v2 = vadd.f32 %v3493_v62, %v7387_v50  ;;  %v2182_v39 = vpop.f32.mrf.mxu0 }
 0x339   :  { %v5676_v3 = vadd.f32 %v5675_v22, %v4615_v30  ;;  %v4618_v4 = vmax.f32 %v2181_v27, 0.0  ;;  %v2183_v5 = vadd.f32 %v2182_v39, %v7391_v53  ;;  %v3495_v6 = vpop.f32.mrf.mxu1 }
 0x33a   :  { %v5750_v41 = vadd.f32 %v5749_v51, %v4617_v0  ;;  %v4620_v57 = vmax.f32 %v3494_v2, 0.0  ;;  %v3496_v46 = vadd.f32 %v3495_v6, %v7393_v54  ;;  %v2186_v7 = vpop.f32.mrf.mxu0  ;;  %6764 = vmatmul.mubr.msk.bf16.gmra.mxu0 %vm987_vm0, %v7104_v26 }
 0x33b   :  { %v5640_v14 = vadd.f32 %v5639_v59, %v4618_v4  ;;  %v4619_v45 = vmax.f32 %v2183_v5, 0.0  ;;  %v2187_v47 = vadd.f32 %v2186_v7, %v7385_v49  ;;  %v3499_v8 = vpop.f32.mrf.mxu1  ;;  %6892 = vmatmul.mubr.msk.bf16.gmra.mxu1 %vm987_vm0, %v7104_v26  ;;  %2434 = vmatprep.mubr.bf16.mxu0 %v7130_v1  ;;  %v7106_v5 = vld [vmem:[%s9675_s0 + $0x340] sm:$0xff]  }
 0x33c   :  { %v5714_v9 = vadd.f32 %v5713_v63, %v4620_v57  ;;  %v4621_v10 = vmax.f32 %v3496_v46, 0.0  ;;  %v3500_v15 = vadd.f32 %v3499_v8, %v7387_v50  ;;  %v2188_v16 = vpop.f32.mrf.mxu0  ;;  %3747 = vmatprep.mubr.bf16.mxu1 %v7130_v1 }
 0x33d   :  { %v5677_v17 = vadd.f32 %v5676_v3, %v4619_v45  ;;  %v4622_v18 = vmax.f32 %v2187_v47, 0.0  ;;  %v2189_v36 = vadd.f32 %v2188_v16, %v7391_v53  ;;  %v3501_v56 = vpop.f32.mrf.mxu1 }
 0x33e   :  { %v5751_v19 = vadd.f32 %v5750_v41, %v4621_v10  ;;  %v4624_v20 = vmax.f32 %v3500_v15, 0.0  ;;  %v3502_v21 = vadd.f32 %v3501_v56, %v7393_v54  ;;  %v2190_v23 = vpop.f32.mrf.mxu0 }
 0x33f   :  { %v5641_v25 = vadd.f32 %v5640_v14, %v4622_v18  ;;  %v4623_v28 = vmax.f32 %v2189_v36, 0.0  ;;  %v2191_v29 = vadd.f32 %v2190_v23, %v7385_v49  ;;  %v3503_v31 = vpop.f32.mrf.mxu1 }
 0x340   :  { %v5715_v37 = vadd.f32 %v5714_v9, %v4624_v20  ;;  %v4625_v11 = vmax.f32 %v3502_v21, 0.0  ;;  %v3504_v32 = vadd.f32 %v3503_v31, %v7387_v50  ;;  %v2192_v33 = vpop.f32.mrf.mxu0 }
 0x341   :  { %v5678_v34 = vadd.f32 %v5677_v17, %v4623_v28  ;;  %v4626_v12 = vmax.f32 %v2191_v29, 0.0  ;;  %v2193_v48 = vadd.f32 %v2192_v33, %v7391_v53  ;;  %v3505_v38 = vpop.f32.mrf.mxu1 }
 0x342   :  { %v5752_v13 = vadd.f32 %v5751_v19, %v4625_v11  ;;  %v4628_v22 = vmax.f32 %v3504_v32, 0.0  ;;  %v3506_v42 = vadd.f32 %v3505_v38, %v7393_v54  ;;  %v2196_v43 = vpop.f32.mrf.mxu0  ;;  %6765 = vmatmul.mubr.msk.bf16.gmra.mxu0 %vm987_vm0, %v7105_v24 }
 0x343   :  { %v5642_v44 = vadd.f32 %v5641_v25, %v4626_v12  ;;  %v4627_v51 = vmax.f32 %v2193_v48, 0.0  ;;  %v2197_v52 = vadd.f32 %v2196_v43, %v7385_v49  ;;  %v3509_v55 = vpop.f32.mrf.mxu1  ;;  %6893 = vmatmul.mubr.msk.bf16.gmra.mxu1 %vm987_vm0, %v7105_v24  ;;  %2444 = vmatprep.mubr.bf16.mxu0 %v7130_v1 }
 0x344   :  { %v5716_v58 = vadd.f32 %v5715_v37, %v4628_v22  ;;  %v4629_v26 = vmax.f32 %v3506_v42, 0.0  ;;  %v3510_v59 = vadd.f32 %v3509_v55, %v7387_v50  ;;  %v2198_v30 = vpop.f32.mrf.mxu0  ;;  %3757 = vmatprep.mubr.bf16.mxu1 %v7130_v1 }
 0x345   :  { %v5679_v27 = vadd.f32 %v5678_v34, %v4627_v51  ;;  %v4630_v62 = vmax.f32 %v2197_v52, 0.0  ;;  %v2199_v63 = vadd.f32 %v2198_v30, %v7391_v53  ;;  %v3511_v0 = vpop.f32.mrf.mxu1 }
 0x346   :  { %v5753_v2 = vadd.f32 %v5752_v13, %v4629_v26  ;;  %v4632_v39 = vmax.f32 %v3510_v59, 0.0  ;;  %v3512_v3 = vadd.f32 %v3511_v0, %v7393_v54  ;;  %v2200_v4 = vpop.f32.mrf.mxu0  ;;  %v7107_v13 = vld [vmem:[%s9675_s0 + $0x348] sm:$0xff]  }
 0x347   :  { %v5643_v6 = vadd.f32 %v5642_v44, %v4630_v62  ;;  %v4631_v41 = vmax.f32 %v2199_v63, 0.0  ;;  %v2201_v57 = vadd.f32 %v2200_v4, %v7385_v49  ;;  %v3513_v46 = vpop.f32.mrf.mxu1 }
 0x348   :  { %v5717_v7 = vadd.f32 %v5716_v58, %v4632_v39  ;;  %v4633_v14 = vmax.f32 %v3512_v3, 0.0  ;;  %v3514_v45 = vadd.f32 %v3513_v46, %v7387_v50  ;;  %v2202_v47 = vpop.f32.mrf.mxu0 }
 0x349   :  { %v5680_v8 = vadd.f32 %v5679_v27, %v4631_v41  ;;  %v4634_v9 = vmax.f32 %v2201_v57, 0.0  ;;  %v2203_v10 = vadd.f32 %v2202_v47, %v7391_v53  ;;  %v3515_v15 = vpop.f32.mrf.mxu1 }
 0x34a   :  { %v5754_v16 = vadd.f32 %v5753_v2, %v4633_v14  ;;  %v4636_v17 = vmax.f32 %v3514_v45, 0.0  ;;  %v3516_v18 = vadd.f32 %v3515_v15, %v7393_v54  ;;  %v2206_v36 = vpop.f32.mrf.mxu0  ;;  %6766 = vmatmul.mubr.msk.bf16.gmra.mxu0 %vm987_vm0, %v7106_v5 }
 0x34b   :  { %v5644_v56 = vadd.f32 %v5643_v6, %v4634_v9  ;;  %v4635_v19 = vmax.f32 %v2203_v10, 0.0  ;;  %v2207_v20 = vadd.f32 %v2206_v36, %v7385_v49  ;;  %v3519_v21 = vpop.f32.mrf.mxu1  ;;  %6894 = vmatmul.mubr.msk.bf16.gmra.mxu1 %vm987_vm0, %v7106_v5  ;;  %2454 = vmatprep.mubr.bf16.mxu0 %v7130_v1 }
 0x34c   :  { %v5718_v23 = vadd.f32 %v5717_v7, %v4636_v17  ;;  %v4637_v24 = vmax.f32 %v3516_v18, 0.0  ;;  %v3520_v25 = vadd.f32 %v3519_v21, %v7387_v50  ;;  %v2208_v28 = vpop.f32.mrf.mxu0  ;;  %3767 = vmatprep.mubr.bf16.mxu1 %v7130_v1 }
 0x34d   :  { %v5645_v29 = vrot.slane %v5644_v56, 4  ;;  %v5681_v31 = vadd.f32 %v5680_v8, %v4635_v19  ;;  %v4638_v37 = vmax.f32 %v2207_v20, 0.0  ;;  %v2209_v11 = vadd.f32 %v2208_v28, %v7391_v53  ;;  %v3521_v32 = vpop.f32.mrf.mxu1 }
 0x34e   :  { %v5719_v33 = vrot.slane %v5718_v23, 4  ;;  %v5755_v34 = vadd.f32 %v5754_v16, %v4637_v24  ;;  %v4640_v12 = vmax.f32 %v3520_v25, 0.0  ;;  %v3522_v48 = vadd.f32 %v3521_v32, %v7393_v54  ;;  %v2210_v38 = vpop.f32.mrf.mxu0 }
 0x34f   :  { %v5646_v22 = vadd.f32 %v5645_v29, %v5644_v56  ;;  %v5682_v42 = vrot.slane %v5681_v31, 4  ;;  %v4639_v43 = vmax.f32 %v2209_v11, 0.0  ;;  %v2211_v44 = vadd.f32 %v2210_v38, %v7385_v49  ;;  %v3523_v51 = vpop.f32.mrf.mxu1 }
 0x350   :  { %v5720_v52 = vadd.f32 %v5719_v33, %v5718_v23  ;;  %v5756_v55 = vrot.slane %v5755_v34, 4  ;;  %v4641_v58 = vmax.f32 %v3522_v48, 0.0  ;;  %v3524_v26 = vadd.f32 %v3523_v51, %v7387_v50  ;;  %v2212_v59 = vpop.f32.mrf.mxu0  ;;  %v7108_v23 = vld [vmem:[%s9675_s0 + $0x350] sm:$0xff]  }
 0x351   :  { %v5647_v30 = vrot.slane %v5646_v22, 2  ;;  %v5683_v27 = vadd.f32 %v5682_v42, %v5681_v31  ;;  %v4642_v62 = vmax.f32 %v2211_v44, 0.0  ;;  %v2213_v63 = vadd.f32 %v2212_v59, %v7391_v53  ;;  %v3525_v0 = vpop.f32.mrf.mxu1 }
 0x352   :  { %v5721_v2 = vrot.slane %v5720_v52, 2  ;;  %v5757_v39 = vadd.f32 %v5756_v55, %v5755_v34  ;;  %v4644_v3 = vmax.f32 %v3524_v26, 0.0  ;;  %v3526_v4 = vadd.f32 %v3525_v0, %v7393_v54  ;;  %v2216_v5 = vpop.f32.mrf.mxu0  ;;  %6767 = vmatmul.mubr.msk.bf16.gmra.mxu0 %vm987_vm0, %v7107_v13 }
 0x353   :  { %v5648_v6 = vadd.f32 %v5647_v30, %v5646_v22  ;;  %v5684_v41 = vrot.slane %v5683_v27, 2  ;;  %v5762_v57 = vadd.f32 %v4642_v62, %v4638_v37  ;;  %v4643_v46 = vmax.f32 %v2213_v63, 0.0  ;;  %v3529_v7 = vpop.f32.mrf.mxu1  ;;  %6895 = vmatmul.mubr.msk.bf16.gmra.mxu1 %vm987_vm0, %v7107_v13  ;;  %2464 = vmatprep.mubr.bf16.mxu0 %v7130_v1 }
 0x354   :  { %v5722_v14 = vadd.f32 %v5721_v2, %v5720_v52  ;;  %v5758_v45 = vrot.slane %v5757_v39, 2  ;;  %v5836_v47 = vadd.f32 %v4644_v3, %v4640_v12  ;;  %v4645_v8 = vmax.f32 %v3526_v4, 0.0  ;;  %v2218_v9 = vpop.f32.mrf.mxu0  ;;  %3777 = vmatprep.mubr.bf16.mxu1 %v7130_v1 }
 0x355   :  { %v5649_v10 = vrot.slane %v5648_v6, 1  ;;  %v5685_v15 = vadd.f32 %v5684_v41, %v5683_v27  ;;  %v5799_v16 = vadd.f32 %v4643_v46, %v4639_v43  ;;  %v2217_v17 = vadd.f32 %v2216_v5, %v7385_v49  ;;  %v3531_v18 = vpop.f32.mrf.mxu1 }
 0x356   :  { %v5723_v36 = vrot.slane %v5722_v14, 1  ;;  %v5759_v56 = vadd.f32 %v5758_v45, %v5757_v39  ;;  %v5873_v19 = vadd.f32 %v4645_v8, %v4641_v58  ;;  %v3530_v20 = vadd.f32 %v3529_v7, %v7387_v50  ;;  %v2220_v21 = vpop.f32.mrf.mxu0 }
 0x357   :  { %v5650_v24 = vadd.f32 %v5649_v10, %v5648_v6  ;;  %v5686_v25 = vrot.slane %v5685_v15, 1  ;;  %v4646_v28 = vmax.f32 %v2217_v17, 0.0  ;;  %v2219_v29 = vadd.f32 %v2218_v9, %v7391_v53  ;;  %v3533_v31 = vpop.f32.mrf.mxu1 }
 0x358   :  { %v5724_v37 = vadd.f32 %v5723_v36, %v5722_v14  ;;  %v5760_v11 = vrot.slane %v5759_v56, 1  ;;  %v4648_v32 = vmax.f32 %v3530_v20, 0.0  ;;  %v3532_v33 = vadd.f32 %v3531_v18, %v7393_v54  ;;  %v2222_v34 = vpop.f32.mrf.mxu0  ;;  %v7109_v14 = vld [vmem:[%s9675_s0 + $0x358] sm:$0xff]  }
 0x359   :  { %v5687_v12 = vadd.f32 %v5686_v25, %v5685_v15  ;;  %v5763_v48 = vadd.f32 %v5762_v57, %v4646_v28  ;;  %v4647_v38 = vmax.f32 %v2219_v29, 0.0  ;;  %v3535_v13 = vpop.f32.mrf.mxu1  ;;  %v8826_v22 = vmul.f32 0.00390625, %v5650_v24 }
 0x35a   :  { %v5761_v42 = vadd.f32 %v5760_v11, %v5759_v56  ;;  %v5837_v43 = vadd.f32 %v5836_v47, %v4648_v32  ;;  %v4649_v44 = vmax.f32 %v3532_v33, 0.0  ;;  %v2226_v51 = vpop.f32.mrf.mxu0  ;;  %6768 = vmatmul.mubr.msk.bf16.gmra.mxu0 %vm987_vm0, %v7108_v23  ;;  %v8829_v52 = vmul.f32 0.00390625, %v5724_v37 }
 0x35b   :  { %v5800_v55 = vadd.f32 %v5799_v16, %v4647_v38  ;;  %v2221_v58 = vadd.f32 %v2220_v21, %v7385_v49  ;;  %v3534_v26 = vadd.f32 %v3533_v31, %v7387_v50  ;;  %v3539_v59 = vpop.f32.mrf.mxu1  ;;  %6896 = vmatmul.mubr.msk.bf16.gmra.mxu1 %vm987_vm0, %v7108_v23  ;;  %2474 = vmatprep.mubr.bf16.mxu0 %v7130_v1  ;;  %v6224_v30 = vmul.f32 0.00390625, %v5687_v12 }
 0x35c   :  { %v5874_v27 = vadd.f32 %v5873_v19, %v4649_v44  ;;  %v2223_v62 = vadd.f32 %v2222_v34, %v7391_v53  ;;  %v3536_v63 = vadd.f32 %v3535_v13, %v7393_v54  ;;  %v2228_v0 = vpop.f32.mrf.mxu0  ;;  %3787 = vmatprep.mubr.bf16.mxu1 %v7130_v1  ;;  %v2227_v3 = vadd.f32 %v2226_v51, %v7385_v49 }
 0x35d   :  { %v4650_v2 = vmax.f32 %v2221_v58, 0.0  ;;  %v4652_v39 = vmax.f32 %v3534_v26, 0.0  ;;  %v3540_v4 = vadd.f32 %v3539_v59, %v7387_v50  ;;  %v3541_v5 = vpop.f32.mrf.mxu1  ;;  %v2229_v57 = vadd.f32 %v2228_v0, %v7391_v53 }
 0x35e   :  { %v4651_v6 = vmax.f32 %v2223_v62, 0.0  ;;  %v4653_v41 = vmax.f32 %v3536_v63, 0.0  ;;  %v3542_v46 = vadd.f32 %v3541_v5, %v7393_v54  ;;  %v2230_v7 = vpop.f32.mrf.mxu0  ;;  %v4654_v8 = vmax.f32 %v2227_v3, 0.0 }
 0x35f   :  { %v5764_v45 = vadd.f32 %v5763_v48, %v4650_v2  ;;  %v5838_v47 = vadd.f32 %v5837_v43, %v4652_v39  ;;  %v4656_v9 = vmax.f32 %v3540_v4, 0.0  ;;  %v3543_v10 = vpop.f32.mrf.mxu1  ;;  %v4655_v17 = vmax.f32 %v2229_v57, 0.0  ;;  %v6242_v43 = vld [vmem:[%s9676_s3 + $0x18] sm:$0xff]  ;;  %v7110_v39 = vld [vmem:[%s9675_s0 + $0x360] sm:$0xff]  }
 0x360   :  { %v5801_v15 = vadd.f32 %v5800_v55, %v4651_v6  ;;  %v5875_v16 = vadd.f32 %v5874_v27, %v4653_v41  ;;  %v4657_v18 = vmax.f32 %v3542_v46, 0.0  ;;  %v2232_v36 = vpop.f32.mrf.mxu0  ;;  %v2231_v20 = vadd.f32 %v2230_v7, %v7385_v49 }
 0x361   :  { %v5765_v56 = vadd.f32 %v5764_v45, %v4654_v8  ;;  %v5839_v19 = vadd.f32 %v5838_v47, %v4656_v9  ;;  %v3544_v21 = vadd.f32 %v3543_v10, %v7387_v50  ;;  %v3545_v23 = vpop.f32.mrf.mxu1  ;;  %v2233_v28 = vadd.f32 %v2232_v36, %v7391_v53 }
 0x362   :  { %v5802_v24 = vadd.f32 %v5801_v15, %v4655_v17  ;;  %v5876_v25 = vadd.f32 %v5875_v16, %v4657_v18  ;;  %v3546_v29 = vadd.f32 %v3545_v23, %v7393_v54  ;;  %v2236_v31 = vpop.f32.mrf.mxu0  ;;  %6769 = vmatmul.mubr.msk.bf16.gmra.mxu0 %vm987_vm0, %v7109_v14  ;;  %v6226_v37 = vmul.f32 0.00390625, %v5761_v42  ;;  %v6258_v42 = vld [vmem:[%s9676_s3 + $0x98] sm:$0xff] }
 0x363   :  { %v4658_v11 = vmax.f32 %v2231_v20, 0.0  ;;  %v4660_v32 = vmax.f32 %v3544_v21, 0.0  ;;  %v2237_v33 = vadd.f32 %v2236_v31, %v7385_v49  ;;  %v3549_v34 = vpop.f32.mrf.mxu1  ;;  %6897 = vmatmul.mubr.msk.bf16.gmra.mxu1 %vm987_vm0, %v7109_v14  ;;  %2484 = vmatprep.mubr.bf16.mxu0 %v7130_v1  ;;  %v4659_v12 = vmax.f32 %v2233_v28, 0.0 }
 0x364   :  { %v4661_v48 = vmax.f32 %v3546_v29, 0.0  ;;  %v3550_v38 = vadd.f32 %v3549_v34, %v7387_v50  ;;  %v2238_v13 = vpop.f32.mrf.mxu0  ;;  %3797 = vmatprep.mubr.bf16.mxu1 %v7130_v1  ;;  %v8863_v44 = vsel %vm6348_vm4, %v6224_v30, %v8599_v60  ;;  %6943 = vmatprep.subr.mxu0 %v6258_v42  ;;  %v6290_v60 = vld [vmem:[%s9676_s3 + $0x198] sm:$0xff]  ;;  %v8879_v41 = vsel %vm6348_vm4, %v6226_v37, %v8604_v61 }
 0x365   :  { %v5766_v51 = vadd.f32 %v5765_v56, %v4658_v11  ;;  %v5840_v55 = vadd.f32 %v5839_v19, %v4660_v32  ;;  %v4662_v58 = vmax.f32 %v2237_v33, 0.0  ;;  %v2239_v26 = vadd.f32 %v2238_v13, %v7391_v53  ;;  %v3551_v59 = vpop.f32.mrf.mxu1  ;;  %6944 = vmatpush3.msra.mxu0 %v6242_v43  ;;  %v6274_v30 = vld [vmem:[%s9676_s3 + $0x118] sm:$0xff]  ;;  %6978 = vmatprep.subr.mxu1 %v6290_v60  ;;  %v7111_v11 = vld [vmem:[%s9675_s0 + $0x368] sm:$0xff]  }
 0x366   :  { %v5803_v27 = vadd.f32 %v5802_v24, %v4659_v12  ;;  %v5877_v62 = vadd.f32 %v5876_v25, %v4661_v48  ;;  %v4664_v63 = vmax.f32 %v3550_v38, 0.0  ;;  %v3552_v0 = vadd.f32 %v3551_v59, %v7393_v54  ;;  %v2240_v2 = vpop.f32.mrf.mxu0  ;;  %6979 = vmatpush3.msra.mxu1 %v6274_v30 }
 0x367   :  { %v5767_v3 = vadd.f32 %v5766_v51, %v4662_v58  ;;  %v4663_v4 = vmax.f32 %v2239_v26, 0.0  ;;  %v2241_v5 = vadd.f32 %v2240_v2, %v7385_v49  ;;  %v3553_v6 = vpop.f32.mrf.mxu1  ;;  %v8885_v45 = vsel %vm6348_vm4, %v8826_v22, %v8543_v35 }
 0x368   :  { %v5841_v57 = vadd.f32 %v5840_v55, %v4664_v63  ;;  %v4665_v46 = vmax.f32 %v3552_v0, 0.0  ;;  %v3554_v7 = vadd.f32 %v3553_v6, %v7387_v50  ;;  %v2242_v14 = vpop.f32.mrf.mxu0  ;;  %v8891_v61 = vsel %vm6348_vm4, %v8829_v52, %v8552_v40 }
 0x369   :  { %v5804_v47 = vadd.f32 %v5803_v27, %v4663_v4  ;;  %v4666_v8 = vmax.f32 %v2241_v5, 0.0  ;;  %v2243_v9 = vadd.f32 %v2242_v14, %v7391_v53  ;;  %v3555_v10 = vpop.f32.mrf.mxu1 }
 0x36a   :  { %v5878_v15 = vadd.f32 %v5877_v62, %v4665_v46  ;;  %v4668_v16 = vmax.f32 %v3554_v7, 0.0  ;;  %v3556_v17 = vadd.f32 %v3555_v10, %v7393_v54  ;;  %v2246_v18 = vpop.f32.mrf.mxu0  ;;  %6770 = vmatmul.mubr.msk.bf16.gmra.mxu0 %vm987_vm0, %v7110_v39 }
 0x36b   :  { %v5768_v36 = vadd.f32 %v5767_v3, %v4666_v8  ;;  %v4667_v35 = vmax.f32 %v2243_v9, 0.0  ;;  %v2247_v22 = vadd.f32 %v2246_v18, %v7385_v49  ;;  %v3559_v56 = vpop.f32.mrf.mxu1  ;;  %6898 = vmatmul.mubr.msk.bf16.gmra.mxu1 %vm987_vm0, %v7110_v39  ;;  %2494 = vmatprep.mubr.bf16.mxu0 %v7130_v1  ;;  %v7112_v9 = vld [vmem:[%s9675_s0 + $0x370] sm:$0xff]  }
 0x36c   :  { %v5842_v19 = vadd.f32 %v5841_v57, %v4668_v16  ;;  %v4669_v20 = vmax.f32 %v3556_v17, 0.0  ;;  %v3560_v40 = vadd.f32 %v3559_v56, %v7387_v50  ;;  %v2248_v52 = vpop.f32.mrf.mxu0  ;;  %3807 = vmatprep.mubr.bf16.mxu1 %v7130_v1 }
 0x36d   :  { %v5805_v21 = vadd.f32 %v5804_v47, %v4667_v35  ;;  %v4670_v23 = vmax.f32 %v2247_v22, 0.0  ;;  %v2249_v24 = vadd.f32 %v2248_v52, %v7391_v53  ;;  %v3561_v25 = vpop.f32.mrf.mxu1 }
 0x36e   :  { %v5879_v28 = vadd.f32 %v5878_v15, %v4669_v20  ;;  %v4672_v29 = vmax.f32 %v3560_v40, 0.0  ;;  %v3562_v31 = vadd.f32 %v3561_v25, %v7393_v54  ;;  %v2250_v37 = vpop.f32.mrf.mxu0 }
 0x36f   :  { %v5769_v32 = vadd.f32 %v5768_v36, %v4670_v23  ;;  %v4671_v33 = vmax.f32 %v2249_v24, 0.0  ;;  %v2251_v34 = vadd.f32 %v2250_v37, %v7385_v49  ;;  %v3563_v12 = vpop.f32.mrf.mxu1 }
 0x370   :  { %v5843_v48 = vadd.f32 %v5842_v19, %v4672_v29  ;;  %v4673_v38 = vmax.f32 %v3562_v31, 0.0  ;;  %v3564_v13 = vadd.f32 %v3563_v12, %v7387_v50  ;;  %v2252_v42 = vpop.f32.mrf.mxu0 }
 0x371   :  { %v5806_v43 = vadd.f32 %v5805_v21, %v4671_v33  ;;  %v4674_v51 = vmax.f32 %v2251_v34, 0.0  ;;  %v2253_v55 = vadd.f32 %v2252_v42, %v7391_v53  ;;  %v3565_v58 = vpop.f32.mrf.mxu1 }
 0x372   :  { %v5880_v26 = vadd.f32 %v5879_v28, %v4673_v38  ;;  %v4676_v59 = vmax.f32 %v3564_v13, 0.0  ;;  %v3566_v27 = vadd.f32 %v3565_v58, %v7393_v54  ;;  %v2256_v62 = vpop.f32.mrf.mxu0  ;;  %6771 = vmatmul.mubr.msk.bf16.gmra.mxu0 %vm987_vm0, %v7111_v11 }
 0x373   :  { %v5770_v63 = vadd.f32 %v5769_v32, %v4674_v51  ;;  %v4675_v0 = vmax.f32 %v2253_v55, 0.0  ;;  %v2257_v2 = vadd.f32 %v2256_v62, %v7385_v49  ;;  %v3569_v39 = vpop.f32.mrf.mxu1  ;;  %6899 = vmatmul.mubr.msk.bf16.gmra.mxu1 %vm987_vm0, %v7111_v11  ;;  %2504 = vmatprep.mubr.bf16.mxu0 %v7130_v1  ;;  %v7113_v55 = vld [vmem:[%s9675_s0 + $0x378] sm:$0xff]  }
 0x374   :  { %v5844_v60 = vadd.f32 %v5843_v48, %v4676_v59  ;;  %v4677_v30 = vmax.f32 %v3566_v27, 0.0  ;;  %v3570_v3 = vadd.f32 %v3569_v39, %v7387_v50  ;;  %v2258_v4 = vpop.f32.mrf.mxu0  ;;  %3817 = vmatprep.mubr.bf16.mxu1 %v7130_v1 }
 0x375   :  { %v5807_v5 = vadd.f32 %v5806_v43, %v4675_v0  ;;  %v4678_v6 = vmax.f32 %v2257_v2, 0.0  ;;  %v2259_v57 = vadd.f32 %v2258_v4, %v7391_v53  ;;  %v3571_v46 = vpop.f32.mrf.mxu1 }
 0x376   :  { %v5881_v7 = vadd.f32 %v5880_v26, %v4677_v30  ;;  %v4680_v14 = vmax.f32 %v3570_v3, 0.0  ;;  %v3572_v47 = vadd.f32 %v3571_v46, %v7393_v54  ;;  %v2260_v8 = vpop.f32.mrf.mxu0 }
 0x377   :  { %v5771_v10 = vadd.f32 %v5770_v63, %v4678_v6  ;;  %v4679_v15 = vmax.f32 %v2259_v57, 0.0  ;;  %v2261_v16 = vadd.f32 %v2260_v8, %v7385_v49  ;;  %v3573_v17 = vpop.f32.mrf.mxu1 }
 0x378   :  { %v5845_v18 = vadd.f32 %v5844_v60, %v4680_v14  ;;  %v4681_v36 = vmax.f32 %v3572_v47, 0.0  ;;  %v3574_v35 = vadd.f32 %v3573_v17, %v7387_v50  ;;  %v2262_v22 = vpop.f32.mrf.mxu0 }
 0x379   :  { %v5808_v56 = vadd.f32 %v5807_v5, %v4679_v15  ;;  %v4682_v19 = vmax.f32 %v2261_v16, 0.0  ;;  %v2263_v20 = vadd.f32 %v2262_v22, %v7391_v53  ;;  %v3575_v40 = vpop.f32.mrf.mxu1 }
 0x37a   :  { %v5882_v52 = vadd.f32 %v5881_v7, %v4681_v36  ;;  %v4684_v21 = vmax.f32 %v3574_v35, 0.0  ;;  %v3576_v23 = vadd.f32 %v3575_v40, %v7393_v54  ;;  %v2266_v24 = vpop.f32.mrf.mxu0  ;;  %6772 = vmatmul.mubr.msk.bf16.gmra.mxu0 %vm987_vm0, %v7112_v9 }
 0x37b   :  { %v5772_v25 = vadd.f32 %v5771_v10, %v4682_v19  ;;  %v4683_v28 = vmax.f32 %v2263_v20, 0.0  ;;  %v2267_v29 = vadd.f32 %v2266_v24, %v7385_v49  ;;  %v3579_v31 = vpop.f32.mrf.mxu1  ;;  %6900 = vmatmul.mubr.msk.bf16.gmra.mxu1 %vm987_vm0, %v7112_v9  ;;  %2514 = vmatprep.mubr.bf16.mxu0 %v7130_v1  ;;  %v7114_v20 = vld [vmem:[%s9675_s0 + $0x380] sm:$0xff]  }
 0x37c   :  { %v5846_v37 = vadd.f32 %v5845_v18, %v4684_v21  ;;  %v4685_v11 = vmax.f32 %v3576_v23, 0.0  ;;  %v3580_v32 = vadd.f32 %v3579_v31, %v7387_v50  ;;  %v2268_v33 = vpop.f32.mrf.mxu0  ;;  %3827 = vmatprep.mubr.bf16.mxu1 %v7130_v1 }
 0x37d   :  { %v5809_v34 = vadd.f32 %v5808_v56, %v4683_v28  ;;  %v4686_v12 = vmax.f32 %v2267_v29, 0.0  ;;  %v2269_v48 = vadd.f32 %v2268_v33, %v7391_v53  ;;  %v3581_v38 = vpop.f32.mrf.mxu1 }
 0x37e   :  { %v5883_v13 = vadd.f32 %v5882_v52, %v4685_v11  ;;  %v4688_v42 = vmax.f32 %v3580_v32, 0.0  ;;  %v3582_v43 = vadd.f32 %v3581_v38, %v7393_v54  ;;  %v2270_v51 = vpop.f32.mrf.mxu0 }
 0x37f   :  { %v5773_v58 = vadd.f32 %v5772_v25, %v4686_v12  ;;  %v4687_v26 = vmax.f32 %v2269_v48, 0.0  ;;  %v2271_v59 = vadd.f32 %v2270_v51, %v7385_v49  ;;  %v3583_v27 = vpop.f32.mrf.mxu1 }
 0x380   :  { %v5847_v62 = vadd.f32 %v5846_v37, %v4688_v42  ;;  %v4689_v63 = vmax.f32 %v3582_v43, 0.0  ;;  %v3584_v0 = vadd.f32 %v3583_v27, %v7387_v50  ;;  %v2272_v2 = vpop.f32.mrf.mxu0 }
 0x381   :  { %v5810_v39 = vadd.f32 %v5809_v34, %v4687_v26  ;;  %v4690_v60 = vmax.f32 %v2271_v59, 0.0  ;;  %v2273_v30 = vadd.f32 %v2272_v2, %v7391_v53  ;;  %v3585_v3 = vpop.f32.mrf.mxu1 }
 0x382   :  { %v5884_v4 = vadd.f32 %v5883_v13, %v4689_v63  ;;  %v4692_v5 = vmax.f32 %v3584_v0, 0.0  ;;  %v3586_v6 = vadd.f32 %v3585_v3, %v7393_v54  ;;  %v2276_v57 = vpop.f32.mrf.mxu0  ;;  %6773 = vmatmul.mubr.msk.bf16.gmra.mxu0 %vm987_vm0, %v7113_v55 }
 0x383   :  { %v5774_v46 = vadd.f32 %v5773_v58, %v4690_v60  ;;  %v4691_v7 = vmax.f32 %v2273_v30, 0.0  ;;  %v2277_v14 = vadd.f32 %v2276_v57, %v7385_v49  ;;  %v3589_v47 = vpop.f32.mrf.mxu1  ;;  %6901 = vmatmul.mubr.msk.bf16.gmra.mxu1 %vm987_vm0, %v7113_v55  ;;  %2524 = vmatprep.mubr.bf16.mxu0 %v7130_v1  ;;  %v7115_v30 = vld [vmem:[%s9675_s0 + $0x388] sm:$0xff]  }
 0x384   :  { %v5848_v8 = vadd.f32 %v5847_v62, %v4692_v5  ;;  %v4693_v9 = vmax.f32 %v3586_v6, 0.0  ;;  %v3590_v10 = vadd.f32 %v3589_v47, %v7387_v50  ;;  %v2278_v15 = vpop.f32.mrf.mxu0  ;;  %3837 = vmatprep.mubr.bf16.mxu1 %v7130_v1 }
 0x385   :  { %v5811_v16 = vadd.f32 %v5810_v39, %v4691_v7  ;;  %v4694_v17 = vmax.f32 %v2277_v14, 0.0  ;;  %v2279_v18 = vadd.f32 %v2278_v15, %v7391_v53  ;;  %v3591_v36 = vpop.f32.mrf.mxu1 }
 0x386   :  { %v5885_v35 = vadd.f32 %v5884_v4, %v4693_v9  ;;  %v4696_v22 = vmax.f32 %v3590_v10, 0.0  ;;  %v3592_v56 = vadd.f32 %v3591_v36, %v7393_v54  ;;  %v2280_v19 = vpop.f32.mrf.mxu0 }
 0x387   :  { %v5775_v40 = vadd.f32 %v5774_v46, %v4694_v17  ;;  %v4695_v52 = vmax.f32 %v2279_v18, 0.0  ;;  %v2281_v21 = vadd.f32 %v2280_v19, %v7385_v49  ;;  %v3593_v23 = vpop.f32.mrf.mxu1 }
 0x388   :  { %v5849_v24 = vadd.f32 %v5848_v8, %v4696_v22  ;;  %v4697_v25 = vmax.f32 %v3592_v56, 0.0  ;;  %v3594_v28 = vadd.f32 %v3593_v23, %v7387_v50  ;;  %v2282_v29 = vpop.f32.mrf.mxu0 }
 0x389   :  { %v5812_v31 = vadd.f32 %v5811_v16, %v4695_v52  ;;  %v4698_v37 = vmax.f32 %v2281_v21, 0.0  ;;  %v2283_v11 = vadd.f32 %v2282_v29, %v7391_v53  ;;  %v3595_v32 = vpop.f32.mrf.mxu1 }
 0x38a   :  { %v5886_v33 = vadd.f32 %v5885_v35, %v4697_v25  ;;  %v4700_v34 = vmax.f32 %v3594_v28, 0.0  ;;  %v3596_v12 = vadd.f32 %v3595_v32, %v7393_v54  ;;  %v2286_v48 = vpop.f32.mrf.mxu0  ;;  %6774 = vmatmul.mubr.msk.bf16.gmra.mxu0 %vm987_vm0, %v7114_v20 }
 0x38b   :  { %v5776_v38 = vadd.f32 %v5775_v40, %v4698_v37  ;;  %v4699_v13 = vmax.f32 %v2283_v11, 0.0  ;;  %v2287_v42 = vadd.f32 %v2286_v48, %v7385_v49  ;;  %v3599_v43 = vpop.f32.mrf.mxu1  ;;  %6902 = vmatmul.mubr.msk.bf16.gmra.mxu1 %vm987_vm0, %v7114_v20  ;;  %2534 = vmatprep.mubr.bf16.mxu0 %v7130_v1  ;;  %v7116_v11 = vld [vmem:[%s9675_s0 + $0x390] sm:$0xff]  }
 0x38c   :  { %v5850_v51 = vadd.f32 %v5849_v24, %v4700_v34  ;;  %v4701_v55 = vmax.f32 %v3596_v12, 0.0  ;;  %v3600_v58 = vadd.f32 %v3599_v43, %v7387_v50  ;;  %v2288_v26 = vpop.f32.mrf.mxu0  ;;  %3847 = vmatprep.mubr.bf16.mxu1 %v7130_v1 }
 0x38d   :  { %v5813_v59 = vadd.f32 %v5812_v31, %v4699_v13  ;;  %v4702_v27 = vmax.f32 %v2287_v42, 0.0  ;;  %v2289_v62 = vadd.f32 %v2288_v26, %v7391_v53  ;;  %v3601_v63 = vpop.f32.mrf.mxu1 }
 0x38e   :  { %v5887_v0 = vadd.f32 %v5886_v33, %v4701_v55  ;;  %v4704_v2 = vmax.f32 %v3600_v58, 0.0  ;;  %v3602_v39 = vadd.f32 %v3601_v63, %v7393_v54  ;;  %v2290_v60 = vpop.f32.mrf.mxu0 }
 0x38f   :  { %v5777_v3 = vadd.f32 %v5776_v38, %v4702_v27  ;;  %v4703_v4 = vmax.f32 %v2289_v62, 0.0  ;;  %v2291_v5 = vadd.f32 %v2290_v60, %v7385_v49  ;;  %v3603_v6 = vpop.f32.mrf.mxu1 }
 0x390   :  { %v5851_v57 = vadd.f32 %v5850_v51, %v4704_v2  ;;  %v4705_v46 = vmax.f32 %v3602_v39, 0.0  ;;  %v3604_v7 = vadd.f32 %v3603_v6, %v7387_v50  ;;  %v2292_v14 = vpop.f32.mrf.mxu0 }
 0x391   :  { %v5814_v47 = vadd.f32 %v5813_v59, %v4703_v4  ;;  %v4706_v8 = vmax.f32 %v2291_v5, 0.0  ;;  %v2293_v9 = vadd.f32 %v2292_v14, %v7391_v53  ;;  %v3605_v10 = vpop.f32.mrf.mxu1 }
 0x392   :  { %v5888_v15 = vadd.f32 %v5887_v0, %v4705_v46  ;;  %v4708_v16 = vmax.f32 %v3604_v7, 0.0  ;;  %v3606_v17 = vadd.f32 %v3605_v10, %v7393_v54  ;;  %v2296_v18 = vpop.f32.mrf.mxu0  ;;  %6775 = vmatmul.mubr.msk.bf16.gmra.mxu0 %vm987_vm0, %v7115_v30 }
 0x393   :  { %v5778_v36 = vadd.f32 %v5777_v3, %v4706_v8  ;;  %v4707_v35 = vmax.f32 %v2293_v9, 0.0  ;;  %v2297_v22 = vadd.f32 %v2296_v18, %v7385_v49  ;;  %v3609_v56 = vpop.f32.mrf.mxu1  ;;  %6903 = vmatmul.mubr.msk.bf16.gmra.mxu1 %vm987_vm0, %v7115_v30  ;;  %2544 = vmatprep.mubr.bf16.mxu0 %v7130_v1  ;;  %v7117_v9 = vld [vmem:[%s9675_s0 + $0x398] sm:$0xff]  }
 0x394   :  { %v5852_v19 = vadd.f32 %v5851_v57, %v4708_v16  ;;  %v4709_v20 = vmax.f32 %v3606_v17, 0.0  ;;  %v3610_v40 = vadd.f32 %v3609_v56, %v7387_v50  ;;  %v2298_v52 = vpop.f32.mrf.mxu0  ;;  %3857 = vmatprep.mubr.bf16.mxu1 %v7130_v1 }
 0x395   :  { %v5815_v21 = vadd.f32 %v5814_v47, %v4707_v35  ;;  %v4710_v23 = vmax.f32 %v2297_v22, 0.0  ;;  %v2299_v24 = vadd.f32 %v2298_v52, %v7391_v53  ;;  %v3611_v25 = vpop.f32.mrf.mxu1 }
 0x396   :  { %v5889_v28 = vadd.f32 %v5888_v15, %v4709_v20  ;;  %v4712_v29 = vmax.f32 %v3610_v40, 0.0  ;;  %v3612_v31 = vadd.f32 %v3611_v25, %v7393_v54  ;;  %v2300_v37 = vpop.f32.mrf.mxu0 }
 0x397   :  { %v5779_v32 = vadd.f32 %v5778_v36, %v4710_v23  ;;  %v4711_v33 = vmax.f32 %v2299_v24, 0.0  ;;  %v2301_v34 = vadd.f32 %v2300_v37, %v7385_v49  ;;  %v3613_v12 = vpop.f32.mrf.mxu1 }
 0x398   :  { %v5853_v48 = vadd.f32 %v5852_v19, %v4712_v29  ;;  %v4713_v38 = vmax.f32 %v3612_v31, 0.0  ;;  %v3614_v13 = vadd.f32 %v3613_v12, %v7387_v50  ;;  %v2302_v42 = vpop.f32.mrf.mxu0  ;;  %v6241_v12 = vld [vmem:[%s9676_s3 + $0x10] sm:$0xff] }
 0x399   :  { %v5816_v43 = vadd.f32 %v5815_v21, %v4711_v33  ;;  %v4714_v51 = vmax.f32 %v2301_v34, 0.0  ;;  %v2303_v55 = vadd.f32 %v2302_v42, %v7391_v53  ;;  %v3615_v58 = vpop.f32.mrf.mxu1  ;;  %v6257_v34 = vld [vmem:[%s9676_s3 + $0x90] sm:$0xff] }
 0x39a   :  { %v5890_v26 = vadd.f32 %v5889_v28, %v4713_v38  ;;  %v4716_v59 = vmax.f32 %v3614_v13, 0.0  ;;  %v3616_v27 = vadd.f32 %v3615_v58, %v7393_v54  ;;  %v2306_v62 = vpop.f32.mrf.mxu0  ;;  %6776 = vmatmul.mubr.msk.bf16.gmra.mxu0 %vm987_vm0, %v7116_v11  ;;  %6945 = vmatprep.subr.mxu0 %v6257_v34 }
 0x39b   :  { %v5780_v63 = vadd.f32 %v5779_v32, %v4714_v51  ;;  %v4715_v0 = vmax.f32 %v2303_v55, 0.0  ;;  %v2307_v2 = vadd.f32 %v2306_v62, %v7385_v49  ;;  %v3619_v39 = vpop.f32.mrf.mxu1  ;;  %6904 = vmatmul.mubr.msk.bf16.gmra.mxu1 %vm987_vm0, %v7116_v11  ;;  %2554 = vmatprep.mubr.bf16.mxu0 %v7130_v1 }
 0x39c   :  { %v5854_v60 = vadd.f32 %v5853_v48, %v4716_v59  ;;  %v4717_v30 = vmax.f32 %v3616_v27, 0.0  ;;  %v3620_v3 = vadd.f32 %v3619_v39, %v7387_v50  ;;  %v2308_v4 = vpop.f32.mrf.mxu0  ;;  %3867 = vmatprep.mubr.bf16.mxu1 %v7130_v1  ;;  %6946 = vmatpush3.msra.mxu0 %v6241_v12  ;;  %v6289_v59 = vld [vmem:[%s9676_s3 + $0x190] sm:$0xff] }
 0x39d   :  { %v5817_v5 = vadd.f32 %v5816_v43, %v4715_v0  ;;  %v4718_v6 = vmax.f32 %v2307_v2, 0.0  ;;  %v2309_v57 = vadd.f32 %v2308_v4, %v7391_v53  ;;  %v3621_v46 = vpop.f32.mrf.mxu1  ;;  %v6273_v27 = vld [vmem:[%s9676_s3 + $0x110] sm:$0xff]  ;;  %6980 = vmatprep.subr.mxu1 %v6289_v59 }
 0x39e   :  { %v5891_v7 = vadd.f32 %v5890_v26, %v4717_v30  ;;  %v4720_v14 = vmax.f32 %v3620_v3, 0.0  ;;  %v3622_v47 = vadd.f32 %v3621_v46, %v7393_v54  ;;  %v2310_v8 = vpop.f32.mrf.mxu0  ;;  %v7118_v26 = vld [vmem:[%s9675_s0 + $0x3a0] sm:$0xff]   ;;  %6981 = vmatpush3.msra.mxu1 %v6273_v27 }
 0x39f   :  { %v5781_v10 = vadd.f32 %v5780_v63, %v4718_v6  ;;  %v4719_v15 = vmax.f32 %v2309_v57, 0.0  ;;  %v2311_v16 = vadd.f32 %v2310_v8, %v7385_v49  ;;  %v3623_v17 = vpop.f32.mrf.mxu1 }
 0x3a0   :  { %v5855_v18 = vadd.f32 %v5854_v60, %v4720_v14  ;;  %v4721_v36 = vmax.f32 %v3622_v47, 0.0  ;;  %v3624_v35 = vadd.f32 %v3623_v17, %v7387_v50  ;;  %v2312_v22 = vpop.f32.mrf.mxu0 }
 0x3a1   :  { %v5818_v56 = vadd.f32 %v5817_v5, %v4719_v15  ;;  %v4722_v19 = vmax.f32 %v2311_v16, 0.0  ;;  %v2313_v20 = vadd.f32 %v2312_v22, %v7391_v53  ;;  %v3625_v40 = vpop.f32.mrf.mxu1 }
 0x3a2   :  { %v5892_v52 = vadd.f32 %v5891_v7, %v4721_v36  ;;  %v4724_v21 = vmax.f32 %v3624_v35, 0.0  ;;  %v3626_v23 = vadd.f32 %v3625_v40, %v7393_v54  ;;  %v2316_v24 = vpop.f32.mrf.mxu0  ;;  %6777 = vmatmul.mubr.msk.bf16.gmra.mxu0 %vm987_vm0, %v7117_v9 }
 0x3a3   :  { %v5782_v25 = vadd.f32 %v5781_v10, %v4722_v19  ;;  %v4723_v28 = vmax.f32 %v2313_v20, 0.0  ;;  %v2317_v29 = vadd.f32 %v2316_v24, %v7385_v49  ;;  %v3629_v31 = vpop.f32.mrf.mxu1  ;;  %6905 = vmatmul.mubr.msk.bf16.gmra.mxu1 %vm987_vm0, %v7117_v9  ;;  %2564 = vmatprep.mubr.bf16.mxu0 %v7130_v1 }
 0x3a4   :  { %v5856_v37 = vadd.f32 %v5855_v18, %v4724_v21  ;;  %v4725_v11 = vmax.f32 %v3626_v23, 0.0  ;;  %v3630_v32 = vadd.f32 %v3629_v31, %v7387_v50  ;;  %v2318_v33 = vpop.f32.mrf.mxu0  ;;  %3877 = vmatprep.mubr.bf16.mxu1 %v7130_v1  ;;  %v7119_v23 = vld [vmem:[%s9675_s0 + $0x3a8] sm:$0xff]  }
 0x3a5   :  { %v5819_v48 = vadd.f32 %v5818_v56, %v4723_v28  ;;  %v4726_v38 = vmax.f32 %v2317_v29, 0.0  ;;  %v2319_v13 = vadd.f32 %v2318_v33, %v7391_v53  ;;  %v3631_v42 = vpop.f32.mrf.mxu1 }
 0x3a6   :  { %v5893_v43 = vadd.f32 %v5892_v52, %v4725_v11  ;;  %v4728_v51 = vmax.f32 %v3630_v32, 0.0  ;;  %v3632_v55 = vadd.f32 %v3631_v42, %v7393_v54  ;;  %v2320_v58 = vpop.f32.mrf.mxu0 }
 0x3a7   :  { %v5783_v62 = vadd.f32 %v5782_v25, %v4726_v38  ;;  %v4727_v63 = vmax.f32 %v2319_v13, 0.0  ;;  %v2321_v0 = vadd.f32 %v2320_v58, %v7385_v49  ;;  %v3633_v2 = vpop.f32.mrf.mxu1 }
 0x3a8   :  { %v5857_v39 = vadd.f32 %v5856_v37, %v4728_v51  ;;  %v4729_v60 = vmax.f32 %v3632_v55, 0.0  ;;  %v3634_v30 = vadd.f32 %v3633_v2, %v7387_v50  ;;  %v2322_v3 = vpop.f32.mrf.mxu0 }
 0x3a9   :  { %v5820_v4 = vadd.f32 %v5819_v48, %v4727_v63  ;;  %v4730_v5 = vmax.f32 %v2321_v0, 0.0  ;;  %v2323_v6 = vadd.f32 %v2322_v3, %v7391_v53  ;;  %v3635_v57 = vpop.f32.mrf.mxu1 }
 0x3aa   :  { %v5894_v46 = vadd.f32 %v5893_v43, %v4729_v60  ;;  %v4732_v7 = vmax.f32 %v3634_v30, 0.0  ;;  %v3636_v14 = vadd.f32 %v3635_v57, %v7393_v54  ;;  %v2326_v47 = vpop.f32.mrf.mxu0  ;;  %6778 = vmatmul.mubr.msk.bf16.gmra.mxu0 %vm987_vm0, %v7118_v26 }
 0x3ab   :  { %v5784_v8 = vadd.f32 %v5783_v62, %v4730_v5  ;;  %v4731_v9 = vmax.f32 %v2323_v6, 0.0  ;;  %v2327_v10 = vadd.f32 %v2326_v47, %v7385_v49  ;;  %v3639_v15 = vpop.f32.mrf.mxu1  ;;  %6906 = vmatmul.mubr.msk.bf16.gmra.mxu1 %vm987_vm0, %v7118_v26  ;;  %2574 = vmatprep.mubr.bf16.mxu0 %v7130_v1  ;;  %v7120_v6 = vld [vmem:[%s9675_s0 + $0x3b0] sm:$0xff]  }
 0x3ac   :  { %v5858_v16 = vadd.f32 %v5857_v39, %v4732_v7  ;;  %v4733_v17 = vmax.f32 %v3636_v14, 0.0  ;;  %v3640_v18 = vadd.f32 %v3639_v15, %v7387_v50  ;;  %v2328_v36 = vpop.f32.mrf.mxu0  ;;  %3887 = vmatprep.mubr.bf16.mxu1 %v7130_v1 }
 0x3ad   :  { %v5821_v35 = vadd.f32 %v5820_v4, %v4731_v9  ;;  %v4734_v22 = vmax.f32 %v2327_v10, 0.0  ;;  %v2329_v56 = vadd.f32 %v2328_v36, %v7391_v53  ;;  %v3641_v19 = vpop.f32.mrf.mxu1 }
 0x3ae   :  { %v5895_v20 = vadd.f32 %v5894_v46, %v4733_v17  ;;  %v4736_v40 = vmax.f32 %v3640_v18, 0.0  ;;  %v3642_v52 = vadd.f32 %v3641_v19, %v7393_v54  ;;  %v2330_v21 = vpop.f32.mrf.mxu0 }
 0x3af   :  { %v5785_v24 = vadd.f32 %v5784_v8, %v4734_v22  ;;  %v4735_v25 = vmax.f32 %v2329_v56, 0.0  ;;  %v2331_v28 = vadd.f32 %v2330_v21, %v7385_v49  ;;  %v3643_v29 = vpop.f32.mrf.mxu1 }
 0x3b0   :  { %v5859_v31 = vadd.f32 %v5858_v16, %v4736_v40  ;;  %v4737_v37 = vmax.f32 %v3642_v52, 0.0  ;;  %v3644_v11 = vadd.f32 %v3643_v29, %v7387_v50  ;;  %v2332_v32 = vpop.f32.mrf.mxu0 }
 0x3b1   :  { %v5822_v33 = vadd.f32 %v5821_v35, %v4735_v25  ;;  %v4738_v34 = vmax.f32 %v2331_v28, 0.0  ;;  %v2333_v12 = vadd.f32 %v2332_v32, %v7391_v53  ;;  %v3645_v48 = vpop.f32.mrf.mxu1 }
 0x3b2   :  { %v5896_v38 = vadd.f32 %v5895_v20, %v4737_v37  ;;  %v4740_v13 = vmax.f32 %v3644_v11, 0.0  ;;  %v3646_v42 = vadd.f32 %v3645_v48, %v7393_v54  ;;  %v2336_v43 = vpop.f32.mrf.mxu0  ;;  %6779 = vmatmul.mubr.msk.bf16.gmra.mxu0 %vm987_vm0, %v7119_v23 }
 0x3b3   :  { %v5786_v51 = vadd.f32 %v5785_v24, %v4738_v34  ;;  %v4739_v55 = vmax.f32 %v2333_v12, 0.0  ;;  %v2337_v58 = vadd.f32 %v2336_v43, %v7385_v49  ;;  %v3649_v26 = vpop.f32.mrf.mxu1  ;;  %6907 = vmatmul.mubr.msk.bf16.gmra.mxu1 %vm987_vm0, %v7119_v23  ;;  %2584 = vmatprep.mubr.bf16.mxu0 %v7130_v1  ;;  %v7121_v12 = vld [vmem:[%s9675_s0 + $0x3b8] sm:$0xff]  }
 0x3b4   :  { %v5860_v59 = vadd.f32 %v5859_v31, %v4740_v13  ;;  %v4741_v27 = vmax.f32 %v3646_v42, 0.0  ;;  %v3650_v62 = vadd.f32 %v3649_v26, %v7387_v50  ;;  %v2338_v63 = vpop.f32.mrf.mxu0  ;;  %3897 = vmatprep.mubr.bf16.mxu1 %v7130_v1 }
 0x3b5   :  { %v5823_v0 = vadd.f32 %v5822_v33, %v4739_v55  ;;  %v4742_v2 = vmax.f32 %v2337_v58, 0.0  ;;  %v2339_v39 = vadd.f32 %v2338_v63, %v7391_v53  ;;  %v3651_v60 = vpop.f32.mrf.mxu1 }
 0x3b6   :  { %v5897_v30 = vadd.f32 %v5896_v38, %v4741_v27  ;;  %v4744_v3 = vmax.f32 %v3650_v62, 0.0  ;;  %v3652_v4 = vadd.f32 %v3651_v60, %v7393_v54  ;;  %v2340_v5 = vpop.f32.mrf.mxu0 }
 0x3b7   :  { %v5787_v57 = vadd.f32 %v5786_v51, %v4742_v2  ;;  %v4743_v46 = vmax.f32 %v2339_v39, 0.0  ;;  %v2341_v7 = vadd.f32 %v2340_v5, %v7385_v49  ;;  %v3653_v14 = vpop.f32.mrf.mxu1 }
 0x3b8   :  { %v5861_v47 = vadd.f32 %v5860_v59, %v4744_v3  ;;  %v4745_v8 = vmax.f32 %v3652_v4, 0.0  ;;  %v3654_v9 = vadd.f32 %v3653_v14, %v7387_v50  ;;  %v2342_v10 = vpop.f32.mrf.mxu0 }
 0x3b9   :  { %v5824_v15 = vadd.f32 %v5823_v0, %v4743_v46  ;;  %v4746_v16 = vmax.f32 %v2341_v7, 0.0  ;;  %v2343_v17 = vadd.f32 %v2342_v10, %v7391_v53  ;;  %v3655_v18 = vpop.f32.mrf.mxu1 }
 0x3ba   :  { %v5898_v36 = vadd.f32 %v5897_v30, %v4745_v8  ;;  %v4748_v35 = vmax.f32 %v3654_v9, 0.0  ;;  %v3656_v22 = vadd.f32 %v3655_v18, %v7393_v54  ;;  %v2346_v56 = vpop.f32.mrf.mxu0  ;;  %6780 = vmatmul.mubr.msk.bf16.gmra.mxu0 %vm987_vm0, %v7120_v6 }
 0x3bb   :  { %v5788_v19 = vadd.f32 %v5787_v57, %v4746_v16  ;;  %v4747_v20 = vmax.f32 %v2343_v17, 0.0  ;;  %v2347_v40 = vadd.f32 %v2346_v56, %v7385_v49  ;;  %v3659_v52 = vpop.f32.mrf.mxu1  ;;  %6908 = vmatmul.mubr.msk.bf16.gmra.mxu1 %vm987_vm0, %v7120_v6  ;;  %2594 = vmatprep.mubr.bf16.mxu0 %v7130_v1  ;;  %v7122_v17 = vld [vmem:[%s9675_s0 + $0x3c0] sm:$0xff]  }
 0x3bc   :  { %v5862_v21 = vadd.f32 %v5861_v47, %v4748_v35  ;;  %v4749_v23 = vmax.f32 %v3656_v22, 0.0  ;;  %v3660_v24 = vadd.f32 %v3659_v52, %v7387_v50  ;;  %v2348_v25 = vpop.f32.mrf.mxu0  ;;  %3907 = vmatprep.mubr.bf16.mxu1 %v7130_v1 }
 0x3bd   :  { %v5825_v28 = vadd.f32 %v5824_v15, %v4747_v20  ;;  %v4750_v29 = vmax.f32 %v2347_v40, 0.0  ;;  %v2349_v31 = vadd.f32 %v2348_v25, %v7391_v53  ;;  %v3661_v37 = vpop.f32.mrf.mxu1 }
 0x3be   :  { %v5899_v11 = vadd.f32 %v5898_v36, %v4749_v23  ;;  %v4752_v32 = vmax.f32 %v3660_v24, 0.0  ;;  %v3662_v33 = vadd.f32 %v3661_v37, %v7393_v54  ;;  %v2350_v34 = vpop.f32.mrf.mxu0 }
 0x3bf   :  { %v5789_v48 = vadd.f32 %v5788_v19, %v4750_v29  ;;  %v4751_v38 = vmax.f32 %v2349_v31, 0.0  ;;  %v2351_v13 = vadd.f32 %v2350_v34, %v7385_v49  ;;  %v3663_v42 = vpop.f32.mrf.mxu1 }
 0x3c0   :  { %v5863_v43 = vadd.f32 %v5862_v21, %v4752_v32  ;;  %v4753_v51 = vmax.f32 %v3662_v33, 0.0  ;;  %v3664_v55 = vadd.f32 %v3663_v42, %v7387_v50  ;;  %v2352_v58 = vpop.f32.mrf.mxu0 }
 0x3c1   :  { %v5826_v26 = vadd.f32 %v5825_v28, %v4751_v38  ;;  %v4754_v59 = vmax.f32 %v2351_v13, 0.0  ;;  %v2353_v27 = vadd.f32 %v2352_v58, %v7391_v53  ;;  %v3665_v62 = vpop.f32.mrf.mxu1 }
 0x3c2   :  { %v5900_v63 = vadd.f32 %v5899_v11, %v4753_v51  ;;  %v4756_v0 = vmax.f32 %v3664_v55, 0.0  ;;  %v3666_v2 = vadd.f32 %v3665_v62, %v7393_v54  ;;  %v2356_v39 = vpop.f32.mrf.mxu0  ;;  %6781 = vmatmul.mubr.msk.bf16.gmra.mxu0 %vm987_vm0, %v7121_v12 }
 0x3c3   :  { %v5790_v60 = vadd.f32 %v5789_v48, %v4754_v59  ;;  %v4755_v30 = vmax.f32 %v2353_v27, 0.0  ;;  %v2357_v3 = vadd.f32 %v2356_v39, %v7385_v49  ;;  %v3669_v4 = vpop.f32.mrf.mxu1  ;;  %6909 = vmatmul.mubr.msk.bf16.gmra.mxu1 %vm987_vm0, %v7121_v12  ;;  %2604 = vmatprep.mubr.bf16.mxu0 %v7130_v1 }
 0x3c4   :  { %v5864_v5 = vadd.f32 %v5863_v43, %v4756_v0  ;;  %v4757_v6 = vmax.f32 %v3666_v2, 0.0  ;;  %v3670_v57 = vadd.f32 %v3669_v4, %v7387_v50  ;;  %v2358_v46 = vpop.f32.mrf.mxu0  ;;  %3917 = vmatprep.mubr.bf16.mxu1 %v7130_v1 }
 0x3c5   :  { %v5827_v7 = vadd.f32 %v5826_v26, %v4755_v30  ;;  %v4758_v14 = vmax.f32 %v2357_v3, 0.0  ;;  %v2359_v47 = vadd.f32 %v2358_v46, %v7391_v53  ;;  %v3671_v8 = vpop.f32.mrf.mxu1 }
 0x3c6   :  { %v5901_v9 = vadd.f32 %v5900_v63, %v4757_v6  ;;  %v4760_v10 = vmax.f32 %v3670_v57, 0.0  ;;  %v3672_v15 = vadd.f32 %v3671_v8, %v7393_v54  ;;  %v2360_v16 = vpop.f32.mrf.mxu0  ;;  %v7123_v63 = vld [vmem:[%s9675_s0 + $0x3c8] sm:$0xff]  }
 0x3c7   :  { %v5791_v18 = vadd.f32 %v5790_v60, %v4758_v14  ;;  %v4759_v36 = vmax.f32 %v2359_v47, 0.0  ;;  %v2361_v35 = vadd.f32 %v2360_v16, %v7385_v49  ;;  %v3673_v22 = vpop.f32.mrf.mxu1 }
 0x3c8   :  { %v5865_v56 = vadd.f32 %v5864_v5, %v4760_v10  ;;  %v4761_v19 = vmax.f32 %v3672_v15, 0.0  ;;  %v3674_v20 = vadd.f32 %v3673_v22, %v7387_v50  ;;  %v2362_v40 = vpop.f32.mrf.mxu0 }
 0x3c9   :  { %v5828_v52 = vadd.f32 %v5827_v7, %v4759_v36  ;;  %v4762_v21 = vmax.f32 %v2361_v35, 0.0  ;;  %v2363_v23 = vadd.f32 %v2362_v40, %v7391_v53  ;;  %v3675_v24 = vpop.f32.mrf.mxu1 }
 0x3ca   :  { %v5902_v25 = vadd.f32 %v5901_v9, %v4761_v19  ;;  %v4764_v28 = vmax.f32 %v3674_v20, 0.0  ;;  %v3676_v29 = vadd.f32 %v3675_v24, %v7393_v54  ;;  %v2366_v31 = vpop.f32.mrf.mxu0  ;;  %6782 = vmatmul.mubr.msk.bf16.gmra.mxu0 %vm987_vm0, %v7122_v17 }
 0x3cb   :  { %v5792_v37 = vadd.f32 %v5791_v18, %v4762_v21  ;;  %v4763_v11 = vmax.f32 %v2363_v23, 0.0  ;;  %v2367_v32 = vadd.f32 %v2366_v31, %v7385_v49  ;;  %v3679_v33 = vpop.f32.mrf.mxu1  ;;  %6910 = vmatmul.mubr.msk.bf16.gmra.mxu1 %vm987_vm0, %v7122_v17  ;;  %2614 = vmatprep.mubr.bf16.mxu0 %v7130_v1 }
 0x3cc   :  { %v5866_v34 = vadd.f32 %v5865_v56, %v4764_v28  ;;  %v4765_v12 = vmax.f32 %v3676_v29, 0.0  ;;  %v3680_v48 = vadd.f32 %v3679_v33, %v7387_v50  ;;  %v2368_v38 = vpop.f32.mrf.mxu0  ;;  %3927 = vmatprep.mubr.bf16.mxu1 %v7130_v1 }
 0x3cd   :  { %v5793_v13 = vrot.slane %v5792_v37, 4  ;;  %v5829_v42 = vadd.f32 %v5828_v52, %v4763_v11  ;;  %v4766_v43 = vmax.f32 %v2367_v32, 0.0  ;;  %v2369_v51 = vadd.f32 %v2368_v38, %v7391_v53  ;;  %v3681_v55 = vpop.f32.mrf.mxu1 }
 0x3ce   :  { %v5867_v58 = vrot.slane %v5866_v34, 4  ;;  %v5903_v26 = vadd.f32 %v5902_v25, %v4765_v12  ;;  %v4768_v59 = vmax.f32 %v3680_v48, 0.0  ;;  %v3682_v27 = vadd.f32 %v3681_v55, %v7393_v54  ;;  %v2370_v62 = vpop.f32.mrf.mxu0 }
 0x3cf   :  { %v5794_v0 = vadd.f32 %v5793_v13, %v5792_v37  ;;  %v5830_v2 = vrot.slane %v5829_v42, 4  ;;  %v4767_v39 = vmax.f32 %v2369_v51, 0.0  ;;  %v2371_v60 = vadd.f32 %v2370_v62, %v7385_v49  ;;  %v3683_v30 = vpop.f32.mrf.mxu1 }
 0x3d0   :  { %v5868_v3 = vadd.f32 %v5867_v58, %v5866_v34  ;;  %v5904_v4 = vrot.slane %v5903_v26, 4  ;;  %v4769_v5 = vmax.f32 %v3682_v27, 0.0  ;;  %v3684_v6 = vadd.f32 %v3683_v30, %v7387_v50  ;;  %v2372_v57 = vpop.f32.mrf.mxu0  ;;  %v7124_v34 = vld [vmem:[%s9675_s0 + $0x3d0] sm:$0xff]  }
 0x3d1   :  { %v5795_v46 = vrot.slane %v5794_v0, 2  ;;  %v5831_v7 = vadd.f32 %v5830_v2, %v5829_v42  ;;  %v4770_v14 = vmax.f32 %v2371_v60, 0.0  ;;  %v2373_v47 = vadd.f32 %v2372_v57, %v7391_v53  ;;  %v3685_v8 = vpop.f32.mrf.mxu1 }
 0x3d2   :  { %v5869_v9 = vrot.slane %v5868_v3, 2  ;;  %v5905_v10 = vadd.f32 %v5904_v4, %v5903_v26  ;;  %v4772_v15 = vmax.f32 %v3684_v6, 0.0  ;;  %v3686_v16 = vadd.f32 %v3685_v8, %v7393_v54  ;;  %v2376_v17 = vpop.f32.mrf.mxu0  ;;  %6783 = vmatmul.mubr.msk.bf16.gmra.mxu0 %vm987_vm0, %v7123_v63 }
 0x3d3   :  { %v5796_v18 = vadd.f32 %v5795_v46, %v5794_v0  ;;  %v5832_v36 = vrot.slane %v5831_v7, 2  ;;  %v5910_v35 = vadd.f32 %v4770_v14, %v4766_v43  ;;  %v4771_v22 = vmax.f32 %v2373_v47, 0.0  ;;  %v3689_v56 = vpop.f32.mrf.mxu1  ;;  %6911 = vmatmul.mubr.msk.bf16.gmra.mxu1 %vm987_vm0, %v7123_v63  ;;  %2624 = vmatprep.mubr.bf16.mxu0 %v7130_v1 }
 0x3d4   :  { %v5870_v19 = vadd.f32 %v5869_v9, %v5868_v3  ;;  %v5906_v20 = vrot.slane %v5905_v10, 2  ;;  %v5984_v40 = vadd.f32 %v4772_v15, %v4768_v59  ;;  %v4773_v52 = vmax.f32 %v3686_v16, 0.0  ;;  %v2378_v21 = vpop.f32.mrf.mxu0  ;;  %3937 = vmatprep.mubr.bf16.mxu1 %v7130_v1 }
 0x3d5   :  { %v5797_v23 = vrot.slane %v5796_v18, 1  ;;  %v5833_v24 = vadd.f32 %v5832_v36, %v5831_v7  ;;  %v5947_v25 = vadd.f32 %v4771_v22, %v4767_v39  ;;  %v2377_v28 = vadd.f32 %v2376_v17, %v7385_v49  ;;  %v3691_v29 = vpop.f32.mrf.mxu1 }
 0x3d6   :  { %v5871_v31 = vrot.slane %v5870_v19, 1  ;;  %v5907_v37 = vadd.f32 %v5906_v20, %v5905_v10  ;;  %v6021_v11 = vadd.f32 %v4773_v52, %v4769_v5  ;;  %v3690_v32 = vadd.f32 %v3689_v56, %v7387_v50  ;;  %v2380_v33 = vpop.f32.mrf.mxu0 }
 0x3d7   :  { %v5798_v12 = vadd.f32 %v5797_v23, %v5796_v18  ;;  %v5834_v48 = vrot.slane %v5833_v24, 1  ;;  %v4774_v38 = vmax.f32 %v2377_v28, 0.0  ;;  %v2379_v13 = vadd.f32 %v2378_v21, %v7391_v53  ;;  %v3693_v42 = vpop.f32.mrf.mxu1 }
 0x3d8   :  { %v5908_v43 = vrot.slane %v5907_v37, 1  ;;  %v4776_v51 = vmax.f32 %v3690_v32, 0.0  ;;  %v3692_v55 = vadd.f32 %v3691_v29, %v7393_v54  ;;  %v2382_v58 = vpop.f32.mrf.mxu0  ;;  %v5872_v59 = vadd.f32 %v5871_v31, %v5870_v19  ;;  %v7125_v19 = vld [vmem:[%s9675_s0 + $0x3d8] sm:$0xff]  }
 0x3d9   :  { %v9112_v26 = vmul.f32 0.00390625, %v5798_v12  ;;  %v5911_v27 = vadd.f32 %v5910_v35, %v4774_v38  ;;  %v4775_v62 = vmax.f32 %v2379_v13, 0.0  ;;  %v3695_v63 = vpop.f32.mrf.mxu1  ;;  %v5835_v0 = vadd.f32 %v5834_v48, %v5833_v24 }
 0x3da   :  { %v9114_v2 = vadd.f32 %v5908_v43, %v5907_v37  ;;  %v5985_v39 = vadd.f32 %v5984_v40, %v4776_v51  ;;  %v4777_v60 = vmax.f32 %v3692_v55, 0.0  ;;  %v2386_v30 = vpop.f32.mrf.mxu0  ;;  %6784 = vmatmul.mubr.msk.bf16.gmra.mxu0 %vm987_vm0, %v7124_v34  ;;  %v2381_v4 = vadd.f32 %v2380_v33, %v7385_v49 }
 0x3db   :  { %v5948_v3 = vadd.f32 %v5947_v25, %v4775_v62  ;;  %v3694_v5 = vadd.f32 %v3693_v42, %v7387_v50  ;;  %v2383_v6 = vadd.f32 %v2382_v58, %v7391_v53  ;;  %v3699_v57 = vpop.f32.mrf.mxu1  ;;  %6912 = vmatmul.mubr.msk.bf16.gmra.mxu1 %vm987_vm0, %v7124_v34  ;;  %v3696_v7 = vadd.f32 %v3695_v63, %v7393_v54 }
 0x3dc   :  { %v6022_v46 = vadd.f32 %v6021_v11, %v4777_v60  ;;  %v2387_v14 = vadd.f32 %v2386_v30, %v7385_v49  ;;  %v3700_v47 = vadd.f32 %v3699_v57, %v7387_v50  ;;  %v2388_v8 = vpop.f32.mrf.mxu0  ;;  %2634 = vmatprep.mubr.bf16.mxu0 %v7130_v1  ;;  %v4778_v9 = vmax.f32 %v2381_v4, 0.0  ;;  %3947 = vmatprep.mubr.bf16.mxu1 %v7130_v1 }
 0x3dd   :  { %v4780_v10 = vmax.f32 %v3694_v5, 0.0  ;;  %v4779_v15 = vmax.f32 %v2383_v6, 0.0  ;;  %v2389_v16 = vadd.f32 %v2388_v8, %v7391_v53  ;;  %v3701_v17 = vpop.f32.mrf.mxu1  ;;  %v4781_v18 = vmax.f32 %v3696_v7, 0.0  ;;  %v7126_v8 = vld [vmem:[%s9675_s0 + $0x3e0] sm:$0xff]  }
 0x3de   :  { %v4782_v36 = vmax.f32 %v2387_v14, 0.0  ;;  %v4784_v35 = vmax.f32 %v3700_v47, 0.0  ;;  %v3702_v22 = vadd.f32 %v3701_v17, %v7393_v54  ;;  %v2390_v56 = vpop.f32.mrf.mxu0  ;;  %v5912_v20 = vadd.f32 %v5911_v27, %v4778_v9  ;;  %v6288_v9 = vld [vmem:[%s9676_s3 + $0x188] sm:$0xff] }
 0x3df   :  { %v5986_v40 = vadd.f32 %v5985_v39, %v4780_v10  ;;  %v5949_v52 = vadd.f32 %v5948_v3, %v4779_v15  ;;  %v4783_v21 = vmax.f32 %v2389_v16, 0.0  ;;  %v3703_v23 = vpop.f32.mrf.mxu1  ;;  %v6023_v24 = vadd.f32 %v6022_v46, %v4781_v18  ;;  %v6240_v3 = vld [vmem:[%s9676_s3 + $0x8] sm:$0xff]  ;;  %6982 = vmatprep.subr.mxu1 %v6288_v9 }
 0x3e0   :  { %v4785_v25 = vmax.f32 %v3702_v22, 0.0  ;;  %v2391_v28 = vadd.f32 %v2390_v56, %v7385_v49  ;;  %v3704_v29 = vadd.f32 %v3703_v23, %v7387_v50  ;;  %v2392_v31 = vpop.f32.mrf.mxu0  ;;  %v5913_v37 = vadd.f32 %v5912_v20, %v4782_v36  ;;  %v6272_v10 = vld [vmem:[%s9676_s3 + $0x108] sm:$0xff] }
 0x3e1   :  { %v5987_v11 = vadd.f32 %v5986_v40, %v4784_v35  ;;  %v5950_v32 = vadd.f32 %v5949_v52, %v4783_v21  ;;  %v2393_v33 = vadd.f32 %v2392_v31, %v7391_v53  ;;  %v3705_v34 = vpop.f32.mrf.mxu1  ;;  %v6229_v43 = vmul.f32 0.00390625, %v5872_v59  ;;  %v6256_v59 = vld [vmem:[%s9676_s3 + $0x88] sm:$0xff]  ;;  %6983 = vmatpush3.msra.mxu1 %v6272_v10 }
 0x3e2   :  { %v6024_v12 = vadd.f32 %v6023_v24, %v4785_v25  ;;  %v4786_v48 = vmax.f32 %v2391_v28, 0.0  ;;  %v4788_v38 = vmax.f32 %v3704_v29, 0.0  ;;  %v3706_v13 = vadd.f32 %v3705_v34, %v7393_v54  ;;  %v2396_v42 = vpop.f32.mrf.mxu0  ;;  %6785 = vmatmul.mubr.msk.bf16.gmra.mxu0 %vm987_vm0, %v7125_v19  ;;  %6947 = vmatprep.subr.mxu0 %v6256_v59 }
 0x3e3   :  { %v4787_v51 = vmax.f32 %v2393_v33, 0.0  ;;  %v2397_v55 = vadd.f32 %v2396_v42, %v7385_v49  ;;  %v3709_v58 = vpop.f32.mrf.mxu1  ;;  %6913 = vmatmul.mubr.msk.bf16.gmra.mxu1 %vm987_vm0, %v7125_v19  ;;  %2644 = vmatprep.mubr.bf16.mxu0 %v7130_v1  ;;  %v6228_v27 = vmul.f32 0.00390625, %v5835_v0  ;;  %v9167_v36 = vsel %vm6350_vm5, %v9112_v26, %v8885_v45 }
 0x3e4   :  { %v5914_v62 = vadd.f32 %v5913_v37, %v4786_v48  ;;  %v5988_v63 = vadd.f32 %v5987_v11, %v4788_v38  ;;  %v4789_v39 = vmax.f32 %v3706_v13, 0.0  ;;  %v3710_v60 = vadd.f32 %v3709_v58, %v7387_v50  ;;  %v2398_v30 = vpop.f32.mrf.mxu0  ;;  %3957 = vmatprep.mubr.bf16.mxu1 %v7130_v1  ;;  %6948 = vmatpush3.msra.mxu0 %v6240_v3 }
 0x3e5   :  { %v5951_v4 = vadd.f32 %v5950_v32, %v4787_v51  ;;  %v4790_v5 = vmax.f32 %v2397_v55, 0.0  ;;  %v2399_v0 = vadd.f32 %v2398_v30, %v7391_v53  ;;  %v3711_v6 = vpop.f32.mrf.mxu1  ;;  %v9150_v57 = vsel %vm6350_vm5, %v6228_v27, %v8863_v44  ;;  %v7127_v51 = vld [vmem:[%s9675_s0 + $0x3e8] sm:$0xff]  }
 0x3e6   :  { %v6025_v46 = vadd.f32 %v6024_v12, %v4789_v39  ;;  %v4792_v7 = vmax.f32 %v3710_v60, 0.0  ;;  %v3712_v14 = vadd.f32 %v3711_v6, %v7393_v54  ;;  %v2400_v47 = vpop.f32.mrf.mxu0  ;;  %v6230_v44 = vmul.f32 0.00390625, %v9114_v2 }
 0x3e7   :  { %v5915_v15 = vadd.f32 %v5914_v62, %v4790_v5  ;;  %v4791_v16 = vmax.f32 %v2399_v0, 0.0  ;;  %v2401_v17 = vadd.f32 %v2400_v47, %v7385_v49  ;;  %v3713_v18 = vpop.f32.mrf.mxu1  ;;  %v9177_v23 = vsel %vm6350_vm5, %v6229_v43, %v8891_v61 }
 0x3e8   :  { %v5989_v35 = vadd.f32 %v5988_v63, %v4792_v7  ;;  %v4793_v22 = vmax.f32 %v3712_v14, 0.0  ;;  %v3714_v56 = vadd.f32 %v3713_v18, %v7387_v50  ;;  %v2402_v19 = vpop.f32.mrf.mxu0  ;;  %v9172_v2 = vsel %vm6350_vm5, %v6230_v44, %v8879_v41 }
 0x3e9   :  { %v5952_v20 = vadd.f32 %v5951_v4, %v4791_v16  ;;  %v4794_v40 = vmax.f32 %v2401_v17, 0.0  ;;  %v2403_v52 = vadd.f32 %v2402_v19, %v7391_v53  ;;  %v3715_v21 = vpop.f32.mrf.mxu1 }
 0x3ea   :  { %v6026_v45 = vadd.f32 %v6025_v46, %v4793_v22  ;;  %v4796_v26 = vmax.f32 %v3714_v56, 0.0  ;;  %v3716_v24 = vadd.f32 %v3715_v21, %v7393_v54  ;;  %v2406_v25 = vpop.f32.mrf.mxu0  ;;  %6786 = vmatmul.mubr.msk.bf16.gmra.mxu0 %vm987_vm0, %v7126_v8 }
 0x3eb   :  { %v5916_v28 = vadd.f32 %v5915_v15, %v4794_v40  ;;  %v4795_v29 = vmax.f32 %v2403_v52, 0.0  ;;  %v2407_v41 = vadd.f32 %v2406_v25, %v7385_v49  ;;  %v3719_v31 = vpop.f32.mrf.mxu1  ;;  %6914 = vmatmul.mubr.msk.bf16.gmra.mxu1 %vm987_vm0, %v7126_v8  ;;  %2654 = vmatprep.mubr.bf16.mxu0 %v7130_v1  ;;  %v7128_v52 = vld [vmem:[%s9675_s0 + $0x3f0] sm:$0xff]  }
 0x3ec   :  { %v5990_v37 = vadd.f32 %v5989_v35, %v4796_v26  ;;  %v4797_v11 = vmax.f32 %v3716_v24, 0.0  ;;  %v3720_v61 = vadd.f32 %v3719_v31, %v7387_v50  ;;  %v2408_v32 = vpop.f32.mrf.mxu0  ;;  %3967 = vmatprep.mubr.bf16.mxu1 %v7130_v1 }
 0x3ed   :  { %v5953_v33 = vadd.f32 %v5952_v20, %v4795_v29  ;;  %v4798_v34 = vmax.f32 %v2407_v41, 0.0  ;;  %v2409_v12 = vadd.f32 %v2408_v32, %v7391_v53  ;;  %v3721_v48 = vpop.f32.mrf.mxu1 }
 0x3ee   :  { %v6027_v38 = vadd.f32 %v6026_v45, %v4797_v11  ;;  %v4800_v13 = vmax.f32 %v3720_v61, 0.0  ;;  %v3722_v42 = vadd.f32 %v3721_v48, %v7393_v54  ;;  %v2410_v43 = vpop.f32.mrf.mxu0 }
 0x3ef   :  { %v5917_v55 = vadd.f32 %v5916_v28, %v4798_v34  ;;  %v4799_v58 = vmax.f32 %v2409_v12, 0.0  ;;  %v2411_v27 = vadd.f32 %v2410_v43, %v7385_v49  ;;  %v3723_v62 = vpop.f32.mrf.mxu1 }
 0x3f0   :  { %v5991_v63 = vadd.f32 %v5990_v37, %v4800_v13  ;;  %v4801_v39 = vmax.f32 %v3722_v42, 0.0  ;;  %v3724_v60 = vadd.f32 %v3723_v62, %v7387_v50  ;;  %v2412_v30 = vpop.f32.mrf.mxu0 }
 0x3f1   :  { %v4802_v59 = vmax.f32 %v2411_v27, 0.0  ;;  %v2413_v3 = vadd.f32 %v2412_v30, %v7391_v53  ;;  %v3725_v4 = vpop.f32.mrf.mxu1  ;;  %v5954_v46 = vadd.f32 %v5953_v33, %v4799_v58 }
 0x3f2   :  { %v4804_v5 = vmax.f32 %v3724_v60, 0.0  ;;  %v3726_v0 = vadd.f32 %v3725_v4, %v7393_v54  ;;  %v2416_v6 = vpop.f32.mrf.mxu0  ;;  %6787 = vmatmul.mubr.msk.bf16.gmra.mxu0 %vm987_vm0, %v7127_v51  ;;  %v6028_v9 = vadd.f32 %v6027_v38, %v4801_v39  ;;  %v7129_v4 = vld [vmem:[%s9675_s0 + $0x3f8] sm:$0xff]  }
 0x3f3   :  { %v5918_v7 = vadd.f32 %v5917_v55, %v4802_v59  ;;  %v4803_v14 = vmax.f32 %v2413_v3, 0.0  ;;  %v2417_v47 = vadd.f32 %v2416_v6, %v7385_v49  ;;  %v3729_v8 = vpop.f32.mrf.mxu1  ;;  %6915 = vmatmul.mubr.msk.bf16.gmra.mxu1 %vm987_vm0, %v7127_v51  ;;  %2664 = vmatprep.mubr.bf16.mxu0 %v7130_v1 }
 0x3f4   :  { %v5992_v10 = vadd.f32 %v5991_v63, %v4804_v5  ;;  %v4805_v44 = vmax.f32 %v3726_v0, 0.0  ;;  %v3730_v15 = vadd.f32 %v3729_v8, %v7387_v50  ;;  %v2418_v16 = vpop.f32.mrf.mxu0  ;;  %3977 = vmatprep.mubr.bf16.mxu1 %v7130_v1 }
 0x3f5   :  { %v5955_v17 = vadd.f32 %v5954_v46, %v4803_v14  ;;  %v4806_v18 = vmax.f32 %v2417_v47, 0.0  ;;  %v2419_v35 = vadd.f32 %v2418_v16, %v7391_v53  ;;  %v3731_v22 = vpop.f32.mrf.mxu1 }
 0x3f6   :  { %v6029_v56 = vadd.f32 %v6028_v9, %v4805_v44  ;;  %v4808_v19 = vmax.f32 %v3730_v15, 0.0  ;;  %v3732_v20 = vadd.f32 %v3731_v22, %v7393_v54  ;;  %v2420_v40 = vpop.f32.mrf.mxu0 }
 0x3f7   :  { %v5919_v21 = vadd.f32 %v5918_v7, %v4806_v18  ;;  %v4807_v45 = vmax.f32 %v2419_v35, 0.0  ;;  %v2421_v26 = vadd.f32 %v2420_v40, %v7385_v49  ;;  %v3733_v24 = vpop.f32.mrf.mxu1 }
 0x3f8   :  { %v5993_v25 = vadd.f32 %v5992_v10, %v4808_v19  ;;  %v4809_v28 = vmax.f32 %v3732_v20, 0.0  ;;  %v3734_v29 = vadd.f32 %v3733_v24, %v7387_v50  ;;  %v2422_v41 = vpop.f32.mrf.mxu0 }
 0x3f9   :  { %v5956_v31 = vadd.f32 %v5955_v17, %v4807_v45  ;;  %v4810_v37 = vmax.f32 %v2421_v26, 0.0  ;;  %v2423_v11 = vadd.f32 %v2422_v41, %v7391_v53  ;;  %v3735_v61 = vpop.f32.mrf.mxu1 }
 0x3fa   :  { %v6030_v32 = vadd.f32 %v6029_v56, %v4809_v28  ;;  %v4812_v33 = vmax.f32 %v3734_v29, 0.0  ;;  %v3736_v34 = vadd.f32 %v3735_v61, %v7393_v54  ;;  %v2426_v12 = vpop.f32.mrf.mxu0  ;;  %6788 = vmatmul.mubr.msk.bf16.gmra.mxu0 %vm987_vm0, %v7128_v52 }
 0x3fb   :  { %v5920_v48 = vadd.f32 %v5919_v21, %v4810_v37  ;;  %v4811_v38 = vmax.f32 %v2423_v11, 0.0  ;;  %v2427_v13 = vadd.f32 %v2426_v12, %v7385_v49  ;;  %v3739_v42 = vpop.f32.mrf.mxu1  ;;  %6916 = vmatmul.mubr.msk.bf16.gmra.mxu1 %vm987_vm0, %v7128_v52  ;;  %2674 = vmatprep.mubr.bf16.mxu0 %v7130_v1 }
 0x3fc   :  { %v5994_v43 = vadd.f32 %v5993_v25, %v4812_v33  ;;  %v4813_v51 = vmax.f32 %v3736_v34, 0.0  ;;  %v3740_v55 = vadd.f32 %v3739_v42, %v7387_v50  ;;  %v2428_v58 = vpop.f32.mrf.mxu0  ;;  %3987 = vmatprep.mubr.bf16.mxu1 %v7130_v1 }
 0x3fd   :  { %v5957_v27 = vadd.f32 %v5956_v31, %v4811_v38  ;;  %v4814_v62 = vmax.f32 %v2427_v13, 0.0  ;;  %v2429_v63 = vadd.f32 %v2428_v58, %v7391_v53  ;;  %v3741_v39 = vpop.f32.mrf.mxu1 }
 0x3fe   :  { %v6031_v60 = vadd.f32 %v6030_v32, %v4813_v51  ;;  %v4816_v30 = vmax.f32 %v3740_v55, 0.0  ;;  %v3742_v59 = vadd.f32 %v3741_v39, %v7393_v54  ;;  %v2430_v3 = vpop.f32.mrf.mxu0 }
 0x3ff   :  { %v5921_v5 = vadd.f32 %v5920_v48, %v4814_v62  ;;  %v4815_v0 = vmax.f32 %v2429_v63, 0.0  ;;  %v2431_v6 = vadd.f32 %v2430_v3, %v7385_v49  ;;  %v3743_v46 = vpop.f32.mrf.mxu1 }
 0x400   :  { %v5995_v1 = vadd.f32 %v5994_v43, %v4816_v30  ;;  %v4817_v7 = vmax.f32 %v3742_v59, 0.0  ;;  %v3744_v14 = vadd.f32 %v3743_v46, %v7387_v50  ;;  %v2432_v47 = vpop.f32.mrf.mxu0 }
 0x401   :  { %v5958_v8 = vadd.f32 %v5957_v27, %v4815_v0  ;;  %v4818_v9 = vmax.f32 %v2431_v6, 0.0  ;;  %v2433_v10 = vadd.f32 %v2432_v47, %v7391_v53  ;;  %v3745_v44 = vpop.f32.mrf.mxu1 }
 0x402   :  { %v6032_v15 = vadd.f32 %v6031_v60, %v4817_v7  ;;  %v4820_v16 = vmax.f32 %v3744_v14, 0.0  ;;  %v3746_v17 = vadd.f32 %v3745_v44, %v7393_v54  ;;  %v2436_v18 = vpop.f32.mrf.mxu0  ;;  %6789 = vmatmul.mubr.msk.bf16.gmra.mxu0 %vm987_vm0, %v7129_v4 }
 0x403   :  { %v5922_v35 = vadd.f32 %v5921_v5, %v4818_v9  ;;  %v4819_v22 = vmax.f32 %v2433_v10, 0.0  ;;  %v2437_v56 = vadd.f32 %v2436_v18, %v7385_v49  ;;  %v3749_v19 = vpop.f32.mrf.mxu1  ;;  %6917 = vmatmul.mubr.msk.bf16.gmra.mxu1 %vm987_vm0, %v7129_v4 }
 0x404   :  { %v5996_v20 = vadd.f32 %v5995_v1, %v4820_v16  ;;  %v4821_v40 = vmax.f32 %v3746_v17, 0.0  ;;  %v3750_v52 = vadd.f32 %v3749_v19, %v7387_v50  ;;  %v2438_v21 = vpop.f32.mrf.mxu0 }
 0x405   :  { %v5959_v45 = vadd.f32 %v5958_v8, %v4819_v22  ;;  %v4822_v26 = vmax.f32 %v2437_v56, 0.0  ;;  %v2439_v24 = vadd.f32 %v2438_v21, %v7391_v53  ;;  %v3751_v25 = vpop.f32.mrf.mxu1 }
 0x406   :  { %v6033_v28 = vadd.f32 %v6032_v15, %v4821_v40  ;;  %v4824_v29 = vmax.f32 %v3750_v52, 0.0  ;;  %v3752_v41 = vadd.f32 %v3751_v25, %v7393_v54  ;;  %v2440_v31 = vpop.f32.mrf.mxu0 }
 0x407   :  { %v5923_v37 = vadd.f32 %v5922_v35, %v4822_v26  ;;  %v4823_v11 = vmax.f32 %v2439_v24, 0.0  ;;  %v2441_v61 = vadd.f32 %v2440_v31, %v7385_v49  ;;  %v3753_v32 = vpop.f32.mrf.mxu1 }
 0x408   :  { %v5997_v33 = vadd.f32 %v5996_v20, %v4824_v29  ;;  %v4825_v34 = vmax.f32 %v3752_v41, 0.0  ;;  %v3754_v12 = vadd.f32 %v3753_v32, %v7387_v50  ;;  %v2442_v48 = vpop.f32.mrf.mxu0 }
 0x409   :  { %v5960_v38 = vadd.f32 %v5959_v45, %v4823_v11  ;;  %v4826_v13 = vmax.f32 %v2441_v61, 0.0  ;;  %v2443_v42 = vadd.f32 %v2442_v48, %v7391_v53  ;;  %v3755_v43 = vpop.f32.mrf.mxu1 }
 0x40a   :  { %v6034_v51 = vadd.f32 %v6033_v28, %v4825_v34  ;;  %v4828_v55 = vmax.f32 %v3754_v12, 0.0  ;;  %v3756_v58 = vadd.f32 %v3755_v43, %v7393_v54  ;;  %v2446_v27 = vpop.f32.mrf.mxu0 }
 0x40b   :  { %v5924_v62 = vadd.f32 %v5923_v37, %v4826_v13  ;;  %v4827_v63 = vmax.f32 %v2443_v42, 0.0  ;;  %v2447_v39 = vadd.f32 %v2446_v27, %v7385_v49  ;;  %v3759_v60 = vpop.f32.mrf.mxu1 }
 0x40c   :  { %v5998_v30 = vadd.f32 %v5997_v33, %v4828_v55  ;;  %v4829_v59 = vmax.f32 %v3756_v58, 0.0  ;;  %v3760_v3 = vadd.f32 %v3759_v60, %v7387_v50  ;;  %v2448_v4 = vpop.f32.mrf.mxu0 }
 0x40d   :  { %v5961_v5 = vadd.f32 %v5960_v38, %v4827_v63  ;;  %v4830_v0 = vmax.f32 %v2447_v39, 0.0  ;;  %v2449_v6 = vadd.f32 %v2448_v4, %v7391_v53  ;;  %v3761_v46 = vpop.f32.mrf.mxu1 }
 0x40e   :  { %v6035_v1 = vadd.f32 %v6034_v51, %v4829_v59  ;;  %v4832_v7 = vmax.f32 %v3760_v3, 0.0  ;;  %v3762_v14 = vadd.f32 %v3761_v46, %v7393_v54  ;;  %v2450_v47 = vpop.f32.mrf.mxu0 }
 0x40f   :  { %v5925_v8 = vadd.f32 %v5924_v62, %v4830_v0  ;;  %v4831_v9 = vmax.f32 %v2449_v6, 0.0  ;;  %v2451_v10 = vadd.f32 %v2450_v47, %v7385_v49  ;;  %v3763_v44 = vpop.f32.mrf.mxu1 }
 0x410   :  { %v5999_v15 = vadd.f32 %v5998_v30, %v4832_v7  ;;  %v4833_v16 = vmax.f32 %v3762_v14, 0.0  ;;  %v3764_v17 = vadd.f32 %v3763_v44, %v7387_v50  ;;  %v2452_v18 = vpop.f32.mrf.mxu0 }
 0x411   :  { %v5962_v35 = vadd.f32 %v5961_v5, %v4831_v9  ;;  %v4834_v22 = vmax.f32 %v2451_v10, 0.0  ;;  %v2453_v56 = vadd.f32 %v2452_v18, %v7391_v53  ;;  %v3765_v19 = vpop.f32.mrf.mxu1 }
 0x412   :  { %v6036_v20 = vadd.f32 %v6035_v1, %v4833_v16  ;;  %v4836_v40 = vmax.f32 %v3764_v17, 0.0  ;;  %v3766_v52 = vadd.f32 %v3765_v19, %v7393_v54  ;;  %v2456_v21 = vpop.f32.mrf.mxu0 }
 0x413   :  { %v5926_v45 = vadd.f32 %v5925_v8, %v4834_v22  ;;  %v4835_v26 = vmax.f32 %v2453_v56, 0.0  ;;  %v2457_v24 = vadd.f32 %v2456_v21, %v7385_v49  ;;  %v3769_v25 = vpop.f32.mrf.mxu1 }
 0x414   :  { %v6000_v28 = vadd.f32 %v5999_v15, %v4836_v40  ;;  %v4837_v29 = vmax.f32 %v3766_v52, 0.0  ;;  %v3770_v41 = vadd.f32 %v3769_v25, %v7387_v50  ;;  %v2458_v31 = vpop.f32.mrf.mxu0 }
 0x415   :  { %v5963_v37 = vadd.f32 %v5962_v35, %v4835_v26  ;;  %v4838_v11 = vmax.f32 %v2457_v24, 0.0  ;;  %v2459_v61 = vadd.f32 %v2458_v31, %v7391_v53  ;;  %v3771_v32 = vpop.f32.mrf.mxu1 }
 0x416   :  { %v6037_v33 = vadd.f32 %v6036_v20, %v4837_v29  ;;  %v4840_v34 = vmax.f32 %v3770_v41, 0.0  ;;  %v3772_v12 = vadd.f32 %v3771_v32, %v7393_v54  ;;  %v2460_v48 = vpop.f32.mrf.mxu0 }
 0x417   :  { %v5927_v38 = vadd.f32 %v5926_v45, %v4838_v11  ;;  %v4839_v13 = vmax.f32 %v2459_v61, 0.0  ;;  %v2461_v42 = vadd.f32 %v2460_v48, %v7385_v49  ;;  %v3773_v43 = vpop.f32.mrf.mxu1 }
 0x418   :  { %v6001_v51 = vadd.f32 %v6000_v28, %v4840_v34  ;;  %v4841_v55 = vmax.f32 %v3772_v12, 0.0  ;;  %v3774_v58 = vadd.f32 %v3773_v43, %v7387_v50  ;;  %v2462_v27 = vpop.f32.mrf.mxu0 }
 0x419   :  { %v5964_v62 = vadd.f32 %v5963_v37, %v4839_v13  ;;  %v4842_v63 = vmax.f32 %v2461_v42, 0.0  ;;  %v2463_v39 = vadd.f32 %v2462_v27, %v7391_v53  ;;  %v3775_v60 = vpop.f32.mrf.mxu1  ;;  %v6239_v13 = vld [vmem:[%s9676_s3] sm:$0xff] }
 0x41a   :  { %v6038_v30 = vadd.f32 %v6037_v33, %v4841_v55  ;;  %v4844_v59 = vmax.f32 %v3774_v58, 0.0  ;;  %v3776_v3 = vadd.f32 %v3775_v60, %v7393_v54  ;;  %v2466_v4 = vpop.f32.mrf.mxu0  ;;  %v6271_v60 = vld [vmem:[%s9676_s3 + $0x100] sm:$0xff] }
 0x41b   :  { %v5928_v5 = vadd.f32 %v5927_v38, %v4842_v63  ;;  %v4843_v0 = vmax.f32 %v2463_v39, 0.0  ;;  %v2467_v6 = vadd.f32 %v2466_v4, %v7385_v49  ;;  %v3779_v46 = vpop.f32.mrf.mxu1  ;;  %v6255_v38 = vld [vmem:[%s9676_s3 + $0x80] sm:$0xff] }
 0x41c   :  { %v6002_v1 = vadd.f32 %v6001_v51, %v4844_v59  ;;  %v4845_v7 = vmax.f32 %v3776_v3, 0.0  ;;  %v3780_v14 = vadd.f32 %v3779_v46, %v7387_v50  ;;  %v2468_v47 = vpop.f32.mrf.mxu0  ;;  %6949 = vmatprep.subr.mxu0 %v6255_v38  ;;  %v6287_v39 = vld [vmem:[%s9676_s3 + $0x180] sm:$0xff] }
 0x41d   :  { %v5965_v8 = vadd.f32 %v5964_v62, %v4843_v0  ;;  %v4846_v9 = vmax.f32 %v2467_v6, 0.0  ;;  %v2469_v10 = vadd.f32 %v2468_v47, %v7391_v53  ;;  %v3781_v44 = vpop.f32.mrf.mxu1  ;;  %6950 = vmatpush3.msra.mxu0 %v6239_v13  ;;  %6984 = vmatprep.subr.mxu1 %v6287_v39 }
 0x41e   :  { %v6039_v15 = vadd.f32 %v6038_v30, %v4845_v7  ;;  %v4848_v16 = vmax.f32 %v3780_v14, 0.0  ;;  %v3782_v17 = vadd.f32 %v3781_v44, %v7393_v54  ;;  %v2470_v18 = vpop.f32.mrf.mxu0  ;;  %6985 = vmatpush3.msra.mxu1 %v6271_v60 }
 0x41f   :  { %v5929_v35 = vadd.f32 %v5928_v5, %v4846_v9  ;;  %v4847_v22 = vmax.f32 %v2469_v10, 0.0  ;;  %v2471_v56 = vadd.f32 %v2470_v18, %v7385_v49  ;;  %v3783_v19 = vpop.f32.mrf.mxu1 }
 0x420   :  { %v6003_v20 = vadd.f32 %v6002_v1, %v4848_v16  ;;  %v4849_v40 = vmax.f32 %v3782_v17, 0.0  ;;  %v3784_v52 = vadd.f32 %v3783_v19, %v7387_v50  ;;  %v2472_v21 = vpop.f32.mrf.mxu0 }
 0x421   :  { %v5966_v45 = vadd.f32 %v5965_v8, %v4847_v22  ;;  %v4850_v26 = vmax.f32 %v2471_v56, 0.0  ;;  %v2473_v24 = vadd.f32 %v2472_v21, %v7391_v53  ;;  %v3785_v25 = vpop.f32.mrf.mxu1 }
 0x422   :  { %v6040_v28 = vadd.f32 %v6039_v15, %v4849_v40  ;;  %v4852_v29 = vmax.f32 %v3784_v52, 0.0  ;;  %v3786_v41 = vadd.f32 %v3785_v25, %v7393_v54  ;;  %v2476_v31 = vpop.f32.mrf.mxu0 }
 0x423   :  { %v5930_v37 = vadd.f32 %v5929_v35, %v4850_v26  ;;  %v4851_v11 = vmax.f32 %v2473_v24, 0.0  ;;  %v2477_v61 = vadd.f32 %v2476_v31, %v7385_v49  ;;  %v3789_v32 = vpop.f32.mrf.mxu1 }
 0x424   :  { %v6004_v33 = vadd.f32 %v6003_v20, %v4852_v29  ;;  %v4853_v34 = vmax.f32 %v3786_v41, 0.0  ;;  %v3790_v12 = vadd.f32 %v3789_v32, %v7387_v50  ;;  %v2478_v48 = vpop.f32.mrf.mxu0 }
 0x425   :  { %v5967_v42 = vadd.f32 %v5966_v45, %v4851_v11  ;;  %v4854_v43 = vmax.f32 %v2477_v61, 0.0  ;;  %v2479_v51 = vadd.f32 %v2478_v48, %v7391_v53  ;;  %v3791_v55 = vpop.f32.mrf.mxu1 }
 0x426   :  { %v6041_v58 = vadd.f32 %v6040_v28, %v4853_v34  ;;  %v4856_v27 = vmax.f32 %v3790_v12, 0.0  ;;  %v3792_v62 = vadd.f32 %v3791_v55, %v7393_v54  ;;  %v2480_v63 = vpop.f32.mrf.mxu0 }
 0x427   :  { %v5931_v30 = vadd.f32 %v5930_v37, %v4854_v43  ;;  %v4855_v59 = vmax.f32 %v2479_v51, 0.0  ;;  %v2481_v3 = vadd.f32 %v2480_v63, %v7385_v49  ;;  %v3793_v4 = vpop.f32.mrf.mxu1 }
 0x428   :  { %v6005_v5 = vadd.f32 %v6004_v33, %v4856_v27  ;;  %v4857_v0 = vmax.f32 %v3792_v62, 0.0  ;;  %v3794_v6 = vadd.f32 %v3793_v4, %v7387_v50  ;;  %v2482_v46 = vpop.f32.mrf.mxu0 }
 0x429   :  { %v5968_v1 = vadd.f32 %v5967_v42, %v4855_v59  ;;  %v4858_v7 = vmax.f32 %v2481_v3, 0.0  ;;  %v2483_v14 = vadd.f32 %v2482_v46, %v7391_v53  ;;  %v3795_v47 = vpop.f32.mrf.mxu1 }
 0x42a   :  { %v6042_v8 = vadd.f32 %v6041_v58, %v4857_v0  ;;  %v4860_v9 = vmax.f32 %v3794_v6, 0.0  ;;  %v3796_v10 = vadd.f32 %v3795_v47, %v7393_v54  ;;  %v2486_v44 = vpop.f32.mrf.mxu0 }
 0x42b   :  { %v5932_v15 = vadd.f32 %v5931_v30, %v4858_v7  ;;  %v4859_v16 = vmax.f32 %v2483_v14, 0.0  ;;  %v2487_v17 = vadd.f32 %v2486_v44, %v7385_v49  ;;  %v3799_v18 = vpop.f32.mrf.mxu1 }
 0x42c   :  { %v6006_v35 = vadd.f32 %v6005_v5, %v4860_v9  ;;  %v4861_v22 = vmax.f32 %v3796_v10, 0.0  ;;  %v3800_v56 = vadd.f32 %v3799_v18, %v7387_v50  ;;  %v2488_v19 = vpop.f32.mrf.mxu0 }
 0x42d   :  { %v5969_v20 = vadd.f32 %v5968_v1, %v4859_v16  ;;  %v4862_v40 = vmax.f32 %v2487_v17, 0.0  ;;  %v2489_v52 = vadd.f32 %v2488_v19, %v7391_v53  ;;  %v3801_v21 = vpop.f32.mrf.mxu1 }
 0x42e   :  { %v6043_v45 = vadd.f32 %v6042_v8, %v4861_v22  ;;  %v4864_v26 = vmax.f32 %v3800_v56, 0.0  ;;  %v3802_v24 = vadd.f32 %v3801_v21, %v7393_v54  ;;  %v2490_v25 = vpop.f32.mrf.mxu0 }
 0x42f   :  { %v5933_v28 = vadd.f32 %v5932_v15, %v4862_v40  ;;  %v4863_v29 = vmax.f32 %v2489_v52, 0.0  ;;  %v2491_v41 = vadd.f32 %v2490_v25, %v7385_v49  ;;  %v3803_v31 = vpop.f32.mrf.mxu1 }
 0x430   :  { %v6007_v37 = vadd.f32 %v6006_v35, %v4864_v26  ;;  %v4865_v11 = vmax.f32 %v3802_v24, 0.0  ;;  %v3804_v61 = vadd.f32 %v3803_v31, %v7387_v50  ;;  %v2492_v32 = vpop.f32.mrf.mxu0 }
 0x431   :  { %v5970_v33 = vadd.f32 %v5969_v20, %v4863_v29  ;;  %v4866_v34 = vmax.f32 %v2491_v41, 0.0  ;;  %v2493_v12 = vadd.f32 %v2492_v32, %v7391_v53  ;;  %v3805_v48 = vpop.f32.mrf.mxu1 }
 0x432   :  { %v6044_v38 = vadd.f32 %v6043_v45, %v4865_v11  ;;  %v4868_v13 = vmax.f32 %v3804_v61, 0.0  ;;  %v3806_v42 = vadd.f32 %v3805_v48, %v7393_v54  ;;  %v2496_v43 = vpop.f32.mrf.mxu0 }
 0x433   :  { %v5934_v51 = vadd.f32 %v5933_v28, %v4866_v34  ;;  %v4867_v55 = vmax.f32 %v2493_v12, 0.0  ;;  %v2497_v58 = vadd.f32 %v2496_v43, %v7385_v49  ;;  %v3809_v27 = vpop.f32.mrf.mxu1 }
 0x434   :  { %v6008_v62 = vadd.f32 %v6007_v37, %v4868_v13  ;;  %v4869_v63 = vmax.f32 %v3806_v42, 0.0  ;;  %v3810_v39 = vadd.f32 %v3809_v27, %v7387_v50  ;;  %v2498_v60 = vpop.f32.mrf.mxu0 }
 0x435   :  { %v5971_v30 = vadd.f32 %v5970_v33, %v4867_v55  ;;  %v4870_v59 = vmax.f32 %v2497_v58, 0.0  ;;  %v2499_v3 = vadd.f32 %v2498_v60, %v7391_v53  ;;  %v3811_v4 = vpop.f32.mrf.mxu1 }
 0x436   :  { %v6045_v5 = vadd.f32 %v6044_v38, %v4869_v63  ;;  %v4872_v0 = vmax.f32 %v3810_v39, 0.0  ;;  %v3812_v6 = vadd.f32 %v3811_v4, %v7393_v54  ;;  %v2500_v46 = vpop.f32.mrf.mxu0 }
 0x437   :  { %v5935_v1 = vadd.f32 %v5934_v51, %v4870_v59  ;;  %v4871_v7 = vmax.f32 %v2499_v3, 0.0  ;;  %v2501_v14 = vadd.f32 %v2500_v46, %v7385_v49  ;;  %v3813_v47 = vpop.f32.mrf.mxu1 }
 0x438   :  { %v6009_v8 = vadd.f32 %v6008_v62, %v4872_v0  ;;  %v4873_v9 = vmax.f32 %v3812_v6, 0.0  ;;  %v3814_v10 = vadd.f32 %v3813_v47, %v7387_v50  ;;  %v2502_v44 = vpop.f32.mrf.mxu0 }
 0x439   :  { %v5972_v15 = vadd.f32 %v5971_v30, %v4871_v7  ;;  %v4874_v16 = vmax.f32 %v2501_v14, 0.0  ;;  %v2503_v17 = vadd.f32 %v2502_v44, %v7391_v53  ;;  %v3815_v18 = vpop.f32.mrf.mxu1 }
 0x43a   :  { %v6046_v35 = vadd.f32 %v6045_v5, %v4873_v9  ;;  %v4876_v22 = vmax.f32 %v3814_v10, 0.0  ;;  %v3816_v56 = vadd.f32 %v3815_v18, %v7393_v54  ;;  %v2506_v19 = vpop.f32.mrf.mxu0 }
 0x43b   :  { %v5936_v20 = vadd.f32 %v5935_v1, %v4874_v16  ;;  %v4875_v40 = vmax.f32 %v2503_v17, 0.0  ;;  %v2507_v52 = vadd.f32 %v2506_v19, %v7385_v49  ;;  %v3819_v21 = vpop.f32.mrf.mxu1 }
 0x43c   :  { %v6010_v45 = vadd.f32 %v6009_v8, %v4876_v22  ;;  %v4877_v26 = vmax.f32 %v3816_v56, 0.0  ;;  %v3820_v24 = vadd.f32 %v3819_v21, %v7387_v50  ;;  %v2508_v25 = vpop.f32.mrf.mxu0 }
 0x43d   :  { %v5973_v28 = vadd.f32 %v5972_v15, %v4875_v40  ;;  %v4878_v29 = vmax.f32 %v2507_v52, 0.0  ;;  %v2509_v41 = vadd.f32 %v2508_v25, %v7391_v53  ;;  %v3821_v31 = vpop.f32.mrf.mxu1 }
 0x43e   :  { %v6047_v37 = vadd.f32 %v6046_v35, %v4877_v26  ;;  %v4880_v11 = vmax.f32 %v3820_v24, 0.0  ;;  %v3822_v61 = vadd.f32 %v3821_v31, %v7393_v54  ;;  %v2510_v32 = vpop.f32.mrf.mxu0 }
 0x43f   :  { %v5937_v33 = vadd.f32 %v5936_v20, %v4878_v29  ;;  %v4879_v34 = vmax.f32 %v2509_v41, 0.0  ;;  %v2511_v12 = vadd.f32 %v2510_v32, %v7385_v49  ;;  %v3823_v48 = vpop.f32.mrf.mxu1 }
 0x440   :  { %v6011_v38 = vadd.f32 %v6010_v45, %v4880_v11  ;;  %v4881_v13 = vmax.f32 %v3822_v61, 0.0  ;;  %v3824_v42 = vadd.f32 %v3823_v48, %v7387_v50  ;;  %v2512_v43 = vpop.f32.mrf.mxu0 }
 0x441   :  { %v5974_v51 = vadd.f32 %v5973_v28, %v4879_v34  ;;  %v4882_v55 = vmax.f32 %v2511_v12, 0.0  ;;  %v2513_v58 = vadd.f32 %v2512_v43, %v7391_v53  ;;  %v3825_v27 = vpop.f32.mrf.mxu1 }
 0x442   :  { %v6048_v62 = vadd.f32 %v6047_v37, %v4881_v13  ;;  %v4884_v63 = vmax.f32 %v3824_v42, 0.0  ;;  %v3826_v39 = vadd.f32 %v3825_v27, %v7393_v54  ;;  %v2516_v60 = vpop.f32.mrf.mxu0 }
 0x443   :  { %v5938_v30 = vadd.f32 %v5937_v33, %v4882_v55  ;;  %v4883_v59 = vmax.f32 %v2513_v58, 0.0  ;;  %v2517_v3 = vadd.f32 %v2516_v60, %v7385_v49  ;;  %v3829_v4 = vpop.f32.mrf.mxu1 }
 0x444   :  { %v6012_v5 = vadd.f32 %v6011_v38, %v4884_v63  ;;  %v4885_v0 = vmax.f32 %v3826_v39, 0.0  ;;  %v3830_v6 = vadd.f32 %v3829_v4, %v7387_v50  ;;  %v2518_v46 = vpop.f32.mrf.mxu0 }
 0x445   :  { %v5975_v1 = vadd.f32 %v5974_v51, %v4883_v59  ;;  %v4886_v7 = vmax.f32 %v2517_v3, 0.0  ;;  %v2519_v14 = vadd.f32 %v2518_v46, %v7391_v53  ;;  %v3831_v47 = vpop.f32.mrf.mxu1 }
 0x446   :  { %v6049_v8 = vadd.f32 %v6048_v62, %v4885_v0  ;;  %v4888_v9 = vmax.f32 %v3830_v6, 0.0  ;;  %v3832_v10 = vadd.f32 %v3831_v47, %v7393_v54  ;;  %v2520_v44 = vpop.f32.mrf.mxu0 }
 0x447   :  { %v5939_v15 = vadd.f32 %v5938_v30, %v4886_v7  ;;  %v4887_v16 = vmax.f32 %v2519_v14, 0.0  ;;  %v2521_v17 = vadd.f32 %v2520_v44, %v7385_v49  ;;  %v3833_v18 = vpop.f32.mrf.mxu1 }
 0x448   :  { %v6013_v35 = vadd.f32 %v6012_v5, %v4888_v9  ;;  %v4889_v22 = vmax.f32 %v3832_v10, 0.0  ;;  %v3834_v56 = vadd.f32 %v3833_v18, %v7387_v50  ;;  %v2522_v19 = vpop.f32.mrf.mxu0 }
 0x449   :  { %v5976_v20 = vadd.f32 %v5975_v1, %v4887_v16  ;;  %v4890_v40 = vmax.f32 %v2521_v17, 0.0  ;;  %v2523_v52 = vadd.f32 %v2522_v19, %v7391_v53  ;;  %v3835_v21 = vpop.f32.mrf.mxu1 }
 0x44a   :  { %v6050_v45 = vadd.f32 %v6049_v8, %v4889_v22  ;;  %v4892_v26 = vmax.f32 %v3834_v56, 0.0  ;;  %v3836_v24 = vadd.f32 %v3835_v21, %v7393_v54  ;;  %v9311_v25 = vpop.f32.mrf.mxu0 }
 0x44b   :  { %v5940_v28 = vadd.f32 %v5939_v15, %v4890_v40  ;;  %v4891_v29 = vmax.f32 %v2523_v52, 0.0  ;;  %v9313_v41 = vpop.f32.mrf.mxu1 }
 0x44c   :  { %v6014_v31 = vadd.f32 %v6013_v35, %v4892_v26  ;;  %v4893_v37 = vmax.f32 %v3836_v24, 0.0  ;;  %v9315_v11 = vpop.f32.mrf.mxu0 }
 0x44d   :  { %v5941_v61 = vrot.slane %v5940_v28, 4  ;;  %v5977_v32 = vadd.f32 %v5976_v20, %v4891_v29  ;;  %v9317_v33 = vpop.f32.mrf.mxu1 }
 0x44e   :  { %v6015_v34 = vrot.slane %v6014_v31, 4  ;;  %v6051_v12 = vadd.f32 %v6050_v45, %v4893_v37  ;;  %v2530_v48 = vpop.f32.mrf.mxu0 }
 0x44f   :  { %v5942_v38 = vadd.f32 %v5941_v61, %v5940_v28  ;;  %v5978_v13 = vrot.slane %v5977_v32, 4  ;;  %v3843_v42 = vpop.f32.mrf.mxu1 }
 0x450   :  { %v6052_v43 = vrot.slane %v6051_v12, 4  ;;  %v2532_v51 = vpop.f32.mrf.mxu0  ;;  %v6016_v55 = vadd.f32 %v6015_v34, %v6014_v31 }
 0x451   :  { %v5979_v58 = vadd.f32 %v5978_v13, %v5977_v32  ;;  %v3845_v27 = vpop.f32.mrf.mxu1  ;;  %v5943_v63 = vrot.slane %v5942_v38, 2 }
 0x452   :  { %v9319_v62 = vpop.f32.mrf.mxu0  ;;  %v6053_v60 = vadd.f32 %v6052_v43, %v6051_v12  ;;  %v6017_v59 = vrot.slane %v6016_v55, 2 }
 0x453   :  { %v9321_v39 = vpop.f32.mrf.mxu1  ;;  %v5980_v3 = vrot.slane %v5979_v58, 2  ;;  %v5944_v0 = vadd.f32 %v5943_v63, %v5942_v38 }
 0x454   :  { %v9323_v30 = vpop.f32.mrf.mxu0  ;;  %v6054_v46 = vrot.slane %v6053_v60, 2  ;;  %v6018_v7 = vadd.f32 %v6017_v59, %v6016_v55  ;;  %v2531_v59 = vadd.f32 %v2530_v48, %v7385_v49  ;;  %v2529_v48 = vadd.f32 %v9315_v11, %v7391_v53 }
 0x455   :  { %v9325_v4 = vpop.f32.mrf.mxu1  ;;  %v5981_v14 = vadd.f32 %v5980_v3, %v5979_v58  ;;  %v5945_v9 = vrot.slane %v5944_v0, 1  ;;  %v3844_v3 = vadd.f32 %v3843_v42, %v7387_v50  ;;  %v3842_v42 = vadd.f32 %v9317_v33, %v7393_v54 }
 0x456   :  { %v9327_v5 = vpop.f32.mrf.mxu0  ;;  %v6055_v44 = vadd.f32 %v6054_v46, %v6053_v60  ;;  %v6019_v16 = vrot.slane %v6018_v7, 1  ;;  %v2539_v11 = vadd.f32 %v9323_v30, %v7391_v53  ;;  %v3852_v33 = vadd.f32 %v9325_v4, %v7393_v54 }
 0x457   :  { %v9329_v6 = vpop.f32.mrf.mxu1  ;;  %v5982_v17 = vrot.slane %v5981_v14, 1  ;;  %v5946_v22 = vadd.f32 %v5945_v9, %v5944_v0  ;;  %v2527_v0 = vadd.f32 %v9311_v25, %v7385_v49  ;;  %v2537_v25 = vadd.f32 %v9319_v62, %v7385_v49 }
 0x458   :  { %v9331_v1 = vpop.f32.mrf.mxu0  ;;  %v6056_v19 = vrot.slane %v6055_v44, 1  ;;  %v6020_v40 = vadd.f32 %v6019_v16, %v6018_v7  ;;  %v3846_v7 = vadd.f32 %v3845_v27, %v7393_v54 }
 0x459   :  { %v9333_v47 = vpop.f32.mrf.mxu1  ;;  %v5983_v21 = vadd.f32 %v5982_v17, %v5981_v14  ;;  %v6231_v26 = vmul.f32 0.00390625, %v5946_v22  ;;  %v4894_v27 = vmax.f32 %v2527_v0, 0.0  ;;  %v2543_v30 = vadd.f32 %v9331_v1, %v7391_v53 }
 0x45a   :  { %v9335_v8 = vpop.f32.mrf.mxu0  ;;  %v6057_v31 = vadd.f32 %v6056_v19, %v6055_v44  ;;  %v6233_v37 = vmul.f32 0.00390625, %v6020_v40  ;;  %v4900_v44 = vmax.f32 %v3844_v3, 0.0  ;;  %v4901_v19 = vmax.f32 %v3846_v7, 0.0 }
 0x45b   :  { %v9337_v10 = vpop.f32.mrf.mxu1  ;;  %v6232_v28 = vmul.f32 0.00390625, %v5983_v21  ;;  %v9367_v13 = vsel %vm6352_vm6, %v6231_v26, %v9167_v36  ;;  %v2541_v40 = vadd.f32 %v9327_v5, %v7385_v49  ;;  %v4895_v26 = vmax.f32 %v2529_v48, 0.0 }
 0x45c   :  { %v9339_v15 = vpop.f32.mrf.mxu0  ;;  %v6234_v12 = vmul.f32 0.00390625, %v6057_v31  ;;  %v9377_v63 = vsel %vm6352_vm6, %v6233_v37, %v9177_v23  ;;  %v3840_v23 = vadd.f32 %v9313_v41, %v7387_v50  ;;  %v3850_v41 = vadd.f32 %v9321_v39, %v7387_v50 }
 0x45d   :  { %v9341_v18 = vpop.f32.mrf.mxu1  ;;  %v9360_v32 = vsel %vm6352_vm6, %v6232_v28, %v9150_v57  ;;  %v3854_v39 = vadd.f32 %v9329_v6, %v7387_v50  ;;  %v4897_v28 = vmax.f32 %v3842_v42, 0.0  ;;  %v4902_v31 = vmax.f32 %v2537_v25, 0.0 }
 0x45e   :  { %v9343_v35 = vpop.f32.mrf.mxu0  ;;  %v9372_v55 = vsel %vm6352_vm6, %v6234_v12, %v9172_v2  ;;  %v2533_v2 = vadd.f32 %v2532_v51, %v7391_v53  ;;  %v4898_v51 = vmax.f32 %v2531_v59, 0.0  ;;  %v4896_v62 = vmax.f32 %v3840_v23, 0.0 }
 0x45f   :  { %v9345_v56 = vpop.f32.mrf.mxu1  ;;  %v4904_v59 = vmax.f32 %v3850_v41, 0.0  ;;  %v3856_v3 = vadd.f32 %v9333_v47, %v7393_v54  ;;  %v4903_v6 = vmax.f32 %v2539_v11, 0.0  ;;  %v2547_v23 = vadd.f32 %v9335_v8, %v7385_v49 }
 0x460   :  { %v9347_v20 = vpop.f32.mrf.mxu0  ;;  %v4899_v17 = vmax.f32 %v2533_v2, 0.0  ;;  %v6058_v4 = vadd.f32 %v4898_v51, %v4894_v27  ;;  %v6132_v12 = vadd.f32 %v4900_v44, %v4896_v62  ;;  %v4905_v2 = vmax.f32 %v3852_v33, 0.0 }
 0x461   :  { %v9349_v52 = vpop.f32.mrf.mxu1  ;;  %v6169_v48 = vadd.f32 %v4901_v19, %v4897_v28  ;;  %v4906_v1 = vmax.f32 %v2541_v40, 0.0  ;;  %v4908_v42 = vmax.f32 %v3854_v39, 0.0  ;;  %v3860_v25 = vadd.f32 %v9337_v10, %v7387_v50 }
 0x462   :  { %v9351_v45 = vpop.f32.mrf.mxu0  ;;  %v6095_v0 = vadd.f32 %v4899_v17, %v4895_v26  ;;  %v6059_v44 = vadd.f32 %v6058_v4, %v4902_v31  ;;  %v4907_v47 = vmax.f32 %v2543_v30, 0.0  ;;  %v2549_v41 = vadd.f32 %v9339_v15, %v7391_v53 }
 0x463   :  { %v9353_v24 = vpop.f32.mrf.mxu1  ;;  %v3862_v27 = vadd.f32 %v9341_v18, %v7393_v54  ;;  %v6133_v8 = vadd.f32 %v6132_v12, %v4904_v59  ;;  %v4909_v11 = vmax.f32 %v3856_v3, 0.0  ;;  %v2551_v33 = vadd.f32 %v9343_v35, %v7385_v49 }
 0x464   :  { %v9355_v29 = vpop.f32.mrf.mxu0  ;;  %v3864_v10 = vadd.f32 %v9345_v56, %v7387_v50  ;;  %v6096_v19 = vadd.f32 %v6095_v0, %v4903_v6  ;;  %v6170_v40 = vadd.f32 %v6169_v48, %v4905_v2  ;;  %v4910_v39 = vmax.f32 %v2547_v23, 0.0 }
 0x465   :  { %v9357_v61 = vpop.f32.mrf.mxu1  ;;  %v2553_v15 = vadd.f32 %v9347_v20, %v7391_v53  ;;  %v6060_v18 = vadd.f32 %v6059_v44, %v4906_v1  ;;  %v6134_v28 = vadd.f32 %v6133_v8, %v4908_v42  ;;  %v4912_v31 = vmax.f32 %v3860_v25, 0.0 }
 0x466   :  { %v9362_v34 = vpop.f32.mrf.mxu0  ;;  %v3866_v30 = vadd.f32 %v9349_v52, %v7393_v54  ;;  %v6097_v4 = vadd.f32 %v6096_v19, %v4907_v47  ;;  %v4911_v56 = vmax.f32 %v2549_v41, 0.0  ;;  %v4913_v12 = vmax.f32 %v3862_v27, 0.0 }
 0x467   :  { %v9364_v38 = vpop.f32.mrf.mxu1  ;;  %v2557_v59 = vadd.f32 %v9351_v45, %v7385_v49  ;;  %v6171_v0 = vadd.f32 %v6170_v40, %v4909_v11  ;;  %v4914_v20 = vmax.f32 %v2551_v33, 0.0  ;;  %v4916_v6 = vmax.f32 %v3864_v10, 0.0 }
 0x468   :  { %v9369_v43 = vpop.f32.mrf.mxu0  ;;  %v3870_v2 = vadd.f32 %v9353_v24, %v7387_v50  ;;  %v6061_v48 = vadd.f32 %v6060_v18, %v4910_v39  ;;  %v4915_v52 = vmax.f32 %v2553_v15, 0.0  ;;  %v2559_v1 = vadd.f32 %v9355_v29, %v7391_v53 }
 0x469   :  { %v9374_v58 = vpop.f32.mrf.mxu1  ;;  %v3872_v42 = vadd.f32 %v9357_v61, %v7393_v54  ;;  %v6135_v45 = vadd.f32 %v6134_v28, %v4912_v31  ;;  %v4917_v44 = vmax.f32 %v3866_v30, 0.0  ;;  %v2561_v47 = vadd.f32 %v9362_v34, %v7385_v49 }
 0x46a   :  { %v9379_v57 = vpop.f32.mrf.mxu0  ;;  %v3874_v24 = vadd.f32 %v9364_v38, %v7387_v50  ;;  %v6098_v27 = vadd.f32 %v6097_v4, %v4911_v56  ;;  %v6172_v8 = vadd.f32 %v6171_v0, %v4913_v12  ;;  %v4918_v11 = vmax.f32 %v2557_v59, 0.0 }
 0x46b   :  { %v9381_v60 = vpop.f32.mrf.mxu1  ;;  %v2563_v29 = vadd.f32 %v9369_v43, %v7391_v53  ;;  %v6062_v61 = vadd.f32 %v6061_v48, %v4914_v20  ;;  %v6136_v10 = vadd.f32 %v6135_v45, %v4916_v6  ;;  %v4920_v19 = vmax.f32 %v3870_v2, 0.0 }
 0x46c   :  { %v9385_v36 = vpop.f32.mrf.mxu0  ;;  %v3876_v40 = vadd.f32 %v9374_v58, %v7393_v54  ;;  %v6099_v39 = vadd.f32 %v6098_v27, %v4915_v52  ;;  %v4919_v38 = vmax.f32 %v2559_v1, 0.0  ;;  %v4921_v15 = vmax.f32 %v3872_v42, 0.0 }
 0x46d   :  { %v9390_v46 = vpop.f32.mrf.mxu1  ;;  %v2567_v18 = vadd.f32 %v9379_v57, %v7385_v49  ;;  %v6173_v31 = vadd.f32 %v6172_v8, %v4917_v44  ;;  %v4922_v43 = vmax.f32 %v2561_v47, 0.0  ;;  %v4924_v30 = vmax.f32 %v3874_v24, 0.0 }
 0x46e   :  { %v9395_v14 = vpop.f32.mrf.mxu0  ;;  %v3880_v4 = vadd.f32 %v9381_v60, %v7387_v50  ;;  %v6063_v12 = vadd.f32 %v6062_v61, %v4918_v11  ;;  %v4923_v58 = vmax.f32 %v2563_v29, 0.0  ;;  %v2569_v59 = vadd.f32 %v9385_v36, %v7391_v53 }
 0x46f   :  { %v9403_v9 = vpop.f32.mrf.mxu1  ;;  %v3882_v0 = vadd.f32 %v9390_v46, %v7393_v54  ;;  %v6137_v57 = vadd.f32 %v6136_v10, %v4920_v19  ;;  %v4925_v6 = vmax.f32 %v3876_v40, 0.0  ;;  %v2571_v2 = vadd.f32 %v9395_v14, %v7385_v49 }
 0x470   :  { %v9407_v16 = vpop.f32.mrf.mxu0  ;;  %v3884_v60 = vadd.f32 %v9403_v9, %v7387_v50  ;;  %v6100_v52 = vadd.f32 %v6099_v39, %v4919_v38  ;;  %v6174_v1 = vadd.f32 %v6173_v31, %v4921_v15  ;;  %v4926_v42 = vmax.f32 %v2567_v18, 0.0 }
 0x471   :  { %v9413_v22 = vpop.f32.mrf.mxu1  ;;  %v2573_v36 = vadd.f32 %v9407_v16, %v7391_v53  ;;  %v6064_v46 = vadd.f32 %v6063_v12, %v4922_v43  ;;  %v6138_v44 = vadd.f32 %v6137_v57, %v4924_v30  ;;  %v4928_v47 = vmax.f32 %v3880_v4, 0.0 }
 0x472   :  { %v9419_v21 = vpop.f32.mrf.mxu0  ;;  %v3886_v24 = vadd.f32 %v9413_v22, %v7393_v54  ;;  %v6101_v27 = vadd.f32 %v6100_v52, %v4923_v58  ;;  %v4927_v9 = vmax.f32 %v2569_v59, 0.0  ;;  %v4929_v8 = vmax.f32 %v3882_v0, 0.0 }
 0x473   :  { %v9423_v37 = vpop.f32.mrf.mxu1  ;;  %v2577_v11 = vadd.f32 %v9419_v21, %v7385_v49  ;;  %v6175_v61 = vadd.f32 %v6174_v1, %v4925_v6  ;;  %v4930_v16 = vmax.f32 %v2571_v2, 0.0  ;;  %v4932_v10 = vmax.f32 %v3884_v60, 0.0 }
 0x474   :  { %v9427_v5 = vpop.f32.mrf.mxu0  ;;  %v3890_v19 = vadd.f32 %v9423_v37, %v7387_v50  ;;  %v6065_v39 = vadd.f32 %v6064_v46, %v4926_v42  ;;  %v4931_v22 = vmax.f32 %v2573_v36, 0.0  ;;  %v6139_v21 = vadd.f32 %v6138_v44, %v4928_v47 }
 0x475   :  { %v9431_v7 = vpop.f32.mrf.mxu1  ;;  %v2579_v38 = vadd.f32 %v9427_v5, %v7391_v53  ;;  %v4933_v31 = vmax.f32 %v3886_v24, 0.0  ;;  %v6102_v4 = vadd.f32 %v6101_v27, %v4927_v9  ;;  %v6176_v12 = vadd.f32 %v6175_v61, %v4929_v8 }
 0x476   :  { %v9435_v51 = vpop.f32.mrf.mxu0  ;;  %v3892_v15 = vadd.f32 %v9431_v7, %v7393_v54  ;;  %v4934_v58 = vmax.f32 %v2577_v11, 0.0  ;;  %v6066_v7 = vadd.f32 %v6065_v39, %v4930_v16  ;;  %v6140_v0 = vadd.f32 %v6139_v21, %v4932_v10 }
 0x477   :  { %v9441_v17 = vpop.f32.mrf.mxu1  ;;  %v2581_v43 = vadd.f32 %v9435_v51, %v7385_v49  ;;  %v4936_v57 = vmax.f32 %v3890_v19, 0.0  ;;  %v6103_v2 = vadd.f32 %v6102_v4, %v4931_v22  ;;  %v6177_v42 = vadd.f32 %v6176_v12, %v4933_v31 }
 0x478   :  { %v9447_v62 = vpop.f32.mrf.mxu0  ;;  %v3894_v37 = vadd.f32 %v9441_v17, %v7387_v50  ;;  %v4935_v17 = vmax.f32 %v2579_v38, 0.0  ;;  %v4937_v60 = vmax.f32 %v3892_v15, 0.0  ;;  %v6067_v47 = vadd.f32 %v6066_v7, %v4934_v58 }
 0x479   :  { %v9451_v26 = vpop.f32.mrf.mxu1  ;;  %v2583_v5 = vadd.f32 %v9447_v62, %v7391_v53  ;;  %v4938_v62 = vmax.f32 %v2581_v43, 0.0 }
 0x47a   :  { %v9455_v35 = vpop.f32.mrf.mxu0  ;;  %v3896_v6 = vadd.f32 %v9451_v26, %v7393_v54  ;;  %v4940_v36 = vmax.f32 %v3894_v37, 0.0  ;;  %v6104_v16 = vadd.f32 %v6103_v2, %v4935_v17  ;;  %v6178_v10 = vadd.f32 %v6177_v42, %v4937_v60 }
 0x47b   :  { %v9459_v3 = vpop.f32.mrf.mxu1  ;;  %v2587_v52 = vadd.f32 %v9455_v35, %v7385_v49  ;;  %v4939_v26 = vmax.f32 %v2583_v5, 0.0  ;;  %v6141_v35 = vadd.f32 %v6140_v0, %v4936_v57 }
 0x47c   :  { %v9463_v23 = vpop.f32.mrf.mxu0  ;;  %v3900_v46 = vadd.f32 %v9459_v3, %v7387_v50  ;;  %v4941_v8 = vmax.f32 %v3896_v6, 0.0 }
 0x47d   :  { %v9469_v25 = vpop.f32.mrf.mxu1  ;;  %v2589_v24 = vadd.f32 %v9463_v23, %v7391_v53  ;;  %v4942_v19 = vmax.f32 %v2587_v52, 0.0  ;;  %v6142_v22 = vadd.f32 %v6141_v35, %v4940_v36  ;;  %v6105_v21 = vadd.f32 %v6104_v16, %v4939_v26 }
 0x47e   :  { %v9475_v41 = vpop.f32.mrf.mxu0  ;;  %v3902_v27 = vadd.f32 %v9469_v25, %v7393_v54  ;;  %v6068_v25 = vadd.f32 %v6067_v47, %v4938_v62  ;;  %v4944_v38 = vmax.f32 %v3900_v46, 0.0  ;;  %v6179_v4 = vadd.f32 %v6178_v10, %v4941_v8 }
 0x47f   :  { %v9479_v33 = vpop.f32.mrf.mxu1  ;;  %v2591_v11 = vadd.f32 %v9475_v41, %v7385_v49 }
 0x480   :  { %v9483_v34 = vpop.f32.mrf.mxu0  ;;  %v3904_v3 = vadd.f32 %v9479_v33, %v7387_v50  ;;  %v4943_v33 = vmax.f32 %v2589_v24, 0.0  ;;  %v4945_v31 = vmax.f32 %v3902_v27, 0.0  ;;  %v6069_v7 = vadd.f32 %v6068_v25, %v4942_v19 }
 0x481   :  { %v9487_v28 = vpop.f32.mrf.mxu1  ;;  %v2593_v23 = vadd.f32 %v9483_v34, %v7391_v53  ;;  %v4946_v34 = vmax.f32 %v2591_v11, 0.0 }
 0x482   :  { %v9491_v56 = vpop.f32.mrf.mxu0  ;;  %v3906_v15 = vadd.f32 %v9487_v28, %v7393_v54  ;;  %v4948_v12 = vmax.f32 %v3904_v3, 0.0  ;;  %v6106_v52 = vadd.f32 %v6105_v21, %v4943_v33  ;;  %v6180_v42 = vadd.f32 %v6179_v4, %v4945_v31 }
 0x483   :  { %v9497_v20 = vpop.f32.mrf.mxu1  ;;  %v2597_v43 = vadd.f32 %v9491_v56, %v7385_v49  ;;  %v4947_v28 = vmax.f32 %v2593_v23, 0.0  ;;  %v6143_v56 = vadd.f32 %v6142_v22, %v4944_v38  ;;  %v6070_v46 = vadd.f32 %v6069_v7, %v4946_v34 }
 0x484   :  { %v9503_v48 = vpop.f32.mrf.mxu0  ;;  %v3910_v58 = vadd.f32 %v9497_v20, %v7387_v50  ;;  %v4949_v2 = vmax.f32 %v3906_v15, 0.0 }
 0x485   :  { %v9507_v45 = vpop.f32.mrf.mxu1  ;;  %v2599_v0 = vadd.f32 %v9503_v48, %v7391_v53  ;;  %v4950_v62 = vmax.f32 %v2597_v43, 0.0  ;;  %v6144_v47 = vadd.f32 %v6143_v56, %v4948_v12  ;;  %v6107_v27 = vadd.f32 %v6106_v52, %v4947_v28 }
 0x486   :  { %v9511_v14 = vpop.f32.mrf.mxu0  ;;  %v3912_v57 = vadd.f32 %v9507_v45, %v7393_v54  ;;  %v4952_v45 = vmax.f32 %v3910_v58, 0.0  ;;  %v6181_v11 = vadd.f32 %v6180_v42, %v4949_v2 }
 0x487   :  { %v9515_v29 = vpop.f32.mrf.mxu1  ;;  %v2601_v17 = vadd.f32 %v9511_v14, %v7385_v49  ;;  %v4951_v14 = vmax.f32 %v2599_v0, 0.0  ;;  %v6071_v19 = vadd.f32 %v6070_v46, %v4950_v62 }
 0x488   :  { %v9519_v40 = vpop.f32.mrf.mxu0  ;;  %v3914_v60 = vadd.f32 %v9515_v29, %v7387_v50  ;;  %v4953_v35 = vmax.f32 %v3912_v57, 0.0  ;;  %v6145_v38 = vadd.f32 %v6144_v47, %v4952_v45 }
 0x489   :  { %v9525_v18 = vpop.f32.mrf.mxu1  ;;  %v2603_v36 = vadd.f32 %v9519_v40, %v7391_v53  ;;  %v4954_v3 = vmax.f32 %v2601_v17, 0.0 }
 0x48a   :  { %v9531_v30 = vpop.f32.mrf.mxu0  ;;  %v3916_v26 = vadd.f32 %v9525_v18, %v7393_v54  ;;  %v4956_v16 = vmax.f32 %v3914_v60, 0.0  ;;  %v6182_v31 = vadd.f32 %v6181_v11, %v4953_v35 }
 0x48b   :  { %v9535_v59 = vpop.f32.mrf.mxu1  ;;  %v2607_v29 = vadd.f32 %v9531_v30, %v7385_v49  ;;  %v4955_v23 = vmax.f32 %v2603_v36, 0.0  ;;  %v6072_v34 = vadd.f32 %v6071_v19, %v4954_v3 }
 0x48c   :  { %v9539_v51 = vpop.f32.mrf.mxu0  ;;  %v3920_v40 = vadd.f32 %v9535_v59, %v7387_v50  ;;  %v4957_v15 = vmax.f32 %v3916_v26, 0.0  ;;  %v6108_v59 = vadd.f32 %v6107_v27, %v4951_v14  ;;  %v6146_v12 = vadd.f32 %v6145_v38, %v4956_v16 }
 0x48d   :  { %v9543_v1 = vpop.f32.mrf.mxu1  ;;  %v2609_v18 = vadd.f32 %v9539_v51, %v7391_v53  ;;  %v4958_v43 = vmax.f32 %v2607_v29, 0.0 }
 0x48e   :  { %v9547_v44 = vpop.f32.mrf.mxu0  ;;  %v3922_v25 = vadd.f32 %v9543_v1, %v7393_v54  ;;  %v4960_v1 = vmax.f32 %v3920_v40, 0.0  ;;  %v6109_v28 = vadd.f32 %v6108_v59, %v4955_v23  ;;  %v6183_v56 = vadd.f32 %v6182_v31, %v4957_v15 }
 0x48f   :  { %v9553_v9 = vpop.f32.mrf.mxu1  ;;  %v2611_v30 = vadd.f32 %v9547_v44, %v7385_v49  ;;  %v4959_v44 = vmax.f32 %v2609_v18, 0.0  ;;  %v6073_v52 = vadd.f32 %v6072_v34, %v4958_v43 }
 0x490   :  { %v9559_v61 = vpop.f32.mrf.mxu0  ;;  %v3924_v21 = vadd.f32 %v9553_v9, %v7387_v50  ;;  %v4961_v0 = vmax.f32 %v3922_v25, 0.0  ;;  %v6147_v46 = vadd.f32 %v6146_v12, %v4960_v1 }
 0x491   :  { %v9563_v39 = vpop.f32.mrf.mxu1  ;;  %v2613_v4 = vadd.f32 %v9559_v61, %v7391_v53  ;;  %v4962_v2 = vmax.f32 %v2611_v30, 0.0  ;;  %v6110_v27 = vadd.f32 %v6109_v28, %v4959_v44 }
 0x492   :  { %v9567_v41 = vpop.f32.mrf.mxu0  ;;  %v3926_v58 = vadd.f32 %v9563_v39, %v7393_v54  ;;  %v4964_v17 = vmax.f32 %v3924_v21, 0.0  ;;  %v6184_v14 = vadd.f32 %v6183_v56, %v4961_v0 }
 0x493   :  { %v9571_v37 = vpop.f32.mrf.mxu1  ;;  %v2617_v9 = vadd.f32 %v9567_v41, %v7385_v49  ;;  %v4963_v42 = vmax.f32 %v2613_v4, 0.0  ;;  %v6074_v11 = vadd.f32 %v6073_v52, %v4962_v2 }
 0x494   :  { %v9575_v5 = vpop.f32.mrf.mxu0  ;;  %v3930_v61 = vadd.f32 %v9571_v37, %v7387_v50  ;;  %v4965_v47 = vmax.f32 %v3926_v58, 0.0  ;;  %v6148_v3 = vadd.f32 %v6147_v46, %v4964_v17 }
 0x495   :  { %v3931_v6 = vpop.f32.mrf.mxu1  ;;  %v2619_v39 = vadd.f32 %v9575_v5, %v7391_v53  ;;  %v4966_v35 = vmax.f32 %v2617_v9, 0.0  ;;  %v6111_v40 = vadd.f32 %v6110_v27, %v4963_v42 }
 0x496   :  { %v2620_v20 = vpop.f32.mrf.mxu0  ;;  %v3932_v62 = vadd.f32 %v3931_v6, %v7393_v54  ;;  %v4968_v16 = vmax.f32 %v3930_v61, 0.0 }
 0x497   :  { %v3933_v48 = vpop.f32.mrf.mxu1  ;;  %v2621_v41 = vadd.f32 %v2620_v20, %v7385_v49  ;;  %v4967_v19 = vmax.f32 %v2619_v39, 0.0 }
 0x498   :  { %v2622_v24 = vpop.f32.mrf.mxu0  ;;  %v3934_v45 = vadd.f32 %v3933_v48, %v7387_v50  ;;  %v4969_v23 = vmax.f32 %v3932_v62, 0.0  ;;  %v6185_v48 = vadd.f32 %v6184_v14, %v4965_v47  ;;  %v6149_v43 = vadd.f32 %v6148_v3, %v4968_v16 }
 0x499   :  { %v3935_v8 = vpop.f32.mrf.mxu1  ;;  %v2623_v37 = vadd.f32 %v2622_v24, %v7391_v53  ;;  %v4970_v25 = vmax.f32 %v2621_v41, 0.0  ;;  %v6075_v24 = vadd.f32 %v6074_v11, %v4966_v35  ;;  %v6112_v1 = vadd.f32 %v6111_v40, %v4967_v19 }
 0x49a   :  { %v2626_v10 = vpop.f32.mrf.mxu0  ;;  %v3936_v5 = vadd.f32 %v3935_v8, %v7393_v54  ;;  %v4972_v38 = vmax.f32 %v3934_v45, 0.0  ;;  %v6186_v58 = vadd.f32 %v6185_v48, %v4969_v23 }
 0x49b   :  { %v3939_v22 = vpop.f32.mrf.mxu1  ;;  %v2627_v20 = vadd.f32 %v2626_v10, %v7385_v49  ;;  %v4971_v21 = vmax.f32 %v2623_v37, 0.0  ;;  %v6076_v0 = vadd.f32 %v6075_v24, %v4970_v25 }
 0x49c   :  { %v2628_v33 = vpop.f32.mrf.mxu0  ;;  %v3940_v15 = vadd.f32 %v3939_v22, %v7387_v50  ;;  %v4973_v4 = vmax.f32 %v3936_v5, 0.0  ;;  %v6150_v9 = vadd.f32 %v6149_v43, %v4972_v38 }
 0x49d   :  { %v3941_v51 = vpop.f32.mrf.mxu1  ;;  %v2629_v59 = vadd.f32 %v2628_v33, %v7391_v53  ;;  %v4974_v28 = vmax.f32 %v2627_v20, 0.0  ;;  %v6113_v2 = vadd.f32 %v6112_v1, %v4971_v21 }
 0x49e   :  { %v2630_v7 = vpop.f32.mrf.mxu0  ;;  %v3942_v31 = vadd.f32 %v3941_v51, %v7393_v54  ;;  %v4976_v56 = vmax.f32 %v3940_v15, 0.0 }
 0x49f   :  { %v3943_v57 = vpop.f32.mrf.mxu1  ;;  %v2631_v34 = vadd.f32 %v2630_v7, %v7385_v49  ;;  %v4975_v17 = vmax.f32 %v2629_v59, 0.0 }
 0x4a0   :  { %v2632_v60 = vpop.f32.mrf.mxu0  ;;  %v3944_v10 = vadd.f32 %v3943_v57, %v7387_v50  ;;  %v4977_v61 = vmax.f32 %v3942_v31, 0.0  ;;  %v6187_v57 = vadd.f32 %v6186_v58, %v4973_v4  ;;  %v6151_v27 = vadd.f32 %v6150_v9, %v4976_v56 }
 0x4a1   :  { %v3945_v36 = vpop.f32.mrf.mxu1  ;;  %v2633_v22 = vadd.f32 %v2632_v60, %v7391_v53  ;;  %v4978_v42 = vmax.f32 %v2631_v34, 0.0  ;;  %v6077_v60 = vadd.f32 %v6076_v0, %v4974_v28  ;;  %v6114_v11 = vadd.f32 %v6113_v2, %v4975_v17 }
 0x4a2   :  { %v2636_v26 = vpop.f32.mrf.mxu0  ;;  %v3946_v33 = vadd.f32 %v3945_v36, %v7393_v54  ;;  %v4980_v39 = vmax.f32 %v3944_v10, 0.0  ;;  %v6188_v3 = vadd.f32 %v6187_v57, %v4977_v61 }
 0x4a3   :  { %v3949_v29 = vpop.f32.mrf.mxu1  ;;  %v2637_v7 = vadd.f32 %v2636_v26, %v7385_v49  ;;  %v4979_v47 = vmax.f32 %v2633_v22, 0.0  ;;  %v6078_v40 = vadd.f32 %v6077_v60, %v4978_v42 }
 0x4a4   :  { %v2638_v6 = vpop.f32.mrf.mxu0  ;;  %v3950_v62 = vadd.f32 %v3949_v29, %v7387_v50  ;;  %v4981_v14 = vmax.f32 %v3946_v33, 0.0  ;;  %v6152_v19 = vadd.f32 %v6151_v27, %v4980_v39 }
 0x4a5   :  { %v3951_v18 = vpop.f32.mrf.mxu1  ;;  %v2639_v41 = vadd.f32 %v2638_v6, %v7391_v53  ;;  %v4982_v16 = vmax.f32 %v2637_v7, 0.0 }
 0x4a6   :  { %v2640_v30 = vpop.f32.mrf.mxu0  ;;  %v3952_v45 = vadd.f32 %v3951_v18, %v7393_v54  ;;  %v4984_v23 = vmax.f32 %v3950_v62, 0.0  ;;  %v6115_v18 = vadd.f32 %v6114_v11, %v4979_v47 }
 0x4a7   :  { %v3953_v8 = vpop.f32.mrf.mxu1  ;;  %v2641_v35 = vadd.f32 %v2640_v30, %v7385_v49  ;;  %v4983_v48 = vmax.f32 %v2639_v41, 0.0  ;;  %v6189_v30 = vadd.f32 %v6188_v3, %v4981_v14 }
 0x4a8   :  { %v2642_v12 = vpop.f32.mrf.mxu0  ;;  %v3954_v26 = vadd.f32 %v3953_v8, %v7387_v50  ;;  %v4985_v25 = vmax.f32 %v3952_v45, 0.0  ;;  %v6079_v8 = vadd.f32 %v6078_v40, %v4982_v16 }
 0x4a9   :  { %v3955_v44 = vpop.f32.mrf.mxu1  ;;  %v2643_v29 = vadd.f32 %v2642_v12, %v7391_v53  ;;  %v4986_v24 = vmax.f32 %v2641_v35, 0.0  ;;  %v6153_v12 = vadd.f32 %v6152_v19, %v4984_v23 }
 0x4aa   :  { %v2646_v51 = vpop.f32.mrf.mxu0  ;;  %v3956_v6 = vadd.f32 %v3955_v44, %v7393_v54  ;;  %v4988_v21 = vmax.f32 %v3954_v26, 0.0  ;;  %v6116_v44 = vadd.f32 %v6115_v18, %v4983_v48  ;;  %v6190_v0 = vadd.f32 %v6189_v30, %v4985_v25 }
 0x4ab   :  { %v3959_v52 = vpop.f32.mrf.mxu1  ;;  %v2647_v38 = vadd.f32 %v2646_v51, %v7385_v49  ;;  %v4987_v43 = vmax.f32 %v2643_v29, 0.0  ;;  %v6080_v51 = vadd.f32 %v6079_v8, %v4986_v24 }
 0x4ac   :  { %v2648_v46 = vpop.f32.mrf.mxu0  ;;  %v3960_v59 = vadd.f32 %v3959_v52, %v7387_v50  ;;  %v4989_v1 = vmax.f32 %v3956_v6, 0.0  ;;  %v6154_v2 = vadd.f32 %v6153_v12, %v4988_v21 }
 0x4ad   :  { %v3961_v36 = vpop.f32.mrf.mxu1  ;;  %v2649_v4 = vadd.f32 %v2648_v46, %v7391_v53  ;;  %v4990_v9 = vmax.f32 %v2647_v38, 0.0  ;;  %v6117_v52 = vadd.f32 %v6116_v44, %v4987_v43 }
 0x4ae   :  { %v2650_v37 = vpop.f32.mrf.mxu0  ;;  %v3962_v34 = vadd.f32 %v3961_v36, %v7393_v54  ;;  %v4992_v17 = vmax.f32 %v3960_v59, 0.0  ;;  %v6191_v46 = vadd.f32 %v6190_v0, %v4989_v1 }
 0x4af   :  { %v3963_v5 = vpop.f32.mrf.mxu1  ;;  %v2651_v58 = vadd.f32 %v2650_v37, %v7385_v49  ;;  %v4991_v57 = vmax.f32 %v2649_v4, 0.0  ;;  %v6081_v36 = vadd.f32 %v6080_v51, %v4990_v9 }
 0x4b0   :  { %v2652_v20 = vpop.f32.mrf.mxu0  ;;  %v3964_v28 = vadd.f32 %v3963_v5, %v7387_v50  ;;  %v4993_v42 = vmax.f32 %v3962_v34, 0.0  ;;  %v6155_v37 = vadd.f32 %v6154_v2, %v4992_v17 }
 0x4b1   :  { %v3965_v15 = vpop.f32.mrf.mxu1  ;;  %v2653_v56 = vadd.f32 %v2652_v20, %v7391_v53  ;;  %v4994_v60 = vmax.f32 %v2651_v58, 0.0  ;;  %v6118_v5 = vadd.f32 %v6117_v52, %v4991_v57 }
 0x4b2   :  { %v2656_v31 = vpop.f32.mrf.mxu0  ;;  %v3966_v61 = vadd.f32 %v3965_v15, %v7393_v54  ;;  %v4996_v47 = vmax.f32 %v3964_v28, 0.0  ;;  %v6192_v40 = vadd.f32 %v6191_v46, %v4993_v42 }
 0x4b3   :  { %v3969_v10 = vpop.f32.mrf.mxu1  ;;  %v2657_v39 = vadd.f32 %v2656_v31, %v7385_v49  ;;  %v4995_v27 = vmax.f32 %v2653_v56, 0.0  ;;  %v6082_v20 = vadd.f32 %v6081_v36, %v4994_v60 }
 0x4b4   :  { %v2658_v22 = vpop.f32.mrf.mxu0  ;;  %v3970_v41 = vadd.f32 %v3969_v10, %v7387_v50  ;;  %v4997_v11 = vmax.f32 %v3966_v61, 0.0  ;;  %v6156_v18 = vadd.f32 %v6155_v37, %v4996_v47 }
 0x4b5   :  { %v3971_v33 = vpop.f32.mrf.mxu1  ;;  %v2659_v14 = vadd.f32 %v2658_v22, %v7391_v53  ;;  %v4998_v19 = vmax.f32 %v2657_v39, 0.0  ;;  %v6119_v15 = vadd.f32 %v6118_v5, %v4995_v27 }
 0x4b6   :  { %v2660_v7 = vpop.f32.mrf.mxu0  ;;  %v3972_v35 = vadd.f32 %v3971_v33, %v7393_v54  ;;  %v5000_v48 = vmax.f32 %v3970_v41, 0.0  ;;  %v6193_v31 = vadd.f32 %v6192_v40, %v4997_v11 }
 0x4b7   :  { %v3973_v62 = vpop.f32.mrf.mxu1  ;;  %v2661_v3 = vadd.f32 %v2660_v7, %v7385_v49  ;;  %v4999_v30 = vmax.f32 %v2659_v14, 0.0  ;;  %v6083_v10 = vadd.f32 %v6082_v20, %v4998_v19 }
 0x4b8   :  { %v2662_v45 = vpop.f32.mrf.mxu0  ;;  %v3974_v16 = vadd.f32 %v3973_v62, %v7387_v50  ;;  %v5001_v24 = vmax.f32 %v3972_v35, 0.0  ;;  %v6157_v22 = vadd.f32 %v6156_v18, %v5000_v48 }
 0x4b9   :  { %v3975_v26 = vpop.f32.mrf.mxu1  ;;  %v2663_v23 = vadd.f32 %v2662_v45, %v7391_v53  ;;  %v5002_v8 = vmax.f32 %v2661_v3, 0.0  ;;  %v6120_v33 = vadd.f32 %v6119_v15, %v4999_v30 }
 0x4ba   :  { %v2666_v29 = vpop.f32.mrf.mxu0  ;;  %v3976_v25 = vadd.f32 %v3975_v26, %v7393_v54  ;;  %v5004_v43 = vmax.f32 %v3974_v16, 0.0  ;;  %v6194_v51 = vadd.f32 %v6193_v31, %v5001_v24 }
 0x4bb   :  { %v3979_v6 = vpop.f32.mrf.mxu1  ;;  %v2667_v21 = vadd.f32 %v2666_v29, %v7385_v49  ;;  %v5003_v12 = vmax.f32 %v2663_v23, 0.0  ;;  %v6084_v7 = vadd.f32 %v6083_v10, %v5002_v8 }
 0x4bc   :  { %v2668_v38 = vpop.f32.mrf.mxu0  ;;  %v3980_v4 = vadd.f32 %v3979_v6, %v7387_v50  ;;  %v5005_v44 = vmax.f32 %v3976_v25, 0.0  ;;  %v6158_v52 = vadd.f32 %v6157_v22, %v5004_v43 }
 0x4bd   :  { %v3981_v59 = vpop.f32.mrf.mxu1  ;;  %v2669_v1 = vadd.f32 %v2668_v38, %v7391_v53  ;;  %v5006_v2 = vmax.f32 %v2667_v21, 0.0  ;;  %v6121_v62 = vadd.f32 %v6120_v33, %v5003_v12 }
 0x4be   :  { %v2670_v34 = vpop.f32.mrf.mxu0  ;;  %v3982_v0 = vadd.f32 %v3981_v59, %v7393_v54  ;;  %v5008_v57 = vmax.f32 %v3980_v4, 0.0  ;;  %v6195_v45 = vadd.f32 %v6194_v51, %v5005_v44 }
 0x4bf   :  { %v2671_v58 = vadd.f32 %v2670_v34, %v7385_v49  ;;  %v3983_v28 = vpop.f32.mrf.mxu1  ;;  %v5007_v46 = vmax.f32 %v2669_v1, 0.0  ;;  %v6085_v26 = vadd.f32 %v6084_v7, %v5006_v2 }
 0x4c0   :  { %v3984_v9 = vadd.f32 %v3983_v28, %v7387_v50  ;;  %v2672_v56 = vpop.f32.mrf.mxu0  ;;  %v5009_v36 = vmax.f32 %v3982_v0, 0.0  ;;  %v6159_v29 = vadd.f32 %v6158_v52, %v5008_v57 }
 0x4c1   :  { %v2673_v17 = vadd.f32 %v2672_v56, %v7391_v53  ;;  %v3985_v61 = vpop.f32.mrf.mxu1  ;;  %v5010_v60 = vmax.f32 %v2671_v58, 0.0  ;;  %v6122_v6 = vadd.f32 %v6121_v62, %v5007_v46 }
 0x4c2   :  { %v3986_v42 = vadd.f32 %v3985_v61, %v7393_v54  ;;  %v2676_v39 = vpop.f32.mrf.mxu0  ;;  %v5012_v27 = vmax.f32 %v3984_v9, 0.0  ;;  %v6196_v38 = vadd.f32 %v6195_v45, %v5009_v36 }
 0x4c3   :  { %v2677_v47 = vadd.f32 %v2676_v39, %v7385_v49  ;;  %v3989_v41 = vpop.f32.mrf.mxu1  ;;  %v5011_v37 = vmax.f32 %v2673_v17, 0.0  ;;  %v6086_v20 = vadd.f32 %v6085_v26, %v5010_v60 }
 0x4c4   :  { %v3990_v14 = vadd.f32 %v3989_v41, %v7387_v50  ;;  %v2678_v35 = vpop.f32.mrf.mxu0  ;;  %v5013_v5 = vmax.f32 %v3986_v42, 0.0  ;;  %v6160_v15 = vadd.f32 %v6159_v29, %v5012_v27 }
 0x4c5   :  { %v5014_v11 = vmax.f32 %v2677_v47, 0.0  ;;  %v2679_v3 = vadd.f32 %v2678_v35, %v7391_v53  ;;  %v3991_v16 = vpop.f32.mrf.mxu1  ;;  %v6123_v59 = vadd.f32 %v6122_v6, %v5011_v37 }
 0x4c6   :  { %v5016_v40 = vmax.f32 %v3990_v14, 0.0  ;;  %v3992_v19 = vadd.f32 %v3991_v16, %v7393_v54  ;;  %v2680_v23 = vpop.f32.mrf.mxu0  ;;  %v6197_v34 = vadd.f32 %v6196_v38, %v5013_v5 }
 0x4c7   :  { %v5015_v18 = vmax.f32 %v2679_v3, 0.0  ;;  %v2681_v48 = vadd.f32 %v2680_v23, %v7385_v49  ;;  %v3993_v25 = vpop.f32.mrf.mxu1  ;;  %v6087_v31 = vadd.f32 %v6086_v20, %v5014_v11  ;;  %v6918_v20 = vld [vmem:[%s9678_s4] ss:$0 sm:$0xff] }
 0x4c8   :  { %v5017_v30 = vmax.f32 %v3992_v19, 0.0  ;;  %v3994_v24 = vadd.f32 %v3993_v25, %v7387_v50  ;;  %v2682_v21 = vpop.f32.mrf.mxu0  ;;  %v6161_v10 = vadd.f32 %v6160_v15, %v5016_v40 }
 0x4c9   :  { %v5018_v8 = vmax.f32 %v2681_v48, 0.0  ;;  %v2683_v43 = vadd.f32 %v2682_v21, %v7391_v53  ;;  %v3995_v4 = vpop.f32.mrf.mxu1  ;;  %v6124_v58 = vadd.f32 %v6123_v59, %v5015_v18 }
 0x4ca   :  { %v5020_v12 = vmax.f32 %v3994_v24, 0.0  ;;  %v3996_v1 = vadd.f32 %v3995_v4, %v7393_v54  ;;  %v6198_v22 = vadd.f32 %v6197_v34, %v5017_v30 }
 0x4cb   :  { %v6088_v49 = vadd.f32 %v6087_v31, %v5018_v8  ;;  %v5019_v28 = vmax.f32 %v2683_v43, 0.0 }
 0x4cc   :  { %v6162_v44 = vadd.f32 %v6161_v10, %v5020_v12  ;;  %v5021_v0 = vmax.f32 %v3996_v1, 0.0 }
 0x4cd   :  { %v6089_v9 = vrot.slane %v6088_v49, 4  ;;  %v6125_v50 = vadd.f32 %v6124_v58, %v5019_v28 }
 0x4ce   :  { %v6163_v56 = vrot.slane %v6162_v44, 4  ;;  %v6199_v33 = vadd.f32 %v6198_v22, %v5021_v0 }
 0x4cf   :  { %v6090_v51 = vadd.f32 %v6089_v9, %v6088_v49  ;;  %v6126_v2 = vrot.slane %v6125_v50, 4 }
 0x4d0   :  { %v6164_v17 = vadd.f32 %v6163_v56, %v6162_v44  ;;  %v6200_v53 = vrot.slane %v6199_v33, 4 }
 0x4d1   :  { %v6091_v61 = vrot.slane %v6090_v51, 2  ;;  %v6127_v7 = vadd.f32 %v6126_v2, %v6125_v50 }
 0x4d2   :  { %v6165_v52 = vrot.slane %v6164_v17, 2  ;;  %v6201_v57 = vadd.f32 %v6200_v53, %v6199_v33 }
 0x4d3   :  { %v6092_v42 = vadd.f32 %v6091_v61, %v6090_v51  ;;  %v6128_v54 = vrot.slane %v6127_v7, 2 }
 0x4d4   :  { %v6166_v39 = vadd.f32 %v6165_v52, %v6164_v17  ;;  %v6202_v62 = vrot.slane %v6201_v57, 2 }
 0x4d5   :  { %v6093_v46 = vrot.slane %v6092_v42, 1  ;;  %v6129_v60 = vadd.f32 %v6128_v54, %v6127_v7 }
 0x4d6   :  { %v6167_v47 = vrot.slane %v6166_v39, 1  ;;  %v6203_v41 = vadd.f32 %v6202_v62, %v6201_v57 }
 0x4d7   :  { %v6094_v45 = vadd.f32 %v6093_v46, %v6092_v42  ;;  %v6130_v36 = vrot.slane %v6129_v60, 1 }
 0x4d8   :  { %v6168_v27 = vadd.f32 %v6167_v47, %v6166_v39  ;;  %v6204_v14 = vrot.slane %v6203_v41, 1 }
 0x4d9   :  { %v6235_v35 = vmul.f32 0.00390625, %v6094_v45  ;;  %v6131_v26 = vadd.f32 %v6130_v36, %v6129_v60 }
 0x4da   :  { %v6237_v37 = vmul.f32 0.00390625, %v6168_v27  ;;  %v6205_v11 = vadd.f32 %v6204_v14, %v6203_v41 }
 0x4db   :  { %v6236_v3 = vmul.f32 0.00390625, %v6131_v26  ;;  %v6355_v16 = vsel %vm6354_vm7, %v6235_v35, %v9367_v13 }
 0x4dc   :  { %v6238_v29 = vmul.f32 0.00390625, %v6205_v11  ;;  %v6369_v5 = vsel %vm6354_vm7, %v6237_v37, %v9377_v63 }
 0x4dd   :  { %v6362_v40 = vsel %vm6354_vm7, %v6236_v3, %v9360_v32 }
 0x4de   :  { %6445 = vmatprep.mubr.f32.mxu0 %v6362_v40  ;;  %v6376_v19 = vsel %vm6354_vm7, %v6238_v29, %v9372_v55 }
 0x4df   :  { %6515 = vmatprep.mubr.f32.mxu1 %v6376_v19  ;;  %6446 = vmatmul.mubr.f32.vlgmr.msra.gmra.mxu0 %v6355_v16 }
 0x4e0   :  { %6516 = vmatmul.mubr.f32.vlgmr.msra.gmra.mxu1 %v6369_v5 }
 0x59f   :  { %v6951_v23 = vpop.f32.mrf.mxu0 }
 0x5a0   :  { %v6986_v6 = vpop.f32.mrf.mxu1 }
 0x5a1   :  { %v6952_v18 = vpop.f32.mrf.mxu0 }
 0x5a2   :  { %v6953_v48 = vadd.f32 %v6952_v18, %v6951_v23  ;;  %v6987_v13 = vpop.f32.mrf.mxu1 }
 0x5a3   :  { %v6988_v38 = vadd.f32 %v6987_v13, %v6986_v6 }
 0x5a4   :  { %v6448_v25 = vadd.f32 %v6953_v48, %v6918_v20 }
 0x5a6   :  { %v6518_v63 = vadd.f32 %v6988_v38, %v6448_v25 }
 0x5a8   :  { %6521 = vst [vmem:[%s9679_s5] sm:$0xff] %v6518_v63 }

</bundles_post_ra>
